<compile_context>
chip_gen: v5e
topology: v5e:2x2
jax: 0.10.0
libtpu: 0.0.40
codegen_flags: <defaults>
</compile_context>

<pallas_src>
import functools

import jax
import jax.numpy as jnp
from jax.experimental import pallas as pl
from jax.experimental.pallas import tpu as pltpu


def _round_up(x, m):
    return (x + m - 1) // m * m


def _pick_tile(m, limit):
    """Largest tile <= limit that is either the full dim or a multiple-of-8
    divisor of m (no padded rows); falls back to `limit` (padded last tile)."""
    if m <= limit:
        return m
    start = limit - (limit % 8)
    for t in range(start, 7, -8):
        if m % t == 0:
            return t
    return limit


# ----------------------- conv matmul kernel (tiled over M) ------------------

def _mm_bias_relu_kernel(x_ref, w_ref, b_ref, o_ref, *, relu):
    # MXU in bf16, f32 accumulate; bias/ReLU epilogue in f32; cast on store.
    y = jnp.dot(x_ref[...].astype(jnp.bfloat16), w_ref[...],
                preferred_element_type=jnp.float32)
    y = y + b_ref[...]                     # (1, N) broadcast over rows
    if relu:
        y = jnp.maximum(y, 0.0)
    o_ref[...] = y.astype(o_ref.dtype)


def pallas_matmul_bias(x, w, b, *, relu, out_dtype, tile_m=512):
    """y = relu(x @ w + b). w: (K, N) bf16, b: (1, N) f32, N % 128 == 0."""
    M, K = x.shape
    N = w.shape[1]
    tm = _pick_tile(M, tile_m)             # divisor tile: no padded rows
    grid = (pl.cdiv(M, tm),)
    cost = pl.CostEstimate(
        flops=2 * M * K * N, transcendentals=0,
        bytes_accessed=(M * K * x.dtype.itemsize + K * N * 2
                        + M * N * jnp.dtype(out_dtype).itemsize))
    return pl.pallas_call(
        functools.partial(_mm_bias_relu_kernel, relu=relu),
        out_shape=jax.ShapeDtypeStruct((M, N), out_dtype),
        grid=grid,
        in_specs=[
            pl.BlockSpec((tm, K), lambda i: (i, 0)),
            # Weight / bias never change block index -> single buffer.
            pl.BlockSpec((K, N), lambda i: (0, 0), pipeline_mode=pl.Buffered(1)),
            pl.BlockSpec((1, N), lambda i: (0, 0), pipeline_mode=pl.Buffered(1)),
        ],
        out_specs=pl.BlockSpec((tm, N), lambda i: (i, 0)),
        compiler_params=pltpu.CompilerParams(
            dimension_semantics=("parallel",),
            allow_input_fusion=[True, False, False],   # fuse im2col into input DMA
            vmem_limit_bytes=48 * 1024 * 1024),
        cost_estimate=cost,
    )(x, w, b)


# ------------- fused FC stack + dueling heads (single pallas_call) ----------

def _fused_fc_kernel(x_ref, w1_ref, b1_ref, w2_ref, b2_ref,
                     w3_ref, b3_ref, w4_ref, b4_ref, q_ref, *, action_dim):
    h = x_ref[...].astype(jnp.bfloat16)
    h = jnp.maximum(jnp.dot(h, w1_ref[...],
                            preferred_element_type=jnp.float32) + b1_ref[...],
                    0.0)                                               # fc1
    h = jnp.maximum(jnp.dot(h.astype(jnp.bfloat16), w2_ref[...],
                            preferred_element_type=jnp.float32) + b2_ref[...],
                    0.0)                                               # fc2
    h = jnp.maximum(jnp.dot(h.astype(jnp.bfloat16), w3_ref[...],
                            preferred_element_type=jnp.float32) + b3_ref[...],
                    0.0)                                               # [a1 | v1]
    av = jnp.dot(h.astype(jnp.bfloat16), w4_ref[...],
                 preferred_element_type=jnp.float32) + b4_ref[...]     # (tb, 128) lane-padded
    a = av[:, :action_dim]
    v = av[:, action_dim:action_dim + 1]
    # Lane-dense store: q = v + (a - mean(a)) lives in the first `action_dim`
    # lanes; the padded lanes hold (v + av - mean) junk and are sliced away
    # by the caller, so stores are full unmasked vst.
    q_ref[...] = (v + (av - jnp.mean(a, axis=-1, keepdims=True))).astype(q_ref.dtype)


def pallas_fused_fc(x, p, *, action_dim, tile_b=512):
    B, D = x.shape
    tb = _pick_tile(B, tile_b)
    grid = (pl.cdiv(B, tb),)
    NP = p["h2_w"].shape[1]                 # 128: lane-dense head width
    wcols = D * 512 + 512 * 256 + 256 * 256 + 256 * NP
    cost = pl.CostEstimate(
        flops=2 * B * wcols, transcendentals=0,
        bytes_accessed=B * D * x.dtype.itemsize + 2 * wcols + B * NP * 4)

    def resident(shape):
        # Constant index_map -> weights stay in VMEM, single-buffered.
        return pl.BlockSpec(shape, lambda i: (0, 0), pipeline_mode=pl.Buffered(1))

    out = pl.pallas_call(
        functools.partial(_fused_fc_kernel, action_dim=action_dim),
        out_shape=jax.ShapeDtypeStruct((B, NP), jnp.float32),
        grid=grid,
        in_specs=[
            pl.BlockSpec((tb, D), lambda i: (i, 0)),
            resident((D, 512)), resident((1, 512)),
            resident((512, 256)), resident((1, 256)),
            resident((256, 256)), resident((1, 256)),
            resident((256, NP)), resident((1, NP)),
        ],
        out_specs=pl.BlockSpec((tb, NP), lambda i: (i, 0)),
        compiler_params=pltpu.CompilerParams(
            dimension_semantics=("parallel",),
            vmem_limit_bytes=48 * 1024 * 1024),
        cost_estimate=cost,
    )(x, p["fc1_w"], p["fc1_b"], p["fc2_w"], p["fc2_b"],
      p["h1_w"], p["h1_b"], p["h2_w"], p["h2_b"])
    return out[:, :action_dim]              # drop padded lanes


# ----------------------------- conv-as-matmul glue --------------------------

def im2col_nhwc(x, k, s):
    """x: (N, H, W, C) -> (N*Ho*Wo, k*k*C); feature order (kh, kw, c)."""
    N, H, W, C = x.shape
    Ho = (H - k) // s + 1
    Wo = (W - k) // s + 1
    patches = []
    for di in range(k):
        for dj in range(k):
            patches.append(x[:, di:di + s * Ho:s, dj:dj + s * Wo:s, :])
    p = jnp.stack(patches, axis=3)                  # (N, Ho, Wo, k*k, C)
    return p.reshape(N * Ho * Wo, k * k * C), Ho, Wo


def conv2d_relu(x, w, b, *, c_in, k, stride):
    """x: NHWC bf16, valid channels in [..., :c_in]; w: prepared (K, Np)."""
    N = x.shape[0]
    cols, Ho, Wo = im2col_nhwc(x[..., :c_in], k, stride)
    # No K padding: block last dim == full array dim is legal (e.g. K=576).
    y = pallas_matmul_bias(cols, w, b, relu=True, out_dtype=jnp.bfloat16)
    return y.reshape(N, Ho, Wo, w.shape[1])         # NHWC, channels 128-padded


# ----------------------------- parameters -----------------------------------

def _uniform(key, shape, fan_in):
    bound = 1.0 / float(fan_in) ** 0.5
    return jax.random.uniform(key, shape, jnp.float32, -bound, bound)


def init_params(key, action_dim):
    """Parameters in the PyTorch layout of the reference DQN module."""
    ks = jax.random.split(key, 18)
    p = {}
    p["c1_w"] = _uniform(ks[0], (32, 4, 8, 8), 4 * 8 * 8)
    p["c1_b"] = _uniform(ks[1], (32,), 4 * 8 * 8)
    p["c2_w"] = _uniform(ks[2], (64, 32, 4, 4), 32 * 4 * 4)
    p["c2_b"] = _uniform(ks[3], (64,), 32 * 4 * 4)
    p["c3_w"] = _uniform(ks[4], (128, 64, 3, 3), 64 * 3 * 3)
    p["c3_b"] = _uniform(ks[5], (128,), 64 * 3 * 3)
    # Linears stored transposed as (in, out); fc1 rows in NCHW-flatten order.
    p["fc1_w"] = _uniform(ks[6], (2048, 512), 2048)
    p["fc1_b"] = _uniform(ks[7], (512,), 2048)
    p["fc2_w"] = _uniform(ks[8], (512, 256), 512)
    p["fc2_b"] = _uniform(ks[9], (256,), 512)
    p["a1_w"] = _uniform(ks[10], (256, 128), 256)
    p["a1_b"] = _uniform(ks[11], (128,), 256)
    p["a2_w"] = _uniform(ks[12], (128, action_dim), 128)
    p["a2_b"] = _uniform(ks[13], (action_dim,), 128)
    p["v1_w"] = _uniform(ks[14], (256, 128), 256)
    p["v1_b"] = _uniform(ks[15], (128,), 256)
    p["v2_w"] = _uniform(ks[16], (128, 1), 128)
    p["v2_b"] = _uniform(ks[17], (1,), 128)
    return p


def _prep_conv(w, b):
    out_c, in_c, k, _ = w.shape
    K = in_c * k * k
    Np = _round_up(out_c, 128)
    # Feature order (kh, kw, c) to match im2col_nhwc; pad only N (lanes) to 128.
    w2 = w.transpose(2, 3, 1, 0).reshape(K, out_c)
    w2 = jnp.pad(w2, ((0, 0), (0, Np - out_c))).astype(jnp.bfloat16)
    b2 = jnp.pad(b, (0, Np - out_c)).astype(jnp.float32).reshape(1, Np)
    return w2, b2


def prepare_params(p, action_dim):
    """One-time conversion from the PyTorch layout to the kernel layout."""
    q = {}
    q["c1_w"], q["c1_b"] = _prep_conv(p["c1_w"], p["c1_b"])
    q["c2_w"], q["c2_b"] = _prep_conv(p["c2_w"], p["c2_b"])
    q["c3_w"], q["c3_b"] = _prep_conv(p["c3_w"], p["c3_b"])
    # Invariant: padded output channels (weight cols AND bias) are exactly 0,
    # so padded lanes carry ReLU(0) = 0 into the next layer.
    for name, valid in (("c1", 32), ("c2", 64), ("c3", 128)):
        assert bool(jnp.all(q[name + "_w"][:, valid:] == 0))
        assert bool(jnp.all(q[name + "_b"][:, valid:] == 0))
    # fc1: permute input rows from NCHW-flatten (PyTorch) to NHWC-flatten order.
    C3, H3, W3 = 128, 4, 4
    perm = jnp.arange(C3 * H3 * W3).reshape(C3, H3, W3).transpose(1, 2, 0).reshape(-1)
    q["fc1_w"] = p["fc1_w"][perm].astype(jnp.bfloat16)
    q["fc1_b"] = p["fc1_b"].astype(jnp.float32).reshape(1, -1)
    q["fc2_w"] = p["fc2_w"].astype(jnp.bfloat16)
    q["fc2_b"] = p["fc2_b"].astype(jnp.float32).reshape(1, -1)
    # Heads fused: level 1 columns = [a1 | v1]; level 2 block-diagonal [a2 | v2]
    # padded to 128 lane-dense output columns (q in cols [0, A), v in col A).
    A = action_dim
    NP = 128
    q["h1_w"] = jnp.concatenate([p["a1_w"], p["v1_w"]], axis=1).astype(jnp.bfloat16)
    q["h1_b"] = jnp.concatenate([p["a1_b"], p["v1_b"]]).astype(jnp.float32).reshape(1, -1)
    h2 = jnp.zeros((256, NP), jnp.float32)
    h2 = h2.at[:128, :A].set(p["a2_w"])          # a-branch hidden -> a logits
    h2 = h2.at[128:, A].set(p["v2_w"][:, 0])     # v-branch hidden -> v value
    q["h2_w"] = h2.astype(jnp.bfloat16)
    h2b = jnp.zeros((NP,), jnp.float32)
    h2b = h2b.at[:A].set(p["a2_b"])
    h2b = h2b.at[A].set(p["v2_b"][0])
    q["h2_b"] = h2b.reshape(1, -1)
    return q


# ----------------------------- forward ---------------------------------------

def dqn_forward(prep, x, *, action_dim):
    # NCHW (PyTorch interface) -> NHWC once; bf16 for MXU / DMA efficiency.
    x = jnp.transpose(x, (0, 2, 3, 1)).astype(jnp.bfloat16)
    x = conv2d_relu(x, prep["c1_w"], prep["c1_b"], c_in=4,  k=8, stride=4)  # (N,20,20,128), 32 valid
    x = conv2d_relu(x, prep["c2_w"], prep["c2_b"], c_in=32, k=4, stride=2)  # (N, 9, 9,128), 64 valid
    x = conv2d_relu(x, prep["c3_w"], prep["c3_b"], c_in=64, k=3, stride=2)  # (N, 4, 4,128), all valid
    n = x.shape[0]
    x = x.reshape(n, -1)                         # NHWC flatten -> (N, 2048)
    # fc1 -> fc2 -> [a1|v1] -> [a2|v2] -> dueling combine, all in one kernel.
    return pallas_fused_fc(x, prep, action_dim=action_dim)


if __name__ == "__main__":
    action_dim = 6
    batch = 2
    key = jax.random.PRNGKey(0)
    k_param, k_x = jax.random.split(key)
    params = init_params(k_param, action_dim)
    prep = prepare_params(params, action_dim)
    # Linear(2048, 512) after the conv stack implies 84x84 Atari frames.
    x = jax.random.normal(k_x, (batch, 4, 84, 84), jnp.float32)

    fwd = jax.jit(functools.partial(dqn_forward, action_dim=action_dim))
    q = fwd(prep, x)
    jax.block_until_ready(q)

    assert q.shape == (batch, action_dim), q.shape
    assert q.dtype == jnp.float32
    assert bool(jnp.all(jnp.isfinite(q)))
    print("KERNEL_OK")
</pallas_src>

<mosaic_0001>
module attributes {stable_mosaic.version = 11 : i64} {
  func.func @_mm_bias_relu_kernel(%arg0: i32, %arg1: memref<400x256xbf16, #tpu.memory_space<vmem>>, %arg2: memref<256x128xbf16, #tpu.memory_space<vmem>>, %arg3: memref<1x128xf32, #tpu.memory_space<vmem>>, %arg4: memref<400x128xbf16, #tpu.memory_space<vmem>>) attributes {dimension_semantics = [#tpu.dimension_semantics<parallel>], iteration_bounds = array<i64: 2>, scalar_prefetch = 0 : i64, scratch_operands = 0 : i64, tpu.core_type = #tpu.core_type<tc>, window_params = [{transform_indices = @transform_0, window_bounds = array<i64: 400, 256>}, {pipeline_mode = #tpu.pipeline_mode<synchronous>, transform_indices = @transform_1, window_bounds = array<i64: 256, 128>}, {pipeline_mode = #tpu.pipeline_mode<synchronous>, transform_indices = @transform_2, window_bounds = array<i64: 1, 128>}, {transform_indices = @transform_3, window_bounds = array<i64: 400, 128>}]} {
    %c0 = arith.constant 0 : index
    %c0_0 = arith.constant 0 : index
    %0 = vector.load %arg1[%c0, %c0_0] : memref<400x256xbf16, #tpu.memory_space<vmem>>, vector<400x256xbf16>
    %c0_1 = arith.constant 0 : index
    %c0_2 = arith.constant 0 : index
    %1 = vector.load %arg2[%c0_1, %c0_2] : memref<256x128xbf16, #tpu.memory_space<vmem>>, vector<256x128xbf16>
    %cst = arith.constant dense<0.000000e+00> : vector<400x128xf32>
    %2 = tpu.matmul %0, %1, %cst {dimension_numbers = #tpu.dot_dimension_numbers<[1], [0], [0], [1], [0, 0, 1, 1], [], []>} : vector<400x256xbf16>, vector<256x128xbf16>, vector<400x128xf32> -> vector<400x128xf32>
    %c0_3 = arith.constant 0 : index
    %c0_4 = arith.constant 0 : index
    %3 = vector.load %arg3[%c0_3, %c0_4] : memref<1x128xf32, #tpu.memory_space<vmem>>, vector<1x128xf32>
    %4 = vector.broadcast %3 : vector<1x128xf32> to vector<400x128xf32>
    %5 = arith.addf %2, %4 : vector<400x128xf32>
    %cst_5 = arith.constant 0.000000e+00 : f32
    %6 = vector.broadcast %cst_5 : f32 to vector<400x128xf32>
    %7 = arith.maximumf %5, %6 : vector<400x128xf32>
    %8 = arith.truncf %7 : vector<400x128xf32> to vector<400x128xbf16>
    %c0_6 = arith.constant 0 : index
    %c0_7 = arith.constant 0 : index
    %9 = vector.load %arg4[%c0_6, %c0_7] : memref<400x128xbf16, #tpu.memory_space<vmem>>, vector<400x128xbf16>
    tpu.vector_store %arg4[%c0_6, %c0_7], %8 {strides = array<i32>} : memref<400x128xbf16, #tpu.memory_space<vmem>>, vector<400x128xbf16>,
    return
  }
  func.func @transform_0(%arg0: i32) -> (i32, i32) {
    %c0_i32 = arith.constant 0 : i32
    %c0_i32_0 = arith.constant 0 : i32
    return %arg0, %c0_i32 : i32, i32
  }
  func.func @transform_1(%arg0: i32) -> (i32, i32) {
    %c0_i32 = arith.constant 0 : i32
    %c0_i32_0 = arith.constant 0 : i32
    %c0_i32_1 = arith.constant 0 : i32
    return %c0_i32, %c0_i32_0 : i32, i32
  }
  func.func @transform_2(%arg0: i32) -> (i32, i32) {
    %c0_i32 = arith.constant 0 : i32
    %c0_i32_0 = arith.constant 0 : i32
    %c0_i32_1 = arith.constant 0 : i32
    return %c0_i32, %c0_i32_0 : i32, i32
  }
  func.func @transform_3(%arg0: i32) -> (i32, i32) {
    %c0_i32 = arith.constant 0 : i32
    %c0_i32_0 = arith.constant 0 : i32
    return %arg0, %c0_i32 : i32, i32
  }
}

module attributes {stable_mosaic.version = 11 : i64} {
  func.func @_mm_bias_relu_kernel(%arg0: i32, %arg1: memref<162x512xbf16, #tpu.memory_space<vmem>>, %arg2: memref<512x128xbf16, #tpu.memory_space<vmem>>, %arg3: memref<1x128xf32, #tpu.memory_space<vmem>>, %arg4: memref<162x128xbf16, #tpu.memory_space<vmem>>) attributes {dimension_semantics = [#tpu.dimension_semantics<parallel>], iteration_bounds = array<i64: 1>, scalar_prefetch = 0 : i64, scratch_operands = 0 : i64, tpu.core_type = #tpu.core_type<tc>, window_params = [{transform_indices = @transform_0, window_bounds = array<i64: 162, 512>}, {pipeline_mode = #tpu.pipeline_mode<synchronous>, transform_indices = @transform_1, window_bounds = array<i64: 512, 128>}, {pipeline_mode = #tpu.pipeline_mode<synchronous>, transform_indices = @transform_2, window_bounds = array<i64: 1, 128>}, {transform_indices = @transform_3, window_bounds = array<i64: 162, 128>}]} {
    %c0 = arith.constant 0 : index
    %c0_0 = arith.constant 0 : index
    %0 = vector.load %arg1[%c0, %c0_0] : memref<162x512xbf16, #tpu.memory_space<vmem>>, vector<162x512xbf16>
    %c0_1 = arith.constant 0 : index
    %c0_2 = arith.constant 0 : index
    %1 = vector.load %arg2[%c0_1, %c0_2] : memref<512x128xbf16, #tpu.memory_space<vmem>>, vector<512x128xbf16>
    %cst = arith.constant dense<0.000000e+00> : vector<162x128xf32>
    %2 = tpu.matmul %0, %1, %cst {dimension_numbers = #tpu.dot_dimension_numbers<[1], [0], [0], [1], [0, 0, 1, 1], [], []>} : vector<162x512xbf16>, vector<512x128xbf16>, vector<162x128xf32> -> vector<162x128xf32>
    %c0_3 = arith.constant 0 : index
    %c0_4 = arith.constant 0 : index
    %3 = vector.load %arg3[%c0_3, %c0_4] : memref<1x128xf32, #tpu.memory_space<vmem>>, vector<1x128xf32>
    %4 = vector.broadcast %3 : vector<1x128xf32> to vector<162x128xf32>
    %5 = arith.addf %2, %4 : vector<162x128xf32>
    %cst_5 = arith.constant 0.000000e+00 : f32
    %6 = vector.broadcast %cst_5 : f32 to vector<162x128xf32>
    %7 = arith.maximumf %5, %6 : vector<162x128xf32>
    %8 = arith.truncf %7 : vector<162x128xf32> to vector<162x128xbf16>
    %c0_6 = arith.constant 0 : index
    %c0_7 = arith.constant 0 : index
    %9 = vector.load %arg4[%c0_6, %c0_7] : memref<162x128xbf16, #tpu.memory_space<vmem>>, vector<162x128xbf16>
    tpu.vector_store %arg4[%c0_6, %c0_7], %8 {strides = array<i32>} : memref<162x128xbf16, #tpu.memory_space<vmem>>, vector<162x128xbf16>,
    return
  }
  func.func @transform_0(%arg0: i32) -> (i32, i32) {
    %c0_i32 = arith.constant 0 : i32
    %c0_i32_0 = arith.constant 0 : i32
    return %arg0, %c0_i32 : i32, i32
  }
  func.func @transform_1(%arg0: i32) -> (i32, i32) {
    %c0_i32 = arith.constant 0 : i32
    %c0_i32_0 = arith.constant 0 : i32
    %c0_i32_1 = arith.constant 0 : i32
    return %c0_i32, %c0_i32_0 : i32, i32
  }
  func.func @transform_2(%arg0: i32) -> (i32, i32) {
    %c0_i32 = arith.constant 0 : i32
    %c0_i32_0 = arith.constant 0 : i32
    %c0_i32_1 = arith.constant 0 : i32
    return %c0_i32, %c0_i32_0 : i32, i32
  }
  func.func @transform_3(%arg0: i32) -> (i32, i32) {
    %c0_i32 = arith.constant 0 : i32
    %c0_i32_0 = arith.constant 0 : i32
    return %arg0, %c0_i32 : i32, i32
  }
}

module attributes {stable_mosaic.version = 11 : i64} {
  func.func @_mm_bias_relu_kernel(%arg0: i32, %arg1: memref<32x576xbf16, #tpu.memory_space<vmem>>, %arg2: memref<576x128xbf16, #tpu.memory_space<vmem>>, %arg3: memref<1x128xf32, #tpu.memory_space<vmem>>, %arg4: memref<32x128xbf16, #tpu.memory_space<vmem>>) attributes {dimension_semantics = [#tpu.dimension_semantics<parallel>], iteration_bounds = array<i64: 1>, scalar_prefetch = 0 : i64, scratch_operands = 0 : i64, tpu.core_type = #tpu.core_type<tc>, window_params = [{transform_indices = @transform_0, window_bounds = array<i64: 32, 576>}, {pipeline_mode = #tpu.pipeline_mode<synchronous>, transform_indices = @transform_1, window_bounds = array<i64: 576, 128>}, {pipeline_mode = #tpu.pipeline_mode<synchronous>, transform_indices = @transform_2, window_bounds = array<i64: 1, 128>}, {transform_indices = @transform_3, window_bounds = array<i64: 32, 128>}]} {
    %c0 = arith.constant 0 : index
    %c0_0 = arith.constant 0 : index
    %0 = vector.load %arg1[%c0, %c0_0] : memref<32x576xbf16, #tpu.memory_space<vmem>>, vector<32x576xbf16>
    %c0_1 = arith.constant 0 : index
    %c0_2 = arith.constant 0 : index
    %1 = vector.load %arg2[%c0_1, %c0_2] : memref<576x128xbf16, #tpu.memory_space<vmem>>, vector<576x128xbf16>
    %cst = arith.constant dense<0.000000e+00> : vector<32x128xf32>
    %2 = tpu.matmul %0, %1, %cst {dimension_numbers = #tpu.dot_dimension_numbers<[1], [0], [0], [1], [0, 0, 1, 1], [], []>} : vector<32x576xbf16>, vector<576x128xbf16>, vector<32x128xf32> -> vector<32x128xf32>
    %c0_3 = arith.constant 0 : index
    %c0_4 = arith.constant 0 : index
    %3 = vector.load %arg3[%c0_3, %c0_4] : memref<1x128xf32, #tpu.memory_space<vmem>>, vector<1x128xf32>
    %4 = vector.broadcast %3 : vector<1x128xf32> to vector<32x128xf32>
    %5 = arith.addf %2, %4 : vector<32x128xf32>
    %cst_5 = arith.constant 0.000000e+00 : f32
    %6 = vector.broadcast %cst_5 : f32 to vector<32x128xf32>
    %7 = arith.maximumf %5, %6 : vector<32x128xf32>
    %8 = arith.truncf %7 : vector<32x128xf32> to vector<32x128xbf16>
    %c0_6 = arith.constant 0 : index
    %c0_7 = arith.constant 0 : index
    %9 = vector.load %arg4[%c0_6, %c0_7] : memref<32x128xbf16, #tpu.memory_space<vmem>>, vector<32x128xbf16>
    tpu.vector_store %arg4[%c0_6, %c0_7], %8 {strides = array<i32>} : memref<32x128xbf16, #tpu.memory_space<vmem>>, vector<32x128xbf16>,
    return
  }
  func.func @transform_0(%arg0: i32) -> (i32, i32) {
    %c0_i32 = arith.constant 0 : i32
    %c0_i32_0 = arith.constant 0 : i32
    return %arg0, %c0_i32 : i32, i32
  }
  func.func @transform_1(%arg0: i32) -> (i32, i32) {
    %c0_i32 = arith.constant 0 : i32
    %c0_i32_0 = arith.constant 0 : i32
    %c0_i32_1 = arith.constant 0 : i32
    return %c0_i32, %c0_i32_0 : i32, i32
  }
  func.func @transform_2(%arg0: i32) -> (i32, i32) {
    %c0_i32 = arith.constant 0 : i32
    %c0_i32_0 = arith.constant 0 : i32
    %c0_i32_1 = arith.constant 0 : i32
    return %c0_i32, %c0_i32_0 : i32, i32
  }
  func.func @transform_3(%arg0: i32) -> (i32, i32) {
    %c0_i32 = arith.constant 0 : i32
    %c0_i32_0 = arith.constant 0 : i32
    return %arg0, %c0_i32 : i32, i32
  }
}

module attributes {stable_mosaic.version = 11 : i64} {
  func.func @_fused_fc_kernel(%arg0: i32, %arg1: memref<2x2048xbf16, #tpu.memory_space<vmem>>, %arg2: memref<2048x512xbf16, #tpu.memory_space<vmem>>, %arg3: memref<1x512xf32, #tpu.memory_space<vmem>>, %arg4: memref<512x256xbf16, #tpu.memory_space<vmem>>, %arg5: memref<1x256xf32, #tpu.memory_space<vmem>>, %arg6: memref<256x256xbf16, #tpu.memory_space<vmem>>, %arg7: memref<1x256xf32, #tpu.memory_space<vmem>>, %arg8: memref<256x128xbf16, #tpu.memory_space<vmem>>, %arg9: memref<1x128xf32, #tpu.memory_space<vmem>>, %arg10: memref<2x128xf32, #tpu.memory_space<vmem>>) attributes {dimension_semantics = [#tpu.dimension_semantics<parallel>], iteration_bounds = array<i64: 1>, scalar_prefetch = 0 : i64, scratch_operands = 0 : i64, tpu.core_type = #tpu.core_type<tc>, window_params = [{transform_indices = @transform_0, window_bounds = array<i64: 2, 2048>}, {pipeline_mode = #tpu.pipeline_mode<synchronous>, transform_indices = @transform_1, window_bounds = array<i64: 2048, 512>}, {pipeline_mode = #tpu.pipeline_mode<synchronous>, transform_indices = @transform_2, window_bounds = array<i64: 1, 512>}, {pipeline_mode = #tpu.pipeline_mode<synchronous>, transform_indices = @transform_3, window_bounds = array<i64: 512, 256>}, {pipeline_mode = #tpu.pipeline_mode<synchronous>, transform_indices = @transform_4, window_bounds = array<i64: 1, 256>}, {pipeline_mode = #tpu.pipeline_mode<synchronous>, transform_indices = @transform_5, window_bounds = array<i64: 256, 256>}, {pipeline_mode = #tpu.pipeline_mode<synchronous>, transform_indices = @transform_6, window_bounds = array<i64: 1, 256>}, {pipeline_mode = #tpu.pipeline_mode<synchronous>, transform_indices = @transform_7, window_bounds = array<i64: 256, 128>}, {pipeline_mode = #tpu.pipeline_mode<synchronous>, transform_indices = @transform_8, window_bounds = array<i64: 1, 128>}, {transform_indices = @transform_9, window_bounds = array<i64: 2, 128>}]} {
    %c0 = arith.constant 0 : index
    %c0_0 = arith.constant 0 : index
    %0 = vector.load %arg1[%c0, %c0_0] : memref<2x2048xbf16, #tpu.memory_space<vmem>>, vector<2x2048xbf16>
    %c0_1 = arith.constant 0 : index
    %c0_2 = arith.constant 0 : index
    %1 = vector.load %arg2[%c0_1, %c0_2] : memref<2048x512xbf16, #tpu.memory_space<vmem>>, vector<2048x512xbf16>
    %cst = arith.constant dense<0.000000e+00> : vector<2x512xf32>
    %2 = tpu.matmul %0, %1, %cst {dimension_numbers = #tpu.dot_dimension_numbers<[1], [0], [0], [1], [0, 0, 1, 1], [], []>} : vector<2x2048xbf16>, vector<2048x512xbf16>, vector<2x512xf32> -> vector<2x512xf32>
    %c0_3 = arith.constant 0 : index
    %c0_4 = arith.constant 0 : index
    %3 = vector.load %arg3[%c0_3, %c0_4] : memref<1x512xf32, #tpu.memory_space<vmem>>, vector<1x512xf32>
    %4 = vector.broadcast %3 : vector<1x512xf32> to vector<2x512xf32>
    %5 = arith.addf %2, %4 : vector<2x512xf32>
    %cst_5 = arith.constant 0.000000e+00 : f32
    %6 = vector.broadcast %cst_5 : f32 to vector<2x512xf32>
    %7 = arith.maximumf %5, %6 : vector<2x512xf32>
    %8 = arith.truncf %7 : vector<2x512xf32> to vector<2x512xbf16>
    %c0_6 = arith.constant 0 : index
    %c0_7 = arith.constant 0 : index
    %9 = vector.load %arg4[%c0_6, %c0_7] : memref<512x256xbf16, #tpu.memory_space<vmem>>, vector<512x256xbf16>
    %cst_8 = arith.constant dense<0.000000e+00> : vector<2x256xf32>
    %10 = tpu.matmul %8, %9, %cst_8 {dimension_numbers = #tpu.dot_dimension_numbers<[1], [0], [0], [1], [0, 0, 1, 1], [], []>} : vector<2x512xbf16>, vector<512x256xbf16>, vector<2x256xf32> -> vector<2x256xf32>
    %c0_9 = arith.constant 0 : index
    %c0_10 = arith.constant 0 : index
    %11 = vector.load %arg5[%c0_9, %c0_10] : memref<1x256xf32, #tpu.memory_space<vmem>>, vector<1x256xf32>
    %12 = vector.broadcast %11 : vector<1x256xf32> to vector<2x256xf32>
    %13 = arith.addf %10, %12 : vector<2x256xf32>
    %cst_11 = arith.constant 0.000000e+00 : f32
    %14 = vector.broadcast %cst_11 : f32 to vector<2x256xf32>
    %15 = arith.maximumf %13, %14 : vector<2x256xf32>
    %16 = arith.truncf %15 : vector<2x256xf32> to vector<2x256xbf16>
    %c0_12 = arith.constant 0 : index
    %c0_13 = arith.constant 0 : index
    %17 = vector.load %arg6[%c0_12, %c0_13] : memref<256x256xbf16, #tpu.memory_space<vmem>>, vector<256x256xbf16>
    %cst_14 = arith.constant dense<0.000000e+00> : vector<2x256xf32>
    %18 = tpu.matmul %16, %17, %cst_14 {dimension_numbers = #tpu.dot_dimension_numbers<[1], [0], [0], [1], [0, 0, 1, 1], [], []>} : vector<2x256xbf16>, vector<256x256xbf16>, vector<2x256xf32> -> vector<2x256xf32>
    %c0_15 = arith.constant 0 : index
    %c0_16 = arith.constant 0 : index
    %19 = vector.load %arg7[%c0_15, %c0_16] : memref<1x256xf32, #tpu.memory_space<vmem>>, vector<1x256xf32>
    %20 = vector.broadcast %19 : vector<1x256xf32> to vector<2x256xf32>
    %21 = arith.addf %18, %20 : vector<2x256xf32>
    %cst_17 = arith.constant 0.000000e+00 : f32
    %22 = vector.broadcast %cst_17 : f32 to vector<2x256xf32>
    %23 = arith.maximumf %21, %22 : vector<2x256xf32>
    %24 = arith.truncf %23 : vector<2x256xf32> to vector<2x256xbf16>
    %c0_18 = arith.constant 0 : index
    %c0_19 = arith.constant 0 : index
    %25 = vector.load %arg8[%c0_18, %c0_19] : memref<256x128xbf16, #tpu.memory_space<vmem>>, vector<256x128xbf16>
    %cst_20 = arith.constant dense<0.000000e+00> : vector<2x128xf32>
    %26 = tpu.matmul %24, %25, %cst_20 {dimension_numbers = #tpu.dot_dimension_numbers<[1], [0], [0], [1], [0, 0, 1, 1], [], []>} : vector<2x256xbf16>, vector<256x128xbf16>, vector<2x128xf32> -> vector<2x128xf32>
    %c0_21 = arith.constant 0 : index
    %c0_22 = arith.constant 0 : index
    %27 = vector.load %arg9[%c0_21, %c0_22] : memref<1x128xf32, #tpu.memory_space<vmem>>, vector<1x128xf32>
    %28 = vector.broadcast %27 : vector<1x128xf32> to vector<2x128xf32>
    %29 = arith.addf %26, %28 : vector<2x128xf32>
    %30 = vector.extract_strided_slice %29 {offsets = [0, 0], sizes = [2, 6], strides = [1, 1]} : vector<2x128xf32> to vector<2x6xf32>
    %31 = vector.extract_strided_slice %29 {offsets = [0, 6], sizes = [2, 1], strides = [1, 1]} : vector<2x128xf32> to vector<2x1xf32>
    %cst_23 = arith.constant dense<0.000000e+00> : vector<2xf32>
    %32 = vector.multi_reduction <add>, %30, %cst_23 [1] : vector<2x6xf32> to vector<2xf32>
    %33 = vector.shape_cast %32 : vector<2xf32> to vector<2x1xf32>
    %cst_24 = arith.constant 6.000000e+00 : f32
    %34 = vector.broadcast %cst_24 : f32 to vector<2x1xf32>
    %35 = arith.divf %33, %34 : vector<2x1xf32>
    %36 = vector.broadcast %35 : vector<2x1xf32> to vector<2x128xf32>
    %37 = arith.subf %29, %36 : vector<2x128xf32>
    %38 = vector.broadcast %31 : vector<2x1xf32> to vector<2x128xf32>
    %39 = arith.addf %38, %37 : vector<2x128xf32>
    %c0_25 = arith.constant 0 : index
    %c0_26 = arith.constant 0 : index
    %40 = vector.load %arg10[%c0_25, %c0_26] : memref<2x128xf32, #tpu.memory_space<vmem>>, vector<2x128xf32>
    tpu.vector_store %arg10[%c0_25, %c0_26], %39 {strides = array<i32>} : memref<2x128xf32, #tpu.memory_space<vmem>>, vector<2x128xf32>,
    return
  }
  func.func @transform_0(%arg0: i32) -> (i32, i32) {
    %c0_i32 = arith.constant 0 : i32
    %c0_i32_0 = arith.constant 0 : i32
    return %arg0, %c0_i32 : i32, i32
  }
  func.func @transform_1(%arg0: i32) -> (i32, i32) {
    %c0_i32 = arith.constant 0 : i32
    %c0_i32_0 = arith.constant 0 : i32
    %c0_i32_1 = arith.constant 0 : i32
    return %c0_i32, %c0_i32_0 : i32, i32
  }
  func.func @transform_2(%arg0: i32) -> (i32, i32) {
    %c0_i32 = arith.constant 0 : i32
    %c0_i32_0 = arith.constant 0 : i32
    %c0_i32_1 = arith.constant 0 : i32
    return %c0_i32, %c0_i32_0 : i32, i32
  }
  func.func @transform_3(%arg0: i32) -> (i32, i32) {
    %c0_i32 = arith.constant 0 : i32
    %c0_i32_0 = arith.constant 0 : i32
    %c0_i32_1 = arith.constant 0 : i32
    return %c0_i32, %c0_i32_0 : i32, i32
  }
  func.func @transform_4(%arg0: i32) -> (i32, i32) {
    %c0_i32 = arith.constant 0 : i32
    %c0_i32_0 = arith.constant 0 : i32
    %c0_i32_1 = arith.constant 0 : i32
    return %c0_i32, %c0_i32_0 : i32, i32
  }
  func.func @transform_5(%arg0: i32) -> (i32, i32) {
    %c0_i32 = arith.constant 0 : i32
    %c0_i32_0 = arith.constant 0 : i32
    %c0_i32_1 = arith.constant 0 : i32
    return %c0_i32, %c0_i32_0 : i32, i32
  }
  func.func @transform_6(%arg0: i32) -> (i32, i32) {
    %c0_i32 = arith.constant 0 : i32
    %c0_i32_0 = arith.constant 0 : i32
    %c0_i32_1 = arith.constant 0 : i32
    return %c0_i32, %c0_i32_0 : i32, i32
  }
  func.func @transform_7(%arg0: i32) -> (i32, i32) {
    %c0_i32 = arith.constant 0 : i32
    %c0_i32_0 = arith.constant 0 : i32
    %c0_i32_1 = arith.constant 0 : i32
    return %c0_i32, %c0_i32_0 : i32, i32
  }
  func.func @transform_8(%arg0: i32) -> (i32, i32) {
    %c0_i32 = arith.constant 0 : i32
    %c0_i32_0 = arith.constant 0 : i32
    %c0_i32_1 = arith.constant 0 : i32
    return %c0_i32, %c0_i32_0 : i32, i32
  }
  func.func @transform_9(%arg0: i32) -> (i32, i32) {
    %c0_i32 = arith.constant 0 : i32
    %c0_i32_0 = arith.constant 0 : i32
    return %arg0, %c0_i32 : i32, i32
  }
}

</mosaic_0001>

<bundles_post_ra>
// kernel: dqn_forward.4
= control target key start
LH: loop header
LB: loop body
LE: loop exit
PB: predicated region body
PF: predicated region fallthrough
CT: control target
= control target key end

     0   :  { %s1626_s12 = smov 0   ;;  %s1885_s0 = inlined_call_operand.vmem [shape: bf16[800,256], index: 0, kind: input, shape index: {}]   ;;  %s1886_s1 = inlined_call_operand.vmem [shape: bf16[256,128], index: 1, kind: input, shape index: {}]   ;;  %s1887_s2 = inlined_call_operand.vmem [shape: f32[1,128], index: 2, kind: input, shape index: {}]   ;;  %s1888_s3 = inlined_call_operand.vmem [shape: bf16[800,128], index: 3, kind: output, shape index: {}]  }
   0x1 LB: > { %s1083_s13 = sadd.s32 4294967295, %s1604_s12   ;;  %p1087_p0 = scmp.ge.s32.totalorder %s1604_s12, 1  ;;  %s1604_s12 = sphi %s1626_s12, %s13_s12  }
   0x2   : > { %p139_p1 = scmp.lt.s32.totalorder %s1604_s12, 3 }
   0x4   : > { %p140_p2 = pnand %p1087_p0, %p139_p1 }
   0x5   : > { %s164_s26 = smul.u32 (!%p140_p2), 50, %s1083_s13 }
   0x6   : > { %143 = sbr.rel (%p140_p2) target bundleno = 384 (0x180), region = 32 }
   0x7   : > { %p165_p3 = scmp.lt.s32.totalorder (!%p140_p2), %s164_s26, 99 }
   0xb   : > { %v1415_v0 = vld [vmem:[%s1886_s1 + $0x38] sm:$0xff]  ;;  %v1414_v2 = vld [vmem:[%s1886_s1 + $0x30] sm:$0xff]  ;;  %v1413_v4 = vld [vmem:[%s1886_s1 + $0x28] sm:$0xff]  ;;  %s1890_s26 = smov (!%p165_p3, %s164_s26), 99 }
   0xc   : > { %v1423_v1 = vld [vmem:[%s1886_s1 + $0x78] sm:$0xff]  ;;  %609 = vmatpush.bf16.msra.mxu0 %v1415_v0  ;;  %1573 = vmatpush.bf16.msra.mxu2 %v1415_v0  ;;  %v1422_v3 = vld [vmem:[%s1886_s1 + $0x70] sm:$0xff]  ;;  %v1421_v5 = vld [vmem:[%s1886_s1 + $0x68] sm:$0xff]  ;;  %s1357_s13 = sshll.u32 %s1890_s26, 3  ;;  %s1090_s28 = sshll.u32 %s1890_s26, 2 }
   0xd   : > { %743 = vmatpush.bf16.msra.mxu1 %v1423_v1  ;;  %1581 = vmatpush.bf16.msra.mxu3 %v1423_v1  ;;  %v1412_v6 = vld [vmem:[%s1886_s1 + $0x20] sm:$0xff]  ;;  %v1411_v8 = vld [vmem:[%s1886_s1 + $0x18] sm:$0xff]  ;;  %v1410_v10 = vld [vmem:[%s1886_s1 + $0x10] sm:$0xff]  ;;  %s1679_s18 = scalar_lea.vmem %s1885_s0, %s1357_s13  ;;  %s1783_s4 = scalar_lea.vmem %s1888_s3, %s1090_s28 }
   0xe   : > { %v1420_v7 = vld [vmem:[%s1886_s1 + $0x60] sm:$0xff]  ;;  %v1419_v9 = vld [vmem:[%s1886_s1 + $0x58] sm:$0xff]  ;;  %v1418_v11 = vld [vmem:[%s1886_s1 + $0x50] sm:$0xff] }
   0xf   : > { %v1409_v12 = vld [vmem:[%s1886_s1 + $0x8] sm:$0xff]  ;;  %v1408_v14 = vld [vmem:[%s1886_s1] sm:$0xff]  ;;  %v1384_v22 = vld [vmem:[%s1679_s18 + $0xd4] sm:$0xf] }
  0x10   : > { %610 = vmatpush.bf16.msra.mxu0 %v1414_v2  ;;  %1574 = vmatpush.bf16.msra.mxu2 %v1414_v2  ;;  %v1417_v13 = vld [vmem:[%s1886_s1 + $0x48] sm:$0xff]  ;;  %v1416_v15 = vld [vmem:[%s1886_s1 + $0x40] sm:$0xff]  ;;  %v1199_v23 = vld [vmem:[%s1679_s18 + $0xd8] sm:$0xf0] }
  0x11   : > { %744 = vmatpush.bf16.msra.mxu1 %v1422_v3  ;;  %1582 = vmatpush.bf16.msra.mxu3 %v1422_v3  ;;  %v1093_v16 = vld [vmem:[%s1679_s18] sm:$0xf]  ;;  %v1359_v17 = vld [vmem:[%s1679_s18 + $0x4] sm:$0xf0]  ;;  %v1358_v20 = vld [vmem:[%s1679_s18 + $0x4] sm:$0xf]  ;;  %v1202_v27 = vor.u32 %v1384_v22, %v1199_v23 }
  0x12   : > { %v1189_v18 = vld [vmem:[%s1679_s18 + $0xc0] sm:$0xf]  ;;  %v1383_v19 = vld [vmem:[%s1679_s18 + $0xc4] sm:$0xf0]  ;;  %v1095_v21 = vld [vmem:[%s1679_s18 + $0x8] sm:$0xf0]  ;;  %v1094_v24 = vor.u32 %v1359_v17, %v1093_v16 }
  0x13   : > { %v1190_v25 = vor.u32 %v1383_v19, %v1189_v18  ;;  %v1098_v26 = vor.u32 %v1358_v20, %v1095_v21  ;;  %v1101_v28 = vld [vmem:[%s1679_s18 + $0x10] sm:$0xf]  ;;  %v1361_v29 = vld [vmem:[%s1679_s18 + $0x14] sm:$0xf0]  ;;  %v1360_v32 = vld [vmem:[%s1679_s18 + $0x14] sm:$0xf] }
  0x14   : > { %611 = vmatpush.bf16.msra.mxu0 %v1413_v4  ;;  %1575 = vmatpush.bf16.msra.mxu2 %v1413_v4  ;;  %v1197_v30 = vld [vmem:[%s1679_s18 + $0xd0] sm:$0xf]  ;;  %v1385_v31 = vld [vmem:[%s1679_s18 + $0xd4] sm:$0xf0]  ;;  %v1103_v33 = vld [vmem:[%s1679_s18 + $0x18] sm:$0xf0]  ;;  %v1102_v36 = vor.u32 %v1361_v29, %v1101_v28 }
  0x15   : > { %745 = vmatpush.bf16.msra.mxu1 %v1421_v5  ;;  %1583 = vmatpush.bf16.msra.mxu3 %v1421_v5  ;;  %v1386_v34 = vld [vmem:[%s1679_s18 + $0xe4] sm:$0xf]  ;;  %v1207_v35 = vld [vmem:[%s1679_s18 + $0xe8] sm:$0xf0]  ;;  %v1198_v37 = vor.u32 %v1385_v31, %v1197_v30  ;;  %v1106_v38 = vor.u32 %v1360_v32, %v1103_v33  ;;  %v1109_v40 = vld [vmem:[%s1679_s18 + $0x20] sm:$0xf] }
  0x16   : > { %v1210_v39 = vor.u32 %v1386_v34, %v1207_v35  ;;  %v1363_v41 = vld [vmem:[%s1679_s18 + $0x24] sm:$0xf0]  ;;  %v1205_v42 = vld [vmem:[%s1679_s18 + $0xe0] sm:$0xf]  ;;  %v1362_v44 = vld [vmem:[%s1679_s18 + $0x24] sm:$0xf] }
  0x17   : > { %v1387_v43 = vld [vmem:[%s1679_s18 + $0xe4] sm:$0xf0]  ;;  %v1111_v45 = vld [vmem:[%s1679_s18 + $0x28] sm:$0xf0]  ;;  %v1388_v46 = vld [vmem:[%s1679_s18 + $0xf4] sm:$0xf]  ;;  %v1110_v48 = vor.u32 %v1363_v41, %v1109_v40 }
  0x18   : > { %612 = vmatpush.bf16.msra.mxu0 %v1412_v6  ;;  %1576 = vmatpush.bf16.msra.mxu2 %v1412_v6  ;;  %v1215_v47 = vld [vmem:[%s1679_s18 + $0xf8] sm:$0xf0]  ;;  %v1206_v49 = vor.u32 %v1387_v43, %v1205_v42  ;;  %v1114_v50 = vor.u32 %v1362_v44, %v1111_v45  ;;  %v1117_v52 = vld [vmem:[%s1679_s18 + $0x30] sm:$0xf]  ;;  %v1365_v53 = vld [vmem:[%s1679_s18 + $0x34] sm:$0xf0] }
  0x19   : > { %746 = vmatpush.bf16.msra.mxu1 %v1420_v7  ;;  %1584 = vmatpush.bf16.msra.mxu3 %v1420_v7  ;;  %v1218_v51 = vor.u32 %v1388_v46, %v1215_v47  ;;  %v1213_v54 = vld [vmem:[%s1679_s18 + $0xf0] sm:$0xf]  ;;  %v1389_v55 = vld [vmem:[%s1679_s18 + $0xf4] sm:$0xf0]  ;;  %v1364_v56 = vld [vmem:[%s1679_s18 + $0x34] sm:$0xf]  ;;  %v1118_v60 = vor.u32 %v1365_v53, %v1117_v52 }
  0x1a   : > { %v1119_v57 = vld [vmem:[%s1679_s18 + $0x38] sm:$0xf0]  ;;  %v1390_v58 = vld [vmem:[%s1679_s18 + $0x104] sm:$0xf]  ;;  %v1223_v59 = vld [vmem:[%s1679_s18 + $0x108] sm:$0xf0]  ;;  %v1214_v61 = vor.u32 %v1389_v55, %v1213_v54 }
  0x1b   : > { %v1122_v62 = vor.u32 %v1364_v56, %v1119_v57  ;;  %v1226_v63 = vor.u32 %v1390_v58, %v1223_v59  ;;  %v1125_v0 = vld [vmem:[%s1679_s18 + $0x40] sm:$0xf]  ;;  %v1367_v1 = vld [vmem:[%s1679_s18 + $0x44] sm:$0xf0]  ;;  %v1366_v4 = vld [vmem:[%s1679_s18 + $0x44] sm:$0xf] }
  0x1c   : > { %613 = vmatpush.bf16.msra.mxu0 %v1411_v8  ;;  %1577 = vmatpush.bf16.msra.mxu2 %v1411_v8  ;;  %v1221_v2 = vld [vmem:[%s1679_s18 + $0x100] sm:$0xf]  ;;  %v1391_v3 = vld [vmem:[%s1679_s18 + $0x104] sm:$0xf0]  ;;  %v1127_v5 = vld [vmem:[%s1679_s18 + $0x48] sm:$0xf0]  ;;  %v1126_v8 = vor.u32 %v1367_v1, %v1125_v0 }
  0x1d   : > { %747 = vmatpush.bf16.msra.mxu1 %v1419_v9  ;;  %1585 = vmatpush.bf16.msra.mxu3 %v1419_v9  ;;  %v1392_v6 = vld [vmem:[%s1679_s18 + $0x114] sm:$0xf]  ;;  %v1231_v7 = vld [vmem:[%s1679_s18 + $0x118] sm:$0xf0]  ;;  %v1222_v9 = vor.u32 %v1391_v3, %v1221_v2  ;;  %v1394_v18 = vld [vmem:[%s1679_s18 + $0x124] sm:$0xf] }
  0x1e   : > { %v1368_v16 = vld [vmem:[%s1679_s18 + $0x54] sm:$0xf]  ;;  %v1135_v17 = vld [vmem:[%s1679_s18 + $0x58] sm:$0xf0]  ;;  %v1239_v19 = vld [vmem:[%s1679_s18 + $0x128] sm:$0xf0] }
  0x1f   : > { %v1138_v22 = vor.u32 %v1368_v16, %v1135_v17  ;;  %v1242_v23 = vor.u32 %v1394_v18, %v1239_v19  ;;  %v1370_v28 = vld [vmem:[%s1679_s18 + $0x64] sm:$0xf]  ;;  %v1143_v29 = vld [vmem:[%s1679_s18 + $0x68] sm:$0xf0]  ;;  %v1396_v30 = vld [vmem:[%s1679_s18 + $0x134] sm:$0xf] }
  0x20   : > { %614 = vmatpush.bf16.msra.mxu0 %v1410_v10  ;;  %1578 = vmatpush.bf16.msra.mxu2 %v1410_v10  ;;  %v1130_v10 = vor.u32 %v1366_v4, %v1127_v5  ;;  %v1247_v31 = vld [vmem:[%s1679_s18 + $0x138] sm:$0xf0]  ;;  %v1146_v34 = vor.u32 %v1370_v28, %v1143_v29  ;;  %v1372_v40 = vld [vmem:[%s1679_s18 + $0x74] sm:$0xf]  ;;  %v1398_v42 = vld [vmem:[%s1679_s18 + $0x144] sm:$0xf] }
  0x21   : > { %748 = vmatpush.bf16.msra.mxu1 %v1418_v11  ;;  %1586 = vmatpush.bf16.msra.mxu3 %v1418_v11  ;;  %v1234_v11 = vor.u32 %v1392_v6, %v1231_v7  ;;  %v1250_v35 = vor.u32 %v1396_v30, %v1247_v31  ;;  %v1151_v41 = vld [vmem:[%s1679_s18 + $0x78] sm:$0xf0]  ;;  %v1255_v43 = vld [vmem:[%s1679_s18 + $0x148] sm:$0xf0]  ;;  %v1374_v52 = vld [vmem:[%s1679_s18 + $0x84] sm:$0xf] }
  0x22   : > { %v1154_v46 = vor.u32 %v1372_v40, %v1151_v41  ;;  %v1258_v47 = vor.u32 %v1398_v42, %v1255_v43  ;;  %v1159_v53 = vld [vmem:[%s1679_s18 + $0x88] sm:$0xf0]  ;;  %v1400_v54 = vld [vmem:[%s1679_s18 + $0x154] sm:$0xf]  ;;  %v1263_v55 = vld [vmem:[%s1679_s18 + $0x158] sm:$0xf0] }
  0x23   : > { %v1162_v59 = vor.u32 %v1374_v52, %v1159_v53  ;;  %v1165_v7 = vld [vmem:[%s1679_s18 + $0x90] sm:$0xf]  ;;  %v1271_v16 = vld [vmem:[%s1679_s18 + $0x168] sm:$0xf0]  ;;  %v1404_v43 = vld [vmem:[%s1679_s18 + $0x174] sm:$0xf] }
  0x24   : > { %615 = vmatpush.bf16.msra.mxu0 %v1409_v12  ;;  %1579 = vmatpush.bf16.msra.mxu2 %v1409_v12  ;;  %v1133_v12 = vld [vmem:[%s1679_s18 + $0x50] sm:$0xf]  ;;  %v1175_v40 = vld [vmem:[%s1679_s18 + $0xa8] sm:$0xf0] }
  0x25   : > { %749 = vmatpush.bf16.msra.mxu1 %v1417_v13  ;;  %1587 = vmatpush.bf16.msra.mxu3 %v1417_v13  ;;  %v1369_v13 = vld [vmem:[%s1679_s18 + $0x54] sm:$0xf0] }
  0x26   : > { %v1134_v20 = vor.u32 %v1369_v13, %v1133_v12  ;;  %v1167_v12 = vld [vmem:[%s1679_s18 + $0x98] sm:$0xf0] }
  0x28   : > { %616 = vmatpush.bf16.msra.mxu0 %v1408_v14  ;;  %1580 = vmatpush.bf16.msra.mxu2 %v1408_v14  ;;  %v1229_v14 = vld [vmem:[%s1679_s18 + $0x110] sm:$0xf] }
  0x29   : > { %750 = vmatpush.bf16.msra.mxu1 %v1416_v15  ;;  %1588 = vmatpush.bf16.msra.mxu3 %v1416_v15  ;;  %v1393_v15 = vld [vmem:[%s1679_s18 + $0x114] sm:$0xf0] }
  0x2a   : > { %v1230_v21 = vor.u32 %v1393_v15, %v1229_v14  ;;  %v1402_v15 = vld [vmem:[%s1679_s18 + $0x164] sm:$0xf] }
  0x2b   : > { %617 = vmatmul.bf16.vlgmr.msra.gmra.mxu0 %v1094_v24  ;;  %677 = vmatmul.bf16.vlgmr.msra.gmra.mxu2 %v1190_v25  ;;  %v1141_v24 = vld [vmem:[%s1679_s18 + $0x60] sm:$0xf]  ;;  %v1371_v25 = vld [vmem:[%s1679_s18 + $0x64] sm:$0xf0] }
  0x2c   : > { %751 = vmatmul.bf16.vlgmr.msra.gmra.mxu1 %v1098_v26  ;;  %816 = vmatmul.bf16.vlgmr.msra.gmra.mxu3 %v1202_v27  ;;  %v1237_v26 = vld [vmem:[%s1679_s18 + $0x120] sm:$0xf]  ;;  %v1395_v27 = vld [vmem:[%s1679_s18 + $0x124] sm:$0xf0]  ;;  %v1142_v32 = vor.u32 %v1371_v25, %v1141_v24  ;;  %v1274_v24 = vor.u32 %v1402_v15, %v1271_v16  ;;  %v1406_v15 = vld [vmem:[%s1679_s18 + $0x184] sm:$0xf] }
  0x2d   : > { %v1238_v33 = vor.u32 %v1395_v27, %v1237_v26  ;;  %v1287_v16 = vld [vmem:[%s1679_s18 + $0x188] sm:$0xf0] }
  0x3b   : > { %622 = vmatmul.bf16.gmra.mxu0 %v1102_v36  ;;  %682 = vmatmul.bf16.gmra.mxu2 %v1198_v37  ;;  %v1149_v36 = vld [vmem:[%s1679_s18 + $0x70] sm:$0xf]  ;;  %v1373_v37 = vld [vmem:[%s1679_s18 + $0x74] sm:$0xf0] }
  0x3c   : > { %756 = vmatmul.bf16.gmra.mxu1 %v1106_v38  ;;  %821 = vmatmul.bf16.gmra.mxu3 %v1210_v39  ;;  %v1245_v38 = vld [vmem:[%s1679_s18 + $0x130] sm:$0xf]  ;;  %v1397_v39 = vld [vmem:[%s1679_s18 + $0x134] sm:$0xf0]  ;;  %v1150_v44 = vor.u32 %v1373_v37, %v1149_v36  ;;  %v1379_v36 = vld [vmem:[%s1679_s18 + $0xa4] sm:$0xf0] }
  0x3d   : > { %v1246_v45 = vor.u32 %v1397_v39, %v1245_v38  ;;  %v1269_v37 = vld [vmem:[%s1679_s18 + $0x160] sm:$0xf]  ;;  %v1403_v38 = vld [vmem:[%s1679_s18 + $0x164] sm:$0xf0]  ;;  %v1378_v39 = vld [vmem:[%s1679_s18 + $0xa4] sm:$0xf] }
  0x3e   : > { %v1178_v53 = vor.u32 %v1378_v39, %v1175_v40 }
  0x4b   : > { %627 = vmatmul.bf16.gmra.mxu0 %v1110_v48  ;;  %687 = vmatmul.bf16.gmra.mxu2 %v1206_v49  ;;  %v1157_v48 = vld [vmem:[%s1679_s18 + $0x80] sm:$0xf]  ;;  %v1375_v49 = vld [vmem:[%s1679_s18 + $0x84] sm:$0xf0] }
  0x4c   : > { %761 = vmatmul.bf16.gmra.mxu1 %v1114_v50  ;;  %826 = vmatmul.bf16.gmra.mxu3 %v1218_v51  ;;  %v1253_v50 = vld [vmem:[%s1679_s18 + $0x140] sm:$0xf]  ;;  %v1399_v51 = vld [vmem:[%s1679_s18 + $0x144] sm:$0xf0]  ;;  %v1158_v56 = vor.u32 %v1375_v49, %v1157_v48 }
  0x4d   : > { %v1254_v57 = vor.u32 %v1399_v51, %v1253_v50  ;;  %v1270_v50 = vor.u32 %v1403_v38, %v1269_v37 }
  0x5b   : > { %632 = vmatmul.bf16.gmra.mxu0 %v1118_v60  ;;  %692 = vmatmul.bf16.gmra.mxu2 %v1214_v61  ;;  %v1266_v60 = vor.u32 %v1400_v54, %v1263_v55  ;;  %v1765_v61 = vld [vmem:[%s1887_s2] ss:$0 sm:$0xff] }
  0x5c   : > { %766 = vmatmul.bf16.gmra.mxu1 %v1122_v62  ;;  %831 = vmatmul.bf16.gmra.mxu3 %v1226_v63 }
  0x6b   : > { %637 = vmatmul.bf16.gmra.mxu0 %v1126_v8  ;;  %697 = vmatmul.bf16.gmra.mxu2 %v1222_v9  ;;  %v1377_v8 = vld [vmem:[%s1679_s18 + $0x94] sm:$0xf0]  ;;  %v1261_v9 = vld [vmem:[%s1679_s18 + $0x150] sm:$0xf] }
  0x6c   : > { %771 = vmatmul.bf16.gmra.mxu1 %v1130_v10  ;;  %836 = vmatmul.bf16.gmra.mxu3 %v1234_v11  ;;  %v1401_v10 = vld [vmem:[%s1679_s18 + $0x154] sm:$0xf0]  ;;  %v1376_v11 = vld [vmem:[%s1679_s18 + $0x94] sm:$0xf]  ;;  %v1166_v19 = vor.u32 %v1377_v8, %v1165_v7  ;;  %v1181_v7 = vld [vmem:[%s1679_s18 + $0xb0] sm:$0xf] }
  0x6d   : > { %v1381_v8 = vld [vmem:[%s1679_s18 + $0xb4] sm:$0xf0] }
  0x7b   : > { %642 = vmatmul.bf16.gmra.mxu0 %v1134_v20  ;;  %702 = vmatmul.bf16.gmra.mxu2 %v1230_v21  ;;  %v1262_v20 = vor.u32 %v1401_v10, %v1261_v9  ;;  %v1277_v9 = vld [vmem:[%s1679_s18 + $0x170] sm:$0xf]  ;;  %v1405_v10 = vld [vmem:[%s1679_s18 + $0x174] sm:$0xf0] }
  0x7c   : > { %776 = vmatmul.bf16.gmra.mxu1 %v1138_v22  ;;  %841 = vmatmul.bf16.gmra.mxu3 %v1242_v23  ;;  %v1170_v23 = vor.u32 %v1376_v11, %v1167_v12  ;;  %v1380_v11 = vld [vmem:[%s1679_s18 + $0xb4] sm:$0xf]  ;;  %v1183_v12 = vld [vmem:[%s1679_s18 + $0xb8] sm:$0xf0] }
  0x8b   : > { %647 = vmatmul.bf16.gmra.mxu0 %v1142_v32  ;;  %707 = vmatmul.bf16.gmra.mxu2 %v1238_v33 }
  0x8c   : > { %781 = vmatmul.bf16.gmra.mxu1 %v1146_v34  ;;  %846 = vmatmul.bf16.gmra.mxu3 %v1250_v35  ;;  %v1173_v35 = vld [vmem:[%s1679_s18 + $0xa0] sm:$0xf] }
  0x9b   : > { %652 = vmatmul.bf16.gmra.mxu0 %v1150_v44  ;;  %712 = vmatmul.bf16.gmra.mxu2 %v1246_v45  ;;  %v1279_v44 = vld [vmem:[%s1679_s18 + $0x178] sm:$0xf0] }
  0x9c   : > { %786 = vmatmul.bf16.gmra.mxu1 %v1154_v46  ;;  %851 = vmatmul.bf16.gmra.mxu3 %v1258_v47  ;;  %v1174_v46 = vor.u32 %v1379_v36, %v1173_v35  ;;  %v1282_v54 = vor.u32 %v1404_v43, %v1279_v44  ;;  %v1407_v43 = vld [vmem:[%s1679_s18 + $0x184] sm:$0xf0] }
  0xa8   : > { %v618_v58 = vpop.f32.mrf.mxu0 }
  0xa9   : > { %v752_v62 = vpop.f32.mrf.mxu1  ;;  %v619_v63 = vadd.f32 %v1765_v61, %v618_v58 }
  0xab   : > { %657 = vmatmul.bf16.gmra.mxu0 %v1158_v56  ;;  %717 = vmatmul.bf16.gmra.mxu2 %v1254_v57  ;;  %v753_v3 = vadd.f32 %v752_v62, %v619_v63 }
  0xac   : > { %791 = vmatmul.bf16.gmra.mxu1 %v1162_v59  ;;  %856 = vmatmul.bf16.gmra.mxu3 %v1266_v60 }
  0xad   : > { %v877_v13 = vmax.f32 %v753_v3, 0.0 }
  0xae   : > { %v1768_v0 = vpop.f32.mrf.mxu2 }
  0xaf   : > { %v817_v1 = vpop.f32.mrf.mxu3 }
  0xb0   : > { %v620_v2 = vpop.f32.mrf.mxu0 }
  0xb1   : > { %v621_v4 = vadd.f32 %v1765_v61, %v620_v2  ;;  %v754_v5 = vpop.f32.mrf.mxu1 }
  0xb3   : > { %v755_v6 = vadd.f32 %v754_v5, %v621_v4 }
  0xb5   : > { %v878_v14 = vmax.f32 %v755_v6, 0.0 }
  0xb6   : > { %v1785_v17 = vpop.f32.mrf.mxu2 }
  0xb7   : > { %v1427_v18 = vpack.c.bf16 %v878_v14, %v877_v13  ;;  %v819_v21 = vpop.f32.mrf.mxu3 }
  0xb8   : > { %v623_v22 = vpop.f32.mrf.mxu0 }
  0xb9   : > { %1428 = vst [vmem:[%s1783_s4] sm:$0xff] %v1427_v18   ;;  %v757_v25 = vpop.f32.mrf.mxu1  ;;  %v624_v26 = vadd.f32 %v1765_v61, %v623_v22 }
  0xbb   : > { %662 = vmatmul.bf16.gmra.mxu0 %v1166_v19  ;;  %722 = vmatmul.bf16.gmra.mxu2 %v1262_v20  ;;  %v758_v30 = vadd.f32 %v757_v25, %v624_v26  ;;  %v1182_v19 = vor.u32 %v1381_v8, %v1181_v7  ;;  %v1186_v26 = vor.u32 %v1380_v11, %v1183_v12 }
  0xbc   : > { %796 = vmatmul.bf16.gmra.mxu1 %v1170_v23  ;;  %861 = vmatmul.bf16.gmra.mxu3 %v1274_v24  ;;  %v1278_v23 = vor.u32 %v1405_v10, %v1277_v9 }
  0xbd   : > { %v879_v41 = vmax.f32 %v758_v30, 0.0 }
  0xbe   : > { %v683_v27 = vpop.f32.mrf.mxu2 }
  0xbf   : > { %v822_v28 = vpop.f32.mrf.mxu3  ;;  %v684_v33 = vadd.f32 %v1765_v61, %v683_v27  ;;  %v1290_v27 = vor.u32 %v1406_v15, %v1287_v16 }
  0xc0   : > { %v625_v29 = vpop.f32.mrf.mxu0 }
  0xc1   : > { %v626_v31 = vadd.f32 %v1765_v61, %v625_v29  ;;  %v759_v32 = vpop.f32.mrf.mxu1  ;;  %v818_v47 = vadd.f32 %v817_v1, %v684_v33 }
  0xc3   : > { %v760_v34 = vadd.f32 %v759_v32, %v626_v31  ;;  %v903_v57 = vmax.f32 %v818_v47, 0.0  ;;  %v1191_v47 = vld [vmem:[%s1679_s18 + $0xc8] sm:$0xf0] }
  0xc5   : > { %v880_v42 = vmax.f32 %v760_v34, 0.0 }
  0xc6   : > { %v685_v45 = vpop.f32.mrf.mxu2 }
  0xc7   : > { %v1432_v48 = vpack.c.bf16 %v880_v42, %v879_v41  ;;  %v686_v49 = vadd.f32 %v1765_v61, %v685_v45  ;;  %v824_v51 = vpop.f32.mrf.mxu3  ;;  %v1285_v42 = vld [vmem:[%s1679_s18 + $0x180] sm:$0xf] }
  0xc8   : > { %v628_v52 = vpop.f32.mrf.mxu0 }
  0xc9   : > { %1549 = vst [vmem:[%s1783_s4 + $0x8] sm:$0xff] %v1432_v48   ;;  %v820_v55 = vadd.f32 %v819_v21, %v686_v49  ;;  %v762_v56 = vpop.f32.mrf.mxu1  ;;  %v629_v60 = vadd.f32 %v1765_v61, %v628_v52  ;;  %v1286_v52 = vor.u32 %v1407_v43, %v1285_v42 }
  0xcb   : > { %v904_v58 = vmax.f32 %v820_v55, 0.0  ;;  %667 = vmatmul.bf16.gmra.mxu0 %v1174_v46  ;;  %727 = vmatmul.bf16.gmra.mxu2 %v1270_v50  ;;  %v763_v2 = vadd.f32 %v762_v56, %v629_v60  ;;  %v1382_v46 = vld [vmem:[%s1679_s18 + $0xc4] sm:$0xf] }
  0xcc   : > { %801 = vmatmul.bf16.gmra.mxu1 %v1178_v53  ;;  %866 = vmatmul.bf16.gmra.mxu3 %v1282_v54  ;;  %v1194_v55 = vor.u32 %v1382_v46, %v1191_v47 }
  0xcd   : > { %v1492_v59 = vpack.c.bf16 %v904_v58, %v903_v57  ;;  %v881_v13 = vmax.f32 %v763_v2, 0.0 }
  0xce   : > { %v688_v62 = vpop.f32.mrf.mxu2 }
  0xcf   : > { %1561 = vst [vmem:[%s1783_s4 + $0x68] sm:$0xff] %v1492_v59   ;;  %v827_v63 = vpop.f32.mrf.mxu3  ;;  %v689_v5 = vadd.f32 %v1765_v61, %v688_v62 }
  0xd0   : > { %v630_v1 = vpop.f32.mrf.mxu0 }
  0xd1   : > { %v631_v3 = vadd.f32 %v1765_v61, %v630_v1  ;;  %v764_v4 = vpop.f32.mrf.mxu1  ;;  %v823_v20 = vadd.f32 %v822_v28, %v689_v5 }
  0xd3   : > { %v765_v6 = vadd.f32 %v764_v4, %v631_v3  ;;  %v905_v31 = vmax.f32 %v823_v20, 0.0 }
  0xd5   : > { %v882_v14 = vmax.f32 %v765_v6, 0.0 }
  0xd6   : > { %v690_v18 = vpop.f32.mrf.mxu2 }
  0xd7   : > { %v1437_v21 = vpack.c.bf16 %v882_v14, %v881_v13  ;;  %v691_v22 = vadd.f32 %v1765_v61, %v690_v18  ;;  %v829_v24 = vpop.f32.mrf.mxu3 }
  0xd8   : > { %v633_v25 = vpop.f32.mrf.mxu0 }
  0xd9   : > { %1550 = vst [vmem:[%s1783_s4 + $0x10] sm:$0xff] %v1437_v21   ;;  %v825_v29 = vadd.f32 %v824_v51, %v691_v22  ;;  %v767_v30 = vpop.f32.mrf.mxu1  ;;  %v634_v33 = vadd.f32 %v1765_v61, %v633_v25 }
  0xdb   : > { %v906_v32 = vmax.f32 %v825_v29, 0.0  ;;  %672 = vmatmul.bf16.gmra.mxu0 %v1182_v19  ;;  %732 = vmatmul.bf16.gmra.mxu2 %v1278_v23  ;;  %v768_v37 = vadd.f32 %v767_v30, %v634_v33 }
  0xdc   : > { %806 = vmatmul.bf16.gmra.mxu1 %v1186_v26  ;;  %871 = vmatmul.bf16.gmra.mxu3 %v1290_v27 }
  0xdd   : > { %v1497_v28 = vpack.c.bf16 %v906_v32, %v905_v31  ;;  %v883_v44 = vmax.f32 %v768_v37, 0.0 }
  0xde   : > { %v693_v34 = vpop.f32.mrf.mxu2 }
  0xdf   : > { %1562 = vst [vmem:[%s1783_s4 + $0x70] sm:$0xff] %v1497_v28   ;;  %v832_v35 = vpop.f32.mrf.mxu3  ;;  %v694_v40 = vadd.f32 %v1765_v61, %v693_v34 }
  0xe0   : > { %v635_v36 = vpop.f32.mrf.mxu0 }
  0xe1   : > { %v636_v38 = vadd.f32 %v1765_v61, %v635_v36  ;;  %v769_v39 = vpop.f32.mrf.mxu1  ;;  %v828_v49 = vadd.f32 %v827_v63, %v694_v40 }
  0xe3   : > { %v770_v41 = vadd.f32 %v769_v39, %v636_v38  ;;  %v907_v58 = vmax.f32 %v828_v49, 0.0 }
  0xe5   : > { %v884_v45 = vmax.f32 %v770_v41, 0.0 }
  0xe6   : > { %v695_v48 = vpop.f32.mrf.mxu2 }
  0xe7   : > { %v1442_v50 = vpack.c.bf16 %v884_v45, %v883_v44  ;;  %v696_v51 = vadd.f32 %v1765_v61, %v695_v48  ;;  %v834_v53 = vpop.f32.mrf.mxu3 }
  0xe8   : > { %v638_v54 = vpop.f32.mrf.mxu0 }
  0xe9   : > { %1551 = vst [vmem:[%s1783_s4 + $0x18] sm:$0xff] %v1442_v50   ;;  %v830_v56 = vadd.f32 %v829_v24, %v696_v51  ;;  %v772_v57 = vpop.f32.mrf.mxu1  ;;  %v639_v62 = vadd.f32 %v1765_v61, %v638_v54 }
  0xeb   : > { %v908_v59 = vmax.f32 %v830_v56, 0.0  ;;  %737 = vmatmul.bf16.gmra.mxu2 %v1286_v52  ;;  %v773_v3 = vadd.f32 %v772_v57, %v639_v62 }
  0xec   : > { %811 = vmatmul.bf16.gmra.mxu1 %v1194_v55 }
  0xed   : > { %v1502_v60 = vpack.c.bf16 %v908_v59, %v907_v58  ;;  %v885_v8 = vmax.f32 %v773_v3, 0.0 }
  0xee   : > { %v698_v1 = vpop.f32.mrf.mxu2 }
  0xef   : > { %1563 = vst [vmem:[%s1783_s4 + $0x78] sm:$0xff] %v1502_v60   ;;  %v837_v63 = vpop.f32.mrf.mxu3  ;;  %v699_v6 = vadd.f32 %v1765_v61, %v698_v1 }
  0xf0   : > { %v640_v2 = vpop.f32.mrf.mxu0 }
  0xf1   : > { %v641_v4 = vadd.f32 %v1765_v61, %v640_v2  ;;  %v774_v5 = vpop.f32.mrf.mxu1  ;;  %v833_v11 = vadd.f32 %v832_v35, %v699_v6 }
  0xf3   : > { %v775_v7 = vadd.f32 %v774_v5, %v641_v4  ;;  %v909_v19 = vmax.f32 %v833_v11, 0.0 }
  0xf5   : > { %v886_v9 = vmax.f32 %v775_v7, 0.0 }
  0xf6   : > { %v700_v10 = vpop.f32.mrf.mxu2 }
  0xf7   : > { %v1447_v12 = vpack.c.bf16 %v886_v9, %v885_v8  ;;  %v701_v13 = vadd.f32 %v1765_v61, %v700_v10  ;;  %v839_v14 = vpop.f32.mrf.mxu3 }
  0xf8   : > { %v643_v15 = vpop.f32.mrf.mxu0 }
  0xf9   : > { %1552 = vst [vmem:[%s1783_s4 + $0x20] sm:$0xff] %v1447_v12   ;;  %v835_v16 = vadd.f32 %v834_v53, %v701_v13  ;;  %v777_v18 = vpop.f32.mrf.mxu1  ;;  %v644_v22 = vadd.f32 %v1765_v61, %v643_v15 }
  0xfb   : > { %v910_v20 = vmax.f32 %v835_v16, 0.0  ;;  %v778_v26 = vadd.f32 %v777_v18, %v644_v22 }
  0xfd   : > { %v1507_v21 = vpack.c.bf16 %v910_v20, %v909_v19  ;;  %v887_v32 = vmax.f32 %v778_v26, 0.0 }
  0xfe   : > { %v703_v23 = vpop.f32.mrf.mxu2 }
  0xff   : > { %1564 = vst [vmem:[%s1783_s4 + $0x80] sm:$0xff] %v1507_v21   ;;  %v842_v24 = vpop.f32.mrf.mxu3  ;;  %v704_v30 = vadd.f32 %v1765_v61, %v703_v23 }
 0x100   : > { %v645_v25 = vpop.f32.mrf.mxu0 }
 0x101   : > { %v646_v27 = vadd.f32 %v1765_v61, %v645_v25  ;;  %v779_v29 = vpop.f32.mrf.mxu1  ;;  %v838_v34 = vadd.f32 %v837_v63, %v704_v30 }
 0x103   : > { %v780_v31 = vadd.f32 %v779_v29, %v646_v27  ;;  %v911_v41 = vmax.f32 %v838_v34, 0.0 }
 0x105   : > { %v888_v28 = vmax.f32 %v780_v31, 0.0 }
 0x106   : > { %v705_v33 = vpop.f32.mrf.mxu2 }
 0x107   : > { %v1452_v35 = vpack.c.bf16 %v888_v28, %v887_v32  ;;  %v706_v36 = vadd.f32 %v1765_v61, %v705_v33  ;;  %v844_v37 = vpop.f32.mrf.mxu3 }
 0x108   : > { %v648_v38 = vpop.f32.mrf.mxu0 }
 0x109   : > { %1553 = vst [vmem:[%s1783_s4 + $0x28] sm:$0xff] %v1452_v35   ;;  %v840_v39 = vadd.f32 %v839_v14, %v706_v36  ;;  %v782_v40 = vpop.f32.mrf.mxu1  ;;  %v649_v44 = vadd.f32 %v1765_v61, %v648_v38 }
 0x10b   : > { %v912_v42 = vmax.f32 %v840_v39, 0.0  ;;  %v783_v48 = vadd.f32 %v782_v40, %v649_v44 }
 0x10d   : > { %v1512_v43 = vpack.c.bf16 %v912_v42, %v911_v41  ;;  %v889_v53 = vmax.f32 %v783_v48, 0.0 }
 0x10e   : > { %v708_v45 = vpop.f32.mrf.mxu2 }
 0x10f   : > { %1565 = vst [vmem:[%s1783_s4 + $0x88] sm:$0xff] %v1512_v43   ;;  %v847_v46 = vpop.f32.mrf.mxu3  ;;  %v709_v51 = vadd.f32 %v1765_v61, %v708_v45 }
 0x110   : > { %v650_v47 = vpop.f32.mrf.mxu0 }
 0x111   : > { %v651_v49 = vadd.f32 %v1765_v61, %v650_v47  ;;  %v784_v50 = vpop.f32.mrf.mxu1  ;;  %v843_v56 = vadd.f32 %v842_v24, %v709_v51 }
 0x113   : > { %v785_v52 = vadd.f32 %v784_v50, %v651_v49  ;;  %v913_v63 = vmax.f32 %v843_v56, 0.0 }
 0x115   : > { %v890_v54 = vmax.f32 %v785_v52, 0.0 }
 0x116   : > { %v710_v55 = vpop.f32.mrf.mxu2 }
 0x117   : > { %v1457_v57 = vpack.c.bf16 %v890_v54, %v889_v53  ;;  %v711_v58 = vadd.f32 %v1765_v61, %v710_v55  ;;  %v849_v59 = vpop.f32.mrf.mxu3 }
 0x118   : > { %v653_v60 = vpop.f32.mrf.mxu0 }
 0x119   : > { %1554 = vst [vmem:[%s1783_s4 + $0x30] sm:$0xff] %v1457_v57   ;;  %v845_v62 = vadd.f32 %v844_v37, %v711_v58  ;;  %v787_v1 = vpop.f32.mrf.mxu1  ;;  %v654_v4 = vadd.f32 %v1765_v61, %v653_v60 }
 0x11b   : > { %v914_v2 = vmax.f32 %v845_v62, 0.0  ;;  %v788_v8 = vadd.f32 %v787_v1, %v654_v4 }
 0x11d   : > { %v1517_v3 = vpack.c.bf16 %v914_v2, %v913_v63  ;;  %v891_v13 = vmax.f32 %v788_v8, 0.0 }
 0x11e   : > { %v713_v5 = vpop.f32.mrf.mxu2 }
 0x11f   : > { %1566 = vst [vmem:[%s1783_s4 + $0x90] sm:$0xff] %v1517_v3   ;;  %v852_v6 = vpop.f32.mrf.mxu3  ;;  %v714_v11 = vadd.f32 %v1765_v61, %v713_v5 }
 0x120   : > { %v655_v7 = vpop.f32.mrf.mxu0 }
 0x121   : > { %v656_v9 = vadd.f32 %v1765_v61, %v655_v7  ;;  %v789_v10 = vpop.f32.mrf.mxu1  ;;  %v848_v16 = vadd.f32 %v847_v46, %v714_v11 }
 0x123   : > { %v790_v12 = vadd.f32 %v789_v10, %v656_v9  ;;  %v915_v24 = vmax.f32 %v848_v16, 0.0 }
 0x125   : > { %v892_v14 = vmax.f32 %v790_v12, 0.0 }
 0x126   : > { %v715_v15 = vpop.f32.mrf.mxu2 }
 0x127   : > { %v1462_v18 = vpack.c.bf16 %v892_v14, %v891_v13  ;;  %v716_v19 = vadd.f32 %v1765_v61, %v715_v15  ;;  %v854_v21 = vpop.f32.mrf.mxu3 }
 0x128   : > { %v658_v20 = vpop.f32.mrf.mxu0 }
 0x129   : > { %1555 = vst [vmem:[%s1783_s4 + $0x38] sm:$0xff] %v1462_v18   ;;  %v850_v22 = vadd.f32 %v849_v59, %v716_v19  ;;  %v792_v23 = vpop.f32.mrf.mxu1  ;;  %v659_v27 = vadd.f32 %v1765_v61, %v658_v20 }
 0x12b   : > { %v916_v25 = vmax.f32 %v850_v22, 0.0  ;;  %v793_v31 = vadd.f32 %v792_v23, %v659_v27 }
 0x12d   : > { %v1522_v26 = vpack.c.bf16 %v916_v25, %v915_v24  ;;  %v893_v36 = vmax.f32 %v793_v31, 0.0 }
 0x12e   : > { %v718_v29 = vpop.f32.mrf.mxu2 }
 0x12f   : > { %1567 = vst [vmem:[%s1783_s4 + $0x98] sm:$0xff] %v1522_v26   ;;  %v857_v33 = vpop.f32.mrf.mxu3  ;;  %v719_v34 = vadd.f32 %v1765_v61, %v718_v29 }
 0x130   : > { %v660_v30 = vpop.f32.mrf.mxu0 }
 0x131   : > { %v661_v32 = vadd.f32 %v1765_v61, %v660_v30  ;;  %v794_v28 = vpop.f32.mrf.mxu1  ;;  %v853_v39 = vadd.f32 %v852_v6, %v719_v34 }
 0x133   : > { %v795_v35 = vadd.f32 %v794_v28, %v661_v32  ;;  %v917_v45 = vmax.f32 %v853_v39, 0.0 }
 0x135   : > { %v894_v37 = vmax.f32 %v795_v35, 0.0 }
 0x136   : > { %v720_v38 = vpop.f32.mrf.mxu2 }
 0x137   : > { %v1467_v40 = vpack.c.bf16 %v894_v37, %v893_v36  ;;  %v721_v41 = vadd.f32 %v1765_v61, %v720_v38  ;;  %v859_v47 = vpop.f32.mrf.mxu3 }
 0x138   : > { %v663_v42 = vpop.f32.mrf.mxu0 }
 0x139   : > { %1556 = vst [vmem:[%s1783_s4 + $0x40] sm:$0xff] %v1467_v40   ;;  %v855_v43 = vadd.f32 %v854_v21, %v721_v41  ;;  %v797_v44 = vpop.f32.mrf.mxu1  ;;  %v664_v49 = vadd.f32 %v1765_v61, %v663_v42 }
 0x13b   : > { %v918_v46 = vmax.f32 %v855_v43, 0.0  ;;  %v798_v52 = vadd.f32 %v797_v44, %v664_v49 }
 0x13d   : > { %v1527_v48 = vpack.c.bf16 %v918_v46, %v917_v45  ;;  %v895_v57 = vmax.f32 %v798_v52, 0.0 }
 0x13e   : > { %v723_v50 = vpop.f32.mrf.mxu2 }
 0x13f   : > { %1568 = vst [vmem:[%s1783_s4 + $0xa0] sm:$0xff] %v1527_v48   ;;  %v724_v55 = vadd.f32 %v1765_v61, %v723_v50  ;;  %v862_v60 = vpop.f32.mrf.mxu3 }
 0x140   : > { %v665_v51 = vpop.f32.mrf.mxu0 }
 0x141   : > { %v666_v53 = vadd.f32 %v1765_v61, %v665_v51  ;;  %v799_v54 = vpop.f32.mrf.mxu1  ;;  %v858_v62 = vadd.f32 %v857_v33, %v724_v55  ;;  %v679_v51 = vadd.f32 %v1765_v61, %v1768_v0 }
 0x143   : > { %v800_v56 = vadd.f32 %v799_v54, %v666_v53  ;;  %v919_v5 = vmax.f32 %v858_v62, 0.0  ;;  %v681_v54 = vadd.f32 %v1765_v61, %v1785_v17 }
 0x145   : > { %v896_v58 = vmax.f32 %v800_v56, 0.0 }
 0x146   : > { %v725_v59 = vpop.f32.mrf.mxu2 }
 0x147   : > { %v1472_v1 = vpack.c.bf16 %v896_v58, %v895_v57  ;;  %v726_v63 = vadd.f32 %v1765_v61, %v725_v59  ;;  %v864_v11 = vpop.f32.mrf.mxu3 }
 0x148   : > { %v668_v2 = vpop.f32.mrf.mxu0 }
 0x149   : > { %1557 = vst [vmem:[%s1783_s4 + $0x48] sm:$0xff] %v1472_v1   ;;  %v860_v3 = vadd.f32 %v859_v47, %v726_v63  ;;  %v802_v4 = vpop.f32.mrf.mxu1  ;;  %v669_v8 = vadd.f32 %v1765_v61, %v668_v2 }
 0x14b   : > { %v920_v6 = vmax.f32 %v860_v3, 0.0  ;;  %v803_v12 = vadd.f32 %v802_v4, %v669_v8 }
 0x14d   : > { %v1532_v7 = vpack.c.bf16 %v920_v6, %v919_v5  ;;  %v897_v18 = vmax.f32 %v803_v12, 0.0 }
 0x14e   : > { %v728_v9 = vpop.f32.mrf.mxu2 }
 0x14f   : > { %1569 = vst [vmem:[%s1783_s4 + $0xa8] sm:$0xff] %v1532_v7   ;;  %v729_v15 = vadd.f32 %v1765_v61, %v728_v9  ;;  %v867_v27 = vpop.f32.mrf.mxu3 }
 0x150   : > { %v670_v10 = vpop.f32.mrf.mxu0 }
 0x151   : > { %v671_v13 = vadd.f32 %v1765_v61, %v670_v10  ;;  %v804_v14 = vpop.f32.mrf.mxu1  ;;  %v863_v21 = vadd.f32 %v862_v60, %v729_v15 }
 0x153   : > { %v805_v16 = vadd.f32 %v804_v14, %v671_v13  ;;  %v921_v29 = vmax.f32 %v863_v21, 0.0 }
 0x155   : > { %v898_v19 = vmax.f32 %v805_v16, 0.0 }
 0x156   : > { %v730_v20 = vpop.f32.mrf.mxu2 }
 0x157   : > { %v1477_v22 = vpack.c.bf16 %v898_v19, %v897_v18  ;;  %v731_v23 = vadd.f32 %v1765_v61, %v730_v20  ;;  %v869_v39 = vpop.f32.mrf.mxu3 }
 0x158   : > { %v673_v24 = vpop.f32.mrf.mxu0 }
 0x159   : > { %1558 = vst [vmem:[%s1783_s4 + $0x50] sm:$0xff] %v1477_v22   ;;  %v865_v25 = vadd.f32 %v864_v11, %v731_v23  ;;  %v807_v26 = vpop.f32.mrf.mxu1  ;;  %v674_v32 = vadd.f32 %v1765_v61, %v673_v24 }
 0x15b   : > { %v922_v30 = vmax.f32 %v865_v25, 0.0  ;;  %v808_v34 = vadd.f32 %v807_v26, %v674_v32 }
 0x15d   : > { %v1537_v31 = vpack.c.bf16 %v922_v30, %v921_v29  ;;  %v899_v40 = vmax.f32 %v808_v34, 0.0 }
 0x15e   : > { %v733_v28 = vpop.f32.mrf.mxu2 }
 0x15f   : > { %1570 = vst [vmem:[%s1783_s4 + $0xb0] sm:$0xff] %v1537_v31   ;;  %v734_v37 = vadd.f32 %v1765_v61, %v733_v28  ;;  %v872_v52 = vpop.f32.mrf.mxu3 }
 0x160   : > { %v675_v33 = vpop.f32.mrf.mxu0 }
 0x161   : > { %v676_v35 = vadd.f32 %v1765_v61, %v675_v33  ;;  %v809_v36 = vpop.f32.mrf.mxu1  ;;  %v868_v43 = vadd.f32 %v867_v27, %v734_v37 }
 0x163   : > { %v810_v38 = vadd.f32 %v809_v36, %v676_v35  ;;  %v923_v48 = vmax.f32 %v868_v43, 0.0 }
 0x165   : > { %v900_v41 = vmax.f32 %v810_v38, 0.0 }
 0x166   : > { %v735_v42 = vpop.f32.mrf.mxu2 }
 0x167   : > { %v1482_v44 = vpack.c.bf16 %v900_v41, %v899_v40  ;;  %v736_v45 = vadd.f32 %v1765_v61, %v735_v42  ;;  %v874_v0 = vpop.f32.mrf.mxu3 }
 0x169   : > { %1559 = vst [vmem:[%s1783_s4 + $0x58] sm:$0xff] %v1482_v44   ;;  %v870_v46 = vadd.f32 %v869_v39, %v736_v45  ;;  %v812_v47 = vpop.f32.mrf.mxu1 }
 0x16a   : > { %v813_v55 = vadd.f32 %v812_v47, %v679_v51 }
 0x16b   : > { %v924_v49 = vmax.f32 %v870_v46, 0.0 }
 0x16c   : > { %v901_v59 = vmax.f32 %v813_v55, 0.0 }
 0x16d   : > { %v1542_v50 = vpack.c.bf16 %v924_v49, %v923_v48 }
 0x16e   : > { %v738_v53 = vpop.f32.mrf.mxu2 }
 0x16f   : > { %1571 = vst [vmem:[%s1783_s4 + $0xb8] sm:$0xff] %v1542_v50   ;;  %v739_v58 = vadd.f32 %v1765_v61, %v738_v53 }
 0x171   : > { %v814_v56 = vpop.f32.mrf.mxu1  ;;  %v873_v63 = vadd.f32 %v872_v52, %v739_v58 }
 0x172   : > { %v815_v57 = vadd.f32 %v814_v56, %v681_v54 }
 0x173   : > { %v925_v4 = vmax.f32 %v873_v63, 0.0 }
 0x174   : > { %v902_v60 = vmax.f32 %v815_v57, 0.0 }
 0x176   : > { %v1487_v62 = vpack.c.bf16 %v902_v60, %v901_v59  ;;  %v740_v1 = vpop.f32.mrf.mxu2 }
 0x177   : > { %v741_v2 = vadd.f32 %v1765_v61, %v740_v1 }
 0x178   : > { %1560 = vst [vmem:[%s1783_s4 + $0x60] sm:$0xff] %v1487_v62  }
 0x179   : > { %v875_v3 = vadd.f32 %v874_v0, %v741_v2 }
 0x17b   : > { %v926_v5 = vmax.f32 %v875_v3, 0.0 }
 0x17d   : > { %v1547_v6 = vpack.c.bf16 %v926_v5, %v925_v4 }
 0x17f   : > { %1572 = vst [vmem:[%s1783_s4 + $0xc0] sm:$0xff] %v1547_v6  }
 0x180 PF: > { %s13_s12 = sadd.s32 1, %s1604_s12  }
 0x181   : > { %p10_p4 = scmp.ge.s32.totalorder %s13_s12, 4  }
 0x183   :  { %12 = sbr.rel (!%p10_p4) target bundleno = 1 (0x1), region = 62 }

// kernel: dqn_forward.5
= control target key start
LH: loop header
LB: loop body
LE: loop exit
PB: predicated region body
PF: predicated region fallthrough
CT: control target
= control target key end

     0   :  { %s1690_s1 = inlined_call_operand.vmem [shape: bf16[512,128], index: 1, kind: input, shape index: {}]   ;;  %s1691_s2 = inlined_call_operand.vmem [shape: f32[1,128], index: 2, kind: input, shape index: {}]   ;;  %s1692_s0 = inlined_call_operand.vmem [shape: bf16[162,512], index: 0, kind: input, shape index: {}]   ;;  %s1693_s3 = inlined_call_operand.vmem [shape: bf16[162,128], index: 3, kind: output, shape index: {}]  }
   0x1   :  { %v1184_v0 = vld [vmem:[%s1690_s1 + $0x38] sm:$0xff]  ;;  %v1183_v4 = vld [vmem:[%s1690_s1 + $0x30] sm:$0xff]  ;;  %v1182_v8 = vld [vmem:[%s1690_s1 + $0x28] sm:$0xff] }
   0x2   :  { %v1192_v1 = vld [vmem:[%s1690_s1 + $0x78] sm:$0xff]  ;;  %530 = vmatpush.bf16.msra.mxu0 %v1184_v0  ;;  %v1191_v5 = vld [vmem:[%s1690_s1 + $0x70] sm:$0xff]  ;;  %v1190_v9 = vld [vmem:[%s1690_s1 + $0x68] sm:$0xff] }
   0x3   :  { %v1200_v2 = vld [vmem:[%s1690_s1 + $0xb8] sm:$0xff]  ;;  %593 = vmatpush.bf16.msra.mxu1 %v1192_v1  ;;  %v1199_v6 = vld [vmem:[%s1690_s1 + $0xb0] sm:$0xff]  ;;  %v1198_v10 = vld [vmem:[%s1690_s1 + $0xa8] sm:$0xff] }
   0x4   :  { %v1208_v3 = vld [vmem:[%s1690_s1 + $0xf8] sm:$0xff]  ;;  %656 = vmatpush.bf16.msra.mxu2 %v1200_v2  ;;  %v1207_v7 = vld [vmem:[%s1690_s1 + $0xf0] sm:$0xff]  ;;  %v1206_v11 = vld [vmem:[%s1690_s1 + $0xe8] sm:$0xff] }
   0x5   :  { %719 = vmatpush.bf16.msra.mxu3 %v1208_v3  ;;  %v1181_v12 = vld [vmem:[%s1690_s1 + $0x20] sm:$0xff]  ;;  %v1180_v16 = vld [vmem:[%s1690_s1 + $0x18] sm:$0xff]  ;;  %v1179_v20 = vld [vmem:[%s1690_s1 + $0x10] sm:$0xff] }
   0x6   :  { %531 = vmatpush.bf16.msra.mxu0 %v1183_v4  ;;  %v1189_v13 = vld [vmem:[%s1690_s1 + $0x60] sm:$0xff]  ;;  %v1188_v17 = vld [vmem:[%s1690_s1 + $0x58] sm:$0xff]  ;;  %v1187_v21 = vld [vmem:[%s1690_s1 + $0x50] sm:$0xff] }
   0x7   :  { %594 = vmatpush.bf16.msra.mxu1 %v1191_v5  ;;  %v1197_v14 = vld [vmem:[%s1690_s1 + $0xa0] sm:$0xff]  ;;  %v1196_v18 = vld [vmem:[%s1690_s1 + $0x98] sm:$0xff]  ;;  %v1195_v22 = vld [vmem:[%s1690_s1 + $0x90] sm:$0xff] }
   0x8   :  { %657 = vmatpush.bf16.msra.mxu2 %v1199_v6  ;;  %v1205_v15 = vld [vmem:[%s1690_s1 + $0xe0] sm:$0xff]  ;;  %v1204_v19 = vld [vmem:[%s1690_s1 + $0xd8] sm:$0xff]  ;;  %v1203_v23 = vld [vmem:[%s1690_s1 + $0xd0] sm:$0xff] }
   0x9   :  { %720 = vmatpush.bf16.msra.mxu3 %v1207_v7  ;;  %v1178_v24 = vld [vmem:[%s1690_s1 + $0x8] sm:$0xff]  ;;  %v1177_v28 = vld [vmem:[%s1690_s1] sm:$0xff]  ;;  %v1139_v33 = vld [vmem:[%s1692_s0 + $0xc] sm:$0xf0] }
   0xa   :  { %532 = vmatpush.bf16.msra.mxu0 %v1182_v8  ;;  %v1186_v25 = vld [vmem:[%s1690_s1 + $0x48] sm:$0xff]  ;;  %v1185_v29 = vld [vmem:[%s1690_s1 + $0x40] sm:$0xff]  ;;  %v853_v35 = vld [vmem:[%s1692_s0 + $0x10] sm:$0xf0] }
   0xb   :  { %595 = vmatpush.bf16.msra.mxu1 %v1190_v9  ;;  %v1194_v26 = vld [vmem:[%s1690_s1 + $0x88] sm:$0xff]  ;;  %v1193_v30 = vld [vmem:[%s1690_s1 + $0x80] sm:$0xff]  ;;  %v1140_v37 = vld [vmem:[%s1692_s0 + $0x14] sm:$0xf0] }
   0xc   :  { %658 = vmatpush.bf16.msra.mxu2 %v1198_v10  ;;  %v1202_v27 = vld [vmem:[%s1690_s1 + $0xc8] sm:$0xff]  ;;  %v1201_v31 = vld [vmem:[%s1690_s1 + $0xc0] sm:$0xff]  ;;  %v861_v39 = vld [vmem:[%s1692_s0 + $0x18] sm:$0xf0] }
   0xd   :  { %721 = vmatpush.bf16.msra.mxu3 %v1206_v11  ;;  %v851_v32 = vld [vmem:[%s1692_s0] sm:$0xf]  ;;  %v1137_v34 = vld [vmem:[%s1692_s0 + $0x4] sm:$0xf]  ;;  %v859_v36 = vld [vmem:[%s1692_s0 + $0x8] sm:$0xf] }
   0xe   :  { %533 = vmatpush.bf16.msra.mxu0 %v1181_v12  ;;  %v1138_v38 = vld [vmem:[%s1692_s0 + $0xc] sm:$0xf]  ;;  %v852_v40 = vor.u32 %v1139_v33, %v851_v32  ;;  %v856_v41 = vor.u32 %v1137_v34, %v853_v35  ;;  %v860_v42 = vor.u32 %v1140_v37, %v859_v36  ;;  %v867_v44 = vld [vmem:[%s1692_s0 + $0x20] sm:$0xf]  ;;  %v1143_v45 = vld [vmem:[%s1692_s0 + $0x2c] sm:$0xf0] }
   0xf   :  { %596 = vmatpush.bf16.msra.mxu1 %v1189_v13  ;;  %v864_v43 = vor.u32 %v1138_v38, %v861_v39  ;;  %v1141_v46 = vld [vmem:[%s1692_s0 + $0x24] sm:$0xf]  ;;  %v869_v47 = vld [vmem:[%s1692_s0 + $0x30] sm:$0xf0]  ;;  %v875_v48 = vld [vmem:[%s1692_s0 + $0x28] sm:$0xf]  ;;  %v868_v52 = vor.u32 %v1143_v45, %v867_v44 }
  0x10   :  { %659 = vmatpush.bf16.msra.mxu2 %v1197_v14  ;;  %v1144_v49 = vld [vmem:[%s1692_s0 + $0x34] sm:$0xf0]  ;;  %v1142_v50 = vld [vmem:[%s1692_s0 + $0x2c] sm:$0xf]  ;;  %v877_v51 = vld [vmem:[%s1692_s0 + $0x38] sm:$0xf0]  ;;  %v872_v53 = vor.u32 %v1141_v46, %v869_v47 }
  0x11   :  { %722 = vmatpush.bf16.msra.mxu3 %v1205_v15  ;;  %v876_v54 = vor.u32 %v1144_v49, %v875_v48  ;;  %v880_v55 = vor.u32 %v1142_v50, %v877_v51  ;;  %v883_v56 = vld [vmem:[%s1692_s0 + $0x40] sm:$0xf]  ;;  %v1147_v57 = vld [vmem:[%s1692_s0 + $0x4c] sm:$0xf0]  ;;  %v1145_v58 = vld [vmem:[%s1692_s0 + $0x44] sm:$0xf] }
  0x12   :  { %534 = vmatpush.bf16.msra.mxu0 %v1180_v16  ;;  %v885_v59 = vld [vmem:[%s1692_s0 + $0x50] sm:$0xf0]  ;;  %v891_v60 = vld [vmem:[%s1692_s0 + $0x48] sm:$0xf]  ;;  %v1148_v61 = vld [vmem:[%s1692_s0 + $0x54] sm:$0xf0]  ;;  %v884_v0 = vor.u32 %v1147_v57, %v883_v56 }
  0x13   :  { %597 = vmatpush.bf16.msra.mxu1 %v1188_v17  ;;  %v1146_v62 = vld [vmem:[%s1692_s0 + $0x4c] sm:$0xf]  ;;  %v893_v63 = vld [vmem:[%s1692_s0 + $0x58] sm:$0xf0]  ;;  %v888_v1 = vor.u32 %v1145_v58, %v885_v59  ;;  %v892_v2 = vor.u32 %v1148_v61, %v891_v60  ;;  %v899_v4 = vld [vmem:[%s1692_s0 + $0x60] sm:$0xf] }
  0x14   :  { %660 = vmatpush.bf16.msra.mxu2 %v1196_v18  ;;  %v896_v3 = vor.u32 %v1146_v62, %v893_v63  ;;  %v1151_v5 = vld [vmem:[%s1692_s0 + $0x6c] sm:$0xf0]  ;;  %v1149_v6 = vld [vmem:[%s1692_s0 + $0x64] sm:$0xf]  ;;  %v901_v7 = vld [vmem:[%s1692_s0 + $0x70] sm:$0xf0] }
  0x15   :  { %723 = vmatpush.bf16.msra.mxu3 %v1204_v19  ;;  %v907_v8 = vld [vmem:[%s1692_s0 + $0x68] sm:$0xf]  ;;  %v1152_v9 = vld [vmem:[%s1692_s0 + $0x74] sm:$0xf0]  ;;  %v1150_v10 = vld [vmem:[%s1692_s0 + $0x6c] sm:$0xf]  ;;  %v900_v12 = vor.u32 %v1151_v5, %v899_v4  ;;  %v904_v13 = vor.u32 %v1149_v6, %v901_v7 }
  0x16   :  { %535 = vmatpush.bf16.msra.mxu0 %v1179_v20  ;;  %v909_v11 = vld [vmem:[%s1692_s0 + $0x78] sm:$0xf0]  ;;  %v908_v14 = vor.u32 %v1152_v9, %v907_v8  ;;  %v915_v16 = vld [vmem:[%s1692_s0 + $0x80] sm:$0xf]  ;;  %v1155_v17 = vld [vmem:[%s1692_s0 + $0x8c] sm:$0xf0] }
  0x17   :  { %598 = vmatpush.bf16.msra.mxu1 %v1187_v21  ;;  %v912_v15 = vor.u32 %v1150_v10, %v909_v11  ;;  %v1153_v18 = vld [vmem:[%s1692_s0 + $0x84] sm:$0xf]  ;;  %v917_v19 = vld [vmem:[%s1692_s0 + $0x90] sm:$0xf0]  ;;  %v923_v20 = vld [vmem:[%s1692_s0 + $0x88] sm:$0xf] }
  0x18   :  { %661 = vmatpush.bf16.msra.mxu2 %v1195_v22  ;;  %v1156_v21 = vld [vmem:[%s1692_s0 + $0x94] sm:$0xf0]  ;;  %v1154_v22 = vld [vmem:[%s1692_s0 + $0x8c] sm:$0xf]  ;;  %v939_v32 = vld [vmem:[%s1692_s0 + $0xa8] sm:$0xf] }
  0x19   :  { %724 = vmatpush.bf16.msra.mxu3 %v1203_v23  ;;  %v925_v23 = vld [vmem:[%s1692_s0 + $0x98] sm:$0xf0]  ;;  %v1160_v33 = vld [vmem:[%s1692_s0 + $0xb4] sm:$0xf0]  ;;  %v1158_v34 = vld [vmem:[%s1692_s0 + $0xac] sm:$0xf] }
  0x1a   :  { %536 = vmatpush.bf16.msra.mxu0 %v1178_v24  ;;  %v916_v24 = vor.u32 %v1155_v17, %v915_v16  ;;  %v941_v35 = vld [vmem:[%s1692_s0 + $0xb8] sm:$0xf0]  ;;  %v940_v38 = vor.u32 %v1160_v33, %v939_v32  ;;  %v955_v44 = vld [vmem:[%s1692_s0 + $0xc8] sm:$0xf]  ;;  %v1164_v45 = vld [vmem:[%s1692_s0 + $0xd4] sm:$0xf0] }
  0x1b   :  { %599 = vmatpush.bf16.msra.mxu1 %v1186_v25  ;;  %v920_v25 = vor.u32 %v1153_v18, %v917_v19  ;;  %v944_v39 = vor.u32 %v1158_v34, %v941_v35  ;;  %v1162_v46 = vld [vmem:[%s1692_s0 + $0xcc] sm:$0xf]  ;;  %v957_v47 = vld [vmem:[%s1692_s0 + $0xd8] sm:$0xf0]  ;;  %v956_v50 = vor.u32 %v1164_v45, %v955_v44  ;;  %v971_v56 = vld [vmem:[%s1692_s0 + $0xe8] sm:$0xf] }
  0x1c   :  { %662 = vmatpush.bf16.msra.mxu2 %v1194_v26  ;;  %v924_v26 = vor.u32 %v1156_v21, %v923_v20  ;;  %v960_v51 = vor.u32 %v1162_v46, %v957_v47  ;;  %v1168_v57 = vld [vmem:[%s1692_s0 + $0xf4] sm:$0xf0]  ;;  %v1166_v58 = vld [vmem:[%s1692_s0 + $0xec] sm:$0xf]  ;;  %v973_v59 = vld [vmem:[%s1692_s0 + $0xf8] sm:$0xf0] }
  0x1d   :  { %725 = vmatpush.bf16.msra.mxu3 %v1202_v27  ;;  %v928_v27 = vor.u32 %v1154_v22, %v925_v23  ;;  %v972_v62 = vor.u32 %v1168_v57, %v971_v56  ;;  %v976_v63 = vor.u32 %v1166_v58, %v973_v59  ;;  %v987_v4 = vld [vmem:[%s1692_s0 + $0x108] sm:$0xf]  ;;  %v1172_v5 = vld [vmem:[%s1692_s0 + $0x114] sm:$0xf0]  ;;  %v1170_v6 = vld [vmem:[%s1692_s0 + $0x10c] sm:$0xf] }
  0x1e   :  { %537 = vmatpush.bf16.msra.mxu0 %v1177_v28  ;;  %v931_v28 = vld [vmem:[%s1692_s0 + $0xa0] sm:$0xf]  ;;  %v989_v7 = vld [vmem:[%s1692_s0 + $0x118] sm:$0xf0]  ;;  %v1175_v23 = vld [vmem:[%s1692_s0 + $0x12c] sm:$0xf0] }
  0x1f   :  { %600 = vmatpush.bf16.msra.mxu1 %v1185_v29  ;;  %v1159_v29 = vld [vmem:[%s1692_s0 + $0xac] sm:$0xf0]  ;;  %v1604_v10 = vld [vmem:[%s1691_s2] ss:$0 sm:$0xff] }
  0x20   :  { %663 = vmatpush.bf16.msra.mxu2 %v1193_v30  ;;  %v1157_v30 = vld [vmem:[%s1692_s0 + $0xa4] sm:$0xf]  ;;  %v932_v36 = vor.u32 %v1159_v29, %v931_v28  ;;  %v995_v22 = vld [vmem:[%s1692_s0 + $0x120] sm:$0xf]  ;;  %v1176_v28 = vld [vmem:[%s1692_s0 + $0x134] sm:$0xf0] }
  0x21   :  { %726 = vmatpush.bf16.msra.mxu3 %v1201_v31  ;;  %538 = vmatmul.bf16.vlgmr.msra.gmra.mxu0 %v852_v40  ;;  %v933_v31 = vld [vmem:[%s1692_s0 + $0xb0] sm:$0xf0]  ;;  %v947_v40 = vld [vmem:[%s1692_s0 + $0xc0] sm:$0xf]  ;;  %v1174_v29 = vld [vmem:[%s1692_s0 + $0x12c] sm:$0xf]  ;;  %v996_v34 = vor.u32 %v1175_v23, %v995_v22 }
  0x22   :  { %601 = vmatmul.bf16.vlgmr.msra.gmra.mxu1 %v856_v41  ;;  %v936_v37 = vor.u32 %v1157_v30, %v933_v31  ;;  %v1163_v41 = vld [vmem:[%s1692_s0 + $0xcc] sm:$0xf0]  ;;  %v1005_v30 = vld [vmem:[%s1692_s0 + $0x138] sm:$0xf0] }
  0x23   :  { %664 = vmatmul.bf16.vlgmr.msra.gmra.mxu2 %v860_v42  ;;  %v1161_v42 = vld [vmem:[%s1692_s0 + $0xc4] sm:$0xf]  ;;  %v948_v48 = vor.u32 %v1163_v41, %v947_v40  ;;  %v1008_v41 = vor.u32 %v1174_v29, %v1005_v30 }
  0x24   :  { %727 = vmatmul.bf16.vlgmr.msra.gmra.mxu3 %v864_v43  ;;  %v949_v43 = vld [vmem:[%s1692_s0 + $0xd0] sm:$0xf0] }
  0x25   :  { %v952_v49 = vor.u32 %v1161_v42, %v949_v43 }
  0x31   :  { %543 = vmatmul.bf16.gmra.mxu0 %v868_v52  ;;  %v963_v52 = vld [vmem:[%s1692_s0 + $0xe0] sm:$0xf] }
  0x32   :  { %606 = vmatmul.bf16.gmra.mxu1 %v872_v53  ;;  %v1167_v53 = vld [vmem:[%s1692_s0 + $0xec] sm:$0xf0] }
  0x33   :  { %669 = vmatmul.bf16.gmra.mxu2 %v876_v54  ;;  %v1165_v54 = vld [vmem:[%s1692_s0 + $0xe4] sm:$0xf]  ;;  %v964_v60 = vor.u32 %v1167_v53, %v963_v52  ;;  %v55_v53 = vld [vmem:[%s1692_s0 + $0x148] sm:$0x11] }
  0x34   :  { %732 = vmatmul.bf16.gmra.mxu3 %v880_v55  ;;  %v965_v55 = vld [vmem:[%s1692_s0 + $0xf0] sm:$0xf0]  ;;  %v54_v52 = vld [vmem:[%s1692_s0 + $0x140] sm:$0x11]  ;;  %v248_v58 = vunpack.c.l.b16 %v55_v53  ;;  %v249_v59 = vunpack.c.h.b16 %v55_v53 }
  0x35   :  { %v968_v61 = vor.u32 %v1165_v54, %v965_v55  ;;  %v246_v55 = vunpack.c.l.b16 %v54_v52  ;;  %v247_v56 = vunpack.c.h.b16 %v54_v52 }
  0x41   :  { %548 = vmatmul.bf16.gmra.mxu0 %v884_v0  ;;  %v979_v0 = vld [vmem:[%s1692_s0 + $0x100] sm:$0xf] }
  0x42   :  { %611 = vmatmul.bf16.gmra.mxu1 %v888_v1  ;;  %v1171_v1 = vld [vmem:[%s1692_s0 + $0x10c] sm:$0xf0] }
  0x43   :  { %674 = vmatmul.bf16.gmra.mxu2 %v892_v2  ;;  %v1169_v2 = vld [vmem:[%s1692_s0 + $0x104] sm:$0xf]  ;;  %v980_v8 = vor.u32 %v1171_v1, %v979_v0  ;;  %v291_v0 = vpack.c.b16 %v247_v56, %v247_v56 }
  0x44   :  { %737 = vmatmul.bf16.gmra.mxu3 %v896_v3  ;;  %v981_v3 = vld [vmem:[%s1692_s0 + $0x110] sm:$0xf0] }
  0x45   :  { %v984_v9 = vor.u32 %v1169_v2, %v981_v3 }
  0x51   :  { %553 = vmatmul.bf16.gmra.mxu0 %v900_v12 }
  0x52   :  { %616 = vmatmul.bf16.gmra.mxu1 %v904_v13  ;;  %v988_v13 = vor.u32 %v1172_v5, %v987_v4  ;;  %v292_v5 = vpack.c.b16 %v248_v58, %v248_v58 }
  0x53   :  { %679 = vmatmul.bf16.gmra.mxu2 %v908_v14  ;;  %v992_v14 = vor.u32 %v1170_v6, %v989_v7  ;;  %v293_v6 = vpack.c.b16 %v249_v59, %v249_v59 }
  0x54   :  { %742 = vmatmul.bf16.gmra.mxu3 %v912_v15 }
  0x61   :  { %558 = vmatmul.bf16.gmra.mxu0 %v916_v24 }
  0x62   :  { %621 = vmatmul.bf16.gmra.mxu1 %v920_v25  ;;  %v1173_v25 = vld [vmem:[%s1692_s0 + $0x124] sm:$0xf] }
  0x63   :  { %684 = vmatmul.bf16.gmra.mxu2 %v924_v26  ;;  %v997_v26 = vld [vmem:[%s1692_s0 + $0x130] sm:$0xf0] }
  0x64   :  { %747 = vmatmul.bf16.gmra.mxu3 %v928_v27  ;;  %v1003_v27 = vld [vmem:[%s1692_s0 + $0x128] sm:$0xf]  ;;  %v1000_v35 = vor.u32 %v1173_v25, %v997_v26 }
  0x65   :  { %v1004_v40 = vor.u32 %v1176_v28, %v1003_v27 }
  0x71   :  { %563 = vmatmul.bf16.gmra.mxu0 %v932_v36 }
  0x72   :  { %626 = vmatmul.bf16.gmra.mxu1 %v936_v37 }
  0x73   :  { %689 = vmatmul.bf16.gmra.mxu2 %v940_v38 }
  0x74   :  { %752 = vmatmul.bf16.gmra.mxu3 %v944_v39 }
  0x81   :  { %568 = vmatmul.bf16.gmra.mxu0 %v948_v48 }
  0x82   :  { %631 = vmatmul.bf16.gmra.mxu1 %v952_v49 }
  0x83   :  { %694 = vmatmul.bf16.gmra.mxu2 %v956_v50 }
  0x84   :  { %757 = vmatmul.bf16.gmra.mxu3 %v960_v51 }
  0x91   :  { %573 = vmatmul.bf16.gmra.mxu0 %v964_v60 }
  0x92   :  { %636 = vmatmul.bf16.gmra.mxu1 %v968_v61 }
  0x93   :  { %699 = vmatmul.bf16.gmra.mxu2 %v972_v62 }
  0x94   :  { %762 = vmatmul.bf16.gmra.mxu3 %v976_v63  ;;  %v290_v63 = vpack.c.b16 %v246_v55, %v246_v55 }
  0x9e   :  { %v539_v11 = vpop.f32.mrf.mxu0 }
  0x9f   :  { %v602_v12 = vpop.f32.mrf.mxu1  ;;  %v540_v15 = vadd.f32 %v1604_v10, %v539_v11 }
  0xa1   :  { %578 = vmatmul.bf16.gmra.mxu0 %v980_v8  ;;  %v603_v18 = vadd.f32 %v602_v12, %v540_v15 }
  0xa2   :  { %641 = vmatmul.bf16.gmra.mxu1 %v984_v9 }
  0xa3   :  { %704 = vmatmul.bf16.gmra.mxu2 %v988_v13 }
  0xa4   :  { %767 = vmatmul.bf16.gmra.mxu3 %v992_v14 }
  0xa6   :  { %v665_v16 = vpop.f32.mrf.mxu2  ;;  %v541_v19 = vpop.f32.mrf.mxu0 }
  0xa7   :  { %v728_v17 = vpop.f32.mrf.mxu3  ;;  %v604_v20 = vpop.f32.mrf.mxu1  ;;  %v542_v21 = vadd.f32 %v1604_v10, %v541_v19  ;;  %v666_v24 = vadd.f32 %v665_v16, %v603_v18 }
  0xa9   :  { %v605_v31 = vadd.f32 %v604_v20, %v542_v21  ;;  %v729_v36 = vadd.f32 %v728_v17, %v666_v24 }
  0xab   :  { %v782_v43 = vmax.f32 %v729_v36, 0.0 }
  0xae   :  { %v667_v32 = vpop.f32.mrf.mxu2  ;;  %v544_v38 = vpop.f32.mrf.mxu0 }
  0xaf   :  { %v730_v33 = vpop.f32.mrf.mxu3  ;;  %v668_v37 = vadd.f32 %v667_v32, %v605_v31  ;;  %v607_v39 = vpop.f32.mrf.mxu1  ;;  %v545_v45 = vadd.f32 %v1604_v10, %v544_v38 }
  0xb1   :  { %v731_v42 = vadd.f32 %v730_v33, %v668_v37  ;;  %583 = vmatmul.bf16.gmra.mxu0 %v996_v34  ;;  %v608_v49 = vadd.f32 %v607_v39, %v545_v45 }
  0xb2   :  { %646 = vmatmul.bf16.gmra.mxu1 %v1000_v35 }
  0xb3   :  { %v783_v44 = vmax.f32 %v731_v42, 0.0  ;;  %709 = vmatmul.bf16.gmra.mxu2 %v1004_v40 }
  0xb4   :  { %772 = vmatmul.bf16.gmra.mxu3 %v1008_v41 }
  0xb5   :  { %v1212_v46 = vpack.c.bf16 %v783_v44, %v782_v43 }
  0xb6   :  { %v670_v47 = vpop.f32.mrf.mxu2  ;;  %v546_v50 = vpop.f32.mrf.mxu0 }
  0xb7   :  { %v733_v48 = vpop.f32.mrf.mxu3  ;;  %1213 = vst [vmem:[%s1693_s3] sm:$0xff] %v1212_v46   ;;  %v609_v51 = vpop.f32.mrf.mxu1  ;;  %v547_v54 = vadd.f32 %v1604_v10, %v546_v50  ;;  %v671_v57 = vadd.f32 %v670_v47, %v608_v49 }
  0xb9   :  { %v610_v60 = vadd.f32 %v609_v51, %v547_v54  ;;  %v734_v1 = vadd.f32 %v733_v48, %v671_v57 }
  0xbb   :  { %v784_v8 = vmax.f32 %v734_v1, 0.0 }
  0xbe   :  { %v672_v61 = vpop.f32.mrf.mxu2  ;;  %v549_v3 = vpop.f32.mrf.mxu0 }
  0xbf   :  { %v735_v62 = vpop.f32.mrf.mxu3  ;;  %v673_v2 = vadd.f32 %v672_v61, %v610_v60  ;;  %v612_v4 = vpop.f32.mrf.mxu1  ;;  %v550_v11 = vadd.f32 %v1604_v10, %v549_v3 }
  0xc1   :  { %v736_v7 = vadd.f32 %v735_v62, %v673_v2  ;;  %588 = vmatmul.bf16.gmra.mxu0 %v290_v63  ;;  %v613_v15 = vadd.f32 %v612_v4, %v550_v11 }
  0xc2   :  { %651 = vmatmul.bf16.gmra.mxu1 %v291_v0 }
  0xc3   :  { %v785_v9 = vmax.f32 %v736_v7, 0.0  ;;  %714 = vmatmul.bf16.gmra.mxu2 %v292_v5 }
  0xc4   :  { %777 = vmatmul.bf16.gmra.mxu3 %v293_v6 }
  0xc5   :  { %v1217_v12 = vpack.c.bf16 %v785_v9, %v784_v8 }
  0xc6   :  { %v675_v13 = vpop.f32.mrf.mxu2  ;;  %v551_v16 = vpop.f32.mrf.mxu0 }
  0xc7   :  { %v738_v14 = vpop.f32.mrf.mxu3  ;;  %1259 = vst [vmem:[%s1693_s3 + $0x8] sm:$0xff] %v1217_v12   ;;  %v614_v17 = vpop.f32.mrf.mxu1  ;;  %v552_v18 = vadd.f32 %v1604_v10, %v551_v16  ;;  %v676_v19 = vadd.f32 %v675_v13, %v613_v15 }
  0xc9   :  { %v615_v20 = vadd.f32 %v614_v17, %v552_v18  ;;  %v739_v23 = vadd.f32 %v738_v14, %v676_v19 }
  0xcb   :  { %v786_v28 = vmax.f32 %v739_v23, 0.0 }
  0xce   :  { %v677_v21 = vpop.f32.mrf.mxu2  ;;  %v554_v25 = vpop.f32.mrf.mxu0 }
  0xcf   :  { %v740_v22 = vpop.f32.mrf.mxu3  ;;  %v678_v24 = vadd.f32 %v677_v21, %v615_v20  ;;  %v617_v26 = vpop.f32.mrf.mxu1  ;;  %v555_v30 = vadd.f32 %v1604_v10, %v554_v25 }
  0xd1   :  { %v741_v27 = vadd.f32 %v740_v22, %v678_v24  ;;  %v618_v34 = vadd.f32 %v617_v26, %v555_v30 }
  0xd3   :  { %v787_v29 = vmax.f32 %v741_v27, 0.0 }
  0xd5   :  { %v1222_v31 = vpack.c.bf16 %v787_v29, %v786_v28 }
  0xd6   :  { %v680_v32 = vpop.f32.mrf.mxu2  ;;  %v556_v35 = vpop.f32.mrf.mxu0 }
  0xd7   :  { %v743_v33 = vpop.f32.mrf.mxu3  ;;  %1260 = vst [vmem:[%s1693_s3 + $0x10] sm:$0xff] %v1222_v31   ;;  %v619_v36 = vpop.f32.mrf.mxu1  ;;  %v557_v37 = vadd.f32 %v1604_v10, %v556_v35  ;;  %v681_v38 = vadd.f32 %v680_v32, %v618_v34 }
  0xd9   :  { %v620_v39 = vadd.f32 %v619_v36, %v557_v37  ;;  %v744_v42 = vadd.f32 %v743_v33, %v681_v38 }
  0xdb   :  { %v788_v47 = vmax.f32 %v744_v42, 0.0 }
  0xde   :  { %v682_v40 = vpop.f32.mrf.mxu2  ;;  %v559_v44 = vpop.f32.mrf.mxu0 }
  0xdf   :  { %v745_v41 = vpop.f32.mrf.mxu3  ;;  %v683_v43 = vadd.f32 %v682_v40, %v620_v39  ;;  %v622_v45 = vpop.f32.mrf.mxu1  ;;  %v560_v49 = vadd.f32 %v1604_v10, %v559_v44 }
  0xe1   :  { %v746_v46 = vadd.f32 %v745_v41, %v683_v43  ;;  %v623_v53 = vadd.f32 %v622_v45, %v560_v49 }
  0xe3   :  { %v789_v48 = vmax.f32 %v746_v46, 0.0 }
  0xe5   :  { %v1227_v50 = vpack.c.bf16 %v789_v48, %v788_v47 }
  0xe6   :  { %v685_v51 = vpop.f32.mrf.mxu2  ;;  %v561_v54 = vpop.f32.mrf.mxu0 }
  0xe7   :  { %v748_v52 = vpop.f32.mrf.mxu3  ;;  %1261 = vst [vmem:[%s1693_s3 + $0x18] sm:$0xff] %v1227_v50   ;;  %v624_v55 = vpop.f32.mrf.mxu1  ;;  %v562_v56 = vadd.f32 %v1604_v10, %v561_v54  ;;  %v686_v57 = vadd.f32 %v685_v51, %v623_v53 }
  0xe9   :  { %v625_v58 = vadd.f32 %v624_v55, %v562_v56  ;;  %v749_v61 = vadd.f32 %v748_v52, %v686_v57 }
  0xeb   :  { %v790_v2 = vmax.f32 %v749_v61, 0.0 }
  0xee   :  { %v687_v59 = vpop.f32.mrf.mxu2  ;;  %v564_v63 = vpop.f32.mrf.mxu0 }
  0xef   :  { %v750_v60 = vpop.f32.mrf.mxu3  ;;  %v688_v62 = vadd.f32 %v687_v59, %v625_v58  ;;  %v627_v0 = vpop.f32.mrf.mxu1  ;;  %v565_v4 = vadd.f32 %v1604_v10, %v564_v63 }
  0xf1   :  { %v751_v1 = vadd.f32 %v750_v60, %v688_v62  ;;  %v628_v8 = vadd.f32 %v627_v0, %v565_v4 }
  0xf3   :  { %v791_v3 = vmax.f32 %v751_v1, 0.0 }
  0xf5   :  { %v1232_v5 = vpack.c.bf16 %v791_v3, %v790_v2 }
  0xf6   :  { %v690_v6 = vpop.f32.mrf.mxu2  ;;  %v566_v9 = vpop.f32.mrf.mxu0 }
  0xf7   :  { %v753_v7 = vpop.f32.mrf.mxu3  ;;  %1262 = vst [vmem:[%s1693_s3 + $0x20] sm:$0xff] %v1232_v5   ;;  %v629_v11 = vpop.f32.mrf.mxu1  ;;  %v567_v12 = vadd.f32 %v1604_v10, %v566_v9  ;;  %v691_v13 = vadd.f32 %v690_v6, %v628_v8 }
  0xf9   :  { %v630_v14 = vadd.f32 %v629_v11, %v567_v12  ;;  %v754_v17 = vadd.f32 %v753_v7, %v691_v13 }
  0xfb   :  { %v792_v22 = vmax.f32 %v754_v17, 0.0 }
  0xfe   :  { %v692_v15 = vpop.f32.mrf.mxu2  ;;  %v569_v19 = vpop.f32.mrf.mxu0 }
  0xff   :  { %v755_v16 = vpop.f32.mrf.mxu3  ;;  %v693_v18 = vadd.f32 %v692_v15, %v630_v14  ;;  %v632_v20 = vpop.f32.mrf.mxu1  ;;  %v570_v24 = vadd.f32 %v1604_v10, %v569_v19 }
 0x101   :  { %v756_v21 = vadd.f32 %v755_v16, %v693_v18  ;;  %v633_v28 = vadd.f32 %v632_v20, %v570_v24 }
 0x103   :  { %v793_v23 = vmax.f32 %v756_v21, 0.0 }
 0x105   :  { %v1237_v25 = vpack.c.bf16 %v793_v23, %v792_v22 }
 0x106   :  { %v695_v26 = vpop.f32.mrf.mxu2  ;;  %v571_v29 = vpop.f32.mrf.mxu0 }
 0x107   :  { %v758_v27 = vpop.f32.mrf.mxu3  ;;  %1263 = vst [vmem:[%s1693_s3 + $0x28] sm:$0xff] %v1237_v25   ;;  %v634_v30 = vpop.f32.mrf.mxu1  ;;  %v572_v31 = vadd.f32 %v1604_v10, %v571_v29  ;;  %v696_v32 = vadd.f32 %v695_v26, %v633_v28 }
 0x109   :  { %v635_v33 = vadd.f32 %v634_v30, %v572_v31  ;;  %v759_v36 = vadd.f32 %v758_v27, %v696_v32 }
 0x10b   :  { %v794_v41 = vmax.f32 %v759_v36, 0.0 }
 0x10e   :  { %v697_v34 = vpop.f32.mrf.mxu2  ;;  %v574_v38 = vpop.f32.mrf.mxu0 }
 0x10f   :  { %v760_v35 = vpop.f32.mrf.mxu3  ;;  %v698_v37 = vadd.f32 %v697_v34, %v635_v33  ;;  %v637_v39 = vpop.f32.mrf.mxu1  ;;  %v575_v43 = vadd.f32 %v1604_v10, %v574_v38 }
 0x111   :  { %v761_v40 = vadd.f32 %v760_v35, %v698_v37  ;;  %v638_v47 = vadd.f32 %v637_v39, %v575_v43 }
 0x113   :  { %v795_v42 = vmax.f32 %v761_v40, 0.0 }
 0x115   :  { %v1242_v44 = vpack.c.bf16 %v795_v42, %v794_v41 }
 0x116   :  { %v700_v45 = vpop.f32.mrf.mxu2  ;;  %v576_v48 = vpop.f32.mrf.mxu0 }
 0x117   :  { %v763_v46 = vpop.f32.mrf.mxu3  ;;  %1264 = vst [vmem:[%s1693_s3 + $0x30] sm:$0xff] %v1242_v44   ;;  %v639_v49 = vpop.f32.mrf.mxu1  ;;  %v577_v50 = vadd.f32 %v1604_v10, %v576_v48  ;;  %v701_v51 = vadd.f32 %v700_v45, %v638_v47 }
 0x119   :  { %v640_v52 = vadd.f32 %v639_v49, %v577_v50  ;;  %v764_v55 = vadd.f32 %v763_v46, %v701_v51 }
 0x11b   :  { %v796_v60 = vmax.f32 %v764_v55, 0.0 }
 0x11e   :  { %v702_v53 = vpop.f32.mrf.mxu2  ;;  %v579_v57 = vpop.f32.mrf.mxu0 }
 0x11f   :  { %v765_v54 = vpop.f32.mrf.mxu3  ;;  %v703_v56 = vadd.f32 %v702_v53, %v640_v52  ;;  %v642_v58 = vpop.f32.mrf.mxu1  ;;  %v580_v62 = vadd.f32 %v1604_v10, %v579_v57 }
 0x121   :  { %v766_v59 = vadd.f32 %v765_v54, %v703_v56  ;;  %v643_v2 = vadd.f32 %v642_v58, %v580_v62 }
 0x123   :  { %v797_v61 = vmax.f32 %v766_v59, 0.0 }
 0x125   :  { %v1247_v63 = vpack.c.bf16 %v797_v61, %v796_v60 }
 0x126   :  { %v705_v0 = vpop.f32.mrf.mxu2  ;;  %v581_v3 = vpop.f32.mrf.mxu0 }
 0x127   :  { %v768_v1 = vpop.f32.mrf.mxu3  ;;  %1265 = vst [vmem:[%s1693_s3 + $0x38] sm:$0xff] %v1247_v63   ;;  %v644_v4 = vpop.f32.mrf.mxu1  ;;  %v582_v5 = vadd.f32 %v1604_v10, %v581_v3  ;;  %v706_v6 = vadd.f32 %v705_v0, %v643_v2 }
 0x129   :  { %v645_v7 = vadd.f32 %v644_v4, %v582_v5  ;;  %v769_v11 = vadd.f32 %v768_v1, %v706_v6 }
 0x12b   :  { %v798_v16 = vmax.f32 %v769_v11, 0.0 }
 0x12e   :  { %v707_v8 = vpop.f32.mrf.mxu2  ;;  %v584_v13 = vpop.f32.mrf.mxu0 }
 0x12f   :  { %v770_v9 = vpop.f32.mrf.mxu3  ;;  %v708_v12 = vadd.f32 %v707_v8, %v645_v7  ;;  %v647_v14 = vpop.f32.mrf.mxu1  ;;  %v585_v18 = vadd.f32 %v1604_v10, %v584_v13 }
 0x131   :  { %v771_v15 = vadd.f32 %v770_v9, %v708_v12  ;;  %v648_v22 = vadd.f32 %v647_v14, %v585_v18 }
 0x133   :  { %v799_v17 = vmax.f32 %v771_v15, 0.0 }
 0x135   :  { %v1252_v19 = vpack.c.bf16 %v799_v17, %v798_v16 }
 0x136   :  { %v710_v20 = vpop.f32.mrf.mxu2  ;;  %v586_v23 = vpop.f32.mrf.mxu0 }
 0x137   :  { %v773_v21 = vpop.f32.mrf.mxu3  ;;  %1266 = vst [vmem:[%s1693_s3 + $0x40] sm:$0xff] %v1252_v19   ;;  %v649_v24 = vpop.f32.mrf.mxu1  ;;  %v587_v25 = vadd.f32 %v1604_v10, %v586_v23  ;;  %v711_v26 = vadd.f32 %v710_v20, %v648_v22 }
 0x139   :  { %v650_v27 = vadd.f32 %v649_v24, %v587_v25  ;;  %v774_v30 = vadd.f32 %v773_v21, %v711_v26 }
 0x13b   :  { %v800_v36 = vmax.f32 %v774_v30, 0.0 }
 0x13e   :  { %v712_v28 = vpop.f32.mrf.mxu2  ;;  %v589_v32 = vpop.f32.mrf.mxu0 }
 0x13f   :  { %v775_v29 = vpop.f32.mrf.mxu3  ;;  %v713_v31 = vadd.f32 %v712_v28, %v650_v27  ;;  %v652_v33 = vpop.f32.mrf.mxu1  ;;  %v590_v34 = vadd.f32 %v1604_v10, %v589_v32 }
 0x141   :  { %v776_v35 = vadd.f32 %v775_v29, %v713_v31  ;;  %v653_v38 = vadd.f32 %v652_v33, %v590_v34 }
 0x143   :  { %v801_v37 = vmax.f32 %v776_v35, 0.0 }
 0x145   :  { %v1257_v39 = vpack.c.bf16 %v801_v37, %v800_v36 }
 0x146   :  { %v715_v40 = vpop.f32.mrf.mxu2  ;;  %v591_v43 = vpop.f32.mrf.mxu0 }
 0x147   :  { %v778_v41 = vpop.f32.mrf.mxu3  ;;  %1267 = vst [vmem:[%s1693_s3 + $0x48] sm:$0xff] %v1257_v39   ;;  %v716_v42 = vadd.f32 %v715_v40, %v653_v38  ;;  %v654_v44 = vpop.f32.mrf.mxu1 }
 0x149   :  { %v779_v45 = vadd.f32 %v778_v41, %v716_v42 }
 0x14b   :  { %v802_v46 = vmax.f32 %v779_v45, 0.0 }
 0x14d   :  { %v823_v47 = vpack.c.bf16 %v802_v46, %v802_v46 }
 0x14e   :  { %v717_v48 = vpop.f32.mrf.mxu2 }
 0x14f   :  { %v780_v49 = vpop.f32.mrf.mxu3  ;;  %844 = vst [vmem:[%s1693_s3 + $0x50] sm:$0x1] %v823_v47 }

// kernel: dqn_forward.6
= control target key start
LH: loop header
LB: loop body
LE: loop exit
PB: predicated region body
PF: predicated region fallthrough
CT: control target
= control target key end

     0   :  { %vm369_vm0 = vcmask 523264   ;;  %s932_s1 = inlined_call_operand.vmem [shape: bf16[576,128], index: 1, kind: input, shape index: {}]   ;;  %s933_s2 = inlined_call_operand.vmem [shape: f32[1,128], index: 2, kind: input, shape index: {}]   ;;  %s934_s0 = inlined_call_operand.vmem [shape: bf16[32,576], index: 0, kind: input, shape index: {}]   ;;  %s935_s3 = inlined_call_operand.vmem [shape: bf16[32,128], index: 3, kind: output, shape index: {}]  }
   0x1   :  { %v690_v0 = vld [vmem:[%s932_s1 + $0x38] sm:$0xff]  ;;  %v689_v4 = vld [vmem:[%s932_s1 + $0x30] sm:$0xff]  ;;  %v688_v8 = vld [vmem:[%s932_s1 + $0x28] sm:$0xff] }
   0x2   :  { %v698_v1 = vld [vmem:[%s932_s1 + $0x78] sm:$0xff]  ;;  %376 = vmatpush.bf16.msra.mxu0 %v690_v0  ;;  %v697_v5 = vld [vmem:[%s932_s1 + $0x70] sm:$0xff]  ;;  %v696_v9 = vld [vmem:[%s932_s1 + $0x68] sm:$0xff] }
   0x3   :  { %v706_v2 = vld [vmem:[%s932_s1 + $0xb8] sm:$0xff]  ;;  %395 = vmatpush.bf16.msra.mxu1 %v698_v1  ;;  %v705_v6 = vld [vmem:[%s932_s1 + $0xb0] sm:$0xff]  ;;  %v704_v10 = vld [vmem:[%s932_s1 + $0xa8] sm:$0xff] }
   0x4   :  { %v714_v3 = vld [vmem:[%s932_s1 + $0xf8] sm:$0xff]  ;;  %414 = vmatpush.bf16.msra.mxu2 %v706_v2  ;;  %v713_v7 = vld [vmem:[%s932_s1 + $0xf0] sm:$0xff]  ;;  %v712_v11 = vld [vmem:[%s932_s1 + $0xe8] sm:$0xff] }
   0x5   :  { %433 = vmatpush.bf16.msra.mxu3 %v714_v3  ;;  %v687_v12 = vld [vmem:[%s932_s1 + $0x20] sm:$0xff]  ;;  %v686_v16 = vld [vmem:[%s932_s1 + $0x18] sm:$0xff]  ;;  %v685_v20 = vld [vmem:[%s932_s1 + $0x10] sm:$0xff] }
   0x6   :  { %377 = vmatpush.bf16.msra.mxu0 %v689_v4  ;;  %v695_v13 = vld [vmem:[%s932_s1 + $0x60] sm:$0xff]  ;;  %v694_v17 = vld [vmem:[%s932_s1 + $0x58] sm:$0xff]  ;;  %v693_v21 = vld [vmem:[%s932_s1 + $0x50] sm:$0xff] }
   0x7   :  { %396 = vmatpush.bf16.msra.mxu1 %v697_v5  ;;  %v703_v14 = vld [vmem:[%s932_s1 + $0xa0] sm:$0xff]  ;;  %v702_v18 = vld [vmem:[%s932_s1 + $0x98] sm:$0xff]  ;;  %v701_v22 = vld [vmem:[%s932_s1 + $0x90] sm:$0xff] }
   0x8   :  { %415 = vmatpush.bf16.msra.mxu2 %v705_v6  ;;  %v711_v15 = vld [vmem:[%s932_s1 + $0xe0] sm:$0xff]  ;;  %v710_v19 = vld [vmem:[%s932_s1 + $0xd8] sm:$0xff]  ;;  %v709_v23 = vld [vmem:[%s932_s1 + $0xd0] sm:$0xff] }
   0x9   :  { %434 = vmatpush.bf16.msra.mxu3 %v713_v7  ;;  %v684_v24 = vld [vmem:[%s932_s1 + $0x8] sm:$0xff]  ;;  %v683_v28 = vld [vmem:[%s932_s1] sm:$0xff]  ;;  %v675_v33 = vld [vmem:[%s934_s0 + $0x10] sm:$0xf0] }
   0xa   :  { %378 = vmatpush.bf16.msra.mxu0 %v688_v8  ;;  %v692_v25 = vld [vmem:[%s932_s1 + $0x48] sm:$0xff]  ;;  %v691_v29 = vld [vmem:[%s932_s1 + $0x40] sm:$0xff]  ;;  %v491_v35 = vld [vmem:[%s934_s0 + $0x14] sm:$0xf0] }
   0xb   :  { %397 = vmatpush.bf16.msra.mxu1 %v696_v9  ;;  %v700_v26 = vld [vmem:[%s932_s1 + $0x88] sm:$0xff]  ;;  %v699_v30 = vld [vmem:[%s932_s1 + $0x80] sm:$0xff]  ;;  %v676_v37 = vld [vmem:[%s934_s0 + $0x18] sm:$0xf0] }
   0xc   :  { %416 = vmatpush.bf16.msra.mxu2 %v704_v10  ;;  %v708_v27 = vld [vmem:[%s932_s1 + $0xc8] sm:$0xff]  ;;  %v707_v31 = vld [vmem:[%s932_s1 + $0xc0] sm:$0xff]  ;;  %v718_v40 = vld [vmem:[%s932_s1 + $0x118] sm:$0xff] }
   0xd   :  { %435 = vmatpush.bf16.msra.mxu3 %v712_v11  ;;  %v489_v32 = vld [vmem:[%s934_s0] sm:$0xf]  ;;  %v673_v34 = vld [vmem:[%s934_s0 + $0x4] sm:$0xf]  ;;  %v497_v36 = vld [vmem:[%s934_s0 + $0x8] sm:$0xf] }
   0xe   :  { %379 = vmatpush.bf16.msra.mxu0 %v687_v12  ;;  %v674_v38 = vld [vmem:[%s934_s0 + $0xc] sm:$0xf]  ;;  %v499_v39 = vld [vmem:[%s934_s0 + $0x1c] sm:$0xf0]  ;;  %v490_v41 = vor.u32 %v675_v33, %v489_v32  ;;  %v494_v42 = vor.u32 %v673_v34, %v491_v35  ;;  %v498_v43 = vor.u32 %v676_v37, %v497_v36  ;;  %v717_v45 = vld [vmem:[%s932_s1 + $0x110] sm:$0xff] }
   0xf   :  { %398 = vmatpush.bf16.msra.mxu1 %v695_v13  ;;  %v502_v44 = vor.u32 %v674_v38, %v499_v39  ;;  %v716_v46 = vld [vmem:[%s932_s1 + $0x108] sm:$0xff]  ;;  %v715_v47 = vld [vmem:[%s932_s1 + $0x100] sm:$0xff]  ;;  %v680_v49 = vld [vmem:[%s934_s0 + $0x38] sm:$0xf0] }
  0x10   :  { %417 = vmatpush.bf16.msra.mxu2 %v703_v14  ;;  %v509_v48 = vld [vmem:[%s934_s0 + $0x28] sm:$0xf]  ;;  %v678_v50 = vld [vmem:[%s934_s0 + $0x2c] sm:$0xf]  ;;  %v511_v51 = vld [vmem:[%s934_s0 + $0x3c] sm:$0xf0] }
  0x11   :  { %436 = vmatpush.bf16.msra.mxu3 %v711_v15  ;;  %v517_v52 = vld [vmem:[%s934_s0 + $0x30] sm:$0xf]  ;;  %v681_v53 = vld [vmem:[%s934_s0 + $0x40] sm:$0xf0]  ;;  %v679_v54 = vld [vmem:[%s934_s0 + $0x34] sm:$0xf]  ;;  %v510_v56 = vor.u32 %v680_v49, %v509_v48  ;;  %v514_v57 = vor.u32 %v678_v50, %v511_v51 }
  0x12   :  { %380 = vmatpush.bf16.msra.mxu0 %v686_v16  ;;  %v519_v55 = vld [vmem:[%s934_s0 + $0x44] sm:$0xf0]  ;;  %v518_v58 = vor.u32 %v681_v53, %v517_v52  ;;  %v505_v60 = vld [vmem:[%s934_s0 + $0x10] sm:$0xf]  ;;  %v677_v61 = vld [vmem:[%s934_s0 + $0x20] sm:$0xf0] }
  0x13   :  { %399 = vmatpush.bf16.msra.mxu1 %v694_v17  ;;  %v522_v59 = vor.u32 %v679_v54, %v519_v55  ;;  %v525_v62 = vld [vmem:[%s934_s0 + $0x38] sm:$0xf]  ;;  %v682_v63 = vld [vmem:[%s934_s0 + $0x48] sm:$0xf0]  ;;  %v506_v0 = vor.u32 %v677_v61, %v505_v60  ;;  %v734_v12 = vld [vmem:[%s933_s2] ss:$0 sm:$0xff] }
  0x14   :  { %418 = vmatpush.bf16.msra.mxu2 %v702_v18  ;;  %v526_v1 = vor.u32 %v682_v63, %v525_v62 }
  0x15   :  { %437 = vmatpush.bf16.msra.mxu3 %v710_v19 }
  0x16   :  { %381 = vmatpush.bf16.msra.mxu0 %v685_v20 }
  0x17   :  { %400 = vmatpush.bf16.msra.mxu1 %v693_v21 }
  0x18   :  { %419 = vmatpush.bf16.msra.mxu2 %v701_v22 }
  0x19   :  { %438 = vmatpush.bf16.msra.mxu3 %v709_v23 }
  0x1a   :  { %382 = vmatpush.bf16.msra.mxu0 %v684_v24 }
  0x1b   :  { %401 = vmatpush.bf16.msra.mxu1 %v692_v25 }
  0x1c   :  { %420 = vmatpush.bf16.msra.mxu2 %v700_v26 }
  0x1d   :  { %439 = vmatpush.bf16.msra.mxu3 %v708_v27 }
  0x1e   :  { %383 = vmatpush.bf16.msra.mxu0 %v683_v28 }
  0x1f   :  { %402 = vmatpush.bf16.msra.mxu1 %v691_v29 }
  0x20   :  { %421 = vmatpush.bf16.msra.mxu2 %v699_v30 }
  0x21   :  { %440 = vmatpush.bf16.msra.mxu3 %v707_v31  ;;  %384 = vmatmul.bf16.vlgmr.msra.gmra.mxu0 %v490_v41 }
  0x22   :  { %456 = vmatpush.bf16.msrb.mxu0 %v718_v40  ;;  %403 = vmatmul.bf16.vlgmr.msra.gmra.mxu1 %v494_v42 }
  0x23   :  { %730 = vmatpush.bf16.msrb.mxu1 %v718_v40  ;;  %422 = vmatmul.bf16.vlgmr.msra.gmra.mxu2 %v498_v43 }
  0x24   :  { %441 = vmatmul.bf16.vlgmr.msra.gmra.mxu3 %v502_v44 }
  0x26   :  { %457 = vmatpush.bf16.msrb.mxu0 %v717_v45 }
  0x27   :  { %731 = vmatpush.bf16.msrb.mxu1 %v717_v45 }
  0x2a   :  { %458 = vmatpush.bf16.msrb.mxu0 %v716_v46 }
  0x2b   :  { %732 = vmatpush.bf16.msrb.mxu1 %v716_v46 }
  0x2e   :  { %459 = vmatpush.bf16.msrb.mxu0 %v715_v47 }
  0x2f   :  { %733 = vmatpush.bf16.msrb.mxu1 %v715_v47 }
  0x31   :  { %389 = vmatmul.bf16.gmra.mxu0 %v510_v56 }
  0x32   :  { %408 = vmatmul.bf16.gmra.mxu1 %v514_v57 }
  0x33   :  { %427 = vmatmul.bf16.gmra.mxu2 %v518_v58 }
  0x34   :  { %446 = vmatmul.bf16.gmra.mxu3 %v522_v59 }
  0x41   :  { %671 = vmatmul.msk.bf16.vlgmr.msrb.gmra.mxu0 %vm369_vm0, %v506_v0 }
  0x42   :  { %672 = vmatmul.msk.bf16.vlgmr.msrb.gmra.mxu1 %vm369_vm0, %v526_v1 }
  0x9e   :  { %v385_v2 = vpop.f32.mrf.mxu0 }
  0x9f   :  { %v404_v3 = vpop.f32.mrf.mxu1  ;;  %v386_v16 = vadd.f32 %v734_v12, %v385_v2 }
  0xa1   :  { %v405_v21 = vadd.f32 %v404_v3, %v386_v16 }
  0xa6   :  { %v423_v4 = vpop.f32.mrf.mxu2  ;;  %v387_v6 = vpop.f32.mrf.mxu0 }
  0xa7   :  { %v442_v5 = vpop.f32.mrf.mxu3  ;;  %v406_v7 = vpop.f32.mrf.mxu1  ;;  %v388_v19 = vadd.f32 %v734_v12, %v387_v6  ;;  %v424_v26 = vadd.f32 %v423_v4, %v405_v21 }
  0xa9   :  { %v407_v27 = vadd.f32 %v406_v7, %v388_v19  ;;  %v443_v32 = vadd.f32 %v442_v5, %v424_v26 }
  0xae   :  { %v425_v8 = vpop.f32.mrf.mxu2  ;;  %v390_v9 = vpop.f32.mrf.mxu0 }
  0xaf   :  { %v409_v10 = vpop.f32.mrf.mxu1  ;;  %v444_v11 = vpop.f32.mrf.mxu3  ;;  %v391_v17 = vadd.f32 %v734_v12, %v390_v9  ;;  %v426_v30 = vadd.f32 %v425_v8, %v407_v27 }
  0xb1   :  { %v410_v22 = vadd.f32 %v409_v10, %v391_v17  ;;  %v445_v35 = vadd.f32 %v444_v11, %v426_v30 }
  0xb6   :  { %v428_v13 = vpop.f32.mrf.mxu2  ;;  %v392_v14 = vpop.f32.mrf.mxu0 }
  0xb7   :  { %v411_v15 = vpop.f32.mrf.mxu1  ;;  %v447_v18 = vpop.f32.mrf.mxu3  ;;  %v393_v20 = vadd.f32 %v734_v12, %v392_v14  ;;  %v429_v28 = vadd.f32 %v428_v13, %v410_v22 }
  0xb9   :  { %v412_v29 = vadd.f32 %v411_v15, %v393_v20  ;;  %v448_v33 = vadd.f32 %v447_v18, %v429_v28 }
  0xbe   :  { %v430_v23 = vpop.f32.mrf.mxu2  ;;  %v461_v24 = vpop.f32.mrf.mxu0 }
  0xbf   :  { %v466_v25 = vpop.f32.mrf.mxu1  ;;  %v431_v31 = vadd.f32 %v430_v23, %v412_v29  ;;  %v449_v34 = vpop.f32.mrf.mxu3  ;;  %v462_v37 = vadd.f32 %v461_v24, %v443_v32 }
  0xc0   :  { %v467_v38 = vadd.f32 %v466_v25, %v448_v33 }
  0xc1   :  { %v450_v36 = vadd.f32 %v449_v34, %v431_v31  ;;  %v471_v43 = vmax.f32 %v462_v37, 0.0 }
  0xc2   :  { %v473_v44 = vmax.f32 %v467_v38, 0.0 }
  0xc6   :  { %v463_v39 = vpop.f32.mrf.mxu0 }
  0xc7   :  { %v468_v40 = vpop.f32.mrf.mxu1  ;;  %v464_v41 = vadd.f32 %v463_v39, %v445_v35 }
  0xc8   :  { %v469_v42 = vadd.f32 %v468_v40, %v450_v36 }
  0xc9   :  { %v472_v45 = vmax.f32 %v464_v41, 0.0 }
  0xca   :  { %v474_v46 = vmax.f32 %v469_v42, 0.0 }
  0xcb   :  { %v722_v47 = vpack.c.bf16 %v472_v45, %v471_v43 }
  0xcc   :  { %v727_v48 = vpack.c.bf16 %v474_v46, %v473_v44 }
  0xcd   :  { %723 = vst [vmem:[%s935_s3] sm:$0xff] %v722_v47  }
  0xce   :  { %729 = vst [vmem:[%s935_s3 + $0x8] sm:$0xff] %v727_v48  }

// kernel: dqn_forward.7
= control target key start
LH: loop header
LB: loop body
LE: loop exit
PB: predicated region body
PF: predicated region fallthrough
CT: control target
= control target key end

     0   :  { %s12022_s0 = inlined_call_operand.vmem [shape: bf16[2,2048], index: 0, kind: input, shape index: {}]   ;;  %s12023_s1 = inlined_call_operand.vmem [shape: bf16[2048,512], index: 1, kind: input, shape index: {}]   ;;  %s12024_s2 = inlined_call_operand.vmem [shape: f32[1,512], index: 2, kind: input, shape index: {}]   ;;  %s12025_s3 = inlined_call_operand.vmem [shape: bf16[512,256], index: 3, kind: input, shape index: {}]   ;;  %s12026_s4 = inlined_call_operand.vmem [shape: f32[1,256], index: 4, kind: input, shape index: {}]   ;;  %s12027_s5 = inlined_call_operand.vmem [shape: bf16[256,256], index: 5, kind: input, shape index: {}]   ;;  %s12028_s6 = inlined_call_operand.vmem [shape: f32[1,256], index: 6, kind: input, shape index: {}]   ;;  %s12029_s7 = inlined_call_operand.vmem [shape: bf16[256,128], index: 7, kind: input, shape index: {}]   ;;  %s12030_s8 = inlined_call_operand.vmem [shape: f32[1,128], index: 8, kind: input, shape index: {}]   ;;  %s12031_s9 = inlined_call_operand.hbm [shape: f32[2,128], index: 9, kind: output, shape index: {}]  }
   0x1   :  { %v5053_v0 = vld [vmem:[%s12023_s1 + $0xe0] sm:$0xf]  ;;  %v7465_v1 = vld [vmem:[%s12023_s1 + $0xec] sm:$0xf0] }
   0x2   :  { %v5181_v2 = vld [vmem:[%s12023_s1 + $0x1e0] sm:$0xf]  ;;  %v5054_v3 = vor.u32 %v7465_v1, %v5053_v0  ;;  %v7497_v4 = vld [vmem:[%s12023_s1 + $0x1ec] sm:$0xf0] }
   0x3   :  { %v5309_v5 = vld [vmem:[%s12023_s1 + $0x2e0] sm:$0xf]  ;;  %v7529_v6 = vld [vmem:[%s12023_s1 + $0x2ec] sm:$0xf0]  ;;  %v5182_v7 = vor.u32 %v7497_v4, %v5181_v2 }
   0x4   :  { %v5310_v8 = vor.u32 %v7529_v6, %v5309_v5  ;;  %v5437_v9 = vld [vmem:[%s12023_s1 + $0x3e0] sm:$0xf]  ;;  %v7561_v10 = vld [vmem:[%s12023_s1 + $0x3ec] sm:$0xf0]  ;;  %3153 = vmatpush.bf16.msra.mxu0 %v5054_v3 }
   0x5   :  { %v5037_v11 = vld [vmem:[%s12023_s1 + $0xc0] sm:$0xf]  ;;  %v5438_v12 = vor.u32 %v7561_v10, %v5437_v9  ;;  %v7461_v13 = vld [vmem:[%s12023_s1 + $0xcc] sm:$0xf0]  ;;  %3166 = vmatpush.bf16.msra.mxu1 %v5182_v7 }
   0x6   :  { %v5165_v14 = vld [vmem:[%s12023_s1 + $0x1c0] sm:$0xf]  ;;  %v7493_v15 = vld [vmem:[%s12023_s1 + $0x1cc] sm:$0xf0]  ;;  %3179 = vmatpush.bf16.msra.mxu2 %v5310_v8  ;;  %v5038_v16 = vor.u32 %v7461_v13, %v5037_v11 }
   0x7   :  { %v5166_v17 = vor.u32 %v7493_v15, %v5165_v14  ;;  %v5293_v18 = vld [vmem:[%s12023_s1 + $0x2c0] sm:$0xf]  ;;  %v7525_v19 = vld [vmem:[%s12023_s1 + $0x2cc] sm:$0xf0]  ;;  %3192 = vmatpush.bf16.msra.mxu3 %v5438_v12 }
   0x8   :  { %v5421_v20 = vld [vmem:[%s12023_s1 + $0x3c0] sm:$0xf]  ;;  %v5294_v21 = vor.u32 %v7525_v19, %v5293_v18  ;;  %v7557_v22 = vld [vmem:[%s12023_s1 + $0x3cc] sm:$0xf0]  ;;  %3154 = vmatpush.bf16.msra.mxu0 %v5038_v16 }
   0x9   :  { %v5021_v23 = vld [vmem:[%s12023_s1 + $0xa0] sm:$0xf]  ;;  %v7457_v24 = vld [vmem:[%s12023_s1 + $0xac] sm:$0xf0]  ;;  %v5422_v25 = vor.u32 %v7557_v22, %v5421_v20  ;;  %3167 = vmatpush.bf16.msra.mxu1 %v5166_v17 }
   0xa   :  { %v5149_v26 = vld [vmem:[%s12023_s1 + $0x1a0] sm:$0xf]  ;;  %v7489_v27 = vld [vmem:[%s12023_s1 + $0x1ac] sm:$0xf0]  ;;  %v5022_v29 = vor.u32 %v7457_v24, %v5021_v23  ;;  %3180 = vmatpush.bf16.msra.mxu2 %v5294_v21 }
   0xb   :  { %v5277_v28 = vld [vmem:[%s12023_s1 + $0x2a0] sm:$0xf]  ;;  %v7521_v30 = vld [vmem:[%s12023_s1 + $0x2ac] sm:$0xf0]  ;;  %v5150_v33 = vor.u32 %v7489_v27, %v5149_v26  ;;  %3193 = vmatpush.bf16.msra.mxu3 %v5422_v25 }
   0xc   :  { %v5405_v31 = vld [vmem:[%s12023_s1 + $0x3a0] sm:$0xf]  ;;  %v7553_v32 = vld [vmem:[%s12023_s1 + $0x3ac] sm:$0xf0]  ;;  %v5278_v34 = vor.u32 %v7521_v30, %v5277_v28  ;;  %3155 = vmatpush.bf16.msra.mxu0 %v5022_v29 }
   0xd   :  { %v5005_v35 = vld [vmem:[%s12023_s1 + $0x80] sm:$0xf]  ;;  %v7453_v36 = vld [vmem:[%s12023_s1 + $0x8c] sm:$0xf0]  ;;  %v5406_v38 = vor.u32 %v7553_v32, %v5405_v31  ;;  %3168 = vmatpush.bf16.msra.mxu1 %v5150_v33 }
   0xe   :  { %v5133_v37 = vld [vmem:[%s12023_s1 + $0x180] sm:$0xf]  ;;  %v7485_v39 = vld [vmem:[%s12023_s1 + $0x18c] sm:$0xf0]  ;;  %v5006_v44 = vor.u32 %v7453_v36, %v5005_v35  ;;  %3181 = vmatpush.bf16.msra.mxu2 %v5278_v34 }
   0xf   :  { %v5261_v40 = vld [vmem:[%s12023_s1 + $0x280] sm:$0xf]  ;;  %v7517_v41 = vld [vmem:[%s12023_s1 + $0x28c] sm:$0xf0]  ;;  %v5134_v45 = vor.u32 %v7485_v39, %v5133_v37  ;;  %3194 = vmatpush.bf16.msra.mxu3 %v5406_v38 }
  0x10   :  { %v5389_v42 = vld [vmem:[%s12023_s1 + $0x380] sm:$0xf]  ;;  %v7549_v43 = vld [vmem:[%s12023_s1 + $0x38c] sm:$0xf0]  ;;  %v5262_v46 = vor.u32 %v7517_v41, %v5261_v40  ;;  %3156 = vmatpush.bf16.msra.mxu0 %v5006_v44 }
  0x11   :  { %v4989_v47 = vld [vmem:[%s12023_s1 + $0x60] sm:$0xf]  ;;  %v7449_v48 = vld [vmem:[%s12023_s1 + $0x6c] sm:$0xf0]  ;;  %v5390_v50 = vor.u32 %v7549_v43, %v5389_v42  ;;  %3169 = vmatpush.bf16.msra.mxu1 %v5134_v45 }
  0x12   :  { %v5117_v49 = vld [vmem:[%s12023_s1 + $0x160] sm:$0xf]  ;;  %v7481_v51 = vld [vmem:[%s12023_s1 + $0x16c] sm:$0xf0]  ;;  %v4990_v56 = vor.u32 %v7449_v48, %v4989_v47  ;;  %3182 = vmatpush.bf16.msra.mxu2 %v5262_v46 }
  0x13   :  { %v5245_v52 = vld [vmem:[%s12023_s1 + $0x260] sm:$0xf]  ;;  %v7513_v53 = vld [vmem:[%s12023_s1 + $0x26c] sm:$0xf0]  ;;  %v5118_v57 = vor.u32 %v7481_v51, %v5117_v49  ;;  %3195 = vmatpush.bf16.msra.mxu3 %v5390_v50 }
  0x14   :  { %v5373_v54 = vld [vmem:[%s12023_s1 + $0x360] sm:$0xf]  ;;  %v7545_v55 = vld [vmem:[%s12023_s1 + $0x36c] sm:$0xf0]  ;;  %v5246_v58 = vor.u32 %v7513_v53, %v5245_v52  ;;  %3157 = vmatpush.bf16.msra.mxu0 %v4990_v56 }
  0x15   :  { %v4973_v59 = vld [vmem:[%s12023_s1 + $0x40] sm:$0xf]  ;;  %v7445_v60 = vld [vmem:[%s12023_s1 + $0x4c] sm:$0xf0]  ;;  %v5374_v62 = vor.u32 %v7545_v55, %v5373_v54  ;;  %3170 = vmatpush.bf16.msra.mxu1 %v5118_v57 }
  0x16   :  { %v5101_v61 = vld [vmem:[%s12023_s1 + $0x140] sm:$0xf]  ;;  %v7477_v63 = vld [vmem:[%s12023_s1 + $0x14c] sm:$0xf0]  ;;  %v4974_v4 = vor.u32 %v7445_v60, %v4973_v59  ;;  %3183 = vmatpush.bf16.msra.mxu2 %v5246_v58 }
  0x17   :  { %v5229_v0 = vld [vmem:[%s12023_s1 + $0x240] sm:$0xf]  ;;  %v7509_v1 = vld [vmem:[%s12023_s1 + $0x24c] sm:$0xf0]  ;;  %v5102_v5 = vor.u32 %v7477_v63, %v5101_v61  ;;  %3196 = vmatpush.bf16.msra.mxu3 %v5374_v62 }
  0x18   :  { %v5357_v2 = vld [vmem:[%s12023_s1 + $0x340] sm:$0xf]  ;;  %v7541_v3 = vld [vmem:[%s12023_s1 + $0x34c] sm:$0xf0]  ;;  %v5230_v6 = vor.u32 %v7509_v1, %v5229_v0  ;;  %3158 = vmatpush.bf16.msra.mxu0 %v4974_v4 }
  0x19   :  { %v4957_v7 = vld [vmem:[%s12023_s1 + $0x20] sm:$0xf]  ;;  %v7441_v8 = vld [vmem:[%s12023_s1 + $0x2c] sm:$0xf0]  ;;  %v5358_v10 = vor.u32 %v7541_v3, %v5357_v2  ;;  %3171 = vmatpush.bf16.msra.mxu1 %v5102_v5 }
  0x1a   :  { %v5085_v9 = vld [vmem:[%s12023_s1 + $0x120] sm:$0xf]  ;;  %v7473_v11 = vld [vmem:[%s12023_s1 + $0x12c] sm:$0xf0]  ;;  %v4958_v16 = vor.u32 %v7441_v8, %v4957_v7  ;;  %3184 = vmatpush.bf16.msra.mxu2 %v5230_v6 }
  0x1b   :  { %v5213_v12 = vld [vmem:[%s12023_s1 + $0x220] sm:$0xf]  ;;  %v7505_v13 = vld [vmem:[%s12023_s1 + $0x22c] sm:$0xf0]  ;;  %v5086_v19 = vor.u32 %v7473_v11, %v5085_v9  ;;  %3197 = vmatpush.bf16.msra.mxu3 %v5358_v10 }
  0x1c   :  { %v5341_v14 = vld [vmem:[%s12023_s1 + $0x320] sm:$0xf]  ;;  %v7537_v15 = vld [vmem:[%s12023_s1 + $0x32c] sm:$0xf0]  ;;  %v5214_v20 = vor.u32 %v7505_v13, %v5213_v12  ;;  %3159 = vmatpush.bf16.msra.mxu0 %v4958_v16 }
  0x1d   :  { %v4941_v17 = vld [vmem:[%s12023_s1] sm:$0xf]  ;;  %v7437_v18 = vld [vmem:[%s12023_s1 + $0xc] sm:$0xf0]  ;;  %v5342_v24 = vor.u32 %v7537_v15, %v5341_v14  ;;  %3172 = vmatpush.bf16.msra.mxu1 %v5086_v19 }
  0x1e   :  { %v5069_v21 = vld [vmem:[%s12023_s1 + $0x100] sm:$0xf]  ;;  %v7469_v22 = vld [vmem:[%s12023_s1 + $0x10c] sm:$0xf0]  ;;  %v4942_v31 = vor.u32 %v7437_v18, %v4941_v17  ;;  %3185 = vmatpush.bf16.msra.mxu2 %v5214_v20 }
  0x1f   :  { %v5197_v23 = vld [vmem:[%s12023_s1 + $0x200] sm:$0xf]  ;;  %v7501_v25 = vld [vmem:[%s12023_s1 + $0x20c] sm:$0xf0]  ;;  %v5070_v35 = vor.u32 %v7469_v22, %v5069_v21  ;;  %3198 = vmatpush.bf16.msra.mxu3 %v5342_v24 }
  0x20   :  { %v5325_v26 = vld [vmem:[%s12023_s1 + $0x300] sm:$0xf]  ;;  %v7533_v27 = vld [vmem:[%s12023_s1 + $0x30c] sm:$0xf0]  ;;  %v5198_v36 = vor.u32 %v7501_v25, %v5197_v23  ;;  %3160 = vmatpush.bf16.msra.mxu0 %v4942_v31 }
  0x21   :  { %v5565_v28 = vld [vmem:[%s12023_s1 + $0x4e0] sm:$0xf]  ;;  %v7593_v29 = vld [vmem:[%s12023_s1 + $0x4ec] sm:$0xf0]  ;;  %v5326_v39 = vor.u32 %v7533_v27, %v5325_v26  ;;  %3173 = vmatpush.bf16.msra.mxu1 %v5070_v35 }
  0x22   :  { %v5693_v30 = vld [vmem:[%s12023_s1 + $0x5e0] sm:$0xf]  ;;  %v7625_v32 = vld [vmem:[%s12023_s1 + $0x5ec] sm:$0xf0]  ;;  %v5566_v40 = vor.u32 %v7593_v29, %v5565_v28  ;;  %3186 = vmatpush.bf16.msra.mxu2 %v5198_v36 }
  0x23   :  { %v5821_v33 = vld [vmem:[%s12023_s1 + $0x6e0] sm:$0xf]  ;;  %v7657_v34 = vld [vmem:[%s12023_s1 + $0x6ec] sm:$0xf0]  ;;  %v5694_v41 = vor.u32 %v7625_v32, %v5693_v30  ;;  %3199 = vmatpush.bf16.msra.mxu3 %v5326_v39 }
  0x24   :  { %v5949_v37 = vld [vmem:[%s12023_s1 + $0x7e0] sm:$0xf]  ;;  %v7689_v38 = vld [vmem:[%s12023_s1 + $0x7ec] sm:$0xf0]  ;;  %v5822_v42 = vor.u32 %v7657_v34, %v5821_v33  ;;  %3205 = vmatpush.bf16.msrb.mxu0 %v5566_v40 }
  0x25   :  { %v5549_v43 = vld [vmem:[%s12023_s1 + $0x4c0] sm:$0xf]  ;;  %v7589_v44 = vld [vmem:[%s12023_s1 + $0x4cc] sm:$0xf0]  ;;  %v5950_v46 = vor.u32 %v7689_v38, %v5949_v37  ;;  %3218 = vmatpush.bf16.msrb.mxu1 %v5694_v41 }
  0x26   :  { %v5677_v45 = vld [vmem:[%s12023_s1 + $0x5c0] sm:$0xf]  ;;  %v7621_v47 = vld [vmem:[%s12023_s1 + $0x5cc] sm:$0xf0]  ;;  %v5550_v52 = vor.u32 %v7589_v44, %v5549_v43  ;;  %3231 = vmatpush.bf16.msrb.mxu2 %v5822_v42 }
  0x27   :  { %v5805_v48 = vld [vmem:[%s12023_s1 + $0x6c0] sm:$0xf]  ;;  %v7653_v49 = vld [vmem:[%s12023_s1 + $0x6cc] sm:$0xf0]  ;;  %v5678_v53 = vor.u32 %v7621_v47, %v5677_v45  ;;  %3244 = vmatpush.bf16.msrb.mxu3 %v5950_v46 }
  0x28   :  { %v5933_v50 = vld [vmem:[%s12023_s1 + $0x7c0] sm:$0xf]  ;;  %v7685_v51 = vld [vmem:[%s12023_s1 + $0x7cc] sm:$0xf0]  ;;  %v5806_v54 = vor.u32 %v7653_v49, %v5805_v48  ;;  %3206 = vmatpush.bf16.msrb.mxu0 %v5550_v52 }
  0x29   :  { %v5533_v55 = vld [vmem:[%s12023_s1 + $0x4a0] sm:$0xf]  ;;  %v7585_v56 = vld [vmem:[%s12023_s1 + $0x4ac] sm:$0xf0]  ;;  %v5934_v58 = vor.u32 %v7685_v51, %v5933_v50  ;;  %3219 = vmatpush.bf16.msrb.mxu1 %v5678_v53 }
  0x2a   :  { %v5661_v57 = vld [vmem:[%s12023_s1 + $0x5a0] sm:$0xf]  ;;  %v7617_v59 = vld [vmem:[%s12023_s1 + $0x5ac] sm:$0xf0]  ;;  %v5534_v0 = vor.u32 %v7585_v56, %v5533_v55  ;;  %3232 = vmatpush.bf16.msrb.mxu2 %v5806_v54 }
  0x2b   :  { %v5789_v60 = vld [vmem:[%s12023_s1 + $0x6a0] sm:$0xf]  ;;  %v7649_v61 = vld [vmem:[%s12023_s1 + $0x6ac] sm:$0xf0]  ;;  %v5662_v3 = vor.u32 %v7617_v59, %v5661_v57  ;;  %3245 = vmatpush.bf16.msrb.mxu3 %v5934_v58 }
  0x2c   :  { %v5917_v62 = vld [vmem:[%s12023_s1 + $0x7a0] sm:$0xf]  ;;  %v7681_v63 = vld [vmem:[%s12023_s1 + $0x7ac] sm:$0xf0]  ;;  %v5790_v4 = vor.u32 %v7649_v61, %v5789_v60  ;;  %3207 = vmatpush.bf16.msrb.mxu0 %v5534_v0  ;;  %v34_v61 = vld [vmem:[%s12022_s0 + $0x8] sm:$0xff] }
  0x2d   :  { %v5517_v1 = vld [vmem:[%s12023_s1 + $0x480] sm:$0xf]  ;;  %v7581_v5 = vld [vmem:[%s12023_s1 + $0x48c] sm:$0xf0]  ;;  %v5918_v7 = vor.u32 %v7681_v63, %v5917_v62  ;;  %3220 = vmatpush.bf16.msrb.mxu1 %v5662_v3 }
  0x2e   :  { %v33_v2 = vld [vmem:[%s12022_s0] sm:$0xff]  ;;  %v7613_v8 = vld [vmem:[%s12023_s1 + $0x58c] sm:$0xf0]  ;;  %v5518_v13 = vor.u32 %v7581_v5, %v5517_v1  ;;  %3233 = vmatpush.bf16.msrb.mxu2 %v5790_v4 }
  0x2f   :  { %v5645_v6 = vld [vmem:[%s12023_s1 + $0x580] sm:$0xf]  ;;  %558 = vst [vmem:[#allocation1] ss:$9 sm:$0xff] %v33_v2  ;;  %v7645_v10 = vld [vmem:[%s12023_s1 + $0x68c] sm:$0xf0]  ;;  %3246 = vmatpush.bf16.msrb.mxu3 %v5918_v7 }
  0x30   :  { %v5773_v9 = vld [vmem:[%s12023_s1 + $0x680] sm:$0xf]  ;;  %v7677_v12 = vld [vmem:[%s12023_s1 + $0x78c] sm:$0xf0]  ;;  %v5646_v14 = vor.u32 %v7613_v8, %v5645_v6  ;;  %3208 = vmatpush.bf16.msrb.mxu0 %v5518_v13 }
  0x31   :  { %v5901_v11 = vld [vmem:[%s12023_s1 + $0x780] sm:$0xf]  ;;  %v5774_v15 = vor.u32 %v7645_v10, %v5773_v9  ;;  %v7577_v17 = vld [vmem:[%s12023_s1 + $0x46c] sm:$0xf0] }
  0x32   :  { %v5501_v16 = vld [vmem:[%s12023_s1 + $0x460] sm:$0xf]  ;;  %v5902_v19 = vor.u32 %v7677_v12, %v5901_v11  ;;  %v7609_v20 = vld [vmem:[%s12023_s1 + $0x56c] sm:$0xf0]  ;;  %3221 = vmatpush.bf16.msrb.mxu1 %v5646_v14 }
  0x33   :  { %v5629_v18 = vld [vmem:[%s12023_s1 + $0x560] sm:$0xf]  ;;  %v7641_v22 = vld [vmem:[%s12023_s1 + $0x66c] sm:$0xf0]  ;;  %v5502_v26 = vor.u32 %v7577_v17, %v5501_v16  ;;  %3234 = vmatpush.bf16.msrb.mxu2 %v5774_v15 }
  0x34   :  { %v5757_v21 = vld [vmem:[%s12023_s1 + $0x660] sm:$0xf]  ;;  %v7673_v24 = vld [vmem:[%s12023_s1 + $0x76c] sm:$0xf0]  ;;  %v5630_v30 = vor.u32 %v7609_v20, %v5629_v18  ;;  %3247 = vmatpush.bf16.msrb.mxu3 %v5902_v19 }
  0x35   :  { %v5885_v23 = vld [vmem:[%s12023_s1 + $0x760] sm:$0xf]  ;;  %v5758_v31 = vor.u32 %v7641_v22, %v5757_v21  ;;  %v7573_v32 = vld [vmem:[%s12023_s1 + $0x44c] sm:$0xf0]  ;;  %3209 = vmatpush.bf16.msrb.mxu0 %v5502_v26 }
  0x36   :  { %v5485_v25 = vld [vmem:[%s12023_s1 + $0x440] sm:$0xf]  ;;  %v8490_v27 = vld [vmem:[#allocation1 + $0x12] sm:$0xff]  ;;  %v8502_v34 = vld [vmem:[#allocation1 + $0x9] sm:$0xff]  ;;  %v5886_v35 = vor.u32 %v7673_v24, %v5885_v23  ;;  %3222 = vmatpush.bf16.msrb.mxu1 %v5630_v30 }
  0x37   :  { %v8492_v28 = vld [vmem:[#allocation1] sm:$0xff]  ;;  %v7605_v36 = vld [vmem:[%s12023_s1 + $0x54c] sm:$0xf0]  ;;  %3187 = vmatmul.bf16.vlgmr.msra.gmra.mxu2 %v8490_v27  ;;  %v5486_v41 = vor.u32 %v7573_v32, %v5485_v25  ;;  %3174 = vmatmul.bf16.vlgmr.msra.gmra.mxu1 %v8502_v34  ;;  %v8565_v60 = vld [vmem:[#allocation1 + $0x36] sm:$0xff] }
  0x38   :  { %v8494_v29 = vld [vmem:[#allocation1 + $0x1b] sm:$0xff]  ;;  %v7637_v38 = vld [vmem:[%s12023_s1 + $0x64c] sm:$0xf0]  ;;  %3161 = vmatmul.bf16.vlgmr.msra.gmra.mxu0 %v8492_v28  ;;  %3235 = vmatpush.bf16.msrb.mxu2 %v5758_v31  ;;  %v8570_v0 = vld [vmem:[#allocation1 + $0x24] sm:$0xff] }
  0x39   :  { %v5613_v33 = vld [vmem:[%s12023_s1 + $0x540] sm:$0xf]  ;;  %v7669_v40 = vld [vmem:[%s12023_s1 + $0x74c] sm:$0xf0]  ;;  %3200 = vmatmul.bf16.vlgmr.msra.gmra.mxu3 %v8494_v29  ;;  %3210 = vmatpush.bf16.msrb.mxu0 %v5486_v41 }
  0x3a   :  { %v5741_v37 = vld [vmem:[%s12023_s1 + $0x640] sm:$0xf]  ;;  %v5614_v43 = vor.u32 %v7605_v36, %v5613_v33  ;;  %v7569_v45 = vld [vmem:[%s12023_s1 + $0x42c] sm:$0xf0]  ;;  %3248 = vmatpush.bf16.msrb.mxu3 %v5886_v35 }
  0x3b   :  { %v5869_v39 = vld [vmem:[%s12023_s1 + $0x740] sm:$0xf]  ;;  %v5742_v44 = vor.u32 %v7637_v38, %v5741_v37  ;;  %v7601_v47 = vld [vmem:[%s12023_s1 + $0x52c] sm:$0xf0] }
  0x3c   :  { %v5469_v42 = vld [vmem:[%s12023_s1 + $0x420] sm:$0xf]  ;;  %v5870_v48 = vor.u32 %v7669_v40, %v5869_v39  ;;  %v7633_v50 = vld [vmem:[%s12023_s1 + $0x62c] sm:$0xf0]  ;;  %3223 = vmatpush.bf16.msrb.mxu1 %v5614_v43 }
  0x3d   :  { %v5597_v46 = vld [vmem:[%s12023_s1 + $0x520] sm:$0xf]  ;;  %v7665_v52 = vld [vmem:[%s12023_s1 + $0x72c] sm:$0xf0]  ;;  %v5470_v55 = vor.u32 %v7569_v45, %v5469_v42  ;;  %3236 = vmatpush.bf16.msrb.mxu2 %v5742_v44 }
  0x3e   :  { %v5725_v49 = vld [vmem:[%s12023_s1 + $0x620] sm:$0xf]  ;;  %v7565_v54 = vld [vmem:[%s12023_s1 + $0x40c] sm:$0xf0]  ;;  %v5598_v62 = vor.u32 %v7601_v47, %v5597_v46  ;;  %3249 = vmatpush.bf16.msrb.mxu3 %v5870_v48 }
  0x3f   :  { %v5853_v51 = vld [vmem:[%s12023_s1 + $0x720] sm:$0xf]  ;;  %v7597_v57 = vld [vmem:[%s12023_s1 + $0x50c] sm:$0xf0]  ;;  %v5726_v63 = vor.u32 %v7633_v50, %v5725_v49  ;;  %3211 = vmatpush.bf16.msrb.mxu0 %v5470_v55 }
  0x40   :  { %v5453_v53 = vld [vmem:[%s12023_s1 + $0x400] sm:$0xf]  ;;  %v7629_v59 = vld [vmem:[%s12023_s1 + $0x60c] sm:$0xf0]  ;;  %v5854_v3 = vor.u32 %v7665_v52, %v5853_v51  ;;  %3224 = vmatpush.bf16.msrb.mxu1 %v5598_v62 }
  0x41   :  { %v5581_v56 = vld [vmem:[%s12023_s1 + $0x500] sm:$0xf]  ;;  %v8574_v2 = vld [vmem:[#allocation1 + $0x2d] sm:$0xff]  ;;  %v5454_v9 = vor.u32 %v7565_v54, %v5453_v53  ;;  %3237 = vmatpush.bf16.msrb.mxu2 %v5726_v63 }
  0x42   :  { %v5709_v58 = vld [vmem:[%s12023_s1 + $0x600] sm:$0xf]  ;;  %v7661_v5 = vld [vmem:[%s12023_s1 + $0x70c] sm:$0xf0]  ;;  %v5582_v13 = vor.u32 %v7597_v57, %v5581_v56  ;;  %3250 = vmatpush.bf16.msrb.mxu3 %v5854_v3 }
  0x43   :  { %v8572_v1 = vld [vmem:[#allocation1 + $0x3f] sm:$0xff]  ;;  %v7721_v7 = vld [vmem:[%s12023_s1 + $0x8ec] sm:$0xf0]  ;;  %v5710_v14 = vor.u32 %v7629_v59, %v5709_v58  ;;  %3212 = vmatpush.bf16.msrb.mxu0 %v5454_v9 }
  0x44   :  { %v5837_v4 = vld [vmem:[%s12023_s1 + $0x700] sm:$0xf]  ;;  %568 = vst [vmem:[#allocation1] ss:$9 sm:$0xff] %v34_v61  ;;  %v7753_v10 = vld [vmem:[%s12023_s1 + $0x9ec] sm:$0xf0]  ;;  %3225 = vmatpush.bf16.msrb.mxu1 %v5582_v13 }
  0x45   :  { %v6077_v6 = vld [vmem:[%s12023_s1 + $0x8e0] sm:$0xf]  ;;  %v7785_v12 = vld [vmem:[%s12023_s1 + $0xaec] sm:$0xf0]  ;;  %v5838_v17 = vor.u32 %v7661_v5, %v5837_v4  ;;  %3238 = vmatpush.bf16.msrb.mxu2 %v5710_v14 }
  0x46   :  { %v6205_v8 = vld [vmem:[%s12023_s1 + $0x9e0] sm:$0xf]  ;;  %v7817_v16 = vld [vmem:[%s12023_s1 + $0xbec] sm:$0xf0]  ;;  %v6078_v18 = vor.u32 %v7721_v7, %v6077_v6 }
  0x47   :  { %v6333_v11 = vld [vmem:[%s12023_s1 + $0xae0] sm:$0xf]  ;;  %v6206_v19 = vor.u32 %v7753_v10, %v6205_v8  ;;  %v7717_v22 = vld [vmem:[%s12023_s1 + $0x8cc] sm:$0xf0]  ;;  %3251 = vmatpush.bf16.msrb.mxu3 %v5838_v17  ;;  %3226 = vmatmul.bf16.vlgmr.msrb.gmra.mxu1 %v8574_v2 }
  0x48   :  { %v6461_v15 = vld [vmem:[%s12023_s1 + $0xbe0] sm:$0xf]  ;;  %v6334_v20 = vor.u32 %v7785_v12, %v6333_v11  ;;  %v7749_v25 = vld [vmem:[%s12023_s1 + $0x9cc] sm:$0xf0]  ;;  %3257 = vmatpush.bf16.msra.mxu0 %v6078_v18  ;;  %3239 = vmatmul.bf16.vlgmr.msrb.gmra.mxu2 %v8565_v60 }
  0x49   :  { %v6061_v21 = vld [vmem:[%s12023_s1 + $0x8c0] sm:$0xf]  ;;  %v6462_v24 = vor.u32 %v7817_v16, %v6461_v15  ;;  %v7781_v30 = vld [vmem:[%s12023_s1 + $0xacc] sm:$0xf0]  ;;  %3270 = vmatpush.bf16.msra.mxu1 %v6206_v19  ;;  %3213 = vmatmul.bf16.vlgmr.msrb.gmra.mxu0 %v8570_v0 }
  0x4a   :  { %v6189_v23 = vld [vmem:[%s12023_s1 + $0x9c0] sm:$0xf]  ;;  %v7813_v32 = vld [vmem:[%s12023_s1 + $0xbcc] sm:$0xf0]  ;;  %v6062_v33 = vor.u32 %v7717_v22, %v6061_v21  ;;  %3283 = vmatpush.bf16.msra.mxu2 %v6334_v20  ;;  %3252 = vmatmul.bf16.vlgmr.msrb.gmra.mxu3 %v8572_v1 }
  0x4b   :  { %v6317_v26 = vld [vmem:[%s12023_s1 + $0xac0] sm:$0xf]  ;;  %v6190_v35 = vor.u32 %v7749_v25, %v6189_v23  ;;  %v7713_v38 = vld [vmem:[%s12023_s1 + $0x8ac] sm:$0xf0]  ;;  %3296 = vmatpush.bf16.msra.mxu3 %v6462_v24 }
  0x4c   :  { %v6445_v31 = vld [vmem:[%s12023_s1 + $0xbc0] sm:$0xf]  ;;  %v6318_v36 = vor.u32 %v7781_v30, %v6317_v26  ;;  %v7745_v41 = vld [vmem:[%s12023_s1 + $0x9ac] sm:$0xf0]  ;;  %3258 = vmatpush.bf16.msra.mxu0 %v6062_v33 }
  0x4d   :  { %v6045_v37 = vld [vmem:[%s12023_s1 + $0x8a0] sm:$0xf]  ;;  %v6446_v40 = vor.u32 %v7813_v32, %v6445_v31  ;;  %v7777_v43 = vld [vmem:[%s12023_s1 + $0xaac] sm:$0xf0]  ;;  %3271 = vmatpush.bf16.msra.mxu1 %v6190_v35 }
  0x4e   :  { %v6173_v39 = vld [vmem:[%s12023_s1 + $0x9a0] sm:$0xf]  ;;  %v7809_v45 = vld [vmem:[%s12023_s1 + $0xbac] sm:$0xf0]  ;;  %v6046_v46 = vor.u32 %v7713_v38, %v6045_v37  ;;  %3284 = vmatpush.bf16.msra.mxu2 %v6318_v36 }
  0x4f   :  { %v6301_v42 = vld [vmem:[%s12023_s1 + $0xaa0] sm:$0xf]  ;;  %v6174_v47 = vor.u32 %v7745_v41, %v6173_v39  ;;  %v7709_v50 = vld [vmem:[%s12023_s1 + $0x88c] sm:$0xf0]  ;;  %3297 = vmatpush.bf16.msra.mxu3 %v6446_v40 }
  0x50   :  { %v6429_v44 = vld [vmem:[%s12023_s1 + $0xba0] sm:$0xf]  ;;  %v6302_v48 = vor.u32 %v7777_v43, %v6301_v42  ;;  %v7741_v53 = vld [vmem:[%s12023_s1 + $0x98c] sm:$0xf0]  ;;  %3259 = vmatpush.bf16.msra.mxu0 %v6046_v46 }
  0x51   :  { %v6029_v49 = vld [vmem:[%s12023_s1 + $0x880] sm:$0xf]  ;;  %v6430_v52 = vor.u32 %v7809_v45, %v6429_v44  ;;  %v7773_v55 = vld [vmem:[%s12023_s1 + $0xa8c] sm:$0xf0]  ;;  %3272 = vmatpush.bf16.msra.mxu1 %v6174_v47 }
  0x52   :  { %v6157_v51 = vld [vmem:[%s12023_s1 + $0x980] sm:$0xf]  ;;  %v7805_v57 = vld [vmem:[%s12023_s1 + $0xb8c] sm:$0xf0]  ;;  %v6030_v58 = vor.u32 %v7709_v50, %v6029_v49  ;;  %3285 = vmatpush.bf16.msra.mxu2 %v6302_v48 }
  0x53   :  { %v6285_v54 = vld [vmem:[%s12023_s1 + $0xa80] sm:$0xf]  ;;  %v6158_v59 = vor.u32 %v7741_v53, %v6157_v51  ;;  %v7705_v63 = vld [vmem:[%s12023_s1 + $0x86c] sm:$0xf0]  ;;  %3298 = vmatpush.bf16.msra.mxu3 %v6430_v52 }
  0x54   :  { %v6413_v56 = vld [vmem:[%s12023_s1 + $0xb80] sm:$0xf]  ;;  %v6286_v61 = vor.u32 %v7773_v55, %v6285_v54  ;;  %v7737_v5 = vld [vmem:[%s12023_s1 + $0x96c] sm:$0xf0]  ;;  %3260 = vmatpush.bf16.msra.mxu0 %v6030_v58 }
  0x55   :  { %v6013_v62 = vld [vmem:[%s12023_s1 + $0x860] sm:$0xf]  ;;  %v6414_v4 = vor.u32 %v7805_v57, %v6413_v56  ;;  %v7769_v7 = vld [vmem:[%s12023_s1 + $0xa6c] sm:$0xf0]  ;;  %3273 = vmatpush.bf16.msra.mxu1 %v6158_v59 }
  0x56   :  { %v6141_v3 = vld [vmem:[%s12023_s1 + $0x960] sm:$0xf]  ;;  %v7801_v9 = vld [vmem:[%s12023_s1 + $0xb6c] sm:$0xf0]  ;;  %v6014_v10 = vor.u32 %v7705_v63, %v6013_v62  ;;  %3286 = vmatpush.bf16.msra.mxu2 %v6286_v61 }
  0x57   :  { %v6269_v6 = vld [vmem:[%s12023_s1 + $0xa60] sm:$0xf]  ;;  %v6142_v11 = vor.u32 %v7737_v5, %v6141_v3  ;;  %v7701_v14 = vld [vmem:[%s12023_s1 + $0x84c] sm:$0xf0]  ;;  %3299 = vmatpush.bf16.msra.mxu3 %v6414_v4 }
  0x58   :  { %v6397_v8 = vld [vmem:[%s12023_s1 + $0xb60] sm:$0xf]  ;;  %v6270_v12 = vor.u32 %v7769_v7, %v6269_v6  ;;  %v7733_v17 = vld [vmem:[%s12023_s1 + $0x94c] sm:$0xf0]  ;;  %3261 = vmatpush.bf16.msra.mxu0 %v6014_v10 }
  0x59   :  { %v5997_v13 = vld [vmem:[%s12023_s1 + $0x840] sm:$0xf]  ;;  %v6398_v16 = vor.u32 %v7801_v9, %v6397_v8  ;;  %v7765_v19 = vld [vmem:[%s12023_s1 + $0xa4c] sm:$0xf0]  ;;  %3274 = vmatpush.bf16.msra.mxu1 %v6142_v11 }
  0x5a   :  { %v6125_v15 = vld [vmem:[%s12023_s1 + $0x940] sm:$0xf]  ;;  %v7797_v21 = vld [vmem:[%s12023_s1 + $0xb4c] sm:$0xf0]  ;;  %v5998_v22 = vor.u32 %v7701_v14, %v5997_v13  ;;  %3287 = vmatpush.bf16.msra.mxu2 %v6270_v12 }
  0x5b   :  { %v6253_v18 = vld [vmem:[%s12023_s1 + $0xa40] sm:$0xf]  ;;  %v6126_v23 = vor.u32 %v7733_v17, %v6125_v15  ;;  %v7697_v26 = vld [vmem:[%s12023_s1 + $0x82c] sm:$0xf0]  ;;  %3300 = vmatpush.bf16.msra.mxu3 %v6398_v16 }
  0x5c   :  { %v6381_v20 = vld [vmem:[%s12023_s1 + $0xb40] sm:$0xf]  ;;  %v6254_v24 = vor.u32 %v7765_v19, %v6253_v18  ;;  %v7729_v32 = vld [vmem:[%s12023_s1 + $0x92c] sm:$0xf0]  ;;  %3262 = vmatpush.bf16.msra.mxu0 %v5998_v22 }
  0x5d   :  { %v5981_v25 = vld [vmem:[%s12023_s1 + $0x820] sm:$0xf]  ;;  %v6382_v31 = vor.u32 %v7797_v21, %v6381_v20  ;;  %v7761_v35 = vld [vmem:[%s12023_s1 + $0xa2c] sm:$0xf0]  ;;  %3275 = vmatpush.bf16.msra.mxu1 %v6126_v23 }
  0x5e   :  { %v6109_v30 = vld [vmem:[%s12023_s1 + $0x920] sm:$0xf]  ;;  %v7793_v37 = vld [vmem:[%s12023_s1 + $0xb2c] sm:$0xf0]  ;;  %v5982_v38 = vor.u32 %v7697_v26, %v5981_v25  ;;  %3288 = vmatpush.bf16.msra.mxu2 %v6254_v24 }
  0x5f   :  { %v6237_v33 = vld [vmem:[%s12023_s1 + $0xa20] sm:$0xf]  ;;  %v7693_v40 = vld [vmem:[%s12023_s1 + $0x80c] sm:$0xf0]  ;;  %v6110_v41 = vor.u32 %v7729_v32, %v6109_v30  ;;  %3301 = vmatpush.bf16.msra.mxu3 %v6382_v31 }
  0x60   :  { %v6365_v36 = vld [vmem:[%s12023_s1 + $0xb20] sm:$0xf]  ;;  %v6238_v42 = vor.u32 %v7761_v35, %v6237_v33  ;;  %v7725_v44 = vld [vmem:[%s12023_s1 + $0x90c] sm:$0xf0]  ;;  %3263 = vmatpush.bf16.msra.mxu0 %v5982_v38 }
  0x61   :  { %v5965_v39 = vld [vmem:[%s12023_s1 + $0x800] sm:$0xf]  ;;  %v6366_v46 = vor.u32 %v7793_v37, %v6365_v36  ;;  %v7757_v47 = vld [vmem:[%s12023_s1 + $0xa0c] sm:$0xf0]  ;;  %3276 = vmatpush.bf16.msra.mxu1 %v6110_v41 }
  0x62   :  { %v6093_v43 = vld [vmem:[%s12023_s1 + $0x900] sm:$0xf]  ;;  %v7789_v49 = vld [vmem:[%s12023_s1 + $0xb0c] sm:$0xf0]  ;;  %v5966_v53 = vor.u32 %v7693_v40, %v5965_v39  ;;  %3289 = vmatpush.bf16.msra.mxu2 %v6238_v42 }
  0x63   :  { %v6221_v45 = vld [vmem:[%s12023_s1 + $0xa00] sm:$0xf]  ;;  %v7849_v51 = vld [vmem:[%s12023_s1 + $0xcec] sm:$0xf0]  ;;  %v6094_v57 = vor.u32 %v7725_v44, %v6093_v43  ;;  %3302 = vmatpush.bf16.msra.mxu3 %v6366_v46 }
  0x64   :  { %v6349_v48 = vld [vmem:[%s12023_s1 + $0xb00] sm:$0xf]  ;;  %v7881_v54 = vld [vmem:[%s12023_s1 + $0xdec] sm:$0xf0]  ;;  %v6222_v58 = vor.u32 %v7757_v47, %v6221_v45  ;;  %3264 = vmatpush.bf16.msra.mxu0 %v5966_v53 }
  0x65   :  { %v6589_v50 = vld [vmem:[%s12023_s1 + $0xce0] sm:$0xf]  ;;  %v7913_v56 = vld [vmem:[%s12023_s1 + $0xeec] sm:$0xf0]  ;;  %v6350_v62 = vor.u32 %v7789_v49, %v6349_v48  ;;  %3277 = vmatpush.bf16.msra.mxu1 %v6094_v57 }
  0x66   :  { %v6717_v52 = vld [vmem:[%s12023_s1 + $0xde0] sm:$0xf]  ;;  %v7945_v61 = vld [vmem:[%s12023_s1 + $0xfec] sm:$0xf0]  ;;  %v6590_v63 = vor.u32 %v7849_v51, %v6589_v50  ;;  %3290 = vmatpush.bf16.msra.mxu2 %v6222_v58 }
  0x67   :  { %v6845_v55 = vld [vmem:[%s12023_s1 + $0xee0] sm:$0xf]  ;;  %v6718_v3 = vor.u32 %v7881_v54, %v6717_v52  ;;  %v7845_v6 = vld [vmem:[%s12023_s1 + $0xccc] sm:$0xf0]  ;;  %3303 = vmatpush.bf16.msra.mxu3 %v6350_v62 }
  0x68   :  { %v6973_v59 = vld [vmem:[%s12023_s1 + $0xfe0] sm:$0xf]  ;;  %v6846_v4 = vor.u32 %v7913_v56, %v6845_v55  ;;  %v7877_v9 = vld [vmem:[%s12023_s1 + $0xdcc] sm:$0xf0]  ;;  %3309 = vmatpush.bf16.msrb.mxu0 %v6590_v63 }
  0x69   :  { %v6573_v5 = vld [vmem:[%s12023_s1 + $0xcc0] sm:$0xf]  ;;  %v6974_v8 = vor.u32 %v7945_v61, %v6973_v59  ;;  %v7909_v11 = vld [vmem:[%s12023_s1 + $0xecc] sm:$0xf0]  ;;  %3322 = vmatpush.bf16.msrb.mxu1 %v6718_v3 }
  0x6a   :  { %v6701_v7 = vld [vmem:[%s12023_s1 + $0xdc0] sm:$0xf]  ;;  %v7941_v14 = vld [vmem:[%s12023_s1 + $0xfcc] sm:$0xf0]  ;;  %v6574_v18 = vor.u32 %v7845_v6, %v6573_v5  ;;  %3335 = vmatpush.bf16.msrb.mxu2 %v6846_v4 }
  0x6b   :  { %v6829_v10 = vld [vmem:[%s12023_s1 + $0xec0] sm:$0xf]  ;;  %v571_v15 = vld [vmem:[#allocation1 + $0x12] sm:$0xff]  ;;  %v570_v16 = vld [vmem:[#allocation1 + $0x9] sm:$0xff]  ;;  %v6702_v19 = vor.u32 %v7877_v9, %v6701_v7  ;;  %3348 = vmatpush.bf16.msrb.mxu3 %v6974_v8 }
  0x6c   :  { %v569_v12 = vld [vmem:[#allocation1] sm:$0xff]  ;;  %v6830_v20 = vor.u32 %v7909_v11, %v6829_v10  ;;  %v7841_v22 = vld [vmem:[%s12023_s1 + $0xcac] sm:$0xf0]  ;;  %3291 = vmatmul.bf16.vlgmr.msra.gmra.mxu2 %v571_v15  ;;  %3278 = vmatmul.bf16.vlgmr.msra.gmra.mxu1 %v570_v16 }
  0x6d   :  { %v6957_v13 = vld [vmem:[%s12023_s1 + $0xfc0] sm:$0xf]  ;;  %3265 = vmatmul.bf16.vlgmr.msra.gmra.mxu0 %v569_v12  ;;  %v7873_v25 = vld [vmem:[%s12023_s1 + $0xdac] sm:$0xf0]  ;;  %3323 = vmatpush.bf16.msrb.mxu1 %v6702_v19 }
  0x6e   :  { %v572_v17 = vld [vmem:[#allocation1 + $0x1b] sm:$0xff]  ;;  %v6958_v24 = vor.u32 %v7941_v14, %v6957_v13  ;;  %v7905_v30 = vld [vmem:[%s12023_s1 + $0xeac] sm:$0xf0]  ;;  %3310 = vmatpush.bf16.msrb.mxu0 %v6574_v18  ;;  %3336 = vmatpush.bf16.msrb.mxu2 %v6830_v20 }
  0x6f   :  { %v6557_v21 = vld [vmem:[%s12023_s1 + $0xca0] sm:$0xf]  ;;  %v7937_v32 = vld [vmem:[%s12023_s1 + $0xfac] sm:$0xf0]  ;;  %3304 = vmatmul.bf16.vlgmr.msra.gmra.mxu3 %v572_v17 }
  0x70   :  { %v6685_v23 = vld [vmem:[%s12023_s1 + $0xda0] sm:$0xf]  ;;  %v6558_v33 = vor.u32 %v7841_v22, %v6557_v21  ;;  %v7837_v38 = vld [vmem:[%s12023_s1 + $0xc8c] sm:$0xf0]  ;;  %3349 = vmatpush.bf16.msrb.mxu3 %v6958_v24 }
  0x71   :  { %v6813_v26 = vld [vmem:[%s12023_s1 + $0xea0] sm:$0xf]  ;;  %v6686_v36 = vor.u32 %v7873_v25, %v6685_v23  ;;  %v7869_v40 = vld [vmem:[%s12023_s1 + $0xd8c] sm:$0xf0] }
  0x72   :  { %v6941_v31 = vld [vmem:[%s12023_s1 + $0xfa0] sm:$0xf]  ;;  %v6814_v37 = vor.u32 %v7905_v30, %v6813_v26  ;;  %v7901_v43 = vld [vmem:[%s12023_s1 + $0xe8c] sm:$0xf0] }
  0x73   :  { %v6541_v35 = vld [vmem:[%s12023_s1 + $0xc80] sm:$0xf]  ;;  %v6942_v41 = vor.u32 %v7937_v32, %v6941_v31  ;;  %v7933_v45 = vld [vmem:[%s12023_s1 + $0xf8c] sm:$0xf0] }
  0x74   :  { %v6669_v39 = vld [vmem:[%s12023_s1 + $0xd80] sm:$0xf] }
  0x75   :  { %v6797_v42 = vld [vmem:[%s12023_s1 + $0xe80] sm:$0xf] }
  0x76   :  { %v6925_v44 = vld [vmem:[%s12023_s1 + $0xf80] sm:$0xf] }
  0x77   :  { %14 = vsyncpa [#allocation3], 0  ;;  %3311 = vmatpush.bf16.msrb.mxu0 %v6558_v33  ;;  %v6542_v46 = vor.u32 %v7837_v38, %v6541_v35  ;;  %3324 = vmatpush.bf16.msrb.mxu1 %v6686_v36  ;;  %v6670_v47 = vor.u32 %v7869_v40, %v6669_v39  ;;  %v6798_v48 = vor.u32 %v7901_v43, %v6797_v42  ;;  %v6525_v49 = vld [vmem:[%s12023_s1 + $0xc60] sm:$0xf]  ;;  %v7833_v50 = vld [vmem:[%s12023_s1 + $0xc6c] sm:$0xf0] }
  0x78   :  { %3337 = vmatpush.bf16.msrb.mxu2 %v6814_v37  ;;  %v6653_v51 = vld [vmem:[%s12023_s1 + $0xd60] sm:$0xf]  ;;  %3350 = vmatpush.bf16.msrb.mxu3 %v6942_v41  ;;  %v6926_v52 = vor.u32 %v7933_v45, %v6925_v44  ;;  %v7865_v53 = vld [vmem:[%s12023_s1 + $0xd6c] sm:$0xf0]  ;;  %v6526_v58 = vor.u32 %v7833_v50, %v6525_v49  ;;  %v7463_v38 = vld [vmem:[%s12023_s1 + $0xe4] sm:$0xf] }
  0x79   :  { %v6781_v54 = vld [vmem:[%s12023_s1 + $0xe60] sm:$0xf]  ;;  %v7897_v55 = vld [vmem:[%s12023_s1 + $0xe6c] sm:$0xf0]  ;;  %v6654_v59 = vor.u32 %v7865_v53, %v6653_v51  ;;  %v5055_v39 = vld [vmem:[%s12023_s1 + $0xf0] sm:$0xf0] }
  0x7a   :  { %v6909_v56 = vld [vmem:[%s12023_s1 + $0xf60] sm:$0xf]  ;;  %v7929_v57 = vld [vmem:[%s12023_s1 + $0xf6c] sm:$0xf0]  ;;  %v6782_v61 = vor.u32 %v7897_v55, %v6781_v54  ;;  %v7495_v40 = vld [vmem:[%s12023_s1 + $0x1e4] sm:$0xf]  ;;  %v5058_v50 = vor.u32 %v7463_v38, %v5055_v39 }
  0x7b   :  { %3312 = vmatpush.bf16.msrb.mxu0 %v6542_v46  ;;  %3325 = vmatpush.bf16.msrb.mxu1 %v6670_v47  ;;  %v6509_v62 = vld [vmem:[%s12023_s1 + $0xc40] sm:$0xf]  ;;  %v7829_v63 = vld [vmem:[%s12023_s1 + $0xc4c] sm:$0xf0]  ;;  %v6910_v4 = vor.u32 %v7929_v57, %v6909_v56  ;;  %v5183_v42 = vld [vmem:[%s12023_s1 + $0x1f0] sm:$0xf0] }
  0x7c   :  { %3338 = vmatpush.bf16.msrb.mxu2 %v6798_v48  ;;  %v6637_v3 = vld [vmem:[%s12023_s1 + $0xd40] sm:$0xf]  ;;  %3351 = vmatpush.bf16.msrb.mxu3 %v6926_v52  ;;  %v7861_v5 = vld [vmem:[%s12023_s1 + $0xd4c] sm:$0xf0]  ;;  %v6510_v10 = vor.u32 %v7829_v63, %v6509_v62  ;;  %v7527_v43 = vld [vmem:[%s12023_s1 + $0x2e4] sm:$0xf]  ;;  %v5186_v51 = vor.u32 %v7495_v40, %v5183_v42 }
  0x7d   :  { %v6765_v6 = vld [vmem:[%s12023_s1 + $0xe40] sm:$0xf]  ;;  %v7893_v7 = vld [vmem:[%s12023_s1 + $0xe4c] sm:$0xf0]  ;;  %v6638_v11 = vor.u32 %v7861_v5, %v6637_v3  ;;  %v5311_v44 = vld [vmem:[%s12023_s1 + $0x2f0] sm:$0xf0] }
  0x7e   :  { %v6893_v8 = vld [vmem:[%s12023_s1 + $0xf40] sm:$0xf]  ;;  %v7925_v9 = vld [vmem:[%s12023_s1 + $0xf4c] sm:$0xf0]  ;;  %v6766_v12 = vor.u32 %v7893_v7, %v6765_v6  ;;  %v7559_v47 = vld [vmem:[%s12023_s1 + $0x3e4] sm:$0xf]  ;;  %v5314_v52 = vor.u32 %v7527_v43, %v5311_v44 }
  0x7f   :  { %3313 = vmatpush.bf16.msrb.mxu0 %v6526_v58  ;;  %3326 = vmatpush.bf16.msrb.mxu1 %v6654_v59  ;;  %v6493_v13 = vld [vmem:[%s12023_s1 + $0xc20] sm:$0xf]  ;;  %v7825_v14 = vld [vmem:[%s12023_s1 + $0xc2c] sm:$0xf0]  ;;  %v6894_v16 = vor.u32 %v7925_v9, %v6893_v8  ;;  %v5439_v48 = vld [vmem:[%s12023_s1 + $0x3f0] sm:$0xf0] }
  0x80   :  { %3339 = vmatpush.bf16.msrb.mxu2 %v6782_v61  ;;  %v6621_v15 = vld [vmem:[%s12023_s1 + $0xd20] sm:$0xf]  ;;  %3352 = vmatpush.bf16.msrb.mxu3 %v6910_v4  ;;  %v7857_v17 = vld [vmem:[%s12023_s1 + $0xd2c] sm:$0xf0]  ;;  %v6494_v22 = vor.u32 %v7825_v14, %v6493_v13  ;;  %v7459_v53 = vld [vmem:[%s12023_s1 + $0xc4] sm:$0xf]  ;;  %v5442_v56 = vor.u32 %v7559_v47, %v5439_v48 }
  0x81   :  { %v6749_v18 = vld [vmem:[%s12023_s1 + $0xe20] sm:$0xf]  ;;  %v7889_v19 = vld [vmem:[%s12023_s1 + $0xe2c] sm:$0xf0]  ;;  %v6622_v25 = vor.u32 %v7857_v17, %v6621_v15  ;;  %v5039_v54 = vld [vmem:[%s12023_s1 + $0xd0] sm:$0xf0] }
  0x82   :  { %v6877_v20 = vld [vmem:[%s12023_s1 + $0xf20] sm:$0xf]  ;;  %v7921_v21 = vld [vmem:[%s12023_s1 + $0xf2c] sm:$0xf0]  ;;  %v6750_v26 = vor.u32 %v7889_v19, %v6749_v18  ;;  %v7491_v55 = vld [vmem:[%s12023_s1 + $0x1c4] sm:$0xf]  ;;  %v5042_v6 = vor.u32 %v7459_v53, %v5039_v54 }
  0x83   :  { %3314 = vmatpush.bf16.msrb.mxu0 %v6510_v10  ;;  %v6477_v23 = vld [vmem:[%s12023_s1 + $0xc00] sm:$0xf]  ;;  %v7821_v24 = vld [vmem:[%s12023_s1 + $0xc0c] sm:$0xf0]  ;;  %3327 = vmatpush.bf16.msrb.mxu1 %v6638_v11  ;;  %v6878_v33 = vor.u32 %v7921_v21, %v6877_v20  ;;  %v5167_v57 = vld [vmem:[%s12023_s1 + $0x1d0] sm:$0xf0] }
  0x84   :  { %3340 = vmatpush.bf16.msrb.mxu2 %v6766_v12  ;;  %v6605_v30 = vld [vmem:[%s12023_s1 + $0xd00] sm:$0xf]  ;;  %v7853_v31 = vld [vmem:[%s12023_s1 + $0xd0c] sm:$0xf0]  ;;  %3353 = vmatpush.bf16.msrb.mxu3 %v6894_v16  ;;  %v6478_v41 = vor.u32 %v7821_v24, %v6477_v23  ;;  %v7523_v58 = vld [vmem:[%s12023_s1 + $0x2c4] sm:$0xf]  ;;  %v5170_v7 = vor.u32 %v7491_v55, %v5167_v57 }
  0x85   :  { %v6733_v32 = vld [vmem:[%s12023_s1 + $0xe00] sm:$0xf]  ;;  %v7885_v35 = vld [vmem:[%s12023_s1 + $0xe0c] sm:$0xf0]  ;;  %v6606_v45 = vor.u32 %v7853_v31, %v6605_v30  ;;  %v5295_v59 = vld [vmem:[%s12023_s1 + $0x2d0] sm:$0xf0] }
  0x86   :  { %v6861_v36 = vld [vmem:[%s12023_s1 + $0xf00] sm:$0xf]  ;;  %v7917_v37 = vld [vmem:[%s12023_s1 + $0xf0c] sm:$0xf0]  ;;  %v6734_v46 = vor.u32 %v7885_v35, %v6733_v32  ;;  %v573_v61 = vld [vmem:[#allocation1 + $0x24] sm:$0xff]  ;;  %v5298_v8 = vor.u32 %v7523_v58, %v5295_v59  ;;  %vm4903_vm0 = vcmask 41984  }
  0x87   :  { %3315 = vmatpush.bf16.msrb.mxu0 %v6494_v22  ;;  %3328 = vmatpush.bf16.msrb.mxu1 %v6622_v25  ;;  %v6862_v49 = vor.u32 %v7917_v37, %v6861_v36  ;;  %v7555_v62 = vld [vmem:[%s12023_s1 + $0x3c4] sm:$0xf]  ;;  %v5423_v63 = vld [vmem:[%s12023_s1 + $0x3d0] sm:$0xf0] }
  0x88   :  { %3341 = vmatpush.bf16.msrb.mxu2 %v6750_v26  ;;  %3354 = vmatpush.bf16.msrb.mxu3 %v6878_v33  ;;  %v575_v3 = vld [vmem:[#allocation1 + $0x36] sm:$0xff]  ;;  %v574_v4 = vld [vmem:[#allocation1 + $0x2d] sm:$0xff]  ;;  %v576_v5 = vld [vmem:[#allocation1 + $0x3f] sm:$0xff]  ;;  %v5426_v12 = vor.u32 %v7555_v62, %v5423_v63 }
  0x89   :  { %v7455_v9 = vld [vmem:[%s12023_s1 + $0xa4] sm:$0xf]  ;;  %v5023_v10 = vld [vmem:[%s12023_s1 + $0xb0] sm:$0xf0] }
  0x8a   :  { %v7487_v11 = vld [vmem:[%s12023_s1 + $0x1a4] sm:$0xf]  ;;  %v5151_v13 = vld [vmem:[%s12023_s1 + $0x1b0] sm:$0xf0]  ;;  %v5026_v18 = vor.u32 %v7455_v9, %v5023_v10 }
  0x8b   :  { %3316 = vmatpush.bf16.msrb.mxu0 %v6478_v41  ;;  %3329 = vmatpush.bf16.msrb.mxu1 %v6606_v45  ;;  %v7519_v14 = vld [vmem:[%s12023_s1 + $0x2a4] sm:$0xf]  ;;  %v5279_v15 = vld [vmem:[%s12023_s1 + $0x2b0] sm:$0xf0]  ;;  %v5154_v19 = vor.u32 %v7487_v11, %v5151_v13 }
  0x8c   :  { %3342 = vmatpush.bf16.msrb.mxu2 %v6734_v46  ;;  %3355 = vmatpush.bf16.msrb.mxu3 %v6862_v49  ;;  %v7551_v16 = vld [vmem:[%s12023_s1 + $0x3a4] sm:$0xf]  ;;  %v5407_v17 = vld [vmem:[%s12023_s1 + $0x3b0] sm:$0xf0]  ;;  %v5282_v20 = vor.u32 %v7519_v14, %v5279_v15 }
  0x8d   :  { %v7451_v21 = vld [vmem:[%s12023_s1 + $0x84] sm:$0xf]  ;;  %v5007_v22 = vld [vmem:[%s12023_s1 + $0x90] sm:$0xf0]  ;;  %v5410_v24 = vor.u32 %v7551_v16, %v5407_v17 }
  0x8e   :  { %3317 = vmatmul.bf16.vlgmr.msrb.gmra.mxu0 %v573_v61  ;;  %3330 = vmatmul.bf16.vlgmr.msrb.gmra.mxu1 %v574_v4  ;;  %v7483_v23 = vld [vmem:[%s12023_s1 + $0x184] sm:$0xf]  ;;  %v5135_v25 = vld [vmem:[%s12023_s1 + $0x190] sm:$0xf0]  ;;  %v5010_v33 = vor.u32 %v7451_v21, %v5007_v22 }
  0x8f   :  { %3361 = vmatpush.bf16.msra.mxu0 %v5058_v50  ;;  %3374 = vmatpush.bf16.msra.mxu1 %v5186_v51  ;;  %v7515_v26 = vld [vmem:[%s12023_s1 + $0x284] sm:$0xf]  ;;  %v5263_v30 = vld [vmem:[%s12023_s1 + $0x290] sm:$0xf0]  ;;  %v5138_v35 = vor.u32 %v7483_v23, %v5135_v25 }
  0x90   :  { %3387 = vmatpush.bf16.msra.mxu2 %v5314_v52  ;;  %3400 = vmatpush.bf16.msra.mxu3 %v5442_v56  ;;  %v7547_v31 = vld [vmem:[%s12023_s1 + $0x384] sm:$0xf]  ;;  %v5391_v32 = vld [vmem:[%s12023_s1 + $0x390] sm:$0xf0]  ;;  %v5266_v36 = vor.u32 %v7515_v26, %v5263_v30 }
  0x91   :  { %3343 = vmatmul.bf16.vlgmr.msrb.gmra.mxu2 %v575_v3  ;;  %3356 = vmatmul.bf16.vlgmr.msrb.gmra.mxu3 %v576_v5  ;;  %v7447_v37 = vld [vmem:[%s12023_s1 + $0x64] sm:$0xf]  ;;  %v4991_v38 = vld [vmem:[%s12023_s1 + $0x70] sm:$0xf0]  ;;  %v5394_v40 = vor.u32 %v7547_v31, %v5391_v32 }
  0x92   :  { %v7479_v39 = vld [vmem:[%s12023_s1 + $0x164] sm:$0xf]  ;;  %v5119_v41 = vld [vmem:[%s12023_s1 + $0x170] sm:$0xf0]  ;;  %v4994_v46 = vor.u32 %v7447_v37, %v4991_v38 }
  0x93   :  { %3362 = vmatpush.bf16.msra.mxu0 %v5042_v6  ;;  %3375 = vmatpush.bf16.msra.mxu1 %v5170_v7  ;;  %v7511_v42 = vld [vmem:[%s12023_s1 + $0x264] sm:$0xf]  ;;  %v5247_v43 = vld [vmem:[%s12023_s1 + $0x270] sm:$0xf0]  ;;  %v5122_v47 = vor.u32 %v7479_v39, %v5119_v41 }
  0x94   :  { %3388 = vmatpush.bf16.msra.mxu2 %v5298_v8  ;;  %3401 = vmatpush.bf16.msra.mxu3 %v5426_v12  ;;  %v7543_v44 = vld [vmem:[%s12023_s1 + $0x364] sm:$0xf]  ;;  %v5375_v45 = vld [vmem:[%s12023_s1 + $0x370] sm:$0xf0]  ;;  %v5250_v48 = vor.u32 %v7511_v42, %v5247_v43 }
  0x95   :  { %v7443_v49 = vld [vmem:[%s12023_s1 + $0x44] sm:$0xf]  ;;  %v4975_v50 = vld [vmem:[%s12023_s1 + $0x50] sm:$0xf0]  ;;  %v5378_v52 = vor.u32 %v7543_v44, %v5375_v45 }
  0x96   :  { %v7475_v51 = vld [vmem:[%s12023_s1 + $0x144] sm:$0xf]  ;;  %v5103_v53 = vld [vmem:[%s12023_s1 + $0x150] sm:$0xf0]  ;;  %v4978_v58 = vor.u32 %v7443_v49, %v4975_v50 }
  0x97   :  { %3363 = vmatpush.bf16.msra.mxu0 %v5026_v18  ;;  %3376 = vmatpush.bf16.msra.mxu1 %v5154_v19  ;;  %v7507_v54 = vld [vmem:[%s12023_s1 + $0x244] sm:$0xf]  ;;  %v5231_v55 = vld [vmem:[%s12023_s1 + $0x250] sm:$0xf0]  ;;  %v5106_v59 = vor.u32 %v7475_v51, %v5103_v53 }
  0x98   :  { %3389 = vmatpush.bf16.msra.mxu2 %v5282_v20  ;;  %3402 = vmatpush.bf16.msra.mxu3 %v5410_v24  ;;  %v7539_v56 = vld [vmem:[%s12023_s1 + $0x344] sm:$0xf]  ;;  %v5359_v57 = vld [vmem:[%s12023_s1 + $0x350] sm:$0xf0]  ;;  %v5234_v61 = vor.u32 %v7507_v54, %v5231_v55 }
  0x99   :  { %v7439_v62 = vld [vmem:[%s12023_s1 + $0x24] sm:$0xf]  ;;  %v4959_v63 = vld [vmem:[%s12023_s1 + $0x30] sm:$0xf0]  ;;  %v5362_v4 = vor.u32 %v7539_v56, %v5359_v57 }
  0x9a   :  { %v7471_v3 = vld [vmem:[%s12023_s1 + $0x124] sm:$0xf]  ;;  %v5087_v5 = vld [vmem:[%s12023_s1 + $0x130] sm:$0xf0]  ;;  %v4962_v10 = vor.u32 %v7439_v62, %v4959_v63 }
  0x9b   :  { %3364 = vmatpush.bf16.msra.mxu0 %v5010_v33  ;;  %3377 = vmatpush.bf16.msra.mxu1 %v5138_v35  ;;  %v7503_v6 = vld [vmem:[%s12023_s1 + $0x224] sm:$0xf]  ;;  %v5215_v7 = vld [vmem:[%s12023_s1 + $0x230] sm:$0xf0]  ;;  %v5090_v13 = vor.u32 %v7471_v3, %v5087_v5 }
  0x9c   :  { %3390 = vmatpush.bf16.msra.mxu2 %v5266_v36  ;;  %3403 = vmatpush.bf16.msra.mxu3 %v5394_v40  ;;  %v7535_v8 = vld [vmem:[%s12023_s1 + $0x324] sm:$0xf]  ;;  %v5343_v9 = vld [vmem:[%s12023_s1 + $0x330] sm:$0xf0]  ;;  %v5218_v14 = vor.u32 %v7503_v6, %v5215_v7 }
  0x9d   :  { %v7435_v11 = vld [vmem:[%s12023_s1 + $0x4] sm:$0xf]  ;;  %v4943_v12 = vld [vmem:[%s12023_s1 + $0x10] sm:$0xf0]  ;;  %v5346_v18 = vor.u32 %v7535_v8, %v5343_v9 }
  0x9e   :  { %v7467_v15 = vld [vmem:[%s12023_s1 + $0x104] sm:$0xf]  ;;  %v5071_v16 = vld [vmem:[%s12023_s1 + $0x110] sm:$0xf0]  ;;  %v4946_v25 = vor.u32 %v7435_v11, %v4943_v12 }
  0x9f   :  { %3365 = vmatpush.bf16.msra.mxu0 %v4994_v46  ;;  %3378 = vmatpush.bf16.msra.mxu1 %v5122_v47  ;;  %v7499_v17 = vld [vmem:[%s12023_s1 + $0x204] sm:$0xf]  ;;  %v5199_v19 = vld [vmem:[%s12023_s1 + $0x210] sm:$0xf0]  ;;  %v5074_v32 = vor.u32 %v7467_v15, %v5071_v16 }
  0xa0   :  { %3391 = vmatpush.bf16.msra.mxu2 %v5250_v48  ;;  %3404 = vmatpush.bf16.msra.mxu3 %v5378_v52  ;;  %v7531_v20 = vld [vmem:[%s12023_s1 + $0x304] sm:$0xf]  ;;  %v5327_v21 = vld [vmem:[%s12023_s1 + $0x310] sm:$0xf0]  ;;  %v5202_v33 = vor.u32 %v7499_v17, %v5199_v19 }
  0xa1   :  { %v7591_v22 = vld [vmem:[%s12023_s1 + $0x4e4] sm:$0xf]  ;;  %v5567_v23 = vld [vmem:[%s12023_s1 + $0x4f0] sm:$0xf0]  ;;  %v5330_v37 = vor.u32 %v7531_v20, %v5327_v21 }
  0xa2   :  { %v7623_v24 = vld [vmem:[%s12023_s1 + $0x5e4] sm:$0xf]  ;;  %v5695_v26 = vld [vmem:[%s12023_s1 + $0x5f0] sm:$0xf0]  ;;  %v5570_v38 = vor.u32 %v7591_v22, %v5567_v23 }
  0xa3   :  { %3366 = vmatpush.bf16.msra.mxu0 %v4978_v58  ;;  %3379 = vmatpush.bf16.msra.mxu1 %v5106_v59  ;;  %v7655_v30 = vld [vmem:[%s12023_s1 + $0x6e4] sm:$0xf]  ;;  %v5823_v31 = vld [vmem:[%s12023_s1 + $0x6f0] sm:$0xf0]  ;;  %v5698_v39 = vor.u32 %v7623_v24, %v5695_v26 }
  0xa4   :  { %3392 = vmatpush.bf16.msra.mxu2 %v5234_v61  ;;  %3405 = vmatpush.bf16.msra.mxu3 %v5362_v4  ;;  %v7687_v35 = vld [vmem:[%s12023_s1 + $0x7e4] sm:$0xf]  ;;  %v5951_v36 = vld [vmem:[%s12023_s1 + $0x7f0] sm:$0xf0]  ;;  %v5826_v40 = vor.u32 %v7655_v30, %v5823_v31 }
  0xa5   :  { %v7587_v41 = vld [vmem:[%s12023_s1 + $0x4c4] sm:$0xf]  ;;  %v5551_v42 = vld [vmem:[%s12023_s1 + $0x4d0] sm:$0xf0]  ;;  %v5954_v44 = vor.u32 %v7687_v35, %v5951_v36 }
  0xa6   :  { %v7619_v43 = vld [vmem:[%s12023_s1 + $0x5c4] sm:$0xf]  ;;  %v5679_v45 = vld [vmem:[%s12023_s1 + $0x5d0] sm:$0xf0]  ;;  %v5554_v50 = vor.u32 %v7587_v41, %v5551_v42 }
  0xa7   :  { %3367 = vmatpush.bf16.msra.mxu0 %v4962_v10  ;;  %3380 = vmatpush.bf16.msra.mxu1 %v5090_v13  ;;  %v7651_v46 = vld [vmem:[%s12023_s1 + $0x6c4] sm:$0xf]  ;;  %v5807_v47 = vld [vmem:[%s12023_s1 + $0x6d0] sm:$0xf0]  ;;  %v5682_v51 = vor.u32 %v7619_v43, %v5679_v45 }
  0xa8   :  { %3393 = vmatpush.bf16.msra.mxu2 %v5218_v14  ;;  %3406 = vmatpush.bf16.msra.mxu3 %v5346_v18  ;;  %v7683_v48 = vld [vmem:[%s12023_s1 + $0x7c4] sm:$0xf]  ;;  %v5935_v49 = vld [vmem:[%s12023_s1 + $0x7d0] sm:$0xf0]  ;;  %v5810_v52 = vor.u32 %v7651_v46, %v5807_v47 }
  0xa9   :  { %v7583_v53 = vld [vmem:[%s12023_s1 + $0x4a4] sm:$0xf]  ;;  %v5535_v54 = vld [vmem:[%s12023_s1 + $0x4b0] sm:$0xf0]  ;;  %v5938_v56 = vor.u32 %v7683_v48, %v5935_v49 }
  0xaa   :  { %v7615_v55 = vld [vmem:[%s12023_s1 + $0x5a4] sm:$0xf]  ;;  %v5663_v57 = vld [vmem:[%s12023_s1 + $0x5b0] sm:$0xf0]  ;;  %v5538_v63 = vor.u32 %v7583_v53, %v5535_v54 }
  0xab   :  { %3368 = vmatpush.bf16.msra.mxu0 %v4946_v25  ;;  %3381 = vmatpush.bf16.msra.mxu1 %v5074_v32  ;;  %v7647_v58 = vld [vmem:[%s12023_s1 + $0x6a4] sm:$0xf]  ;;  %v5791_v59 = vld [vmem:[%s12023_s1 + $0x6b0] sm:$0xf0]  ;;  %v5666_v3 = vor.u32 %v7615_v55, %v5663_v57 }
  0xac   :  { %3394 = vmatpush.bf16.msra.mxu2 %v5202_v33  ;;  %3407 = vmatpush.bf16.msra.mxu3 %v5330_v37  ;;  %v7679_v61 = vld [vmem:[%s12023_s1 + $0x7a4] sm:$0xf]  ;;  %v5919_v62 = vld [vmem:[%s12023_s1 + $0x7b0] sm:$0xf0]  ;;  %v5794_v4 = vor.u32 %v7647_v58, %v5791_v59 }
  0xad   :  { %v7579_v5 = vld [vmem:[%s12023_s1 + $0x484] sm:$0xf]  ;;  %v5519_v6 = vld [vmem:[%s12023_s1 + $0x490] sm:$0xf0]  ;;  %v5922_v8 = vor.u32 %v7679_v61, %v5919_v62 }
  0xae   :  { %3369 = vmatmul.bf16.vlgmr.msra.gmra.mxu0 %v8492_v28  ;;  %3382 = vmatmul.bf16.vlgmr.msra.gmra.mxu1 %v8502_v34  ;;  %v7611_v7 = vld [vmem:[%s12023_s1 + $0x584] sm:$0xf]  ;;  %v5647_v9 = vld [vmem:[%s12023_s1 + $0x590] sm:$0xf0]  ;;  %v5522_v14 = vor.u32 %v7579_v5, %v5519_v6 }
  0xaf   :  { %3413 = vmatpush.bf16.msrb.mxu0 %v5570_v38  ;;  %3426 = vmatpush.bf16.msrb.mxu1 %v5698_v39  ;;  %v7643_v10 = vld [vmem:[%s12023_s1 + $0x684] sm:$0xf]  ;;  %v5775_v11 = vld [vmem:[%s12023_s1 + $0x690] sm:$0xf0]  ;;  %v5650_v15 = vor.u32 %v7611_v7, %v5647_v9 }
  0xb0   :  { %3439 = vmatpush.bf16.msrb.mxu2 %v5826_v40  ;;  %3452 = vmatpush.bf16.msrb.mxu3 %v5954_v44  ;;  %v7675_v12 = vld [vmem:[%s12023_s1 + $0x784] sm:$0xf]  ;;  %v5903_v13 = vld [vmem:[%s12023_s1 + $0x790] sm:$0xf0]  ;;  %v5778_v16 = vor.u32 %v7643_v10, %v5775_v11  ;;  %v547_v40 = vld [vmem:[%s12024_s2] sm:$0xf] }
  0xb1   :  { %3395 = vmatmul.bf16.vlgmr.msra.gmra.mxu2 %v8490_v27  ;;  %3408 = vmatmul.bf16.vlgmr.msra.gmra.mxu3 %v8494_v29  ;;  %v7575_v17 = vld [vmem:[%s12023_s1 + $0x464] sm:$0xf]  ;;  %v5503_v18 = vld [vmem:[%s12023_s1 + $0x470] sm:$0xf0]  ;;  %v5906_v20 = vor.u32 %v7675_v12, %v5903_v13  ;;  %v549_v49 = vperm.slane %v547_v40, 0 }
  0xb2   :  { %v7607_v19 = vld [vmem:[%s12023_s1 + $0x564] sm:$0xf]  ;;  %v5631_v21 = vld [vmem:[%s12023_s1 + $0x570] sm:$0xf0]  ;;  %v5506_v26 = vor.u32 %v7575_v17, %v5503_v18 }
  0xb3   :  { %3414 = vmatpush.bf16.msrb.mxu0 %v5554_v50  ;;  %3427 = vmatpush.bf16.msrb.mxu1 %v5682_v51  ;;  %v7639_v22 = vld [vmem:[%s12023_s1 + $0x664] sm:$0xf]  ;;  %v5759_v23 = vld [vmem:[%s12023_s1 + $0x670] sm:$0xf0]  ;;  %v5634_v31 = vor.u32 %v7607_v19, %v5631_v21 }
  0xb4   :  { %3440 = vmatpush.bf16.msrb.mxu2 %v5810_v52  ;;  %3453 = vmatpush.bf16.msrb.mxu3 %v5938_v56  ;;  %v7671_v24 = vld [vmem:[%s12023_s1 + $0x764] sm:$0xf]  ;;  %v5887_v25 = vld [vmem:[%s12023_s1 + $0x770] sm:$0xf0]  ;;  %v5762_v32 = vor.u32 %v7639_v22, %v5759_v23  ;;  %v3175_v6 = vpop.f32.mrf.mxu1 }
  0xb5   :  { %v7571_v30 = vld [vmem:[%s12023_s1 + $0x444] sm:$0xf]  ;;  %v5487_v33 = vld [vmem:[%s12023_s1 + $0x450] sm:$0xf0]  ;;  %v5890_v37 = vor.u32 %v7671_v24, %v5887_v25  ;;  %v3162_v59 = vpop.f32.mrf.mxu0 }
  0xb6   :  { %v7603_v35 = vld [vmem:[%s12023_s1 + $0x544] sm:$0xf]  ;;  %v5615_v36 = vld [vmem:[%s12023_s1 + $0x550] sm:$0xf0]  ;;  %v5490_v43 = vor.u32 %v7571_v30, %v5487_v33  ;;  %v3163_v5 = vadd.f32 %v3162_v59, %v549_v49 }
  0xb7   :  { %3415 = vmatpush.bf16.msrb.mxu0 %v5538_v63  ;;  %3428 = vmatpush.bf16.msrb.mxu1 %v5666_v3  ;;  %v7635_v38 = vld [vmem:[%s12023_s1 + $0x644] sm:$0xf]  ;;  %v5743_v39 = vld [vmem:[%s12023_s1 + $0x650] sm:$0xf0]  ;;  %v5618_v45 = vor.u32 %v7603_v35, %v5615_v36 }
  0xb8   :  { %3441 = vmatpush.bf16.msrb.mxu2 %v5794_v4  ;;  %3454 = vmatpush.bf16.msrb.mxu3 %v5922_v8  ;;  %v7667_v41 = vld [vmem:[%s12023_s1 + $0x744] sm:$0xf]  ;;  %v5871_v42 = vld [vmem:[%s12023_s1 + $0x750] sm:$0xf0]  ;;  %v5746_v46 = vor.u32 %v7635_v38, %v5743_v39 }
  0xb9   :  { %v7567_v44 = vld [vmem:[%s12023_s1 + $0x424] sm:$0xf]  ;;  %v5471_v47 = vld [vmem:[%s12023_s1 + $0x430] sm:$0xf0]  ;;  %v5874_v50 = vor.u32 %v7667_v41, %v5871_v42 }
  0xba   :  { %v7599_v48 = vld [vmem:[%s12023_s1 + $0x524] sm:$0xf]  ;;  %v5599_v51 = vld [vmem:[%s12023_s1 + $0x530] sm:$0xf0]  ;;  %v5474_v56 = vor.u32 %v7567_v44, %v5471_v47  ;;  %v3188_v23 = vpop.f32.mrf.mxu2 }
  0xbb   :  { %3416 = vmatpush.bf16.msrb.mxu0 %v5522_v14  ;;  %3429 = vmatpush.bf16.msrb.mxu1 %v5650_v15  ;;  %v7631_v52 = vld [vmem:[%s12023_s1 + $0x624] sm:$0xf]  ;;  %v5727_v53 = vld [vmem:[%s12023_s1 + $0x630] sm:$0xf0]  ;;  %v5602_v61 = vor.u32 %v7599_v48, %v5599_v51  ;;  %v3176_v14 = vadd.f32 %v3175_v6, %v3163_v5 }
  0xbc   :  { %3442 = vmatpush.bf16.msrb.mxu2 %v5778_v16  ;;  %3455 = vmatpush.bf16.msrb.mxu3 %v5906_v20  ;;  %v7663_v54 = vld [vmem:[%s12023_s1 + $0x724] sm:$0xf]  ;;  %v5855_v55 = vld [vmem:[%s12023_s1 + $0x730] sm:$0xf0]  ;;  %v5730_v62 = vor.u32 %v7631_v52, %v5727_v53  ;;  %v3201_v30 = vpop.f32.mrf.mxu3 }
  0xbd   :  { %v7563_v57 = vld [vmem:[%s12023_s1 + $0x404] sm:$0xf]  ;;  %v5455_v58 = vld [vmem:[%s12023_s1 + $0x410] sm:$0xf0]  ;;  %v5858_v7 = vor.u32 %v7663_v54, %v5855_v55  ;;  %v3164_v42 = vpop.f32.mrf.mxu0 }
  0xbe   :  { %v7595_v63 = vld [vmem:[%s12023_s1 + $0x504] sm:$0xf]  ;;  %v5583_v3 = vld [vmem:[%s12023_s1 + $0x510] sm:$0xf0]  ;;  %v5458_v15 = vor.u32 %v7563_v57, %v5455_v58 }
  0xbf   :  { %3417 = vmatpush.bf16.msrb.mxu0 %v5506_v26  ;;  %3430 = vmatpush.bf16.msrb.mxu1 %v5634_v31  ;;  %v7627_v4 = vld [vmem:[%s12023_s1 + $0x604] sm:$0xf]  ;;  %v5711_v8 = vld [vmem:[%s12023_s1 + $0x610] sm:$0xf0]  ;;  %v5586_v19 = vor.u32 %v7595_v63, %v5583_v3  ;;  %v3189_v26 = vadd.f32 %v3188_v23, %v3176_v14 }
  0xc0   :  { %3443 = vmatpush.bf16.msrb.mxu2 %v5762_v32  ;;  %3456 = vmatpush.bf16.msrb.mxu3 %v5890_v37  ;;  %v7659_v9 = vld [vmem:[%s12023_s1 + $0x704] sm:$0xf]  ;;  %v5839_v10 = vld [vmem:[%s12023_s1 + $0x710] sm:$0xf0]  ;;  %v5714_v20 = vor.u32 %v7627_v4, %v5711_v8 }
  0xc1   :  { %v7719_v11 = vld [vmem:[%s12023_s1 + $0x8e4] sm:$0xf]  ;;  %v6079_v12 = vld [vmem:[%s12023_s1 + $0x8f0] sm:$0xf0]  ;;  %v5842_v24 = vor.u32 %v7659_v9, %v5839_v10  ;;  %v3202_v41 = vadd.f32 %v3201_v30, %v3189_v26 }
  0xc2   :  { %v7751_v13 = vld [vmem:[%s12023_s1 + $0x9e4] sm:$0xf]  ;;  %v6207_v16 = vld [vmem:[%s12023_s1 + $0x9f0] sm:$0xf0]  ;;  %v6082_v25 = vor.u32 %v7719_v11, %v6079_v12  ;;  %v3190_v58 = vpop.f32.mrf.mxu2 }
  0xc3   :  { %3418 = vmatpush.bf16.msrb.mxu0 %v5490_v43  ;;  %3431 = vmatpush.bf16.msrb.mxu1 %v5618_v45  ;;  %v7783_v17 = vld [vmem:[%s12023_s1 + $0xae4] sm:$0xf]  ;;  %v6335_v18 = vld [vmem:[%s12023_s1 + $0xaf0] sm:$0xf0]  ;;  %v6210_v31 = vor.u32 %v7751_v13, %v6207_v16  ;;  %v3177_v45 = vpop.f32.mrf.mxu1 }
  0xc4   :  { %3444 = vmatpush.bf16.msrb.mxu2 %v5746_v46  ;;  %3457 = vmatpush.bf16.msrb.mxu3 %v5874_v50  ;;  %v7815_v21 = vld [vmem:[%s12023_s1 + $0xbe4] sm:$0xf]  ;;  %v6463_v22 = vld [vmem:[%s12023_s1 + $0xbf0] sm:$0xf0]  ;;  %v6338_v32 = vor.u32 %v7783_v17, %v6335_v18 }
  0xc5   :  { %v7715_v33 = vld [vmem:[%s12023_s1 + $0x8c4] sm:$0xf]  ;;  %v6063_v35 = vld [vmem:[%s12023_s1 + $0x8d0] sm:$0xf0]  ;;  %v6466_v37 = vor.u32 %v7815_v21, %v6463_v22 }
  0xc6   :  { %v7747_v36 = vld [vmem:[%s12023_s1 + $0x9c4] sm:$0xf]  ;;  %v6191_v38 = vld [vmem:[%s12023_s1 + $0x9d0] sm:$0xf0]  ;;  %v6066_v46 = vor.u32 %v7715_v33, %v6063_v35  ;;  %v3214_v13 = vpop.f32.mrf.mxu0 }
  0xc7   :  { %3419 = vmatpush.bf16.msrb.mxu0 %v5474_v56  ;;  %3432 = vmatpush.bf16.msrb.mxu1 %v5602_v61  ;;  %v7779_v39 = vld [vmem:[%s12023_s1 + $0xac4] sm:$0xf]  ;;  %v6319_v40 = vld [vmem:[%s12023_s1 + $0xad0] sm:$0xf0]  ;;  %v6194_v47 = vor.u32 %v7747_v36, %v6191_v38  ;;  %v3203_v61 = vpop.f32.mrf.mxu3 }
  0xc8   :  { %3445 = vmatpush.bf16.msrb.mxu2 %v5730_v62  ;;  %3458 = vmatpush.bf16.msrb.mxu3 %v5858_v7  ;;  %v7811_v43 = vld [vmem:[%s12023_s1 + $0xbc4] sm:$0xf]  ;;  %v6447_v44 = vld [vmem:[%s12023_s1 + $0xbd0] sm:$0xf0]  ;;  %v6322_v48 = vor.u32 %v7779_v39, %v6319_v40 }
  0xc9   :  { %v7711_v49 = vld [vmem:[%s12023_s1 + $0x8a4] sm:$0xf]  ;;  %v6047_v50 = vld [vmem:[%s12023_s1 + $0x8b0] sm:$0xf0]  ;;  %v6450_v52 = vor.u32 %v7811_v43, %v6447_v44 }
  0xca   :  { %v7743_v51 = vld [vmem:[%s12023_s1 + $0x9a4] sm:$0xf]  ;;  %v6175_v53 = vld [vmem:[%s12023_s1 + $0x9b0] sm:$0xf0]  ;;  %v6050_v59 = vor.u32 %v7711_v49, %v6047_v50 }
  0xcb   :  { %3420 = vmatpush.bf16.msrb.mxu0 %v5458_v15  ;;  %3433 = vmatpush.bf16.msrb.mxu1 %v5586_v19  ;;  %v7775_v54 = vld [vmem:[%s12023_s1 + $0xaa4] sm:$0xf]  ;;  %v6303_v55 = vld [vmem:[%s12023_s1 + $0xab0] sm:$0xf0]  ;;  %v6178_v62 = vor.u32 %v7743_v51, %v6175_v53  ;;  %v3215_v19 = vadd.f32 %v3214_v13, %v3202_v41  ;;  %v3240_v38 = vpop.f32.mrf.mxu2 }
  0xcc   :  { %3446 = vmatpush.bf16.msrb.mxu2 %v5714_v20  ;;  %3459 = vmatpush.bf16.msrb.mxu3 %v5842_v24  ;;  %v7807_v56 = vld [vmem:[%s12023_s1 + $0xba4] sm:$0xf]  ;;  %v6431_v57 = vld [vmem:[%s12023_s1 + $0xbb0] sm:$0xf0]  ;;  %v6306_v63 = vor.u32 %v7775_v54, %v6303_v55  ;;  %v3227_v20 = vpop.f32.mrf.mxu1 }
  0xcd   :  { %v7707_v3 = vld [vmem:[%s12023_s1 + $0x884] sm:$0xf]  ;;  %v6031_v4 = vld [vmem:[%s12023_s1 + $0x890] sm:$0xf0]  ;;  %v6434_v6 = vor.u32 %v7807_v56, %v6431_v57  ;;  %v3228_v30 = vadd.f32 %v3227_v20, %v3215_v19 }
  0xce   :  { %3421 = vmatmul.bf16.vlgmr.msrb.gmra.mxu0 %v8570_v0  ;;  %3434 = vmatmul.bf16.vlgmr.msrb.gmra.mxu1 %v8574_v2  ;;  %v7739_v5 = vld [vmem:[%s12023_s1 + $0x984] sm:$0xf]  ;;  %v6159_v7 = vld [vmem:[%s12023_s1 + $0x990] sm:$0xf0]  ;;  %v6034_v12 = vor.u32 %v7707_v3, %v6031_v4  ;;  %v3216_v49 = vpop.f32.mrf.mxu0 }
  0xcf   :  { %3465 = vmatpush.bf16.msra.mxu0 %v6082_v25  ;;  %3478 = vmatpush.bf16.msra.mxu1 %v6210_v31  ;;  %v7771_v8 = vld [vmem:[%s12023_s1 + $0xa84] sm:$0xf]  ;;  %v6287_v9 = vld [vmem:[%s12023_s1 + $0xa90] sm:$0xf0]  ;;  %v6162_v14 = vor.u32 %v7739_v5, %v6159_v7  ;;  %v3241_v43 = vadd.f32 %v3240_v38, %v3228_v30  ;;  %v3253_v44 = vpop.f32.mrf.mxu3 }
  0xd0   :  { %3491 = vmatpush.bf16.msra.mxu2 %v6338_v32  ;;  %3504 = vmatpush.bf16.msra.mxu3 %v6466_v37  ;;  %v7803_v10 = vld [vmem:[%s12023_s1 + $0xb84] sm:$0xf]  ;;  %v6415_v11 = vld [vmem:[%s12023_s1 + $0xb90] sm:$0xf0]  ;;  %v6290_v15 = vor.u32 %v7771_v8, %v6287_v9 }
  0xd1   :  { %3447 = vmatmul.bf16.vlgmr.msrb.gmra.mxu2 %v8565_v60  ;;  %3460 = vmatmul.bf16.vlgmr.msrb.gmra.mxu3 %v8572_v1  ;;  %v7703_v16 = vld [vmem:[%s12023_s1 + $0x864] sm:$0xf]  ;;  %v6015_v17 = vld [vmem:[%s12023_s1 + $0x870] sm:$0xf0]  ;;  %v6418_v21 = vor.u32 %v7803_v10, %v6415_v11 }
  0xd2   :  { %v7735_v18 = vld [vmem:[%s12023_s1 + $0x964] sm:$0xf]  ;;  %v6143_v22 = vld [vmem:[%s12023_s1 + $0x970] sm:$0xf0]  ;;  %v6018_v31 = vor.u32 %v7703_v16, %v6015_v17 }
  0xd3   :  { %3466 = vmatpush.bf16.msra.mxu0 %v6066_v46  ;;  %3479 = vmatpush.bf16.msra.mxu1 %v6194_v47  ;;  %v7767_v23 = vld [vmem:[%s12023_s1 + $0xa64] sm:$0xf]  ;;  %v6271_v24 = vld [vmem:[%s12023_s1 + $0xa70] sm:$0xf0]  ;;  %v6146_v32 = vor.u32 %v7735_v18, %v6143_v22  ;;  %v3242_v10 = vpop.f32.mrf.mxu2 }
  0xd4   :  { %3492 = vmatpush.bf16.msra.mxu2 %v6322_v48  ;;  %3505 = vmatpush.bf16.msra.mxu3 %v6450_v52  ;;  %v7799_v25 = vld [vmem:[%s12023_s1 + $0xb64] sm:$0xf]  ;;  %v6399_v26 = vld [vmem:[%s12023_s1 + $0xb70] sm:$0xf0]  ;;  %v6274_v33 = vor.u32 %v7767_v23, %v6271_v24  ;;  %v9509_v48 = vadd.f32 %v3253_v44, %v3241_v43  ;;  %v3229_v55 = vpop.f32.mrf.mxu1 }
  0xd5   :  { %v7699_v35 = vld [vmem:[%s12023_s1 + $0x844] sm:$0xf]  ;;  %v5999_v36 = vld [vmem:[%s12023_s1 + $0x850] sm:$0xf0]  ;;  %v6402_v39 = vor.u32 %v7799_v25, %v6399_v26 }
  0xd6   :  { %v7731_v37 = vld [vmem:[%s12023_s1 + $0x944] sm:$0xf]  ;;  %v6127_v40 = vld [vmem:[%s12023_s1 + $0x950] sm:$0xf0]  ;;  %v6002_v47 = vor.u32 %v7699_v35, %v5999_v36 }
  0xd7   :  { %3467 = vmatpush.bf16.msra.mxu0 %v6050_v59  ;;  %3480 = vmatpush.bf16.msra.mxu1 %v6178_v62  ;;  %v7763_v41 = vld [vmem:[%s12023_s1 + $0xa44] sm:$0xf]  ;;  %v6255_v42 = vld [vmem:[%s12023_s1 + $0xa50] sm:$0xf0]  ;;  %v6130_v50 = vor.u32 %v7731_v37, %v6127_v40 }
  0xd8   :  { %3493 = vmatpush.bf16.msra.mxu2 %v6306_v63  ;;  %3506 = vmatpush.bf16.msra.mxu3 %v6434_v6  ;;  %v7795_v45 = vld [vmem:[%s12023_s1 + $0xb44] sm:$0xf]  ;;  %v6383_v46 = vld [vmem:[%s12023_s1 + $0xb50] sm:$0xf0]  ;;  %v6258_v51 = vor.u32 %v7763_v41, %v6255_v42 }
  0xd9   :  { %v7695_v52 = vld [vmem:[%s12023_s1 + $0x824] sm:$0xf]  ;;  %v5983_v53 = vld [vmem:[%s12023_s1 + $0x830] sm:$0xf0]  ;;  %v6386_v56 = vor.u32 %v7795_v45, %v6383_v46 }
  0xda   :  { %v7727_v54 = vld [vmem:[%s12023_s1 + $0x924] sm:$0xf]  ;;  %v6111_v57 = vld [vmem:[%s12023_s1 + $0x930] sm:$0xf0]  ;;  %v5986_v63 = vor.u32 %v7695_v52, %v5983_v53 }
  0xdb   :  { %3468 = vmatpush.bf16.msra.mxu0 %v6034_v12  ;;  %3481 = vmatpush.bf16.msra.mxu1 %v6162_v14  ;;  %v7759_v58 = vld [vmem:[%s12023_s1 + $0xa24] sm:$0xf]  ;;  %v6239_v59 = vld [vmem:[%s12023_s1 + $0xa30] sm:$0xf0]  ;;  %v6114_v5 = vor.u32 %v7727_v54, %v6111_v57  ;;  %v8068_v57 = vld [vmem:[#allocation1 + $0x9] sm:$0xff] }
  0xdc   :  { %3494 = vmatpush.bf16.msra.mxu2 %v6290_v15  ;;  %3507 = vmatpush.bf16.msra.mxu3 %v6418_v21  ;;  %v7791_v61 = vld [vmem:[%s12023_s1 + $0xb24] sm:$0xf]  ;;  %v6367_v62 = vld [vmem:[%s12023_s1 + $0xb30] sm:$0xf0]  ;;  %v6242_v6 = vor.u32 %v7759_v58, %v6239_v59  ;;  %v3255_v15 = vpop.f32.mrf.mxu3 }
  0xdd   :  { %v7691_v3 = vld [vmem:[%s12023_s1 + $0x804] sm:$0xf]  ;;  %v5967_v4 = vld [vmem:[%s12023_s1 + $0x810] sm:$0xf0]  ;;  %v6370_v11 = vor.u32 %v7791_v61, %v6367_v62  ;;  %v8069_v61 = vld [vmem:[#allocation1 + $0x1b] sm:$0xff] }
  0xde   :  { %v7723_v7 = vld [vmem:[%s12023_s1 + $0x904] sm:$0xf]  ;;  %v6095_v8 = vld [vmem:[%s12023_s1 + $0x910] sm:$0xf0]  ;;  %v5970_v19 = vor.u32 %v7691_v3, %v5967_v4 }
  0xdf   :  { %3469 = vmatpush.bf16.msra.mxu0 %v6018_v31  ;;  %3482 = vmatpush.bf16.msra.mxu1 %v6146_v32  ;;  %v7755_v9 = vld [vmem:[%s12023_s1 + $0xa04] sm:$0xf]  ;;  %v6223_v12 = vld [vmem:[%s12023_s1 + $0xa10] sm:$0xf0]  ;;  %v6098_v23 = vor.u32 %v7723_v7, %v6095_v8 }
  0xe0   :  { %3495 = vmatpush.bf16.msra.mxu2 %v6274_v33  ;;  %3508 = vmatpush.bf16.msra.mxu3 %v6402_v39  ;;  %v7787_v13 = vld [vmem:[%s12023_s1 + $0xb04] sm:$0xf]  ;;  %v6351_v14 = vld [vmem:[%s12023_s1 + $0xb10] sm:$0xf0]  ;;  %v6226_v24 = vor.u32 %v7755_v9, %v6223_v12 }
  0xe1   :  { %v7847_v16 = vld [vmem:[%s12023_s1 + $0xce4] sm:$0xf]  ;;  %v6591_v17 = vld [vmem:[%s12023_s1 + $0xcf0] sm:$0xf0]  ;;  %v6354_v30 = vor.u32 %v7787_v13, %v6351_v14 }
  0xe2   :  { %v7879_v18 = vld [vmem:[%s12023_s1 + $0xde4] sm:$0xf]  ;;  %v6719_v20 = vld [vmem:[%s12023_s1 + $0xdf0] sm:$0xf0]  ;;  %v6594_v31 = vor.u32 %v7847_v16, %v6591_v17 }
  0xe3   :  { %3470 = vmatpush.bf16.msra.mxu0 %v6002_v47  ;;  %3483 = vmatpush.bf16.msra.mxu1 %v6130_v50  ;;  %v7911_v21 = vld [vmem:[%s12023_s1 + $0xee4] sm:$0xf]  ;;  %v6847_v22 = vld [vmem:[%s12023_s1 + $0xef0] sm:$0xf0]  ;;  %v6722_v32 = vor.u32 %v7879_v18, %v6719_v20 }
  0xe4   :  { %3496 = vmatpush.bf16.msra.mxu2 %v6258_v51  ;;  %3509 = vmatpush.bf16.msra.mxu3 %v6386_v56  ;;  %v7943_v25 = vld [vmem:[%s12023_s1 + $0xfe4] sm:$0xf]  ;;  %v6975_v26 = vld [vmem:[%s12023_s1 + $0xff0] sm:$0xf0]  ;;  %v6850_v33 = vor.u32 %v7911_v21, %v6847_v22 }
  0xe5   :  { %v7843_v35 = vld [vmem:[%s12023_s1 + $0xcc4] sm:$0xf]  ;;  %v6575_v36 = vld [vmem:[%s12023_s1 + $0xcd0] sm:$0xf0]  ;;  %v6978_v38 = vor.u32 %v7943_v25, %v6975_v26 }
  0xe6   :  { %v7875_v37 = vld [vmem:[%s12023_s1 + $0xdc4] sm:$0xf]  ;;  %v6703_v39 = vld [vmem:[%s12023_s1 + $0xdd0] sm:$0xf0]  ;;  %v6578_v44 = vor.u32 %v7843_v35, %v6575_v36 }
  0xe7   :  { %3471 = vmatpush.bf16.msra.mxu0 %v5986_v63  ;;  %3484 = vmatpush.bf16.msra.mxu1 %v6114_v5  ;;  %v7907_v40 = vld [vmem:[%s12023_s1 + $0xec4] sm:$0xf]  ;;  %v6831_v41 = vld [vmem:[%s12023_s1 + $0xed0] sm:$0xf0]  ;;  %v6706_v45 = vor.u32 %v7875_v37, %v6703_v39 }
  0xe8   :  { %3497 = vmatpush.bf16.msra.mxu2 %v6242_v6  ;;  %3510 = vmatpush.bf16.msra.mxu3 %v6370_v11  ;;  %v7939_v42 = vld [vmem:[%s12023_s1 + $0xfc4] sm:$0xf]  ;;  %v6959_v43 = vld [vmem:[%s12023_s1 + $0xfd0] sm:$0xf0]  ;;  %v6834_v46 = vor.u32 %v7907_v40, %v6831_v41 }
  0xe9   :  { %v7839_v47 = vld [vmem:[%s12023_s1 + $0xca4] sm:$0xf]  ;;  %v6559_v49 = vld [vmem:[%s12023_s1 + $0xcb0] sm:$0xf0]  ;;  %v6962_v52 = vor.u32 %v7939_v42, %v6959_v43  ;;  %v3279_v16 = vpop.f32.mrf.mxu1 }
  0xea   :  { %v7871_v50 = vld [vmem:[%s12023_s1 + $0xda4] sm:$0xf]  ;;  %v6687_v53 = vld [vmem:[%s12023_s1 + $0xdb0] sm:$0xf0]  ;;  %v6562_v62 = vor.u32 %v7839_v47, %v6559_v49  ;;  %v3266_v11 = vpop.f32.mrf.mxu0 }
  0xeb   :  { %3472 = vmatpush.bf16.msra.mxu0 %v5970_v19  ;;  %3485 = vmatpush.bf16.msra.mxu1 %v6098_v23  ;;  %v8066_v51 = vld [vmem:[#allocation1] sm:$0xff]  ;;  %v6815_v55 = vld [vmem:[%s12023_s1 + $0xeb0] sm:$0xf0]  ;;  %v6690_v63 = vor.u32 %v7871_v50, %v6687_v53  ;;  %v3267_v14 = vadd.f32 %v3266_v11, %v9509_v48 }
  0xec   :  { %3498 = vmatpush.bf16.msra.mxu2 %v6226_v24  ;;  %3511 = vmatpush.bf16.msra.mxu3 %v6354_v30  ;;  %v7903_v54 = vld [vmem:[%s12023_s1 + $0xea4] sm:$0xf]  ;;  %v8067_v56 = vld [vmem:[#allocation1 + $0x12] sm:$0xff] }
  0xed   :  { %v7935_v58 = vld [vmem:[%s12023_s1 + $0xfa4] sm:$0xf]  ;;  %v6943_v59 = vld [vmem:[%s12023_s1 + $0xfb0] sm:$0xf0]  ;;  %v6818_v3 = vor.u32 %v7903_v54, %v6815_v55  ;;  %v3280_v22 = vadd.f32 %v3279_v16, %v3267_v14  ;;  %v5061_v16 = vld [vmem:[%s12023_s1 + $0xe8] sm:$0xf] }
  0xee   :  { %3473 = vmatmul.bf16.vlgmr.msra.gmra.mxu0 %v8066_v51  ;;  %3486 = vmatmul.bf16.vlgmr.msra.gmra.mxu1 %v8068_v57  ;;  %v7835_v4 = vld [vmem:[%s12023_s1 + $0xc84] sm:$0xf]  ;;  %v6543_v5 = vld [vmem:[%s12023_s1 + $0xc90] sm:$0xf0]  ;;  %v6946_v7 = vor.u32 %v7935_v58, %v6943_v59 }
  0xef   :  { %3517 = vmatpush.bf16.msrb.mxu0 %v6594_v31  ;;  %3530 = vmatpush.bf16.msrb.mxu1 %v6722_v32  ;;  %v7867_v6 = vld [vmem:[%s12023_s1 + $0xd84] sm:$0xf]  ;;  %v6671_v8 = vld [vmem:[%s12023_s1 + $0xd90] sm:$0xf0]  ;;  %v6546_v15 = vor.u32 %v7835_v4, %v6543_v5  ;;  %v3292_v39 = vpop.f32.mrf.mxu2 }
  0xf0   :  { %3543 = vmatpush.bf16.msrb.mxu2 %v6850_v33  ;;  %3556 = vmatpush.bf16.msrb.mxu3 %v6978_v38  ;;  %v7899_v9 = vld [vmem:[%s12023_s1 + $0xe84] sm:$0xf]  ;;  %v6799_v10 = vld [vmem:[%s12023_s1 + $0xe90] sm:$0xf0]  ;;  %v6674_v17 = vor.u32 %v7867_v6, %v6671_v8  ;;  %v3293_v43 = vadd.f32 %v3292_v39, %v3280_v22  ;;  %v7530_v22 = vld [vmem:[%s12023_s1 + $0x2f4] sm:$0xf0] }
  0xf1   :  { %3499 = vmatmul.bf16.vlgmr.msra.gmra.mxu2 %v8067_v56  ;;  %3512 = vmatmul.bf16.vlgmr.msra.gmra.mxu3 %v8069_v61  ;;  %v7931_v12 = vld [vmem:[%s12023_s1 + $0xf84] sm:$0xf]  ;;  %v6927_v13 = vld [vmem:[%s12023_s1 + $0xf90] sm:$0xf0]  ;;  %v6802_v18 = vor.u32 %v7899_v9, %v6799_v10  ;;  %v3281_v50 = vpop.f32.mrf.mxu1  ;;  %v7494_v39 = vld [vmem:[%s12023_s1 + $0x1d4] sm:$0xf0] }
  0xf2   :  { %v7831_v19 = vld [vmem:[%s12023_s1 + $0xc64] sm:$0xf]  ;;  %v6527_v20 = vld [vmem:[%s12023_s1 + $0xc70] sm:$0xf0]  ;;  %v6930_v48 = vor.u32 %v7931_v12, %v6927_v13  ;;  %v3268_v47 = vpop.f32.mrf.mxu0  ;;  %v5157_v50 = vld [vmem:[%s12023_s1 + $0x1a8] sm:$0xf] }
  0xf3   :  { %3518 = vmatpush.bf16.msrb.mxu0 %v6578_v44  ;;  %3531 = vmatpush.bf16.msrb.mxu1 %v6706_v45  ;;  %v7863_v21 = vld [vmem:[%s12023_s1 + $0xd64] sm:$0xf]  ;;  %v6655_v23 = vld [vmem:[%s12023_s1 + $0xd70] sm:$0xf0]  ;;  %v6530_v31 = vor.u32 %v7831_v19, %v6527_v20  ;;  %v3305_v44 = vpop.f32.mrf.mxu3  ;;  %v5029_v47 = vld [vmem:[%s12023_s1 + $0xa8] sm:$0xf] }
  0xf4   :  { %3544 = vmatpush.bf16.msrb.mxu2 %v6834_v46  ;;  %3557 = vmatpush.bf16.msrb.mxu3 %v6962_v52  ;;  %v7895_v24 = vld [vmem:[%s12023_s1 + $0xe64] sm:$0xf]  ;;  %v6783_v25 = vld [vmem:[%s12023_s1 + $0xe70] sm:$0xf0]  ;;  %v6658_v32 = vor.u32 %v7863_v21, %v6655_v23  ;;  %v9704_v51 = vadd.f32 %v3305_v44, %v3293_v43  ;;  %v7498_v21 = vld [vmem:[%s12023_s1 + $0x1f4] sm:$0xf0] }
  0xf5   :  { %v7927_v26 = vld [vmem:[%s12023_s1 + $0xf64] sm:$0xf]  ;;  %v6911_v30 = vld [vmem:[%s12023_s1 + $0xf70] sm:$0xf0]  ;;  %v6786_v33 = vor.u32 %v7895_v24, %v6783_v25  ;;  %v5445_v25 = vld [vmem:[%s12023_s1 + $0x3e8] sm:$0xf] }
  0xf6   :  { %v7827_v35 = vld [vmem:[%s12023_s1 + $0xc44] sm:$0xf]  ;;  %v6511_v36 = vld [vmem:[%s12023_s1 + $0xc50] sm:$0xf0]  ;;  %v6914_v38 = vor.u32 %v7927_v26, %v6911_v30  ;;  %v7562_v26 = vld [vmem:[%s12023_s1 + $0x3f4] sm:$0xf0] }
  0xf7   :  { %3519 = vmatpush.bf16.msrb.mxu0 %v6562_v62  ;;  %3532 = vmatpush.bf16.msrb.mxu1 %v6690_v63  ;;  %v7859_v37 = vld [vmem:[%s12023_s1 + $0xd44] sm:$0xf]  ;;  %v6639_v40 = vld [vmem:[%s12023_s1 + $0xd50] sm:$0xf0]  ;;  %v6514_v49 = vor.u32 %v7827_v35, %v6511_v36  ;;  %v5045_v35 = vld [vmem:[%s12023_s1 + $0xc8] sm:$0xf] }
  0xf8   :  { %3545 = vmatpush.bf16.msrb.mxu2 %v6818_v3  ;;  %3558 = vmatpush.bf16.msrb.mxu3 %v6946_v7  ;;  %v7891_v41 = vld [vmem:[%s12023_s1 + $0xe44] sm:$0xf]  ;;  %v6767_v42 = vld [vmem:[%s12023_s1 + $0xe50] sm:$0xf0]  ;;  %v6642_v52 = vor.u32 %v7859_v37, %v6639_v40  ;;  %v7462_v36 = vld [vmem:[%s12023_s1 + $0xd4] sm:$0xf0] }
  0xf9   :  { %v7923_v45 = vld [vmem:[%s12023_s1 + $0xf44] sm:$0xf]  ;;  %v6895_v46 = vld [vmem:[%s12023_s1 + $0xf50] sm:$0xf0]  ;;  %v6770_v53 = vor.u32 %v7891_v41, %v6767_v42  ;;  %v5173_v37 = vld [vmem:[%s12023_s1 + $0x1c8] sm:$0xf]  ;;  %v5046_v44 = vor.u32 %v7462_v36, %v5045_v35 }
  0xfa   :  { %v7823_v54 = vld [vmem:[%s12023_s1 + $0xc24] sm:$0xf]  ;;  %v6495_v55 = vld [vmem:[%s12023_s1 + $0xc30] sm:$0xf0]  ;;  %v6898_v57 = vor.u32 %v7923_v45, %v6895_v46  ;;  %v5301_v40 = vld [vmem:[%s12023_s1 + $0x2c8] sm:$0xf]  ;;  %v5174_v45 = vor.u32 %v7494_v39, %v5173_v37 }
  0xfb   :  { %3520 = vmatpush.bf16.msrb.mxu0 %v6546_v15  ;;  %3533 = vmatpush.bf16.msrb.mxu1 %v6674_v17  ;;  %v7855_v56 = vld [vmem:[%s12023_s1 + $0xd24] sm:$0xf]  ;;  %v6623_v58 = vld [vmem:[%s12023_s1 + $0xd30] sm:$0xf0]  ;;  %v6498_v3 = vor.u32 %v7823_v54, %v6495_v55  ;;  %v3294_v15 = vpop.f32.mrf.mxu2  ;;  %v7466_v17 = vld [vmem:[%s12023_s1 + $0xf4] sm:$0xf0]  ;;  %v3307_v19 = vpop.f32.mrf.mxu3 }
  0xfc   :  { %3546 = vmatpush.bf16.msrb.mxu2 %v6802_v18  ;;  %3559 = vmatpush.bf16.msrb.mxu3 %v6930_v48  ;;  %v7887_v59 = vld [vmem:[%s12023_s1 + $0xe24] sm:$0xf]  ;;  %v6751_v61 = vld [vmem:[%s12023_s1 + $0xe30] sm:$0xf0]  ;;  %v6626_v6 = vor.u32 %v7855_v56, %v6623_v58  ;;  %v5189_v18 = vld [vmem:[%s12023_s1 + $0x1e8] sm:$0xf] }
  0xfd   :  { %v7919_v62 = vld [vmem:[%s12023_s1 + $0xf24] sm:$0xf]  ;;  %v6879_v63 = vld [vmem:[%s12023_s1 + $0xf30] sm:$0xf0]  ;;  %v6754_v7 = vor.u32 %v7887_v59, %v6751_v61  ;;  %v5317_v48 = vld [vmem:[%s12023_s1 + $0x2e8] sm:$0xf] }
  0xfe   :  { %v7819_v4 = vld [vmem:[%s12023_s1 + $0xc04] sm:$0xf]  ;;  %v6479_v5 = vld [vmem:[%s12023_s1 + $0xc10] sm:$0xf0]  ;;  %v6882_v11 = vor.u32 %v7919_v62, %v6879_v63  ;;  %v7526_v41 = vld [vmem:[%s12023_s1 + $0x2d4] sm:$0xf0] }
  0xff   :  { %3521 = vmatpush.bf16.msrb.mxu0 %v6530_v31  ;;  %3534 = vmatpush.bf16.msrb.mxu1 %v6658_v32  ;;  %v7851_v8 = vld [vmem:[%s12023_s1 + $0xd04] sm:$0xf]  ;;  %v6607_v9 = vld [vmem:[%s12023_s1 + $0xd10] sm:$0xf0]  ;;  %v6482_v20 = vor.u32 %v7819_v4, %v6479_v5  ;;  %v5062_v31 = vor.u32 %v7466_v17, %v5061_v16  ;;  %v5190_v32 = vor.u32 %v7498_v21, %v5189_v18  ;;  %v5429_v42 = vld [vmem:[%s12023_s1 + $0x3c8] sm:$0xf] }
 0x100   :  { %3547 = vmatpush.bf16.msrb.mxu2 %v6786_v33  ;;  %3560 = vmatpush.bf16.msrb.mxu3 %v6914_v38  ;;  %v7883_v10 = vld [vmem:[%s12023_s1 + $0xe04] sm:$0xf]  ;;  %v6735_v12 = vld [vmem:[%s12023_s1 + $0xe10] sm:$0xf0]  ;;  %v6610_v23 = vor.u32 %v7851_v8, %v6607_v9  ;;  %v5318_v33 = vor.u32 %v7530_v22, %v5317_v48  ;;  %v5446_v38 = vor.u32 %v7562_v26, %v5445_v25  ;;  %v7558_v43 = vld [vmem:[%s12023_s1 + $0x3d4] sm:$0xf0] }
 0x101   :  { %v7915_v13 = vld [vmem:[%s12023_s1 + $0xf04] sm:$0xf]  ;;  %v6863_v14 = vld [vmem:[%s12023_s1 + $0xf10] sm:$0xf0]  ;;  %v6738_v24 = vor.u32 %v7883_v10, %v6735_v12  ;;  %v5302_v46 = vor.u32 %v7526_v41, %v5301_v40  ;;  %v7490_v54 = vld [vmem:[%s12023_s1 + $0x1b4] sm:$0xf0] }
 0x102   :  { %v6866_v30 = vor.u32 %v7915_v13, %v6863_v14  ;;  %v5285_v55 = vld [vmem:[%s12023_s1 + $0x2a8] sm:$0xf]  ;;  %v7522_v56 = vld [vmem:[%s12023_s1 + $0x2b4] sm:$0xf0]  ;;  %v8072_v58 = vld [vmem:[#allocation1 + $0x2d] sm:$0xff] }
 0x103   :  { %3522 = vmatpush.bf16.msrb.mxu0 %v6514_v49  ;;  %3535 = vmatpush.bf16.msrb.mxu1 %v6642_v52  ;;  %v7458_v49 = vld [vmem:[%s12023_s1 + $0xb4] sm:$0xf0]  ;;  %v8070_v52 = vld [vmem:[#allocation1 + $0x24] sm:$0xff]  ;;  %v5286_v4 = vor.u32 %v7522_v56, %v5285_v55 }
 0x104   :  { %3548 = vmatpush.bf16.msrb.mxu2 %v6770_v53  ;;  %3561 = vmatpush.bf16.msrb.mxu3 %v6898_v57  ;;  %v5430_v53 = vor.u32 %v7558_v43, %v5429_v42  ;;  %v8071_v57 = vld [vmem:[#allocation1 + $0x36] sm:$0xff]  ;;  %v5413_v59 = vld [vmem:[%s12023_s1 + $0x3a8] sm:$0xf]  ;;  %v8073_v62 = vld [vmem:[#allocation1 + $0x3f] sm:$0xff]  ;;  %v5030_v63 = vor.u32 %v7458_v49, %v5029_v47 }
 0x105   :  { %v7554_v61 = vld [vmem:[%s12023_s1 + $0x3b4] sm:$0xf0]  ;;  %v5013_v5 = vld [vmem:[%s12023_s1 + $0x88] sm:$0xf] }
 0x106   :  { %v5414_v8 = vor.u32 %v7554_v61, %v5413_v59  ;;  %v7486_v9 = vld [vmem:[%s12023_s1 + $0x194] sm:$0xf0]  ;;  %v5269_v10 = vld [vmem:[%s12023_s1 + $0x288] sm:$0xf] }
 0x107   :  { %3523 = vmatpush.bf16.msrb.mxu0 %v6498_v3  ;;  %3536 = vmatpush.bf16.msrb.mxu1 %v6626_v6  ;;  %v5158_v3 = vor.u32 %v7490_v54, %v5157_v50  ;;  %v7454_v6 = vld [vmem:[%s12023_s1 + $0x94] sm:$0xf0]  ;;  %v5397_v13 = vld [vmem:[%s12023_s1 + $0x388] sm:$0xf] }
 0x108   :  { %3549 = vmatpush.bf16.msrb.mxu2 %v6754_v7  ;;  %3562 = vmatpush.bf16.msrb.mxu3 %v6882_v11  ;;  %v5141_v7 = vld [vmem:[%s12023_s1 + $0x188] sm:$0xf]  ;;  %v7518_v11 = vld [vmem:[%s12023_s1 + $0x294] sm:$0xf0]  ;;  %v5014_v16 = vor.u32 %v7454_v6, %v5013_v5 }
 0x109   :  { %v7550_v14 = vld [vmem:[%s12023_s1 + $0x394] sm:$0xf0]  ;;  %v5142_v18 = vor.u32 %v7486_v9, %v5141_v7  ;;  %v5270_v19 = vor.u32 %v7518_v11, %v5269_v10  ;;  %v5125_v48 = vld [vmem:[%s12023_s1 + $0x168] sm:$0xf] }
 0x10a   :  { %v7450_v21 = vld [vmem:[%s12023_s1 + $0x74] sm:$0xf0]  ;;  %v5381_v26 = vld [vmem:[%s12023_s1 + $0x368] sm:$0xf] }
 0x10b   :  { %3524 = vmatpush.bf16.msrb.mxu0 %v6482_v20  ;;  %3537 = vmatpush.bf16.msrb.mxu1 %v6610_v23  ;;  %v3318_v12 = vpop.f32.mrf.mxu0  ;;  %v3331_v17 = vpop.f32.mrf.mxu1  ;;  %v4997_v20 = vld [vmem:[%s12023_s1 + $0x68] sm:$0xf]  ;;  %v7482_v23 = vld [vmem:[%s12023_s1 + $0x174] sm:$0xf0] }
 0x10c   :  { %3550 = vmatpush.bf16.msrb.mxu2 %v6738_v24  ;;  %3563 = vmatpush.bf16.msrb.mxu3 %v6866_v30  ;;  %v3319_v15 = vadd.f32 %v3318_v12, %v9704_v51  ;;  %v5398_v51 = vor.u32 %v7550_v14, %v5397_v13  ;;  %v5253_v24 = vld [vmem:[%s12023_s1 + $0x268] sm:$0xf]  ;;  %v7514_v25 = vld [vmem:[%s12023_s1 + $0x274] sm:$0xf0] }
 0x10d   :  { %v7546_v30 = vld [vmem:[%s12023_s1 + $0x374] sm:$0xf0]  ;;  %v4981_v35 = vld [vmem:[%s12023_s1 + $0x48] sm:$0xf] }
 0x10e   :  { %3525 = vmatmul.bf16.vlgmr.msrb.gmra.mxu0 %v8070_v52  ;;  %3538 = vmatmul.bf16.vlgmr.msrb.gmra.mxu1 %v8072_v58  ;;  %v3332_v22 = vadd.f32 %v3331_v17, %v3319_v15  ;;  %v7446_v36 = vld [vmem:[%s12023_s1 + $0x54] sm:$0xf0]  ;;  %v5109_v37 = vld [vmem:[%s12023_s1 + $0x148] sm:$0xf] }
 0x10f   :  { %3569 = vmatpush.bf16.msra.mxu0 %v5062_v31  ;;  %3582 = vmatpush.bf16.msra.mxu1 %v5190_v32  ;;  %v4998_v31 = vor.u32 %v7450_v21, %v4997_v20  ;;  %v5126_v32 = vor.u32 %v7482_v23, %v5125_v48  ;;  %v7478_v40 = vld [vmem:[%s12023_s1 + $0x154] sm:$0xf0]  ;;  %v5237_v41 = vld [vmem:[%s12023_s1 + $0x248] sm:$0xf]  ;;  %v4982_v49 = vor.u32 %v7446_v36, %v4981_v35 }
 0x110   :  { %3595 = vmatpush.bf16.msra.mxu2 %v5318_v33  ;;  %3608 = vmatpush.bf16.msra.mxu3 %v5446_v38  ;;  %v5254_v33 = vor.u32 %v7514_v25, %v5253_v24  ;;  %v5382_v38 = vor.u32 %v7546_v30, %v5381_v26  ;;  %v7510_v42 = vld [vmem:[%s12023_s1 + $0x254] sm:$0xf0]  ;;  %v4965_v55 = vld [vmem:[%s12023_s1 + $0x28] sm:$0xf] }
 0x111   :  { %3551 = vmatmul.bf16.vlgmr.msrb.gmra.mxu2 %v8071_v57  ;;  %3564 = vmatmul.bf16.vlgmr.msrb.gmra.mxu3 %v8073_v62  ;;  %v5238_v54 = vor.u32 %v7510_v42, %v5237_v41  ;;  %v7442_v56 = vld [vmem:[%s12023_s1 + $0x34] sm:$0xf0]  ;;  %v5093_v57 = vld [vmem:[%s12023_s1 + $0x128] sm:$0xf] }
 0x112   :  { %v7474_v59 = vld [vmem:[%s12023_s1 + $0x134] sm:$0xf0]  ;;  %v5221_v61 = vld [vmem:[%s12023_s1 + $0x228] sm:$0xf] }
 0x113   :  { %3570 = vmatpush.bf16.msra.mxu0 %v5046_v44  ;;  %3583 = vmatpush.bf16.msra.mxu1 %v5174_v45  ;;  %v5365_v45 = vld [vmem:[%s12023_s1 + $0x348] sm:$0xf]  ;;  %v3320_v47 = vpop.f32.mrf.mxu0  ;;  %v3333_v50 = vpop.f32.mrf.mxu1  ;;  %v7506_v62 = vld [vmem:[%s12023_s1 + $0x234] sm:$0xf0]  ;;  %v5094_v7 = vor.u32 %v7474_v59, %v5093_v57 }
 0x114   :  { %3596 = vmatpush.bf16.msra.mxu2 %v5302_v46  ;;  %3609 = vmatpush.bf16.msra.mxu3 %v5430_v53  ;;  %v3344_v39 = vpop.f32.mrf.mxu2  ;;  %v3357_v44 = vpop.f32.mrf.mxu3  ;;  %v7542_v46 = vld [vmem:[%s12023_s1 + $0x354] sm:$0xf0]  ;;  %v5110_v53 = vor.u32 %v7478_v40, %v5109_v37  ;;  %v4949_v5 = vld [vmem:[%s12023_s1 + $0x8] sm:$0xf] }
 0x115   :  { %v3345_v43 = vadd.f32 %v3344_v39, %v3332_v22  ;;  %v5366_v58 = vor.u32 %v7542_v46, %v5365_v45  ;;  %v7438_v6 = vld [vmem:[%s12023_s1 + $0x14] sm:$0xf0]  ;;  %v5077_v9 = vld [vmem:[%s12023_s1 + $0x108] sm:$0xf] }
 0x116   :  { %v7470_v10 = vld [vmem:[%s12023_s1 + $0x114] sm:$0xf0]  ;;  %v5205_v11 = vld [vmem:[%s12023_s1 + $0x208] sm:$0xf]  ;;  %v4950_v21 = vor.u32 %v7438_v6, %v4949_v5  ;;  %v8074_v5 = vld [vmem:[%s12024_s2] sm:$0xf] }
 0x117   :  { %3571 = vmatpush.bf16.msra.mxu0 %v5030_v63  ;;  %3584 = vmatpush.bf16.msra.mxu1 %v5158_v3  ;;  %v9899_v52 = vadd.f32 %v3357_v44, %v3345_v43  ;;  %v5349_v63 = vld [vmem:[%s12023_s1 + $0x328] sm:$0xf]  ;;  %v7538_v3 = vld [vmem:[%s12023_s1 + $0x334] sm:$0xf0]  ;;  %v5078_v23 = vor.u32 %v7470_v10, %v5077_v9  ;;  %v550_v6 = vperm.slane %v8074_v5, 1 }
 0x118   :  { %3597 = vmatpush.bf16.msra.mxu2 %v5286_v4  ;;  %3610 = vmatpush.bf16.msra.mxu3 %v5414_v8  ;;  %v4966_v4 = vor.u32 %v7442_v56, %v4965_v55  ;;  %v5222_v8 = vor.u32 %v7506_v62, %v5221_v61  ;;  %v5350_v12 = vor.u32 %v7538_v3, %v5349_v63  ;;  %v7502_v13 = vld [vmem:[%s12023_s1 + $0x214] sm:$0xf0]  ;;  %v5333_v14 = vld [vmem:[%s12023_s1 + $0x308] sm:$0xf] }
 0x119   :  { %v7534_v15 = vld [vmem:[%s12023_s1 + $0x314] sm:$0xf0]  ;;  %v5573_v17 = vld [vmem:[%s12023_s1 + $0x4e8] sm:$0xf]  ;;  %v5206_v24 = vor.u32 %v7502_v13, %v5205_v11 }
 0x11a   :  { %v7626_v48 = vld [vmem:[%s12023_s1 + $0x5f4] sm:$0xf0]  ;;  %v5957_v25 = vld [vmem:[%s12023_s1 + $0x7e8] sm:$0xf]  ;;  %v5334_v30 = vor.u32 %v7534_v15, %v5333_v14 }
 0x11b   :  { %3572 = vmatpush.bf16.msra.mxu0 %v5014_v16  ;;  %3585 = vmatpush.bf16.msra.mxu1 %v5142_v18  ;;  %v7594_v18 = vld [vmem:[%s12023_s1 + $0x4f4] sm:$0xf0]  ;;  %v5557_v35 = vld [vmem:[%s12023_s1 + $0x4c8] sm:$0xf] }
 0x11c   :  { %3598 = vmatpush.bf16.msra.mxu2 %v5270_v19  ;;  %3611 = vmatpush.bf16.msra.mxu3 %v5398_v51  ;;  %v3346_v16 = vpop.f32.mrf.mxu2  ;;  %v5701_v19 = vld [vmem:[%s12023_s1 + $0x5e8] sm:$0xf]  ;;  %v3359_v20 = vpop.f32.mrf.mxu3  ;;  %v7658_v22 = vld [vmem:[%s12023_s1 + $0x6f4] sm:$0xf0] }
 0x11d   :  { %v5829_v51 = vld [vmem:[%s12023_s1 + $0x6e8] sm:$0xf]  ;;  %v7690_v26 = vld [vmem:[%s12023_s1 + $0x7f4] sm:$0xf0] }
 0x11e   :  { %v7590_v36 = vld [vmem:[%s12023_s1 + $0x4d4] sm:$0xf0]  ;;  %v5685_v37 = vld [vmem:[%s12023_s1 + $0x5c8] sm:$0xf] }
 0x11f   :  { %3573 = vmatpush.bf16.msra.mxu0 %v4998_v31  ;;  %3586 = vmatpush.bf16.msra.mxu1 %v5126_v32  ;;  %v5574_v31 = vor.u32 %v7594_v18, %v5573_v17  ;;  %v5702_v32 = vor.u32 %v7626_v48, %v5701_v19  ;;  %v7622_v39 = vld [vmem:[%s12023_s1 + $0x5d4] sm:$0xf0]  ;;  %v5813_v40 = vld [vmem:[%s12023_s1 + $0x6c8] sm:$0xf]  ;;  %v5558_v44 = vor.u32 %v7590_v36, %v5557_v35 }
 0x120   :  { %3599 = vmatpush.bf16.msra.mxu2 %v5254_v33  ;;  %3612 = vmatpush.bf16.msra.mxu3 %v5382_v38  ;;  %v5830_v33 = vor.u32 %v7658_v22, %v5829_v51  ;;  %v5958_v38 = vor.u32 %v7690_v26, %v5957_v25  ;;  %v7654_v41 = vld [vmem:[%s12023_s1 + $0x6d4] sm:$0xf0]  ;;  %v5941_v42 = vld [vmem:[%s12023_s1 + $0x7c8] sm:$0xf]  ;;  %v5686_v45 = vor.u32 %v7622_v39, %v5685_v37 }
 0x121   :  { %v7686_v43 = vld [vmem:[%s12023_s1 + $0x7d4] sm:$0xf0]  ;;  %v5814_v46 = vor.u32 %v7654_v41, %v5813_v40  ;;  %v5541_v47 = vld [vmem:[%s12023_s1 + $0x4a8] sm:$0xf] }
 0x122   :  { %v5669_v50 = vld [vmem:[%s12023_s1 + $0x5a8] sm:$0xf]  ;;  %v7650_v56 = vld [vmem:[%s12023_s1 + $0x6b4] sm:$0xf0] }
 0x123   :  { %3574 = vmatpush.bf16.msra.mxu0 %v4982_v49  ;;  %3587 = vmatpush.bf16.msra.mxu1 %v5110_v53  ;;  %v7586_v49 = vld [vmem:[%s12023_s1 + $0x4b4] sm:$0xf0]  ;;  %v5942_v53 = vor.u32 %v7686_v43, %v5941_v42  ;;  %v5797_v55 = vld [vmem:[%s12023_s1 + $0x6a8] sm:$0xf] }
 0x124   :  { %3600 = vmatpush.bf16.msra.mxu2 %v5238_v54  ;;  %3613 = vmatpush.bf16.msra.mxu3 %v5366_v58  ;;  %v7618_v54 = vld [vmem:[%s12023_s1 + $0x5b4] sm:$0xf0]  ;;  %v5925_v57 = vld [vmem:[%s12023_s1 + $0x7a8] sm:$0xf]  ;;  %v5542_v59 = vor.u32 %v7586_v49, %v5541_v47  ;;  %v5798_v63 = vor.u32 %v7650_v56, %v5797_v55 }
 0x125   :  { %v7682_v58 = vld [vmem:[%s12023_s1 + $0x7b4] sm:$0xf0]  ;;  %v5525_v61 = vld [vmem:[%s12023_s1 + $0x488] sm:$0xf]  ;;  %v5670_v62 = vor.u32 %v7618_v54, %v5669_v50 }
 0x126   :  { %v7582_v3 = vld [vmem:[%s12023_s1 + $0x494] sm:$0xf0]  ;;  %v5781_v9 = vld [vmem:[%s12023_s1 + $0x688] sm:$0xf] }
 0x127   :  { %3575 = vmatpush.bf16.msra.mxu0 %v4966_v4  ;;  %3588 = vmatpush.bf16.msra.mxu1 %v5094_v7  ;;  %v5653_v4 = vld [vmem:[%s12023_s1 + $0x588] sm:$0xf]  ;;  %v5926_v7 = vor.u32 %v7682_v58, %v5925_v57  ;;  %v7646_v10 = vld [vmem:[%s12023_s1 + $0x694] sm:$0xf0]  ;;  %v5526_v13 = vor.u32 %v7582_v3, %v5525_v61 }
 0x128   :  { %3601 = vmatpush.bf16.msra.mxu2 %v5222_v8  ;;  %3614 = vmatpush.bf16.msra.mxu3 %v5350_v12  ;;  %v7614_v8 = vld [vmem:[%s12023_s1 + $0x594] sm:$0xf0]  ;;  %v5909_v11 = vld [vmem:[%s12023_s1 + $0x788] sm:$0xf]  ;;  %v5782_v16 = vor.u32 %v7646_v10, %v5781_v9 }
 0x129   :  { %v7678_v12 = vld [vmem:[%s12023_s1 + $0x794] sm:$0xf0]  ;;  %v5654_v15 = vor.u32 %v7614_v8, %v5653_v4  ;;  %v5509_v17 = vld [vmem:[%s12023_s1 + $0x468] sm:$0xf] }
 0x12a   :  { %v7578_v18 = vld [vmem:[%s12023_s1 + $0x474] sm:$0xf0]  ;;  %v5637_v19 = vld [vmem:[%s12023_s1 + $0x568] sm:$0xf]  ;;  %v5910_v48 = vor.u32 %v7678_v12, %v5909_v11 }
 0x12b   :  { %3576 = vmatpush.bf16.msra.mxu0 %v4950_v21  ;;  %3589 = vmatpush.bf16.msra.mxu1 %v5078_v23  ;;  %v3370_v14 = vpop.f32.mrf.mxu0  ;;  %v3383_v21 = vpop.f32.mrf.mxu1  ;;  %v7610_v51 = vld [vmem:[%s12023_s1 + $0x574] sm:$0xf0]  ;;  %v5765_v22 = vld [vmem:[%s12023_s1 + $0x668] sm:$0xf] }
 0x12c   :  { %3602 = vmatpush.bf16.msra.mxu2 %v5206_v24  ;;  %3615 = vmatpush.bf16.msra.mxu3 %v5334_v30  ;;  %v3371_v20 = vadd.f32 %v3370_v14, %v550_v6  ;;  %v7642_v23 = vld [vmem:[%s12023_s1 + $0x674] sm:$0xf0]  ;;  %v5893_v24 = vld [vmem:[%s12023_s1 + $0x768] sm:$0xf]  ;;  %v5510_v30 = vor.u32 %v7578_v18, %v5509_v17 }
 0x12d   :  { %v7674_v25 = vld [vmem:[%s12023_s1 + $0x774] sm:$0xf0]  ;;  %v5621_v36 = vld [vmem:[%s12023_s1 + $0x548] sm:$0xf] }
 0x12e   :  { %3577 = vmatmul.bf16.vlgmr.msra.gmra.mxu0 %v8492_v28  ;;  %3590 = vmatmul.bf16.vlgmr.msra.gmra.mxu1 %v8502_v34  ;;  %v3384_v26 = vadd.f32 %v3383_v21, %v3371_v20  ;;  %v7574_v35 = vld [vmem:[%s12023_s1 + $0x454] sm:$0xf0]  ;;  %v5749_v40 = vld [vmem:[%s12023_s1 + $0x648] sm:$0xf] }
 0x12f   :  { %3621 = vmatpush.bf16.msrb.mxu0 %v5574_v31  ;;  %3634 = vmatpush.bf16.msrb.mxu1 %v5702_v32  ;;  %v5638_v31 = vor.u32 %v7610_v51, %v5637_v19  ;;  %v5766_v32 = vor.u32 %v7642_v23, %v5765_v22  ;;  %v7606_v39 = vld [vmem:[%s12023_s1 + $0x554] sm:$0xf0]  ;;  %v5477_v54 = vld [vmem:[%s12023_s1 + $0x428] sm:$0xf] }
 0x130   :  { %3647 = vmatpush.bf16.msrb.mxu2 %v5830_v33  ;;  %3660 = vmatpush.bf16.msrb.mxu3 %v5958_v38  ;;  %v5493_v33 = vld [vmem:[%s12023_s1 + $0x448] sm:$0xf]  ;;  %v5894_v38 = vor.u32 %v7674_v25, %v5893_v24  ;;  %v7638_v41 = vld [vmem:[%s12023_s1 + $0x654] sm:$0xf0]  ;;  %v5622_v50 = vor.u32 %v7606_v39, %v5621_v36 }
 0x131   :  { %3603 = vmatmul.bf16.vlgmr.msra.gmra.mxu2 %v8490_v27  ;;  %3616 = vmatmul.bf16.vlgmr.msra.gmra.mxu3 %v8494_v29  ;;  %v7570_v55 = vld [vmem:[%s12023_s1 + $0x434] sm:$0xf0]  ;;  %v5605_v56 = vld [vmem:[%s12023_s1 + $0x528] sm:$0xf] }
 0x132   :  { %v5733_v61 = vld [vmem:[%s12023_s1 + $0x628] sm:$0xf]  ;;  %v7666_v3 = vld [vmem:[%s12023_s1 + $0x734] sm:$0xf0]  ;;  %v5478_v4 = vor.u32 %v7570_v55, %v5477_v54 }
 0x133   :  { %3622 = vmatpush.bf16.msrb.mxu0 %v5558_v44  ;;  %3635 = vmatpush.bf16.msrb.mxu1 %v5686_v45  ;;  %v5877_v44 = vld [vmem:[%s12023_s1 + $0x748] sm:$0xf]  ;;  %v7670_v45 = vld [vmem:[%s12023_s1 + $0x754] sm:$0xf0]  ;;  %v3372_v49 = vpop.f32.mrf.mxu0  ;;  %v3385_v57 = vpop.f32.mrf.mxu1 }
 0x134   :  { %3648 = vmatpush.bf16.msrb.mxu2 %v5814_v46  ;;  %3661 = vmatpush.bf16.msrb.mxu3 %v5942_v53  ;;  %v3396_v37 = vpop.f32.mrf.mxu2  ;;  %v3409_v43 = vpop.f32.mrf.mxu3  ;;  %v5494_v46 = vor.u32 %v7574_v35, %v5493_v33  ;;  %v5750_v53 = vor.u32 %v7638_v41, %v5749_v40  ;;  %v5878_v58 = vor.u32 %v7670_v45, %v5877_v44  ;;  %v5461_v5 = vld [vmem:[%s12023_s1 + $0x408] sm:$0xf]  ;;  %v7566_v6 = vld [vmem:[%s12023_s1 + $0x414] sm:$0xf0] }
 0x135   :  { %v3397_v42 = vadd.f32 %v3396_v37, %v3384_v26  ;;  %v5589_v9 = vld [vmem:[%s12023_s1 + $0x508] sm:$0xf]  ;;  %v7598_v10 = vld [vmem:[%s12023_s1 + $0x514] sm:$0xf0]  ;;  %v5462_v21 = vor.u32 %v7566_v6, %v5461_v5 }
 0x136   :  { %v5717_v11 = vld [vmem:[%s12023_s1 + $0x608] sm:$0xf]  ;;  %v7630_v14 = vld [vmem:[%s12023_s1 + $0x614] sm:$0xf0]  ;;  %v5590_v23 = vor.u32 %v7598_v10, %v5589_v9 }
 0x137   :  { %3623 = vmatpush.bf16.msrb.mxu0 %v5542_v59  ;;  %3636 = vmatpush.bf16.msrb.mxu1 %v5670_v62  ;;  %v10100_v47 = vadd.f32 %v3409_v43, %v3397_v42  ;;  %v7602_v59 = vld [vmem:[%s12023_s1 + $0x534] sm:$0xf0]  ;;  %v6085_v18 = vld [vmem:[%s12023_s1 + $0x8e8] sm:$0xf]  ;;  %v5718_v24 = vor.u32 %v7630_v14, %v5717_v11 }
 0x138   :  { %3649 = vmatpush.bf16.msrb.mxu2 %v5798_v63  ;;  %3662 = vmatpush.bf16.msrb.mxu3 %v5926_v7  ;;  %v7634_v62 = vld [vmem:[%s12023_s1 + $0x634] sm:$0xf0]  ;;  %v5861_v63 = vld [vmem:[%s12023_s1 + $0x728] sm:$0xf]  ;;  %v5606_v7 = vor.u32 %v7602_v59, %v5605_v56 }
 0x139   :  { %v5734_v8 = vor.u32 %v7634_v62, %v5733_v61  ;;  %v7722_v19 = vld [vmem:[%s12023_s1 + $0x8f4] sm:$0xf0]  ;;  %v6213_v20 = vld [vmem:[%s12023_s1 + $0x9e8] sm:$0xf] }
 0x13a   :  { %v6341_v51 = vld [vmem:[%s12023_s1 + $0xae8] sm:$0xf]  ;;  %v7786_v22 = vld [vmem:[%s12023_s1 + $0xaf4] sm:$0xf0] }
 0x13b   :  { %3624 = vmatpush.bf16.msrb.mxu0 %v5526_v13  ;;  %3637 = vmatpush.bf16.msrb.mxu1 %v5654_v15  ;;  %v5862_v13 = vor.u32 %v7666_v3, %v5861_v63  ;;  %v5845_v15 = vld [vmem:[%s12023_s1 + $0x708] sm:$0xf]  ;;  %v7818_v26 = vld [vmem:[%s12023_s1 + $0xbf4] sm:$0xf0]  ;;  %v6342_v33 = vor.u32 %v7786_v22, %v6341_v51 }
 0x13c   :  { %3650 = vmatpush.bf16.msrb.mxu2 %v5782_v16  ;;  %3663 = vmatpush.bf16.msrb.mxu3 %v5910_v48  ;;  %v3398_v12 = vpop.f32.mrf.mxu2  ;;  %v7662_v16 = vld [vmem:[%s12023_s1 + $0x714] sm:$0xf0]  ;;  %v3411_v17 = vpop.f32.mrf.mxu3  ;;  %v6469_v25 = vld [vmem:[%s12023_s1 + $0xbe8] sm:$0xf] }
 0x13d   :  { %v7754_v48 = vld [vmem:[%s12023_s1 + $0x9f4] sm:$0xf0]  ;;  %v6069_v35 = vld [vmem:[%s12023_s1 + $0x8c8] sm:$0xf] }
 0x13e   :  { %v7718_v36 = vld [vmem:[%s12023_s1 + $0x8d4] sm:$0xf0]  ;;  %v6197_v37 = vld [vmem:[%s12023_s1 + $0x9c8] sm:$0xf] }
 0x13f   :  { %3625 = vmatpush.bf16.msrb.mxu0 %v5510_v30  ;;  %3638 = vmatpush.bf16.msrb.mxu1 %v5638_v31  ;;  %v5846_v30 = vor.u32 %v7662_v16, %v5845_v15  ;;  %v6086_v31 = vor.u32 %v7722_v19, %v6085_v18  ;;  %v7750_v39 = vld [vmem:[%s12023_s1 + $0x9d4] sm:$0xf0]  ;;  %v6325_v40 = vld [vmem:[%s12023_s1 + $0xac8] sm:$0xf]  ;;  %v6070_v44 = vor.u32 %v7718_v36, %v6069_v35 }
 0x140   :  { %3651 = vmatpush.bf16.msrb.mxu2 %v5766_v32  ;;  %3664 = vmatpush.bf16.msrb.mxu3 %v5894_v38  ;;  %v6214_v32 = vor.u32 %v7754_v48, %v6213_v20  ;;  %v6470_v38 = vor.u32 %v7818_v26, %v6469_v25  ;;  %v7782_v41 = vld [vmem:[%s12023_s1 + $0xad4] sm:$0xf0]  ;;  %v6453_v42 = vld [vmem:[%s12023_s1 + $0xbc8] sm:$0xf]  ;;  %v6198_v45 = vor.u32 %v7750_v39, %v6197_v37 }
 0x141   :  { %v7814_v43 = vld [vmem:[%s12023_s1 + $0xbd4] sm:$0xf0]  ;;  %v6053_v49 = vld [vmem:[%s12023_s1 + $0x8a8] sm:$0xf] }
 0x142   :  { %v6454_v54 = vor.u32 %v7814_v43, %v6453_v42  ;;  %v7746_v55 = vld [vmem:[%s12023_s1 + $0x9b4] sm:$0xf0]  ;;  %v6309_v56 = vld [vmem:[%s12023_s1 + $0xaa8] sm:$0xf] }
 0x143   :  { %3626 = vmatpush.bf16.msrb.mxu0 %v5494_v46  ;;  %3639 = vmatpush.bf16.msrb.mxu1 %v5622_v50  ;;  %v6326_v46 = vor.u32 %v7782_v41, %v6325_v40  ;;  %v7714_v50 = vld [vmem:[%s12023_s1 + $0x8b4] sm:$0xf0]  ;;  %v6037_v3 = vld [vmem:[%s12023_s1 + $0x888] sm:$0xf] }
 0x144   :  { %3652 = vmatpush.bf16.msrb.mxu2 %v5750_v53  ;;  %3665 = vmatpush.bf16.msrb.mxu3 %v5878_v58  ;;  %v6181_v53 = vld [vmem:[%s12023_s1 + $0x9a8] sm:$0xf]  ;;  %v7778_v57 = vld [vmem:[%s12023_s1 + $0xab4] sm:$0xf0]  ;;  %v6054_v61 = vor.u32 %v7714_v50, %v6053_v49 }
 0x145   :  { %v6437_v58 = vld [vmem:[%s12023_s1 + $0xba8] sm:$0xf]  ;;  %v7810_v59 = vld [vmem:[%s12023_s1 + $0xbb4] sm:$0xf0]  ;;  %v6182_v62 = vor.u32 %v7746_v55, %v6181_v53  ;;  %v6310_v63 = vor.u32 %v7778_v57, %v6309_v56 }
 0x146   :  { %v6165_v5 = vld [vmem:[%s12023_s1 + $0x988] sm:$0xf]  ;;  %v6438_v6 = vor.u32 %v7810_v59, %v6437_v58  ;;  %v7774_v9 = vld [vmem:[%s12023_s1 + $0xa94] sm:$0xf0] }
 0x147   :  { %3627 = vmatpush.bf16.msrb.mxu0 %v5478_v4  ;;  %3640 = vmatpush.bf16.msrb.mxu1 %v5606_v7  ;;  %v7710_v4 = vld [vmem:[%s12023_s1 + $0x894] sm:$0xf0]  ;;  %v6421_v10 = vld [vmem:[%s12023_s1 + $0xb88] sm:$0xf] }
 0x148   :  { %3653 = vmatpush.bf16.msrb.mxu2 %v5734_v8  ;;  %3666 = vmatpush.bf16.msrb.mxu3 %v5862_v13  ;;  %v7742_v7 = vld [vmem:[%s12023_s1 + $0x994] sm:$0xf0]  ;;  %v6293_v8 = vld [vmem:[%s12023_s1 + $0xa88] sm:$0xf]  ;;  %v6038_v12 = vor.u32 %v7710_v4, %v6037_v3 }
 0x149   :  { %v7806_v11 = vld [vmem:[%s12023_s1 + $0xb94] sm:$0xf0]  ;;  %v6166_v14 = vor.u32 %v7742_v7, %v6165_v5  ;;  %v6294_v15 = vor.u32 %v7774_v9, %v6293_v8  ;;  %v6021_v16 = vld [vmem:[%s12023_s1 + $0x868] sm:$0xf] }
 0x14a   :  { %v7706_v17 = vld [vmem:[%s12023_s1 + $0x874] sm:$0xf0]  ;;  %v6149_v18 = vld [vmem:[%s12023_s1 + $0x968] sm:$0xf] }
 0x14b   :  { %3628 = vmatpush.bf16.msrb.mxu0 %v5462_v21  ;;  %3641 = vmatpush.bf16.msrb.mxu1 %v5590_v23  ;;  %v3422_v13 = vpop.f32.mrf.mxu0  ;;  %v3435_v20 = vpop.f32.mrf.mxu1  ;;  %v6422_v21 = vor.u32 %v7806_v11, %v6421_v10  ;;  %v7738_v48 = vld [vmem:[%s12023_s1 + $0x974] sm:$0xf0]  ;;  %v6277_v51 = vld [vmem:[%s12023_s1 + $0xa68] sm:$0xf]  ;;  %v6022_v25 = vor.u32 %v7706_v17, %v6021_v16 }
 0x14c   :  { %3654 = vmatpush.bf16.msrb.mxu2 %v5718_v24  ;;  %3667 = vmatpush.bf16.msrb.mxu3 %v5846_v30  ;;  %v3423_v19 = vadd.f32 %v3422_v13, %v10100_v47  ;;  %v7770_v22 = vld [vmem:[%s12023_s1 + $0xa74] sm:$0xf0]  ;;  %v6405_v23 = vld [vmem:[%s12023_s1 + $0xb68] sm:$0xf]  ;;  %v6150_v26 = vor.u32 %v7738_v48, %v6149_v18 }
 0x14d   :  { %v7802_v47 = vld [vmem:[%s12023_s1 + $0xb74] sm:$0xf0]  ;;  %v6278_v30 = vor.u32 %v7770_v22, %v6277_v51  ;;  %v6389_v42 = vld [vmem:[%s12023_s1 + $0xb48] sm:$0xf] }
 0x14e   :  { %3629 = vmatmul.bf16.vlgmr.msrb.gmra.mxu0 %v8570_v0  ;;  %3642 = vmatmul.bf16.vlgmr.msrb.gmra.mxu1 %v8574_v2  ;;  %v3436_v24 = vadd.f32 %v3435_v20, %v3423_v19  ;;  %v6406_v36 = vor.u32 %v7802_v47, %v6405_v23  ;;  %v7734_v37 = vld [vmem:[%s12023_s1 + $0x954] sm:$0xf0]  ;;  %v5989_v53 = vld [vmem:[%s12023_s1 + $0x828] sm:$0xf] }
 0x14f   :  { %3673 = vmatpush.bf16.msra.mxu0 %v6086_v31  ;;  %3686 = vmatpush.bf16.msra.mxu1 %v6214_v32  ;;  %v6005_v31 = vld [vmem:[%s12023_s1 + $0x848] sm:$0xf]  ;;  %v7702_v32 = vld [vmem:[%s12023_s1 + $0x854] sm:$0xf0] }
 0x150   :  { %3699 = vmatpush.bf16.msra.mxu2 %v6342_v33  ;;  %3712 = vmatpush.bf16.msra.mxu3 %v6470_v38  ;;  %v6133_v33 = vld [vmem:[%s12023_s1 + $0x948] sm:$0xf]  ;;  %v7766_v39 = vld [vmem:[%s12023_s1 + $0xa54] sm:$0xf0] }
 0x151   :  { %3655 = vmatmul.bf16.vlgmr.msrb.gmra.mxu2 %v8565_v60  ;;  %3668 = vmatmul.bf16.vlgmr.msrb.gmra.mxu3 %v8572_v1  ;;  %v6261_v38 = vld [vmem:[%s12023_s1 + $0xa48] sm:$0xf]  ;;  %v7798_v43 = vld [vmem:[%s12023_s1 + $0xb54] sm:$0xf0]  ;;  %v6134_v49 = vor.u32 %v7734_v37, %v6133_v33 }
 0x152   :  { %v6262_v50 = vor.u32 %v7766_v39, %v6261_v38  ;;  %v6117_v55 = vld [vmem:[%s12023_s1 + $0x928] sm:$0xf]  ;;  %v6390_v57 = vor.u32 %v7798_v43, %v6389_v42  ;;  %v7730_v58 = vld [vmem:[%s12023_s1 + $0x934] sm:$0xf0] }
 0x153   :  { %3674 = vmatpush.bf16.msra.mxu0 %v6070_v44  ;;  %3687 = vmatpush.bf16.msra.mxu1 %v6198_v45  ;;  %v6006_v44 = vor.u32 %v7702_v32, %v6005_v31  ;;  %v3437_v56 = vpop.f32.mrf.mxu1  ;;  %v6245_v59 = vld [vmem:[%s12023_s1 + $0xa28] sm:$0xf]  ;;  %v7694_v5 = vld [vmem:[%s12023_s1 + $0x814] sm:$0xf0] }
 0x154   :  { %3700 = vmatpush.bf16.msra.mxu2 %v6326_v46  ;;  %3713 = vmatpush.bf16.msra.mxu3 %v6454_v54  ;;  %v3448_v35 = vpop.f32.mrf.mxu2  ;;  %v3461_v41 = vpop.f32.mrf.mxu3  ;;  %v7698_v54 = vld [vmem:[%s12023_s1 + $0x834] sm:$0xf0]  ;;  %v5973_v4 = vld [vmem:[%s12023_s1 + $0x808] sm:$0xf] }
 0x155   :  { %v3449_v40 = vadd.f32 %v3448_v35, %v3436_v24  ;;  %v3424_v46 = vpop.f32.mrf.mxu0  ;;  %v5990_v3 = vor.u32 %v7698_v54, %v5989_v53  ;;  %v6101_v8 = vld [vmem:[%s12023_s1 + $0x908] sm:$0xf]  ;;  %v7726_v9 = vld [vmem:[%s12023_s1 + $0x914] sm:$0xf0]  ;;  %v5974_v20 = vor.u32 %v7694_v5, %v5973_v4  ;;  %v8075_v53 = vld [vmem:[#allocation1] sm:$0xff] }
 0x156   :  { %v6229_v10 = vld [vmem:[%s12023_s1 + $0xa08] sm:$0xf]  ;;  %v7758_v13 = vld [vmem:[%s12023_s1 + $0xa14] sm:$0xf0]  ;;  %v6102_v22 = vor.u32 %v7726_v9, %v6101_v8 }
 0x157   :  { %3675 = vmatpush.bf16.msra.mxu0 %v6054_v61  ;;  %3688 = vmatpush.bf16.msra.mxu1 %v6182_v62  ;;  %v10299_v45 = vadd.f32 %v3461_v41, %v3449_v40  ;;  %v7762_v61 = vld [vmem:[%s12023_s1 + $0xa34] sm:$0xf0]  ;;  %v6373_v62 = vld [vmem:[%s12023_s1 + $0xb28] sm:$0xf]  ;;  %v6230_v23 = vor.u32 %v7758_v13, %v6229_v10 }
 0x158   :  { %3701 = vmatpush.bf16.msra.mxu2 %v6310_v63  ;;  %3714 = vmatpush.bf16.msra.mxu3 %v6438_v6  ;;  %v7794_v63 = vld [vmem:[%s12023_s1 + $0xb34] sm:$0xf0]  ;;  %v6118_v6 = vor.u32 %v7730_v58, %v6117_v55  ;;  %v6246_v7 = vor.u32 %v7762_v61, %v6245_v59  ;;  %v6597_v17 = vld [vmem:[%s12023_s1 + $0xce8] sm:$0xf] }
 0x159   :  { %v7850_v18 = vld [vmem:[%s12023_s1 + $0xcf4] sm:$0xf0]  ;;  %v6725_v19 = vld [vmem:[%s12023_s1 + $0xde8] sm:$0xf] }
 0x15a   :  { %v6853_v48 = vld [vmem:[%s12023_s1 + $0xee8] sm:$0xf]  ;;  %v7914_v51 = vld [vmem:[%s12023_s1 + $0xef4] sm:$0xf0] }
 0x15b   :  { %3676 = vmatpush.bf16.msra.mxu0 %v6038_v12  ;;  %3689 = vmatpush.bf16.msra.mxu1 %v6166_v14  ;;  %v6374_v12 = vor.u32 %v7794_v63, %v6373_v62  ;;  %v6357_v14 = vld [vmem:[%s12023_s1 + $0xb08] sm:$0xf]  ;;  %v7946_v24 = vld [vmem:[%s12023_s1 + $0xff4] sm:$0xf0]  ;;  %v6854_v31 = vor.u32 %v7914_v51, %v6853_v48 }
 0x15c   :  { %3702 = vmatpush.bf16.msra.mxu2 %v6294_v15  ;;  %3715 = vmatpush.bf16.msra.mxu3 %v6422_v21  ;;  %v3450_v11 = vpop.f32.mrf.mxu2  ;;  %v7790_v15 = vld [vmem:[%s12023_s1 + $0xb14] sm:$0xf0]  ;;  %v3463_v16 = vpop.f32.mrf.mxu3  ;;  %v6981_v47 = vld [vmem:[%s12023_s1 + $0xfe8] sm:$0xf] }
 0x15d   :  { %v7882_v21 = vld [vmem:[%s12023_s1 + $0xdf4] sm:$0xf0]  ;;  %v6581_v32 = vld [vmem:[%s12023_s1 + $0xcc8] sm:$0xf] }
 0x15e   :  { %v7846_v33 = vld [vmem:[%s12023_s1 + $0xcd4] sm:$0xf0]  ;;  %v6709_v35 = vld [vmem:[%s12023_s1 + $0xdc8] sm:$0xf] }
 0x15f   :  { %3677 = vmatpush.bf16.msra.mxu0 %v6022_v25  ;;  %3690 = vmatpush.bf16.msra.mxu1 %v6150_v26  ;;  %v6358_v25 = vor.u32 %v7790_v15, %v6357_v14  ;;  %v6598_v26 = vor.u32 %v7850_v18, %v6597_v17  ;;  %v7878_v37 = vld [vmem:[%s12023_s1 + $0xdd4] sm:$0xf0]  ;;  %v6837_v38 = vld [vmem:[%s12023_s1 + $0xec8] sm:$0xf]  ;;  %v6582_v42 = vor.u32 %v7846_v33, %v6581_v32 }
 0x160   :  { %3703 = vmatpush.bf16.msra.mxu2 %v6278_v30  ;;  %3716 = vmatpush.bf16.msra.mxu3 %v6406_v36  ;;  %v6726_v30 = vor.u32 %v7882_v21, %v6725_v19  ;;  %v6982_v36 = vor.u32 %v7946_v24, %v6981_v47  ;;  %v7910_v39 = vld [vmem:[%s12023_s1 + $0xed4] sm:$0xf0]  ;;  %v6965_v40 = vld [vmem:[%s12023_s1 + $0xfc8] sm:$0xf]  ;;  %v6710_v43 = vor.u32 %v7878_v37, %v6709_v35 }
 0x161   :  { %v7942_v41 = vld [vmem:[%s12023_s1 + $0xfd4] sm:$0xf0]  ;;  %v6565_v46 = vld [vmem:[%s12023_s1 + $0xca8] sm:$0xf] }
 0x162   :  { %v6966_v54 = vor.u32 %v7942_v41, %v6965_v40  ;;  %v7874_v55 = vld [vmem:[%s12023_s1 + $0xdb4] sm:$0xf0]  ;;  %v6821_v56 = vld [vmem:[%s12023_s1 + $0xea8] sm:$0xf] }
 0x163   :  { %3678 = vmatpush.bf16.msra.mxu0 %v6006_v44  ;;  %3691 = vmatpush.bf16.msra.mxu1 %v6134_v49  ;;  %v6838_v44 = vor.u32 %v7910_v39, %v6837_v38  ;;  %v7842_v49 = vld [vmem:[%s12023_s1 + $0xcb4] sm:$0xf0]  ;;  %v8077_v59 = vld [vmem:[#allocation1 + $0x9] sm:$0xff] }
 0x164   :  { %3704 = vmatpush.bf16.msra.mxu2 %v6262_v50  ;;  %3717 = vmatpush.bf16.msra.mxu3 %v6390_v57  ;;  %v6693_v50 = vld [vmem:[%s12023_s1 + $0xda8] sm:$0xf]  ;;  %v7906_v57 = vld [vmem:[%s12023_s1 + $0xeb4] sm:$0xf0] }
 0x165   :  { %v8076_v58 = vld [vmem:[#allocation1 + $0x12] sm:$0xff]  ;;  %v6949_v61 = vld [vmem:[%s12023_s1 + $0xfa8] sm:$0xf]  ;;  %v8078_v63 = vld [vmem:[#allocation1 + $0x1b] sm:$0xff]  ;;  %v6694_v4 = vor.u32 %v7874_v55, %v6693_v50  ;;  %v6822_v5 = vor.u32 %v7906_v57, %v6821_v56 }
 0x166   :  { %v7938_v62 = vld [vmem:[%s12023_s1 + $0xfb4] sm:$0xf0]  ;;  %v6677_v8 = vld [vmem:[%s12023_s1 + $0xd88] sm:$0xf] }
 0x167   :  { %3679 = vmatpush.bf16.msra.mxu0 %v5990_v3  ;;  %3692 = vmatpush.bf16.msra.mxu1 %v6118_v6  ;;  %v6566_v3 = vor.u32 %v7842_v49, %v6565_v46  ;;  %v6549_v6 = vld [vmem:[%s12023_s1 + $0xc88] sm:$0xf]  ;;  %v6950_v9 = vor.u32 %v7938_v62, %v6949_v61  ;;  %v7870_v10 = vld [vmem:[%s12023_s1 + $0xd94] sm:$0xf0] }
 0x168   :  { %3705 = vmatpush.bf16.msra.mxu2 %v6246_v7  ;;  %3718 = vmatpush.bf16.msra.mxu3 %v6374_v12  ;;  %v7838_v7 = vld [vmem:[%s12023_s1 + $0xc94] sm:$0xf0]  ;;  %v6805_v11 = vld [vmem:[%s12023_s1 + $0xe88] sm:$0xf]  ;;  %v6678_v19 = vor.u32 %v7870_v10, %v6677_v8 }
 0x169   :  { %v7902_v12 = vld [vmem:[%s12023_s1 + $0xe94] sm:$0xf0]  ;;  %v6933_v14 = vld [vmem:[%s12023_s1 + $0xf88] sm:$0xf]  ;;  %v6550_v17 = vor.u32 %v7838_v7, %v6549_v6 }
 0x16a   :  { %v7934_v15 = vld [vmem:[%s12023_s1 + $0xf94] sm:$0xf0]  ;;  %v6533_v21 = vld [vmem:[%s12023_s1 + $0xc68] sm:$0xf] }
 0x16b   :  { %3680 = vmatpush.bf16.msra.mxu0 %v5974_v20  ;;  %3693 = vmatpush.bf16.msra.mxu1 %v6102_v22  ;;  %v3474_v13 = vpop.f32.mrf.mxu0  ;;  %v3487_v18 = vpop.f32.mrf.mxu1  ;;  %v6806_v20 = vor.u32 %v7902_v12, %v6805_v11  ;;  %v7834_v48 = vld [vmem:[%s12023_s1 + $0xc74] sm:$0xf0]  ;;  %v6661_v51 = vld [vmem:[%s12023_s1 + $0xd68] sm:$0xf] }
 0x16c   :  { %3706 = vmatpush.bf16.msra.mxu2 %v6230_v23  ;;  %3719 = vmatpush.bf16.msra.mxu3 %v6358_v25  ;;  %v3475_v16 = vadd.f32 %v3474_v13, %v10299_v45  ;;  %v6934_v45 = vor.u32 %v7934_v15, %v6933_v14  ;;  %v7866_v23 = vld [vmem:[%s12023_s1 + $0xd74] sm:$0xf0]  ;;  %v6789_v47 = vld [vmem:[%s12023_s1 + $0xe68] sm:$0xf] }
 0x16d   :  { %v7898_v24 = vld [vmem:[%s12023_s1 + $0xe74] sm:$0xf0]  ;;  %v6917_v25 = vld [vmem:[%s12023_s1 + $0xf68] sm:$0xf] }
 0x16e   :  { %3681 = vmatmul.bf16.vlgmr.msra.gmra.mxu0 %v8075_v53  ;;  %3694 = vmatmul.bf16.vlgmr.msra.gmra.mxu1 %v8077_v59  ;;  %v3488_v22 = vadd.f32 %v3487_v18, %v3475_v16  ;;  %v6790_v32 = vor.u32 %v7898_v24, %v6789_v47  ;;  %v6517_v33 = vld [vmem:[%s12023_s1 + $0xc48] sm:$0xf]  ;;  %v7830_v35 = vld [vmem:[%s12023_s1 + $0xc54] sm:$0xf0] }
 0x16f   :  { %3725 = vmatpush.bf16.msrb.mxu0 %v6598_v26  ;;  %3738 = vmatpush.bf16.msrb.mxu1 %v6726_v30  ;;  %v7930_v26 = vld [vmem:[%s12023_s1 + $0xf74] sm:$0xf0]  ;;  %v6534_v30 = vor.u32 %v7834_v48, %v6533_v21  ;;  %v6773_v40 = vld [vmem:[%s12023_s1 + $0xe48] sm:$0xf]  ;;  %v6518_v50 = vor.u32 %v7830_v35, %v6517_v33  ;;  %v7496_v21 = vld [vmem:[%s12023_s1 + $0x1ec] sm:$0xf] }
 0x170   :  { %3751 = vmatpush.bf16.msrb.mxu2 %v6854_v31  ;;  %3764 = vmatpush.bf16.msrb.mxu3 %v6982_v36  ;;  %v6662_v31 = vor.u32 %v7866_v23, %v6661_v51  ;;  %v6645_v36 = vld [vmem:[%s12023_s1 + $0xd48] sm:$0xf]  ;;  %v6918_v37 = vor.u32 %v7930_v26, %v6917_v25  ;;  %v7862_v39 = vld [vmem:[%s12023_s1 + $0xd54] sm:$0xf0]  ;;  %v5319_v23 = vld [vmem:[%s12023_s1 + $0x2f8] sm:$0xf0] }
 0x171   :  { %3707 = vmatmul.bf16.vlgmr.msra.gmra.mxu2 %v8076_v58  ;;  %3720 = vmatmul.bf16.vlgmr.msra.gmra.mxu3 %v8078_v63  ;;  %v7894_v41 = vld [vmem:[%s12023_s1 + $0xe54] sm:$0xf0]  ;;  %v6646_v55 = vor.u32 %v7862_v39, %v6645_v36  ;;  %v6501_v57 = vld [vmem:[%s12023_s1 + $0xc28] sm:$0xf]  ;;  %v7560_v25 = vld [vmem:[%s12023_s1 + $0x3ec] sm:$0xf] }
 0x172   :  { %v7926_v46 = vld [vmem:[%s12023_s1 + $0xf54] sm:$0xf0]  ;;  %v6774_v56 = vor.u32 %v7894_v41, %v6773_v40  ;;  %v6629_v59 = vld [vmem:[%s12023_s1 + $0xd28] sm:$0xf]  ;;  %v5447_v26 = vld [vmem:[%s12023_s1 + $0x3f8] sm:$0xf0] }
 0x173   :  { %3726 = vmatpush.bf16.msrb.mxu0 %v6582_v42  ;;  %3739 = vmatpush.bf16.msrb.mxu1 %v6710_v43  ;;  %v3476_v49 = vpop.f32.mrf.mxu0  ;;  %v3489_v53 = vpop.f32.mrf.mxu1  ;;  %v7826_v58 = vld [vmem:[%s12023_s1 + $0xc34] sm:$0xf0]  ;;  %v6757_v63 = vld [vmem:[%s12023_s1 + $0xe28] sm:$0xf]  ;;  %v7460_v35 = vld [vmem:[%s12023_s1 + $0xcc] sm:$0xf] }
 0x174   :  { %3752 = vmatpush.bf16.msrb.mxu2 %v6838_v44  ;;  %3765 = vmatpush.bf16.msrb.mxu3 %v6966_v54  ;;  %v3500_v38 = vpop.f32.mrf.mxu2  ;;  %v3513_v43 = vpop.f32.mrf.mxu3  ;;  %v6901_v44 = vld [vmem:[%s12023_s1 + $0xf48] sm:$0xf]  ;;  %v7858_v62 = vld [vmem:[%s12023_s1 + $0xd34] sm:$0xf0]  ;;  %v6502_v6 = vor.u32 %v7826_v58, %v6501_v57  ;;  %v5047_v36 = vld [vmem:[%s12023_s1 + $0xd8] sm:$0xf0] }
 0x175   :  { %v3501_v42 = vadd.f32 %v3500_v38, %v3488_v22  ;;  %v6902_v61 = vor.u32 %v7926_v46, %v6901_v44  ;;  %v6485_v7 = vld [vmem:[%s12023_s1 + $0xc08] sm:$0xf]  ;;  %v7822_v8 = vld [vmem:[%s12023_s1 + $0xc14] sm:$0xf0]  ;;  %v7528_v22 = vld [vmem:[%s12023_s1 + $0x2ec] sm:$0xf]  ;;  %v5450_v38 = vor.u32 %v7560_v25, %v5447_v26  ;;  %v5050_v44 = vor.u32 %v7460_v35, %v5047_v36 }
 0x176   :  { %v6613_v11 = vld [vmem:[%s12023_s1 + $0xd08] sm:$0xf]  ;;  %v7854_v12 = vld [vmem:[%s12023_s1 + $0xd14] sm:$0xf0]  ;;  %v6486_v51 = vor.u32 %v7822_v8, %v6485_v7  ;;  %v5322_v33 = vor.u32 %v7528_v22, %v5319_v23  ;;  %v5175_v39 = vld [vmem:[%s12023_s1 + $0x1d8] sm:$0xf0] }
 0x177   :  { %3727 = vmatpush.bf16.msrb.mxu0 %v6566_v3  ;;  %3740 = vmatpush.bf16.msrb.mxu1 %v6694_v4  ;;  %v10494_v54 = vadd.f32 %v3513_v43, %v3501_v42  ;;  %v7890_v3 = vld [vmem:[%s12023_s1 + $0xe34] sm:$0xf0]  ;;  %v6885_v4 = vld [vmem:[%s12023_s1 + $0xf28] sm:$0xf]  ;;  %v6614_v47 = vor.u32 %v7854_v12, %v6613_v11  ;;  %v7524_v40 = vld [vmem:[%s12023_s1 + $0x2cc] sm:$0xf] }
 0x178   :  { %3753 = vmatpush.bf16.msrb.mxu2 %v6822_v5  ;;  %3766 = vmatpush.bf16.msrb.mxu3 %v6950_v9  ;;  %v7922_v5 = vld [vmem:[%s12023_s1 + $0xf34] sm:$0xf0]  ;;  %v6630_v9 = vor.u32 %v7858_v62, %v6629_v59  ;;  %v6758_v10 = vor.u32 %v7890_v3, %v6757_v63  ;;  %v6741_v13 = vld [vmem:[%s12023_s1 + $0xe08] sm:$0xf]  ;;  %v5303_v41 = vld [vmem:[%s12023_s1 + $0x2d8] sm:$0xf0] }
 0x179   :  { %v6886_v14 = vor.u32 %v7922_v5, %v6885_v4  ;;  %v7886_v15 = vld [vmem:[%s12023_s1 + $0xe14] sm:$0xf0]  ;;  %v6869_v16 = vld [vmem:[%s12023_s1 + $0xf08] sm:$0xf]  ;;  %v7556_v42 = vld [vmem:[%s12023_s1 + $0x3cc] sm:$0xf]  ;;  %v5306_v49 = vor.u32 %v7524_v40, %v5303_v41 }
 0x17a   :  { %v6742_v24 = vor.u32 %v7886_v15, %v6741_v13  ;;  %v5431_v43 = vld [vmem:[%s12023_s1 + $0x3d8] sm:$0xf0]  ;;  %v7520_v59 = vld [vmem:[%s12023_s1 + $0x2ac] sm:$0xf] }
 0x17b   :  { %3728 = vmatpush.bf16.msrb.mxu0 %v6550_v17  ;;  %3741 = vmatpush.bf16.msrb.mxu1 %v6678_v19  ;;  %v7918_v17 = vld [vmem:[%s12023_s1 + $0xf14] sm:$0xf0]  ;;  %v7464_v19 = vld [vmem:[%s12023_s1 + $0xec] sm:$0xf]  ;;  %v5031_v53 = vld [vmem:[%s12023_s1 + $0xb8] sm:$0xf0]  ;;  %v5434_v57 = vor.u32 %v7556_v42, %v5431_v43 }
 0x17c   :  { %3754 = vmatpush.bf16.msrb.mxu2 %v6806_v20  ;;  %3767 = vmatpush.bf16.msrb.mxu3 %v6934_v45  ;;  %v3502_v18 = vpop.f32.mrf.mxu2  ;;  %v5063_v20 = vld [vmem:[%s12023_s1 + $0xf8] sm:$0xf0]  ;;  %v3515_v48 = vpop.f32.mrf.mxu3  ;;  %v8081_v63 = vld [vmem:[#allocation1 + $0x2d] sm:$0xff] }
 0x17d   :  { %v5191_v45 = vld [vmem:[%s12023_s1 + $0x1f8] sm:$0xf0]  ;;  %v7552_v3 = vld [vmem:[%s12023_s1 + $0x3ac] sm:$0xf] }
 0x17e   :  { %v5159_v58 = vld [vmem:[%s12023_s1 + $0x1b8] sm:$0xf0]  ;;  %v7484_v11 = vld [vmem:[%s12023_s1 + $0x18c] sm:$0xf] }
 0x17f   :  { %3729 = vmatpush.bf16.msrb.mxu0 %v6534_v30  ;;  %3742 = vmatpush.bf16.msrb.mxu1 %v6662_v31  ;;  %v6870_v30 = vor.u32 %v7918_v17, %v6869_v16  ;;  %v5066_v31 = vor.u32 %v7464_v19, %v5063_v20  ;;  %v8080_v62 = vld [vmem:[#allocation1 + $0x36] sm:$0xff]  ;;  %v8082_v5 = vld [vmem:[#allocation1 + $0x3f] sm:$0xff]  ;;  %v7548_v17 = vld [vmem:[%s12023_s1 + $0x38c] sm:$0xf] }
 0x180   :  { %3755 = vmatpush.bf16.msrb.mxu2 %v6790_v32  ;;  %3768 = vmatpush.bf16.msrb.mxu3 %v6918_v37  ;;  %v5194_v32 = vor.u32 %v7496_v21, %v5191_v45  ;;  %v7492_v37 = vld [vmem:[%s12023_s1 + $0x1cc] sm:$0xf]  ;;  %v5415_v4 = vld [vmem:[%s12023_s1 + $0x3b8] sm:$0xf0] }
 0x181   :  { %v5178_v46 = vor.u32 %v7492_v37, %v5175_v39  ;;  %v5418_v12 = vor.u32 %v7552_v3, %v5415_v4  ;;  %v5143_v13 = vld [vmem:[%s12023_s1 + $0x198] sm:$0xf0]  ;;  %v7448_v45 = vld [vmem:[%s12023_s1 + $0x6c] sm:$0xf] }
 0x182   :  { %v5271_v15 = vld [vmem:[%s12023_s1 + $0x298] sm:$0xf0]  ;;  %v5146_v48 = vor.u32 %v7484_v11, %v5143_v13  ;;  %v7480_v23 = vld [vmem:[%s12023_s1 + $0x16c] sm:$0xf] }
 0x183   :  { %3730 = vmatpush.bf16.msrb.mxu0 %v6518_v50  ;;  %3743 = vmatpush.bf16.msrb.mxu1 %v6646_v55  ;;  %v7456_v50 = vld [vmem:[%s12023_s1 + $0xac] sm:$0xf]  ;;  %v5399_v18 = vld [vmem:[%s12023_s1 + $0x398] sm:$0xf0] }
 0x184   :  { %3756 = vmatpush.bf16.msrb.mxu2 %v6774_v56  ;;  %3769 = vmatpush.bf16.msrb.mxu3 %v6902_v61  ;;  %v7488_v55 = vld [vmem:[%s12023_s1 + $0x1ac] sm:$0xf]  ;;  %v8079_v56 = vld [vmem:[#allocation1 + $0x24] sm:$0xff]  ;;  %v5287_v61 = vld [vmem:[%s12023_s1 + $0x2b8] sm:$0xf0] }
 0x185   :  { %v5162_v7 = vor.u32 %v7488_v55, %v5159_v58  ;;  %v5290_v8 = vor.u32 %v7520_v59, %v5287_v61  ;;  %v4999_v22 = vld [vmem:[%s12023_s1 + $0x78] sm:$0xf0]  ;;  %v7512_v25 = vld [vmem:[%s12023_s1 + $0x26c] sm:$0xf] }
 0x186   :  { %v5255_v26 = vld [vmem:[%s12023_s1 + $0x278] sm:$0xf0]  ;;  %v7444_v36 = vld [vmem:[%s12023_s1 + $0x4c] sm:$0xf] }
 0x187   :  { %3731 = vmatpush.bf16.msrb.mxu0 %v6502_v6  ;;  %3744 = vmatpush.bf16.msrb.mxu1 %v6630_v9  ;;  %v5034_v6 = vor.u32 %v7456_v50, %v5031_v53  ;;  %v7452_v9 = vld [vmem:[%s12023_s1 + $0x8c] sm:$0xf]  ;;  %v5258_v35 = vor.u32 %v7512_v25, %v5255_v26  ;;  %v4983_v37 = vld [vmem:[%s12023_s1 + $0x58] sm:$0xf0] }
 0x188   :  { %3757 = vmatpush.bf16.msrb.mxu2 %v6758_v10  ;;  %3770 = vmatpush.bf16.msrb.mxu3 %v6886_v14  ;;  %v5015_v10 = vld [vmem:[%s12023_s1 + $0x98] sm:$0xf0]  ;;  %v7516_v14 = vld [vmem:[%s12023_s1 + $0x28c] sm:$0xf]  ;;  %v4986_v55 = vor.u32 %v7444_v36, %v4983_v37 }
 0x189   :  { %v5018_v20 = vor.u32 %v7452_v9, %v5015_v10  ;;  %v5111_v41 = vld [vmem:[%s12023_s1 + $0x158] sm:$0xf0]  ;;  %v7508_v42 = vld [vmem:[%s12023_s1 + $0x24c] sm:$0xf] }
 0x18a   :  { %v5239_v43 = vld [vmem:[%s12023_s1 + $0x258] sm:$0xf0]  ;;  %v7440_v61 = vld [vmem:[%s12023_s1 + $0x2c] sm:$0xf] }
 0x18b   :  { %3732 = vmatpush.bf16.msrb.mxu0 %v6486_v51  ;;  %3745 = vmatpush.bf16.msrb.mxu1 %v6614_v47  ;;  %v3526_v16 = vpop.f32.mrf.mxu0  ;;  %v3539_v21 = vpop.f32.mrf.mxu1  ;;  %v5274_v51 = vor.u32 %v7516_v14, %v5271_v15  ;;  %v5367_v50 = vld [vmem:[%s12023_s1 + $0x358] sm:$0xf0]  ;;  %v5242_v59 = vor.u32 %v7508_v42, %v5239_v43  ;;  %v7436_v10 = vld [vmem:[%s12023_s1 + $0xc] sm:$0xf] }
 0x18c   :  { %3758 = vmatpush.bf16.msrb.mxu2 %v6742_v24  ;;  %3771 = vmatpush.bf16.msrb.mxu3 %v6870_v30  ;;  %v3527_v19 = vadd.f32 %v3526_v16, %v10494_v54  ;;  %v5402_v54 = vor.u32 %v7548_v17, %v5399_v18  ;;  %v5127_v24 = vld [vmem:[%s12023_s1 + $0x178] sm:$0xf0]  ;;  %v7544_v30 = vld [vmem:[%s12023_s1 + $0x36c] sm:$0xf] }
 0x18d   :  { %v5095_v4 = vld [vmem:[%s12023_s1 + $0x138] sm:$0xf0]  ;;  %v7468_v14 = vld [vmem:[%s12023_s1 + $0x10c] sm:$0xf] }
 0x18e   :  { %3733 = vmatmul.bf16.vlgmr.msrb.gmra.mxu0 %v8079_v56  ;;  %3746 = vmatmul.bf16.vlgmr.msrb.gmra.mxu1 %v8081_v63  ;;  %v3540_v47 = vadd.f32 %v3539_v21, %v3527_v19  ;;  %v7472_v63 = vld [vmem:[%s12023_s1 + $0x12c] sm:$0xf]  ;;  %v4951_v11 = vld [vmem:[%s12023_s1 + $0x18] sm:$0xf0] }
 0x18f   :  { %3777 = vmatpush.bf16.msra.mxu0 %v5066_v31  ;;  %3790 = vmatpush.bf16.msra.mxu1 %v5194_v32  ;;  %v5383_v31 = vld [vmem:[%s12023_s1 + $0x378] sm:$0xf0]  ;;  %v5002_v32 = vor.u32 %v7448_v45, %v4999_v22  ;;  %v7500_v16 = vld [vmem:[%s12023_s1 + $0x20c] sm:$0xf] }
 0x190   :  { %3803 = vmatpush.bf16.msra.mxu2 %v5322_v33  ;;  %3816 = vmatpush.bf16.msra.mxu3 %v5450_v38  ;;  %v5130_v33 = vor.u32 %v7480_v23, %v5127_v24  ;;  %v7476_v38 = vld [vmem:[%s12023_s1 + $0x14c] sm:$0xf]  ;;  %v5386_v39 = vor.u32 %v7544_v30, %v5383_v31  ;;  %v5079_v15 = vld [vmem:[%s12023_s1 + $0x118] sm:$0xf0]  ;;  %v4954_v23 = vor.u32 %v7436_v10, %v4951_v11 }
 0x191   :  { %3759 = vmatmul.bf16.vlgmr.msrb.gmra.mxu2 %v8080_v62  ;;  %3772 = vmatmul.bf16.vlgmr.msrb.gmra.mxu3 %v8082_v5  ;;  %v5114_v58 = vor.u32 %v7476_v38, %v5111_v41  ;;  %v4967_v62 = vld [vmem:[%s12023_s1 + $0x38] sm:$0xf0]  ;;  %v7504_v5 = vld [vmem:[%s12023_s1 + $0x22c] sm:$0xf]  ;;  %v5082_v25 = vor.u32 %v7468_v14, %v5079_v15 }
 0x192   :  { %v4970_v9 = vor.u32 %v7440_v61, %v4967_v62  ;;  %v5207_v18 = vld [vmem:[%s12023_s1 + $0x218] sm:$0xf0]  ;;  %v7532_v19 = vld [vmem:[%s12023_s1 + $0x30c] sm:$0xf] }
 0x193   :  { %3778 = vmatpush.bf16.msra.mxu0 %v5050_v44  ;;  %3791 = vmatpush.bf16.msra.mxu1 %v5178_v46  ;;  %v3528_v53 = vpop.f32.mrf.mxu0  ;;  %v3541_v56 = vpop.f32.mrf.mxu1  ;;  %v7624_v45 = vld [vmem:[%s12023_s1 + $0x5ec] sm:$0xf]  ;;  %v5831_v24 = vld [vmem:[%s12023_s1 + $0x6f8] sm:$0xf0]  ;;  %v5210_v26 = vor.u32 %v7500_v16, %v5207_v18 }
 0x194   :  { %3804 = vmatpush.bf16.msra.mxu2 %v5306_v49  ;;  %3817 = vmatpush.bf16.msra.mxu3 %v5434_v57  ;;  %v3552_v40 = vpop.f32.mrf.mxu2  ;;  %v3565_v46 = vpop.f32.mrf.mxu3  ;;  %v7540_v49 = vld [vmem:[%s12023_s1 + $0x34c] sm:$0xf]  ;;  %v5959_v31 = vld [vmem:[%s12023_s1 + $0x7f8] sm:$0xf0] }
 0x195   :  { %v3553_v44 = vadd.f32 %v3552_v40, %v3540_v47  ;;  %v5370_v3 = vor.u32 %v7540_v49, %v5367_v50  ;;  %v7656_v47 = vld [vmem:[%s12023_s1 + $0x6ec] sm:$0xf]  ;;  %v5559_v38 = vld [vmem:[%s12023_s1 + $0x4d8] sm:$0xf0] }
 0x196   :  { %v7688_v30 = vld [vmem:[%s12023_s1 + $0x7ec] sm:$0xf]  ;;  %v5834_v36 = vor.u32 %v7656_v47, %v5831_v24  ;;  %v5687_v41 = vld [vmem:[%s12023_s1 + $0x5d8] sm:$0xf0] }
 0x197   :  { %3779 = vmatpush.bf16.msra.mxu0 %v5034_v6  ;;  %3792 = vmatpush.bf16.msra.mxu1 %v5162_v7  ;;  %v10689_v57 = vadd.f32 %v3565_v46, %v3553_v44  ;;  %v5223_v6 = vld [vmem:[%s12023_s1 + $0x238] sm:$0xf0]  ;;  %v7536_v7 = vld [vmem:[%s12023_s1 + $0x32c] sm:$0xf]  ;;  %v5962_v40 = vor.u32 %v7688_v30, %v5959_v31 }
 0x198   :  { %3805 = vmatpush.bf16.msra.mxu2 %v5290_v8  ;;  %3818 = vmatpush.bf16.msra.mxu3 %v5418_v12  ;;  %v5351_v8 = vld [vmem:[%s12023_s1 + $0x338] sm:$0xf0]  ;;  %v5098_v12 = vor.u32 %v7472_v63, %v5095_v4  ;;  %v5226_v13 = vor.u32 %v7504_v5, %v5223_v6  ;;  %v7588_v37 = vld [vmem:[%s12023_s1 + $0x4cc] sm:$0xf] }
 0x199   :  { %v5354_v17 = vor.u32 %v7536_v7, %v5351_v8  ;;  %v7652_v42 = vld [vmem:[%s12023_s1 + $0x6cc] sm:$0xf]  ;;  %v5815_v43 = vld [vmem:[%s12023_s1 + $0x6d8] sm:$0xf0]  ;;  %v5562_v49 = vor.u32 %v7588_v37, %v5559_v38 }
 0x19a   :  { %v7684_v44 = vld [vmem:[%s12023_s1 + $0x7cc] sm:$0xf]  ;;  %v5943_v46 = vld [vmem:[%s12023_s1 + $0x7d8] sm:$0xf0]  ;;  %v5818_v53 = vor.u32 %v7652_v42, %v5815_v43 }
 0x19b   :  { %3780 = vmatpush.bf16.msra.mxu0 %v5018_v20  ;;  %3793 = vmatpush.bf16.msra.mxu1 %v5146_v48  ;;  %v5335_v20 = vld [vmem:[%s12023_s1 + $0x318] sm:$0xf0]  ;;  %v7592_v48 = vld [vmem:[%s12023_s1 + $0x4ec] sm:$0xf] }
 0x19c   :  { %3806 = vmatpush.bf16.msra.mxu2 %v5274_v51  ;;  %3819 = vmatpush.bf16.msra.mxu3 %v5402_v54  ;;  %v3554_v21 = vpop.f32.mrf.mxu2  ;;  %v5575_v51 = vld [vmem:[%s12023_s1 + $0x4f8] sm:$0xf0]  ;;  %v3567_v22 = vpop.f32.mrf.mxu3  ;;  %v7648_v62 = vld [vmem:[%s12023_s1 + $0x6ac] sm:$0xf] }
 0x19d   :  { %v5703_v54 = vld [vmem:[%s12023_s1 + $0x5f8] sm:$0xf0]  ;;  %v7580_v6 = vld [vmem:[%s12023_s1 + $0x48c] sm:$0xf] }
 0x19e   :  { %v5543_v56 = vld [vmem:[%s12023_s1 + $0x4b8] sm:$0xf0]  ;;  %v7644_v11 = vld [vmem:[%s12023_s1 + $0x68c] sm:$0xf] }
 0x19f   :  { %3781 = vmatpush.bf16.msra.mxu0 %v5002_v32  ;;  %3794 = vmatpush.bf16.msra.mxu1 %v5130_v33  ;;  %v5338_v32 = vor.u32 %v7532_v19, %v5335_v20  ;;  %v5578_v33 = vor.u32 %v7592_v48, %v5575_v51  ;;  %v5671_v61 = vld [vmem:[%s12023_s1 + $0x5b8] sm:$0xf0]  ;;  %v7576_v19 = vld [vmem:[%s12023_s1 + $0x46c] sm:$0xf] }
 0x1a0   :  { %3807 = vmatpush.bf16.msra.mxu2 %v5258_v35  ;;  %3820 = vmatpush.bf16.msra.mxu3 %v5386_v39  ;;  %v5706_v35 = vor.u32 %v7624_v45, %v5703_v54  ;;  %v7620_v39 = vld [vmem:[%s12023_s1 + $0x5cc] sm:$0xf]  ;;  %v5799_v63 = vld [vmem:[%s12023_s1 + $0x6b8] sm:$0xf0] }
 0x1a1   :  { %v5690_v50 = vor.u32 %v7620_v39, %v5687_v41  ;;  %v5927_v4 = vld [vmem:[%s12023_s1 + $0x7b8] sm:$0xf0]  ;;  %v5802_v7 = vor.u32 %v7648_v62, %v5799_v63  ;;  %v7608_v21 = vld [vmem:[%s12023_s1 + $0x56c] sm:$0xf] }
 0x1a2   :  { %v5527_v8 = vld [vmem:[%s12023_s1 + $0x498] sm:$0xf0]  ;;  %v7672_v47 = vld [vmem:[%s12023_s1 + $0x76c] sm:$0xf] }
 0x1a3   :  { %3782 = vmatpush.bf16.msra.mxu0 %v4986_v55  ;;  %3795 = vmatpush.bf16.msra.mxu1 %v5114_v58  ;;  %v7584_v55 = vld [vmem:[%s12023_s1 + $0x4ac] sm:$0xf]  ;;  %v5911_v14 = vld [vmem:[%s12023_s1 + $0x798] sm:$0xf0]  ;;  %v5530_v15 = vor.u32 %v7580_v6, %v5527_v8 }
 0x1a4   :  { %3808 = vmatpush.bf16.msra.mxu2 %v5242_v59  ;;  %3821 = vmatpush.bf16.msra.mxu3 %v5370_v3  ;;  %v7616_v58 = vld [vmem:[%s12023_s1 + $0x5ac] sm:$0xf]  ;;  %v5946_v59 = vor.u32 %v7684_v44, %v5943_v46  ;;  %v5546_v5 = vor.u32 %v7584_v55, %v5543_v56  ;;  %v5511_v20 = vld [vmem:[%s12023_s1 + $0x478] sm:$0xf0] }
 0x1a5   :  { %v7680_v3 = vld [vmem:[%s12023_s1 + $0x7ac] sm:$0xf]  ;;  %v5639_v22 = vld [vmem:[%s12023_s1 + $0x578] sm:$0xf0] }
 0x1a6   :  { %v5930_v10 = vor.u32 %v7680_v3, %v5927_v4  ;;  %v5767_v54 = vld [vmem:[%s12023_s1 + $0x678] sm:$0xf0]  ;;  %v5642_v30 = vor.u32 %v7608_v21, %v5639_v22  ;;  %v7636_v39 = vld [vmem:[%s12023_s1 + $0x64c] sm:$0xf] }
 0x1a7   :  { %3783 = vmatpush.bf16.msra.mxu0 %v4970_v9  ;;  %3796 = vmatpush.bf16.msra.mxu1 %v5098_v12  ;;  %v5783_v12 = vld [vmem:[%s12023_s1 + $0x698] sm:$0xf0]  ;;  %v7668_v43 = vld [vmem:[%s12023_s1 + $0x74c] sm:$0xf] }
 0x1a8   :  { %3809 = vmatpush.bf16.msra.mxu2 %v5226_v13  ;;  %3822 = vmatpush.bf16.msra.mxu3 %v5354_v17  ;;  %v7676_v13 = vld [vmem:[%s12023_s1 + $0x78c] sm:$0xf]  ;;  %v5786_v18 = vor.u32 %v7644_v11, %v5783_v12  ;;  %v5895_v24 = vld [vmem:[%s12023_s1 + $0x778] sm:$0xf0] }
 0x1a9   :  { %v5914_v45 = vor.u32 %v7676_v13, %v5911_v14  ;;  %v5898_v37 = vor.u32 %v7672_v47, %v5895_v24  ;;  %v5623_v38 = vld [vmem:[%s12023_s1 + $0x558] sm:$0xf0]  ;;  %v7568_v56 = vld [vmem:[%s12023_s1 + $0x42c] sm:$0xf] }
 0x1aa   :  { %v5879_v44 = vld [vmem:[%s12023_s1 + $0x758] sm:$0xf0]  ;;  %v7632_v3 = vld [vmem:[%s12023_s1 + $0x62c] sm:$0xf] }
 0x1ab   :  { %3784 = vmatpush.bf16.msra.mxu0 %v4954_v23  ;;  %3797 = vmatpush.bf16.msra.mxu1 %v5082_v25  ;;  %v3578_v16 = vpop.f32.mrf.mxu0  ;;  %v3591_v51 = vpop.f32.mrf.mxu1  ;;  %v7640_v23 = vld [vmem:[%s12023_s1 + $0x66c] sm:$0xf]  ;;  %v5882_v62 = vor.u32 %v7668_v43, %v5879_v44  ;;  %v5607_v63 = vld [vmem:[%s12023_s1 + $0x538] sm:$0xf0] }
 0x1ac   :  { %3810 = vmatpush.bf16.msra.mxu2 %v5210_v26  ;;  %3823 = vmatpush.bf16.msra.mxu3 %v5338_v32  ;;  %v5514_v26 = vor.u32 %v7576_v19, %v5511_v20  ;;  %v5770_v31 = vor.u32 %v7640_v23, %v5767_v54  ;;  %v7572_v32 = vld [vmem:[%s12023_s1 + $0x44c] sm:$0xf]  ;;  %v5735_v4 = vld [vmem:[%s12023_s1 + $0x638] sm:$0xf0] }
 0x1ad   :  { %v5863_v6 = vld [vmem:[%s12023_s1 + $0x738] sm:$0xf0]  ;;  %v7660_v14 = vld [vmem:[%s12023_s1 + $0x70c] sm:$0xf] }
 0x1ae   :  { %3785 = vmatmul.bf16.vlgmr.msra.gmra.mxu0 %v8492_v28  ;;  %3798 = vmatmul.bf16.vlgmr.msra.gmra.mxu1 %v8502_v34  ;;  %v7612_v28 = vld [vmem:[%s12023_s1 + $0x58c] sm:$0xf]  ;;  %v5655_v34 = vld [vmem:[%s12023_s1 + $0x598] sm:$0xf0] }
 0x1af   :  { %3829 = vmatpush.bf16.msrb.mxu0 %v5578_v33  ;;  %3842 = vmatpush.bf16.msrb.mxu1 %v5706_v35  ;;  %v5658_v17 = vor.u32 %v7612_v28, %v5655_v34  ;;  %v5495_v33 = vld [vmem:[%s12023_s1 + $0x458] sm:$0xf0]  ;;  %v7604_v35 = vld [vmem:[%s12023_s1 + $0x54c] sm:$0xf] }
 0x1b0   :  { %3855 = vmatpush.bf16.msrb.mxu2 %v5834_v36  ;;  %3868 = vmatpush.bf16.msrb.mxu3 %v5962_v40  ;;  %v5751_v40 = vld [vmem:[%s12023_s1 + $0x658] sm:$0xf0]  ;;  %v5498_v46 = vor.u32 %v7572_v32, %v5495_v33  ;;  %v7628_v34 = vld [vmem:[%s12023_s1 + $0x60c] sm:$0xf] }
 0x1b1   :  { %3811 = vmatmul.bf16.vlgmr.msra.gmra.mxu2 %v8490_v27  ;;  %3824 = vmatmul.bf16.vlgmr.msra.gmra.mxu3 %v8494_v29  ;;  %v5674_v27 = vor.u32 %v7616_v58, %v5671_v61  ;;  %v8083_v29 = vld [vmem:[%s12024_s2] sm:$0xf]  ;;  %v5754_v55 = vor.u32 %v7636_v39, %v5751_v40  ;;  %v5479_v58 = vld [vmem:[%s12023_s1 + $0x438] sm:$0xf0]  ;;  %v7752_v19 = vld [vmem:[%s12023_s1 + $0x9ec] sm:$0xf] }
 0x1b2   :  { %v551_v9 = vperm.slane %v8083_v29, 2  ;;  %v5463_v8 = vld [vmem:[%s12023_s1 + $0x418] sm:$0xf0]  ;;  %v5738_v29 = vor.u32 %v7632_v3, %v5735_v4  ;;  %v7816_v23 = vld [vmem:[%s12023_s1 + $0xbec] sm:$0xf] }
 0x1b3   :  { %3830 = vmatpush.bf16.msrb.mxu0 %v5562_v49  ;;  %3843 = vmatpush.bf16.msrb.mxu1 %v5690_v50  ;;  %v3580_v50 = vpop.f32.mrf.mxu0  ;;  %v3593_v61 = vpop.f32.mrf.mxu1  ;;  %v5719_v13 = vld [vmem:[%s12023_s1 + $0x618] sm:$0xf0]  ;;  %v7748_v32 = vld [vmem:[%s12023_s1 + $0x9cc] sm:$0xf] }
 0x1b4   :  { %3856 = vmatpush.bf16.msrb.mxu2 %v5818_v53  ;;  %3869 = vmatpush.bf16.msrb.mxu3 %v5946_v59  ;;  %v3579_v48 = vadd.f32 %v3578_v16, %v551_v9  ;;  %v3604_v36 = vpop.f32.mrf.mxu2  ;;  %v3617_v42 = vpop.f32.mrf.mxu3  ;;  %v5626_v53 = vor.u32 %v7604_v35, %v5623_v38  ;;  %v7600_v59 = vld [vmem:[%s12023_s1 + $0x52c] sm:$0xf]  ;;  %v6215_v21 = vld [vmem:[%s12023_s1 + $0x9f8] sm:$0xf0]  ;;  %v5722_v22 = vor.u32 %v7628_v34, %v5719_v13 }
 0x1b5   :  { %v5610_v28 = vor.u32 %v7600_v59, %v5607_v63  ;;  %v7596_v9 = vld [vmem:[%s12023_s1 + $0x50c] sm:$0xf]  ;;  %v6471_v54 = vld [vmem:[%s12023_s1 + $0xbf8] sm:$0xf0] }
 0x1b6   :  { %v3592_v25 = vadd.f32 %v3591_v51, %v3579_v48  ;;  %v7784_v48 = vld [vmem:[%s12023_s1 + $0xaec] sm:$0xf]  ;;  %v6343_v51 = vld [vmem:[%s12023_s1 + $0xaf8] sm:$0xf0]  ;;  %v6474_v33 = vor.u32 %v7816_v23, %v6471_v54 }
 0x1b7   :  { %3831 = vmatpush.bf16.msrb.mxu0 %v5546_v5  ;;  %3844 = vmatpush.bf16.msrb.mxu1 %v5674_v27  ;;  %v7664_v5 = vld [vmem:[%s12023_s1 + $0x72c] sm:$0xf]  ;;  %v5482_v27 = vor.u32 %v7568_v56, %v5479_v58  ;;  %v6199_v35 = vld [vmem:[%s12023_s1 + $0x9d8] sm:$0xf0] }
 0x1b8   :  { %3857 = vmatpush.bf16.msrb.mxu2 %v5802_v7  ;;  %3870 = vmatpush.bf16.msrb.mxu3 %v5930_v10  ;;  %v3605_v41 = vadd.f32 %v3604_v36, %v3592_v25  ;;  %v7564_v7 = vld [vmem:[%s12023_s1 + $0x40c] sm:$0xf]  ;;  %v5591_v10 = vld [vmem:[%s12023_s1 + $0x518] sm:$0xf0]  ;;  %v5866_v12 = vor.u32 %v7664_v5, %v5863_v6  ;;  %v6218_v25 = vor.u32 %v7752_v19, %v6215_v21 }
 0x1b9   :  { %v5466_v20 = vor.u32 %v7564_v7, %v5463_v8  ;;  %v7780_v36 = vld [vmem:[%s12023_s1 + $0xacc] sm:$0xf]  ;;  %v6455_v39 = vld [vmem:[%s12023_s1 + $0xbd8] sm:$0xf0] }
 0x1ba   :  { %v10890_v49 = vadd.f32 %v3617_v42, %v3605_v41  ;;  %v7812_v38 = vld [vmem:[%s12023_s1 + $0xbcc] sm:$0xf]  ;;  %v6202_v41 = vor.u32 %v7748_v32, %v6199_v35  ;;  %v6055_v44 = vld [vmem:[%s12023_s1 + $0x8b8] sm:$0xf0] }
 0x1bb   :  { %3832 = vmatpush.bf16.msrb.mxu0 %v5530_v15  ;;  %3845 = vmatpush.bf16.msrb.mxu1 %v5658_v17  ;;  %v5847_v15 = vld [vmem:[%s12023_s1 + $0x718] sm:$0xf0]  ;;  %v7720_v17 = vld [vmem:[%s12023_s1 + $0x8ec] sm:$0xf]  ;;  %v6458_v50 = vor.u32 %v7812_v38, %v6455_v39 }
 0x1bc   :  { %3858 = vmatpush.bf16.msrb.mxu2 %v5786_v18  ;;  %3871 = vmatpush.bf16.msrb.mxu3 %v5914_v45  ;;  %v3606_v11 = vpop.f32.mrf.mxu2  ;;  %v3619_v16 = vpop.f32.mrf.mxu3  ;;  %v6087_v18 = vld [vmem:[%s12023_s1 + $0x8f8] sm:$0xf0]  ;;  %v5594_v45 = vor.u32 %v7596_v9, %v5591_v10  ;;  %v5850_v47 = vor.u32 %v7660_v14, %v5847_v15  ;;  %v7712_v43 = vld [vmem:[%s12023_s1 + $0x8ac] sm:$0xf] }
 0x1bd   :  { %v6090_v24 = vor.u32 %v7720_v17, %v6087_v18  ;;  %v6311_v56 = vld [vmem:[%s12023_s1 + $0xab8] sm:$0xf0]  ;;  %v7808_v58 = vld [vmem:[%s12023_s1 + $0xbac] sm:$0xf]  ;;  %v6058_v59 = vor.u32 %v7712_v43, %v6055_v44 }
 0x1be   :  { %v7708_v63 = vld [vmem:[%s12023_s1 + $0x88c] sm:$0xf]  ;;  %v6039_v3 = vld [vmem:[%s12023_s1 + $0x898] sm:$0xf0] }
 0x1bf   :  { %3833 = vmatpush.bf16.msrb.mxu0 %v5514_v26  ;;  %3846 = vmatpush.bf16.msrb.mxu1 %v5642_v30  ;;  %v6346_v26 = vor.u32 %v7784_v48, %v6343_v51  ;;  %v7716_v30 = vld [vmem:[%s12023_s1 + $0x8cc] sm:$0xf]  ;;  %v6295_v5 = vld [vmem:[%s12023_s1 + $0xa98] sm:$0xf0]  ;;  %v6042_v7 = vor.u32 %v7708_v63, %v6039_v3 }
 0x1c0   :  { %3859 = vmatpush.bf16.msrb.mxu2 %v5770_v31  ;;  %3872 = vmatpush.bf16.msrb.mxu3 %v5898_v37  ;;  %v6071_v31 = vld [vmem:[%s12023_s1 + $0x8d8] sm:$0xf0]  ;;  %v7772_v4 = vld [vmem:[%s12023_s1 + $0xa8c] sm:$0xf] }
 0x1c1   :  { %v6327_v37 = vld [vmem:[%s12023_s1 + $0xad8] sm:$0xf0]  ;;  %v6074_v40 = vor.u32 %v7716_v30, %v6071_v31  ;;  %v7804_v6 = vld [vmem:[%s12023_s1 + $0xb8c] sm:$0xf] }
 0x1c2   :  { %v6330_v42 = vor.u32 %v7780_v36, %v6327_v37  ;;  %v7704_v9 = vld [vmem:[%s12023_s1 + $0x86c] sm:$0xf]  ;;  %v6023_v10 = vld [vmem:[%s12023_s1 + $0x878] sm:$0xf0] }
 0x1c3   :  { %3834 = vmatpush.bf16.msrb.mxu0 %v5498_v46  ;;  %3847 = vmatpush.bf16.msrb.mxu1 %v5626_v53  ;;  %v7744_v46 = vld [vmem:[%s12023_s1 + $0x9ac] sm:$0xf]  ;;  %v6183_v53 = vld [vmem:[%s12023_s1 + $0x9b8] sm:$0xf0]  ;;  %v6026_v18 = vor.u32 %v7704_v9, %v6023_v10 }
 0x1c4   :  { %3860 = vmatpush.bf16.msrb.mxu2 %v5754_v55  ;;  %3873 = vmatpush.bf16.msrb.mxu3 %v5882_v62  ;;  %v7776_v55 = vld [vmem:[%s12023_s1 + $0xaac] sm:$0xf]  ;;  %v6186_v61 = vor.u32 %v7744_v46, %v6183_v53  ;;  %v6151_v13 = vld [vmem:[%s12023_s1 + $0x978] sm:$0xf0] }
 0x1c5   :  { %v6314_v62 = vor.u32 %v7776_v55, %v6311_v56  ;;  %v7736_v34 = vld [vmem:[%s12023_s1 + $0x96c] sm:$0xf]  ;;  %v6279_v15 = vld [vmem:[%s12023_s1 + $0xa78] sm:$0xf0] }
 0x1c6   :  { %v7768_v14 = vld [vmem:[%s12023_s1 + $0xa6c] sm:$0xf]  ;;  %v6407_v17 = vld [vmem:[%s12023_s1 + $0xb78] sm:$0xf0]  ;;  %v6154_v19 = vor.u32 %v7736_v34, %v6151_v13 }
 0x1c7   :  { %3835 = vmatpush.bf16.msrb.mxu0 %v5482_v27  ;;  %3848 = vmatpush.bf16.msrb.mxu1 %v5610_v28  ;;  %v6423_v27 = vld [vmem:[%s12023_s1 + $0xb98] sm:$0xf0]  ;;  %v7800_v16 = vld [vmem:[%s12023_s1 + $0xb6c] sm:$0xf] }
 0x1c8   :  { %3861 = vmatpush.bf16.msrb.mxu2 %v5738_v29  ;;  %3874 = vmatpush.bf16.msrb.mxu3 %v5866_v12  ;;  %v6298_v29 = vor.u32 %v7772_v4, %v6295_v5  ;;  %v6426_v12 = vor.u32 %v7804_v6, %v6423_v27  ;;  %v7700_v21 = vld [vmem:[%s12023_s1 + $0x84c] sm:$0xf]  ;;  %v6007_v48 = vld [vmem:[%s12023_s1 + $0x858] sm:$0xf0] }
 0x1c9   :  { %v7732_v51 = vld [vmem:[%s12023_s1 + $0x94c] sm:$0xf]  ;;  %v6135_v23 = vld [vmem:[%s12023_s1 + $0x958] sm:$0xf0]  ;;  %v6010_v30 = vor.u32 %v7700_v21, %v6007_v48 }
 0x1ca   :  { %v7764_v54 = vld [vmem:[%s12023_s1 + $0xa4c] sm:$0xf]  ;;  %v6138_v32 = vor.u32 %v7732_v51, %v6135_v23  ;;  %v5991_v36 = vld [vmem:[%s12023_s1 + $0x838] sm:$0xf0] }
 0x1cb   :  { %3836 = vmatpush.bf16.msrb.mxu0 %v5466_v20  ;;  %3849 = vmatpush.bf16.msrb.mxu1 %v5594_v45  ;;  %v11040_v8 = vpop.f32.mrf.mxu0  ;;  %v11051_v11 = vpop.f32.mrf.mxu1  ;;  %v6282_v20 = vor.u32 %v7768_v14, %v6279_v15  ;;  %v7696_v35 = vld [vmem:[%s12023_s1 + $0x82c] sm:$0xf]  ;;  %v6375_v44 = vld [vmem:[%s12023_s1 + $0xb38] sm:$0xf0] }
 0x1cc   :  { %3862 = vmatpush.bf16.msrb.mxu2 %v5722_v22  ;;  %3875 = vmatpush.bf16.msrb.mxu3 %v5850_v47  ;;  %v6410_v22 = vor.u32 %v7800_v16, %v6407_v17  ;;  %v6263_v47 = vld [vmem:[%s12023_s1 + $0xa58] sm:$0xf0]  ;;  %v7728_v37 = vld [vmem:[%s12023_s1 + $0x92c] sm:$0xf]  ;;  %v5994_v46 = vor.u32 %v7696_v35, %v5991_v36 }
 0x1cd   :  { %v7792_v43 = vld [vmem:[%s12023_s1 + $0xb2c] sm:$0xf]  ;;  %v5975_v53 = vld [vmem:[%s12023_s1 + $0x818] sm:$0xf0] }
 0x1ce   :  { %3837 = vmatmul.bf16.vlgmr.msrb.gmra.mxu0 %v8570_v0  ;;  %3850 = vmatmul.bf16.vlgmr.msrb.gmra.mxu1 %v8574_v2  ;;  %v7740_v0 = vld [vmem:[%s12023_s1 + $0x98c] sm:$0xf]  ;;  %v6167_v2 = vld [vmem:[%s12023_s1 + $0x998] sm:$0xf0] }
 0x1cf   :  { %3881 = vmatpush.bf16.msra.mxu0 %v6090_v24  ;;  %3894 = vmatpush.bf16.msra.mxu1 %v6218_v25  ;;  %v6170_v28 = vor.u32 %v7740_v0, %v6167_v2  ;;  %v7796_v25 = vld [vmem:[%s12023_s1 + $0xb4c] sm:$0xf]  ;;  %v6231_v63 = vld [vmem:[%s12023_s1 + $0xa18] sm:$0xf0] }
 0x1d0   :  { %3907 = vmatpush.bf16.msra.mxu2 %v6346_v26  ;;  %3920 = vmatpush.bf16.msra.mxu3 %v6474_v33  ;;  %v6391_v26 = vld [vmem:[%s12023_s1 + $0xb58] sm:$0xf0]  ;;  %v6266_v33 = vor.u32 %v7764_v54, %v6263_v47  ;;  %v7788_v3 = vld [vmem:[%s12023_s1 + $0xb0c] sm:$0xf] }
 0x1d1   :  { %3863 = vmatmul.bf16.vlgmr.msrb.gmra.mxu2 %v8565_v60  ;;  %v6439_v60 = vld [vmem:[%s12023_s1 + $0xbb8] sm:$0xf0]  ;;  %3876 = vmatmul.bf16.vlgmr.msrb.gmra.mxu3 %v8572_v1  ;;  %v6394_v39 = vor.u32 %v7796_v25, %v6391_v26  ;;  %v7848_v2 = vld [vmem:[%s12023_s1 + $0xcec] sm:$0xf] }
 0x1d2   :  { %v6442_v1 = vor.u32 %v7808_v58, %v6439_v60  ;;  %v7724_v58 = vld [vmem:[%s12023_s1 + $0x90c] sm:$0xf]  ;;  %v6103_v60 = vld [vmem:[%s12023_s1 + $0x918] sm:$0xf0] }
 0x1d3   :  { %3882 = vmatpush.bf16.msra.mxu0 %v6074_v40  ;;  %3895 = vmatpush.bf16.msra.mxu1 %v6202_v41  ;;  %v3632_v31 = vpop.f32.mrf.mxu0  ;;  %v3645_v38 = vpop.f32.mrf.mxu1  ;;  %v6119_v40 = vld [vmem:[%s12023_s1 + $0x938] sm:$0xf0]  ;;  %v7760_v41 = vld [vmem:[%s12023_s1 + $0xa2c] sm:$0xf] }
 0x1d4   :  { %3908 = vmatpush.bf16.msra.mxu2 %v6330_v42  ;;  %3921 = vmatpush.bf16.msra.mxu3 %v6458_v50  ;;  %v11077_v45 = vpop.f32.mrf.mxu2  ;;  %v11088_v24 = vpop.f32.mrf.mxu3  ;;  %v6247_v42 = vld [vmem:[%s12023_s1 + $0xa38] sm:$0xf0]  ;;  %v7692_v50 = vld [vmem:[%s12023_s1 + $0x80c] sm:$0xf]  ;;  %v6122_v55 = vor.u32 %v7728_v37, %v6119_v40  ;;  %v8084_v31 = vld [vmem:[#allocation1] sm:$0xff] }
 0x1d5   :  { %v6250_v56 = vor.u32 %v7760_v41, %v6247_v42  ;;  %v6359_v0 = vld [vmem:[%s12023_s1 + $0xb18] sm:$0xf0]  ;;  %v7880_v5 = vld [vmem:[%s12023_s1 + $0xdec] sm:$0xf]  ;;  %v5978_v6 = vor.u32 %v7692_v50, %v5975_v53  ;;  %v8085_v37 = vld [vmem:[#allocation1 + $0x12] sm:$0xff] }
 0x1d6   :  { %v6599_v4 = vld [vmem:[%s12023_s1 + $0xcf8] sm:$0xf0]  ;;  %v7944_v10 = vld [vmem:[%s12023_s1 + $0xfec] sm:$0xf] }
 0x1d7   :  { %3883 = vmatpush.bf16.msra.mxu0 %v6058_v59  ;;  %3896 = vmatpush.bf16.msra.mxu1 %v6186_v61  ;;  %v7756_v59 = vld [vmem:[%s12023_s1 + $0xa0c] sm:$0xf]  ;;  %v6727_v27 = vld [vmem:[%s12023_s1 + $0xdf8] sm:$0xf0]  ;;  %v6602_v13 = vor.u32 %v7848_v2, %v6599_v4 }
 0x1d8   :  { %3909 = vmatpush.bf16.msra.mxu2 %v6314_v62  ;;  %3922 = vmatpush.bf16.msra.mxu3 %v6442_v1  ;;  %v6378_v62 = vor.u32 %v7792_v43, %v6375_v44  ;;  %v6234_v9 = vor.u32 %v7756_v59, %v6231_v63  ;;  %v6983_v34 = vld [vmem:[%s12023_s1 + $0xff8] sm:$0xf0]  ;;  %v6730_v14 = vor.u32 %v7880_v5, %v6727_v27  ;;  %v7844_v16 = vld [vmem:[%s12023_s1 + $0xccc] sm:$0xf] }
 0x1d9   :  { %v6583_v17 = vld [vmem:[%s12023_s1 + $0xcd8] sm:$0xf0]  ;;  %v7908_v21 = vld [vmem:[%s12023_s1 + $0xecc] sm:$0xf] }
 0x1da   :  { %v6839_v48 = vld [vmem:[%s12023_s1 + $0xed8] sm:$0xf0]  ;;  %v7940_v51 = vld [vmem:[%s12023_s1 + $0xfcc] sm:$0xf]  ;;  %v6586_v23 = vor.u32 %v7844_v16, %v6583_v17 }
 0x1db   :  { %3884 = vmatpush.bf16.msra.mxu0 %v6042_v7  ;;  %3897 = vmatpush.bf16.msra.mxu1 %v6170_v28  ;;  %v7912_v7 = vld [vmem:[%s12023_s1 + $0xeec] sm:$0xf]  ;;  %v6855_v28 = vld [vmem:[%s12023_s1 + $0xef8] sm:$0xf0]  ;;  %v6842_v47 = vor.u32 %v7908_v21, %v6839_v48 }
 0x1dc   :  { %3910 = vmatpush.bf16.msra.mxu2 %v6298_v29  ;;  %3923 = vmatpush.bf16.msra.mxu3 %v6426_v12  ;;  %v3658_v61 = vpop.f32.mrf.mxu2  ;;  %v3671_v1 = vpop.f32.mrf.mxu3  ;;  %v6106_v29 = vor.u32 %v7724_v58, %v6103_v60  ;;  %v6362_v12 = vor.u32 %v7788_v3, %v6359_v0  ;;  %v6858_v15 = vor.u32 %v7912_v7, %v6855_v28  ;;  %v7840_v25 = vld [vmem:[%s12023_s1 + $0xcac] sm:$0xf]  ;;  %v6567_v26 = vld [vmem:[%s12023_s1 + $0xcb8] sm:$0xf0] }
 0x1dd   :  { %v7904_v35 = vld [vmem:[%s12023_s1 + $0xeac] sm:$0xf]  ;;  %v6823_v36 = vld [vmem:[%s12023_s1 + $0xeb8] sm:$0xf0]  ;;  %v6570_v42 = vor.u32 %v7840_v25, %v6567_v26 }
 0x1de   :  { %v8086_v38 = vld [vmem:[#allocation1 + $0x9] sm:$0xff]  ;;  %v6951_v40 = vld [vmem:[%s12023_s1 + $0xfb8] sm:$0xf0]  ;;  %v6826_v44 = vor.u32 %v7904_v35, %v6823_v36 }
 0x1df   :  { %3885 = vmatpush.bf16.msra.mxu0 %v6026_v18  ;;  %3898 = vmatpush.bf16.msra.mxu1 %v6154_v19  ;;  %v7876_v18 = vld [vmem:[%s12023_s1 + $0xdcc] sm:$0xf]  ;;  %v6986_v19 = vor.u32 %v7944_v10, %v6983_v34  ;;  %v8087_v41 = vld [vmem:[#allocation1 + $0x1b] sm:$0xff] }
 0x1e0   :  { %3911 = vmatpush.bf16.msra.mxu2 %v6282_v20  ;;  %3924 = vmatpush.bf16.msra.mxu3 %v6410_v22  ;;  %v6711_v20 = vld [vmem:[%s12023_s1 + $0xdd8] sm:$0xf0]  ;;  %v7868_v53 = vld [vmem:[%s12023_s1 + $0xd8c] sm:$0xf] }
 0x1e1   :  { %v6967_v22 = vld [vmem:[%s12023_s1 + $0xfd8] sm:$0xf0]  ;;  %v6714_v54 = vor.u32 %v7876_v18, %v6711_v20  ;;  %v7900_v58 = vld [vmem:[%s12023_s1 + $0xe8c] sm:$0xf] }
 0x1e2   :  { %v6551_v50 = vld [vmem:[%s12023_s1 + $0xc98] sm:$0xf0]  ;;  %v7932_v61 = vld [vmem:[%s12023_s1 + $0xf8c] sm:$0xf] }
 0x1e3   :  { %3886 = vmatpush.bf16.msra.mxu0 %v6010_v30  ;;  %3899 = vmatpush.bf16.msra.mxu1 %v6138_v32  ;;  %v7872_v30 = vld [vmem:[%s12023_s1 + $0xdac] sm:$0xf]  ;;  %v6970_v32 = vor.u32 %v7940_v51, %v6967_v22  ;;  %v6807_v60 = vld [vmem:[%s12023_s1 + $0xe98] sm:$0xf0] }
 0x1e4   :  { %3912 = vmatpush.bf16.msra.mxu2 %v6266_v33  ;;  %3925 = vmatpush.bf16.msra.mxu3 %v6394_v39  ;;  %v6695_v33 = vld [vmem:[%s12023_s1 + $0xdb8] sm:$0xf0]  ;;  %v7936_v39 = vld [vmem:[%s12023_s1 + $0xfac] sm:$0xf]  ;;  %v6810_v1 = vor.u32 %v7900_v58, %v6807_v60  ;;  %v7045_v60 = vld [vmem:[%s12025_s3 + $0x70] sm:$0xf] }
 0x1e5   :  { %v6698_v43 = vor.u32 %v7872_v30, %v6695_v33  ;;  %v7832_v2 = vld [vmem:[%s12023_s1 + $0xc6c] sm:$0xf]  ;;  %v6535_v4 = vld [vmem:[%s12023_s1 + $0xc78] sm:$0xf0] }
 0x1e6   :  { %v7864_v5 = vld [vmem:[%s12023_s1 + $0xd6c] sm:$0xf]  ;;  %v6663_v27 = vld [vmem:[%s12023_s1 + $0xd78] sm:$0xf0]  ;;  %v6538_v10 = vor.u32 %v7832_v2, %v6535_v4  ;;  %v7978_v2 = vld [vmem:[%s12025_s3 + $0xf4] sm:$0xf0] }
 0x1e7   :  { %3887 = vmatpush.bf16.msra.mxu0 %v5994_v46  ;;  %3900 = vmatpush.bf16.msra.mxu1 %v6122_v55  ;;  %v7836_v46 = vld [vmem:[%s12023_s1 + $0xc8c] sm:$0xf]  ;;  %v6954_v55 = vor.u32 %v7936_v39, %v6951_v40  ;;  %v6791_v28 = vld [vmem:[%s12023_s1 + $0xe78] sm:$0xf0]  ;;  %v6666_v34 = vor.u32 %v7864_v5, %v6663_v27  ;;  %v7173_v4 = vld [vmem:[%s12025_s3 + $0x170] sm:$0xf] }
 0x1e8   :  { %3913 = vmatpush.bf16.msra.mxu2 %v6250_v56  ;;  %3926 = vmatpush.bf16.msra.mxu3 %v6378_v62  ;;  %v6679_v56 = vld [vmem:[%s12023_s1 + $0xd98] sm:$0xf0]  ;;  %v6554_v63 = vor.u32 %v7836_v46, %v6551_v50  ;;  %v7896_v7 = vld [vmem:[%s12023_s1 + $0xe6c] sm:$0xf]  ;;  %v7994_v5 = vld [vmem:[%s12025_s3 + $0x174] sm:$0xf0] }
 0x1e9   :  { %v6935_v62 = vld [vmem:[%s12023_s1 + $0xf98] sm:$0xf0]  ;;  %v6682_v0 = vor.u32 %v7868_v53, %v6679_v56  ;;  %v7924_v48 = vld [vmem:[%s12023_s1 + $0xf4c] sm:$0xf] }
 0x1ea   :  { %v6647_v18 = vld [vmem:[%s12023_s1 + $0xd58] sm:$0xf0]  ;;  %v7824_v30 = vld [vmem:[%s12023_s1 + $0xc2c] sm:$0xf] }
 0x1eb   :  { %3888 = vmatpush.bf16.msra.mxu0 %v5978_v6  ;;  %3901 = vmatpush.bf16.msra.mxu1 %v6106_v29  ;;  %v11234_v59 = vpop.f32.mrf.mxu0  ;;  %v11242_v3 = vpop.f32.mrf.mxu1  ;;  %v6938_v6 = vor.u32 %v7932_v61, %v6935_v62  ;;  %v7928_v29 = vld [vmem:[%s12023_s1 + $0xf6c] sm:$0xf]  ;;  %v6775_v20 = vld [vmem:[%s12023_s1 + $0xe58] sm:$0xf0]  ;;  %v7962_v61 = vld [vmem:[%s12025_s3 + $0x74] sm:$0xf0] }
 0x1ec   :  { %3914 = vmatpush.bf16.msra.mxu2 %v6234_v9  ;;  %3927 = vmatpush.bf16.msra.mxu3 %v6362_v12  ;;  %v6919_v9 = vld [vmem:[%s12023_s1 + $0xf78] sm:$0xf0]  ;;  %v6794_v12 = vor.u32 %v7896_v7, %v6791_v28  ;;  %v7888_v33 = vld [vmem:[%s12023_s1 + $0xe2c] sm:$0xf]  ;;  %v7109_v62 = vld [vmem:[%s12025_s3 + $0xf0] sm:$0xf]  ;;  %v7046_v7 = vor.u32 %v7962_v61, %v7045_v60 }
 0x1ed   :  { %v6922_v16 = vor.u32 %v7928_v29, %v6919_v9  ;;  %v6903_v51 = vld [vmem:[%s12023_s1 + $0xf58] sm:$0xf0]  ;;  %v7920_v36 = vld [vmem:[%s12023_s1 + $0xf2c] sm:$0xf]  ;;  %v7110_v28 = vor.u32 %v7978_v2, %v7109_v62  ;;  %v7174_v29 = vor.u32 %v7994_v5, %v7173_v4  ;;  %v7037_v9 = vld [vmem:[%s12025_s3 + $0x60] sm:$0xf] }
 0x1ee   :  { %3889 = vmatmul.bf16.vlgmr.msra.gmra.mxu0 %v8084_v31  ;;  %3902 = vmatmul.bf16.vlgmr.msra.gmra.mxu1 %v8086_v38  ;;  %v6503_v31 = vld [vmem:[%s12023_s1 + $0xc38] sm:$0xf0]  ;;  %v7820_v40 = vld [vmem:[%s12023_s1 + $0xc0c] sm:$0xf]  ;;  %v7952_v62 = vld [vmem:[%s12025_s3 + $0x24] sm:$0xf0] }
 0x1ef   :  { %3933 = vmatpush.bf16.msrb.mxu0 %v6602_v13  ;;  %3946 = vmatpush.bf16.msrb.mxu1 %v6730_v14  ;;  %v7828_v13 = vld [vmem:[%s12023_s1 + $0xc4c] sm:$0xf]  ;;  %v6519_v14 = vld [vmem:[%s12023_s1 + $0xc58] sm:$0xf0]  ;;  %v6506_v39 = vor.u32 %v7824_v30, %v6503_v31  ;;  %v7133_v2 = vld [vmem:[%s12025_s3 + $0x120] sm:$0xf] }
 0x1f0   :  { %3959 = vmatpush.bf16.msrb.mxu2 %v6858_v15  ;;  %3972 = vmatpush.bf16.msrb.mxu3 %v6986_v19  ;;  %v7860_v15 = vld [vmem:[%s12023_s1 + $0xd4c] sm:$0xf]  ;;  %v6759_v35 = vld [vmem:[%s12023_s1 + $0xe38] sm:$0xf0]  ;;  %v7984_v4 = vld [vmem:[%s12025_s3 + $0x124] sm:$0xf0] }
 0x1f1   :  { %3915 = vmatmul.bf16.vlgmr.msra.gmra.mxu2 %v8085_v37  ;;  %3928 = vmatmul.bf16.vlgmr.msra.gmra.mxu3 %v8087_v41  ;;  %v7892_v19 = vld [vmem:[%s12023_s1 + $0xe4c] sm:$0xf]  ;;  %v6650_v25 = vor.u32 %v7860_v15, %v6647_v18  ;;  %v6887_v37 = vld [vmem:[%s12023_s1 + $0xf38] sm:$0xf0]  ;;  %v7992_v15 = vld [vmem:[%s12025_s3 + $0x164] sm:$0xf0] }
 0x1f2   :  { %v6778_v26 = vor.u32 %v7892_v19, %v6775_v20  ;;  %v6487_v41 = vld [vmem:[%s12023_s1 + $0xc18] sm:$0xf0]  ;;  %v7884_v46 = vld [vmem:[%s12023_s1 + $0xe0c] sm:$0xf]  ;;  %v6890_v50 = vor.u32 %v7920_v36, %v6887_v37  ;;  %v7029_v20 = vld [vmem:[%s12025_s3 + $0x50] sm:$0xf] }
 0x1f3   :  { %3934 = vmatpush.bf16.msrb.mxu0 %v6586_v23  ;;  %3947 = vmatpush.bf16.msrb.mxu1 %v6714_v54  ;;  %v3684_v22 = vpop.f32.mrf.mxu0  ;;  %v3631_v23 = vadd.f32 %v11040_v8, %v10890_v49  ;;  %v6522_v54 = vor.u32 %v7828_v13, %v6519_v14  ;;  %v6906_v49 = vor.u32 %v7924_v48, %v6903_v51  ;;  %v6631_v8 = vld [vmem:[%s12023_s1 + $0xd38] sm:$0xf0]  ;;  %v7976_v13 = vld [vmem:[%s12025_s3 + $0xe4] sm:$0xf0]  ;;  %v7165_v14 = vld [vmem:[%s12025_s3 + $0x160] sm:$0xf] }
 0x1f4   :  { %3960 = vmatpush.bf16.msrb.mxu2 %v6842_v47  ;;  %3973 = vmatpush.bf16.msrb.mxu3 %v6970_v32  ;;  %v11277_v17 = vpop.f32.mrf.mxu2  ;;  %v11288_v21 = vpop.f32.mrf.mxu3  ;;  %v7856_v32 = vld [vmem:[%s12023_s1 + $0xd2c] sm:$0xf]  ;;  %v6743_v53 = vld [vmem:[%s12023_s1 + $0xe18] sm:$0xf0]  ;;  %v7166_v19 = vor.u32 %v7992_v15, %v7165_v14  ;;  %v7958_v48 = vld [vmem:[%s12025_s3 + $0x54] sm:$0xf0] }
 0x1f5   :  { %v3697_v47 = vpop.f32.mrf.mxu1  ;;  %v3644_v38 = vadd.f32 %v11051_v11, %v3631_v23  ;;  %v6615_v11 = vld [vmem:[%s12023_s1 + $0xd18] sm:$0xf0]  ;;  %v6746_v27 = vor.u32 %v7884_v46, %v6743_v53  ;;  %v7093_v51 = vld [vmem:[%s12025_s3 + $0xd0] sm:$0xf]  ;;  %v7974_v23 = vld [vmem:[%s12025_s3 + $0xd4] sm:$0xf0]  ;;  %v7030_v31 = vor.u32 %v7958_v48, %v7029_v20 }
 0x1f6   :  { %v6871_v56 = vld [vmem:[%s12023_s1 + $0xf18] sm:$0xf0]  ;;  %v8089_v22 = vld [vmem:[#allocation1 + $0x2d] sm:$0xff]  ;;  %v7990_v47 = vld [vmem:[%s12025_s3 + $0x154] sm:$0xf0] }
 0x1f7   :  { %3935 = vmatpush.bf16.msrb.mxu0 %v6570_v42  ;;  %3948 = vmatpush.bf16.msrb.mxu1 %v6698_v43  ;;  %v6634_v42 = vor.u32 %v7856_v32, %v6631_v8  ;;  %v6762_v43 = vor.u32 %v7888_v33, %v6759_v35  ;;  %v7094_v32 = vor.u32 %v7974_v23, %v7093_v51  ;;  %v7021_v8 = vld [vmem:[%s12025_s3 + $0x40] sm:$0xf]  ;;  %v7956_v33 = vld [vmem:[%s12025_s3 + $0x44] sm:$0xf0]  ;;  %v7141_v53 = vld [vmem:[%s12025_s3 + $0x130] sm:$0xf] }
 0x1f8   :  { %3961 = vmatpush.bf16.msrb.mxu2 %v6826_v44  ;;  %3974 = vmatpush.bf16.msrb.mxu3 %v6954_v55  ;;  %v7852_v44 = vld [vmem:[%s12023_s1 + $0xd0c] sm:$0xf]  ;;  %v7085_v35 = vld [vmem:[%s12025_s3 + $0xc0] sm:$0xf]  ;;  %v7972_v36 = vld [vmem:[%s12025_s3 + $0xc4] sm:$0xf0] }
 0x1f9   :  { %v7916_v55 = vld [vmem:[%s12023_s1 + $0xf0c] sm:$0xf]  ;;  %v7149_v37 = vld [vmem:[%s12025_s3 + $0x140] sm:$0xf]  ;;  %v7125_v14 = vld [vmem:[%s12025_s3 + $0x110] sm:$0xf] }
 0x1fa   :  { %v7982_v15 = vld [vmem:[%s12025_s3 + $0x114] sm:$0xf0]  ;;  %v7948_v20 = vld [vmem:[%s12025_s3 + $0x4] sm:$0xf0]  ;;  %v7053_v48 = vld [vmem:[%s12025_s3 + $0x80] sm:$0xf] }
 0x1fb   :  { %3936 = vmatpush.bf16.msrb.mxu0 %v6554_v63  ;;  %3949 = vmatpush.bf16.msrb.mxu1 %v6682_v0  ;;  %v3657_v0 = vadd.f32 %v11077_v45, %v3644_v38  ;;  %v6874_v45 = vor.u32 %v7916_v55, %v6871_v56  ;;  %v7988_v38 = vld [vmem:[%s12025_s3 + $0x144] sm:$0xf0]  ;;  %v7986_v55 = vld [vmem:[%s12025_s3 + $0x134] sm:$0xf0]  ;;  %s4930_s1 = sshll.u32 %s12031_s9, 4  ;;  %s4931_s1 = int_to_ptr.hbm [resolvable:$true] %s4930_s1 }
 0x1fc   :  { %3962 = vmatpush.bf16.msrb.mxu2 %v6810_v1  ;;  %3975 = vmatpush.bf16.msrb.mxu3 %v6938_v6  ;;  %v3710_v58 = vpop.f32.mrf.mxu2  ;;  %v3723_v63 = vpop.f32.mrf.mxu3  ;;  %v6490_v1 = vor.u32 %v7820_v40, %v6487_v41  ;;  %v6618_v6 = vor.u32 %v7852_v44, %v6615_v11  ;;  %v7022_v40 = vor.u32 %v7956_v33, %v7021_v8  ;;  %v7954_v44 = vld [vmem:[%s12025_s3 + $0x34] sm:$0xf0]  ;;  %v7077_v11 = vld [vmem:[%s12025_s3 + $0xb0] sm:$0xf]  ;;  %v7964_v51 = vld [vmem:[%s12025_s3 + $0x84] sm:$0xf0] }
 0x1fd   :  { %v7142_v61 = vor.u32 %v7986_v55, %v7141_v53  ;;  %v7069_v63 = vld [vmem:[%s12025_s3 + $0xa0] sm:$0xf]  ;;  %v7980_v23 = vld [vmem:[%s12025_s3 + $0x104] sm:$0xf0]  ;;  %v7175_v8 = vld [vmem:[%s12025_s3 + $0x178] sm:$0xf0] }
 0x1fe   :  { %v3985_v33 = vmax.f32 %v9899_v52, 0.0  ;;  %v7975_v52 = vld [vmem:[%s12025_s3 + $0xe4] sm:$0xf]  ;;  %v7957_v55 = vld [vmem:[%s12025_s3 + $0x54] sm:$0xf] }
 0x1ff   :  { %3937 = vmatpush.bf16.msrb.mxu0 %v6538_v10  ;;  %3950 = vmatpush.bf16.msrb.mxu1 %v6666_v34  ;;  %v7960_v10 = vld [vmem:[%s12025_s3 + $0x64] sm:$0xf0]  ;;  %v7101_v34 = vld [vmem:[%s12025_s3 + $0xe0] sm:$0xf] }
 0x200   :  { %3963 = vmatpush.bf16.msrb.mxu2 %v6794_v12  ;;  %3976 = vmatpush.bf16.msrb.mxu3 %v6922_v16  ;;  %v3670_v12 = vadd.f32 %v11088_v24, %v3657_v0  ;;  %v7038_v24 = vor.u32 %v7960_v10, %v7037_v9  ;;  %v7102_v18 = vor.u32 %v7976_v13, %v7101_v34  ;;  %v6997_v9 = vld [vmem:[%s12025_s3 + $0x10] sm:$0xf]  ;;  %v7950_v10 = vld [vmem:[%s12025_s3 + $0x14] sm:$0xf0] }
 0x201   :  { %v7061_v34 = vld [vmem:[%s12025_s3 + $0x90] sm:$0xf]  ;;  %v7966_v13 = vld [vmem:[%s12025_s3 + $0x94] sm:$0xf0] }
 0x202   :  { %v3683_v16 = vadd.f32 %v11234_v59, %v3670_v12  ;;  %v8088_v59 = vld [vmem:[#allocation1 + $0x24] sm:$0xff] }
 0x203   :  { %3938 = vmatpush.bf16.msrb.mxu0 %v6522_v54  ;;  %3951 = vmatpush.bf16.msrb.mxu1 %v6650_v25  ;;  %v7157_v54 = vld [vmem:[%s12025_s3 + $0x150] sm:$0xf]  ;;  %v8090_v25 = vld [vmem:[#allocation1 + $0x36] sm:$0xff] }
 0x204   :  { %3964 = vmatpush.bf16.msrb.mxu2 %v6778_v26  ;;  %3977 = vmatpush.bf16.msrb.mxu3 %v6906_v49  ;;  %v8091_v26 = vld [vmem:[#allocation1 + $0x3f] sm:$0xff]  ;;  %v3696_v30 = vadd.f32 %v11242_v3, %v3683_v16  ;;  %v7158_v49 = vor.u32 %v7990_v47, %v7157_v54  ;;  %v6998_v16 = vor.u32 %v7950_v10, %v6997_v9  ;;  %v7961_v54 = vld [vmem:[%s12025_s3 + $0x74] sm:$0xf] }
 0x205   :  { %v7953_v10 = vld [vmem:[%s12025_s3 + $0x34] sm:$0xf] }
 0x206   :  { %v3709_v3 = vadd.f32 %v11277_v17, %v3696_v30  ;;  %v7150_v17 = vor.u32 %v7988_v38, %v7149_v37  ;;  %v7111_v30 = vld [vmem:[%s12025_s3 + $0xf8] sm:$0xf0] }
 0x207   :  { %3939 = vmatpush.bf16.msrb.mxu0 %v6506_v39  ;;  %3952 = vmatpush.bf16.msrb.mxu1 %v6634_v42  ;;  %v7086_v42 = vor.u32 %v7972_v36, %v7085_v35  ;;  %v3986_v35 = vmax.f32 %v10689_v57, 0.0  ;;  %v7103_v57 = vld [vmem:[%s12025_s3 + $0xe8] sm:$0xf0] }
 0x208   :  { %3965 = vmatpush.bf16.msrb.mxu2 %v6762_v43  ;;  %3978 = vmatpush.bf16.msrb.mxu3 %v6890_v50  ;;  %v7013_v43 = vld [vmem:[%s12025_s3 + $0x30] sm:$0xf]  ;;  %v3722_v46 = vadd.f32 %v11288_v21, %v3709_v3  ;;  %v7970_v50 = vld [vmem:[%s12025_s3 + $0xb4] sm:$0xf0]  ;;  %v7005_v21 = vld [vmem:[%s12025_s3 + $0x20] sm:$0xf]  ;;  %v7054_v3 = vor.u32 %v7964_v51, %v7053_v48  ;;  %v7106_v53 = vor.u32 %v7975_v52, %v7103_v57 }
 0x209   :  { %v7014_v58 = vor.u32 %v7954_v44, %v7013_v43  ;;  %v7078_v60 = vor.u32 %v7970_v50, %v7077_v11  ;;  %v7167_v43 = vld [vmem:[%s12025_s3 + $0x168] sm:$0xf0]  ;;  %v11535_v44 = vpack.c.bf16 %v3985_v33, %v3985_v33  ;;  %v11537_v11 = vpack.c.bf16 %v3986_v35, %v3986_v35  ;;  %v7949_v33 = vld [vmem:[%s12025_s3 + $0x14] sm:$0xf] }
 0x20b   :  { %3940 = vmatpush.bf16.msrb.mxu0 %v6490_v1  ;;  %3953 = vmatpush.bf16.msrb.mxu1 %v6618_v6  ;;  %v3734_v39 = vpop.f32.mrf.mxu0  ;;  %v3747_v41 = vpop.f32.mrf.mxu1  ;;  %v7968_v1 = vld [vmem:[%s12025_s3 + $0xa4] sm:$0xf0] }
 0x20c   :  { %3966 = vmatpush.bf16.msrb.mxu2 %v6746_v27  ;;  %3979 = vmatpush.bf16.msrb.mxu3 %v6874_v45  ;;  %v3735_v56 = vadd.f32 %v3734_v39, %v3722_v46  ;;  %v7006_v45 = vor.u32 %v7952_v62, %v7005_v21  ;;  %v7989_v21 = vld [vmem:[%s12025_s3 + $0x154] sm:$0xf]  ;;  %v7159_v62 = vld [vmem:[%s12025_s3 + $0x158] sm:$0xf0] }
 0x20e   :  { %3941 = vmatmul.bf16.vlgmr.msrb.gmra.mxu0 %v8088_v59  ;;  %3954 = vmatmul.bf16.vlgmr.msrb.gmra.mxu1 %v8089_v22  ;;  %v3748_v27 = vadd.f32 %v3747_v41, %v3735_v56  ;;  %v7117_v22 = vld [vmem:[%s12025_s3 + $0x100] sm:$0xf] }
 0x20f   :  { %4383 = vmatpush.bf16.msra.mxu0 %v7046_v7  ;;  %4396 = vmatpush.bf16.msra.mxu1 %v7110_v28  ;;  %v7070_v28 = vor.u32 %v7968_v1, %v7069_v63  ;;  %v7118_v36 = vor.u32 %v7980_v23, %v7117_v22  ;;  %v7955_v1 = vld [vmem:[%s12025_s3 + $0x44] sm:$0xf]  ;;  %v7007_v23 = vld [vmem:[%s12025_s3 + $0x28] sm:$0xf0] }
 0x210   :  { %4409 = vmatpush.bf16.msra.mxu2 %v7174_v29  ;;  %3980 = vmatmul.bf16.vlgmr.msrb.gmra.mxu3 %v8091_v26  ;;  %v7134_v29 = vor.u32 %v7984_v4, %v7133_v2  ;;  %v7977_v26 = vld [vmem:[%s12025_s3 + $0xf4] sm:$0xf]  ;;  %v7023_v2 = vld [vmem:[%s12025_s3 + $0x48] sm:$0xf0]  ;;  %v7162_v4 = vor.u32 %v7989_v21, %v7159_v62 }
 0x211   :  { %3967 = vmatmul.bf16.vlgmr.msrb.gmra.mxu2 %v8090_v25  ;;  %v7047_v25 = vld [vmem:[%s12025_s3 + $0x78] sm:$0xf0]  ;;  %v7114_v39 = vor.u32 %v7977_v26, %v7111_v30  ;;  %v7983_v26 = vld [vmem:[%s12025_s3 + $0x124] sm:$0xf]  ;;  %v7135_v30 = vld [vmem:[%s12025_s3 + $0x128] sm:$0xf0] }
 0x212   :  { %v7050_v38 = vor.u32 %v7961_v54, %v7047_v25  ;;  %v7967_v54 = vld [vmem:[%s12025_s3 + $0xa4] sm:$0xf] }
 0x213   :  { %4384 = vmatpush.bf16.msra.mxu0 %v7038_v24  ;;  %4397 = vmatpush.bf16.msra.mxu1 %v7102_v18  ;;  %v3736_v6 = vpop.f32.mrf.mxu0  ;;  %v3749_v7 = vpop.f32.mrf.mxu1  ;;  %v6989_v24 = vld [vmem:[%s12025_s3] sm:$0xf]  ;;  %v7062_v18 = vor.u32 %v7966_v13, %v7061_v34  ;;  %v7015_v13 = vld [vmem:[%s12025_s3 + $0x38] sm:$0xf0] }
 0x214   :  { %4410 = vmatpush.bf16.msra.mxu2 %v7166_v19  ;;  %v3760_v0 = vpop.f32.mrf.mxu2  ;;  %v3773_v5 = vpop.f32.mrf.mxu3  ;;  %v7126_v19 = vor.u32 %v7982_v15, %v7125_v14  ;;  %v7087_v6 = vld [vmem:[%s12025_s3 + $0xc8] sm:$0xf0]  ;;  %v7987_v7 = vld [vmem:[%s12025_s3 + $0x144] sm:$0xf]  ;;  %v7969_v14 = vld [vmem:[%s12025_s3 + $0xb4] sm:$0xf]  ;;  %v7018_v48 = vor.u32 %v7953_v10, %v7015_v13 }
 0x215   :  { %v3761_v12 = vadd.f32 %v3760_v0, %v3748_v27  ;;  %v8092_v27 = vld [vmem:[%s12024_s2] sm:$0xf]  ;;  %v7079_v15 = vld [vmem:[%s12025_s3 + $0xb8] sm:$0xf0]  ;;  %v7205_v13 = vld [vmem:[%s12025_s3 + $0x1b0] sm:$0xf] }
 0x216   :  { %v7082_v51 = vor.u32 %v7969_v14, %v7079_v15  ;;  %v8002_v14 = vld [vmem:[%s12025_s3 + $0x1b4] sm:$0xf0] }
 0x217   :  { %4385 = vmatpush.bf16.msra.mxu0 %v7030_v31  ;;  %4398 = vmatpush.bf16.msra.mxu1 %v7094_v32  ;;  %v3774_v59 = vadd.f32 %v3773_v5, %v3761_v12  ;;  %v6990_v32 = vor.u32 %v7948_v20, %v6989_v24  ;;  %v7971_v5 = vld [vmem:[%s12025_s3 + $0xc4] sm:$0xf]  ;;  %v7206_v15 = vor.u32 %v8002_v14, %v7205_v13 }
 0x218   :  { %4411 = vmatpush.bf16.msra.mxu2 %v7158_v49  ;;  %v7993_v49 = vld [vmem:[%s12025_s3 + $0x174] sm:$0xf]  ;;  %v7090_v9 = vor.u32 %v7971_v5, %v7087_v6  ;;  %v7229_v5 = vld [vmem:[%s12025_s3 + $0x1e0] sm:$0xf] }
 0x219   :  { %v3987_v37 = vmax.f32 %v3774_v59, 0.0  ;;  %v7178_v41 = vor.u32 %v7993_v49, %v7175_v8  ;;  %v7951_v59 = vld [vmem:[%s12025_s3 + $0x24] sm:$0xf] }
 0x21a   :  { %v7010_v49 = vor.u32 %v7951_v59, %v7007_v23  ;;  %v7996_v23 = vld [vmem:[%s12025_s3 + $0x184] sm:$0xf0] }
 0x21b   :  { %4386 = vmatpush.bf16.msra.mxu0 %v7022_v40  ;;  %4399 = vmatpush.bf16.msra.mxu1 %v7086_v42  ;;  %v7959_v40 = vld [vmem:[%s12025_s3 + $0x64] sm:$0xf]  ;;  %v7039_v42 = vld [vmem:[%s12025_s3 + $0x68] sm:$0xf0]  ;;  %v11539_v46 = vpack.c.bf16 %v3987_v37, %v3987_v37  ;;  %v6999_v37 = vld [vmem:[%s12025_s3 + $0x18] sm:$0xf0] }
 0x21c   :  { %4412 = vmatpush.bf16.msra.mxu2 %v7150_v17  ;;  %v3762_v47 = vpop.f32.mrf.mxu2  ;;  %v3775_v31 = vpop.f32.mrf.mxu3  ;;  %v7991_v17 = vld [vmem:[%s12025_s3 + $0x164] sm:$0xf]  ;;  %v7042_v50 = vor.u32 %v7959_v40, %v7039_v42  ;;  %v7127_v42 = vld [vmem:[%s12025_s3 + $0x118] sm:$0xf0]  ;;  %v7002_v52 = vor.u32 %v7949_v33, %v6999_v37  ;;  %v8005_v33 = vld [vmem:[%s12025_s3 + $0x1d4] sm:$0xf] }
 0x21d   :  { %v7170_v56 = vor.u32 %v7991_v17, %v7167_v43  ;;  %v7071_v47 = vld [vmem:[%s12025_s3 + $0xa8] sm:$0xf0]  ;;  %v7947_v17 = vld [vmem:[%s12025_s3 + $0x4] sm:$0xf] }
 0x21e   :  { %v7074_v8 = vor.u32 %v7967_v54, %v7071_v47  ;;  %v8009_v47 = vld [vmem:[%s12025_s3 + $0x1f4] sm:$0xf] }
 0x21f   :  { %4387 = vmatpush.bf16.msra.mxu0 %v7014_v58  ;;  %4400 = vmatpush.bf16.msra.mxu1 %v7078_v60  ;;  %v7031_v58 = vld [vmem:[%s12025_s3 + $0x58] sm:$0xf0]  ;;  %v7973_v60 = vld [vmem:[%s12025_s3 + $0xd4] sm:$0xf] }
 0x220   :  { %4413 = vmatpush.bf16.msra.mxu2 %v7142_v61  ;;  %v7095_v61 = vld [vmem:[%s12025_s3 + $0xd8] sm:$0xf0]  ;;  %v7034_v63 = vor.u32 %v7957_v55, %v7031_v58  ;;  %v7055_v55 = vld [vmem:[%s12025_s3 + $0x88] sm:$0xf0]  ;;  %v7979_v58 = vld [vmem:[%s12025_s3 + $0x104] sm:$0xf] }
 0x221   :  { %v7098_v0 = vor.u32 %v7973_v60, %v7095_v61  ;;  %v7119_v60 = vld [vmem:[%s12025_s3 + $0x108] sm:$0xf0] }
 0x223   :  { %4388 = vmatpush.bf16.msra.mxu0 %v7006_v45  ;;  %4401 = vmatpush.bf16.msra.mxu1 %v7070_v28  ;;  %v552_v45 = vperm.slane %v8092_v27, 3  ;;  %v7151_v28 = vld [vmem:[%s12025_s3 + $0x148] sm:$0xf0]  ;;  %v7221_v27 = vld [vmem:[%s12025_s3 + $0x1d0] sm:$0xf] }
 0x224   :  { %4414 = vmatpush.bf16.msra.mxu2 %v7134_v29  ;;  %v7026_v29 = vor.u32 %v7955_v1, %v7023_v2  ;;  %v7154_v12 = vor.u32 %v7987_v7, %v7151_v28  ;;  %v8010_v1 = vld [vmem:[%s12025_s3 + $0x1f4] sm:$0xf0] }
 0x227   :  { %4389 = vmatpush.bf16.msra.mxu0 %v6998_v16  ;;  %4402 = vmatpush.bf16.msra.mxu1 %v7062_v18  ;;  %v7985_v18 = vld [vmem:[%s12025_s3 + $0x134] sm:$0xf] }
 0x228   :  { %4415 = vmatpush.bf16.msra.mxu2 %v7126_v19  ;;  %v7143_v19 = vld [vmem:[%s12025_s3 + $0x138] sm:$0xf0] }
 0x229   :  { %v7146_v22 = vor.u32 %v7985_v18, %v7143_v19  ;;  %v8000_v18 = vld [vmem:[%s12025_s3 + $0x1a4] sm:$0xf0] }
 0x22b   :  { %4390 = vmatpush.bf16.msra.mxu0 %v6990_v32  ;;  %4403 = vmatpush.bf16.msra.mxu1 %v7054_v3  ;;  %v3786_v34 = vpop.f32.mrf.mxu0  ;;  %v3799_v24 = vpop.f32.mrf.mxu1 }
 0x22c   :  { %4416 = vmatpush.bf16.msra.mxu2 %v7118_v36  ;;  %v3787_v16 = vadd.f32 %v3786_v34, %v552_v45  ;;  %v7138_v36 = vor.u32 %v7983_v26, %v7135_v30  ;;  %v8006_v45 = vld [vmem:[%s12025_s3 + $0x1d4] sm:$0xf0] }
 0x22d   :  { %v7222_v28 = vor.u32 %v8006_v45, %v7221_v27 }
 0x22e   :  { %4391 = vmatmul.bf16.vlgmr.msra.gmra.mxu0 %v11535_v44  ;;  %4404 = vmatmul.bf16.vlgmr.msra.gmra.mxu1 %v11537_v11  ;;  %v3800_v20 = vadd.f32 %v3799_v24, %v3787_v16  ;;  %v7197_v24 = vld [vmem:[%s12025_s3 + $0x1a0] sm:$0xf] }
 0x22f   :  { %4435 = vmatpush.bf16.msrb.mxu0 %v7050_v38  ;;  %4448 = vmatpush.bf16.msrb.mxu1 %v7114_v39  ;;  %v7965_v38 = vld [vmem:[%s12025_s3 + $0x94] sm:$0xf]  ;;  %v7063_v39 = vld [vmem:[%s12025_s3 + $0x98] sm:$0xf0] }
 0x230   :  { %4461 = vmatpush.bf16.msrb.mxu2 %v7178_v41  ;;  %v7981_v41 = vld [vmem:[%s12025_s3 + $0x114] sm:$0xf]  ;;  %v7066_v57 = vor.u32 %v7965_v38, %v7063_v39 }
 0x231   :  { %4417 = vmatmul.bf16.vlgmr.msra.gmra.mxu2 %v11539_v46  ;;  %v7130_v43 = vor.u32 %v7981_v41, %v7127_v42  ;;  %v8003_v42 = vld [vmem:[%s12025_s3 + $0x1c4] sm:$0xf] }
 0x233   :  { %4436 = vmatpush.bf16.msrb.mxu0 %v7042_v50  ;;  %4449 = vmatpush.bf16.msrb.mxu1 %v7106_v53  ;;  %v3788_v3 = vpop.f32.mrf.mxu0  ;;  %v3801_v40 = vpop.f32.mrf.mxu1  ;;  %v6991_v50 = vld [vmem:[%s12025_s3 + $0x8] sm:$0xf0]  ;;  %v7963_v53 = vld [vmem:[%s12025_s3 + $0x84] sm:$0xf] }
 0x234   :  { %4462 = vmatpush.bf16.msrb.mxu2 %v7170_v56  ;;  %v3812_v25 = vpop.f32.mrf.mxu2  ;;  %v3825_v32 = vpop.f32.mrf.mxu3  ;;  %v6994_v21 = vor.u32 %v7947_v17, %v6991_v50  ;;  %v7058_v62 = vor.u32 %v7963_v53, %v7055_v55  ;;  %v7223_v3 = vld [vmem:[%s12025_s3 + $0x1d8] sm:$0xf0]  ;;  %v7999_v55 = vld [vmem:[%s12025_s3 + $0x1a4] sm:$0xf] }
 0x235   :  { %v3813_v31 = vadd.f32 %v3812_v25, %v3800_v20  ;;  %v7198_v20 = vor.u32 %v8000_v18, %v7197_v24  ;;  %v7239_v25 = vld [vmem:[%s12025_s3 + $0x1f8] sm:$0xf0]  ;;  %v7226_v37 = vor.u32 %v8005_v33, %v7223_v3  ;;  %v11763_v24 = vld [vmem:[%s12026_s4] sm:$0x3]  ;;  %v8023_v3 = vld [vmem:[%s12027_s5 + $0x64] sm:$0xf] }
 0x236   :  { %v7242_v26 = vor.u32 %v8009_v47, %v7239_v25  ;;  %v4059_v18 = vperm.slane %v11763_v24, 0  ;;  %v7301_v47 = vld [vmem:[%s12027_s5 + $0x70] sm:$0xf]  ;;  %v8026_v25 = vld [vmem:[%s12027_s5 + $0x74] sm:$0xf0] }
 0x237   :  { %4437 = vmatpush.bf16.msrb.mxu0 %v7034_v63  ;;  %4450 = vmatpush.bf16.msrb.mxu1 %v7098_v0  ;;  %v11622_v35 = vadd.f32 %v3825_v32, %v3813_v31  ;;  %v7122_v63 = vor.u32 %v7979_v58, %v7119_v60  ;;  %v7237_v0 = vld [vmem:[%s12025_s3 + $0x1f0] sm:$0xf]  ;;  %v8007_v32 = vld [vmem:[%s12025_s3 + $0x1e4] sm:$0xf] }
 0x238   :  { %4463 = vmatpush.bf16.msrb.mxu2 %v7162_v4  ;;  %v7238_v2 = vor.u32 %v8010_v1, %v7237_v0 }
 0x23a   :  { %4422 = vmatpush.bf16.msra.mxu3 %v7238_v2  ;;  %v7995_v2 = vld [vmem:[%s12025_s3 + $0x184] sm:$0xf] }
 0x23b   :  { %4438 = vmatpush.bf16.msrb.mxu0 %v7026_v29  ;;  %4451 = vmatpush.bf16.msrb.mxu1 %v7090_v9  ;;  %v7213_v29 = vld [vmem:[%s12025_s3 + $0x1c0] sm:$0xf]  ;;  %v8004_v9 = vld [vmem:[%s12025_s3 + $0x1c4] sm:$0xf0] }
 0x23c   :  { %4464 = vmatpush.bf16.msrb.mxu2 %v7154_v12  ;;  %v3814_v56 = vpop.f32.mrf.mxu2  ;;  %v3827_v61 = vpop.f32.mrf.mxu3  ;;  %v7214_v34 = vor.u32 %v8004_v9, %v7213_v29 }
 0x23d   :  { %v7199_v56 = vld [vmem:[%s12025_s3 + $0x1a8] sm:$0xf0] }
 0x23e   :  { %v7202_v61 = vor.u32 %v7999_v55, %v7199_v56  ;;  %v7277_v55 = vld [vmem:[%s12027_s5 + $0x40] sm:$0xf]  ;;  %v8020_v56 = vld [vmem:[%s12027_s5 + $0x44] sm:$0xf0] }
 0x23f   :  { %4439 = vmatpush.bf16.msrb.mxu0 %v7018_v48  ;;  %4452 = vmatpush.bf16.msrb.mxu1 %v7082_v51  ;;  %v7189_v48 = vld [vmem:[%s12025_s3 + $0x190] sm:$0xf]  ;;  %v7998_v51 = vld [vmem:[%s12025_s3 + $0x194] sm:$0xf0] }
 0x240   :  { %4465 = vmatpush.bf16.msrb.mxu2 %v7146_v22  ;;  %v7190_v59 = vor.u32 %v7998_v51, %v7189_v48  ;;  %v7181_v22 = vld [vmem:[%s12025_s3 + $0x180] sm:$0xf] }
 0x241   :  { %v7182_v54 = vor.u32 %v7996_v23, %v7181_v22 }
 0x243   :  { %4440 = vmatpush.bf16.msrb.mxu0 %v7010_v49  ;;  %4453 = vmatpush.bf16.msrb.mxu1 %v7074_v8  ;;  %v7231_v49 = vld [vmem:[%s12025_s3 + $0x1e8] sm:$0xf0] }
 0x244   :  { %4466 = vmatpush.bf16.msrb.mxu2 %v7138_v36  ;;  %v7234_v8 = vor.u32 %v8007_v32, %v7231_v49  ;;  %v7293_v32 = vld [vmem:[%s12027_s5 + $0x60] sm:$0xf]  ;;  %v8024_v49 = vld [vmem:[%s12027_s5 + $0x64] sm:$0xf0] }
 0x247   :  { %4441 = vmatpush.bf16.msrb.mxu0 %v7002_v52  ;;  %4454 = vmatpush.bf16.msrb.mxu1 %v7066_v57  ;;  %v7215_v52 = vld [vmem:[%s12025_s3 + $0x1c8] sm:$0xf0] }
 0x248   :  { %4467 = vmatpush.bf16.msrb.mxu2 %v7130_v43  ;;  %v7218_v17 = vor.u32 %v8003_v42, %v7215_v52  ;;  %v7207_v43 = vld [vmem:[%s12025_s3 + $0x1b8] sm:$0xf0]  ;;  %v7365_v52 = vld [vmem:[%s12027_s5 + $0xf0] sm:$0xf] }
 0x249   :  { %v7287_v42 = vld [vmem:[%s12027_s5 + $0x58] sm:$0xf0] }
 0x24b   :  { %4442 = vmatpush.bf16.msrb.mxu0 %v6994_v21  ;;  %4455 = vmatpush.bf16.msrb.mxu1 %v7058_v62  ;;  %v3838_v4 = vpop.f32.mrf.mxu0  ;;  %v7997_v21 = vld [vmem:[%s12025_s3 + $0x194] sm:$0xf]  ;;  %v7191_v62 = vld [vmem:[%s12025_s3 + $0x198] sm:$0xf0] }
 0x24c   :  { %4468 = vmatpush.bf16.msrb.mxu2 %v7122_v63  ;;  %v3839_v36 = vadd.f32 %v3838_v4, %v11622_v35  ;;  %v8001_v35 = vld [vmem:[%s12025_s3 + $0x1b4] sm:$0xf]  ;;  %v7194_v1 = vor.u32 %v7997_v21, %v7191_v62  ;;  %v7183_v4 = vld [vmem:[%s12025_s3 + $0x188] sm:$0xf0]  ;;  %v8040_v62 = vld [vmem:[%s12027_s5 + $0xe4] sm:$0xf0] }
 0x24d   :  { %v7210_v53 = vor.u32 %v8001_v35, %v7207_v43  ;;  %v8041_v43 = vld [vmem:[%s12027_s5 + $0xf4] sm:$0xf]  ;;  %v7279_v21 = vld [vmem:[%s12027_s5 + $0x48] sm:$0xf0] }
 0x24e   :  { %4443 = vmatmul.bf16.vlgmr.msrb.gmra.mxu0 %v11535_v44  ;;  %4456 = vmatmul.bf16.vlgmr.msrb.gmra.mxu1 %v11537_v11  ;;  %v8008_v44 = vld [vmem:[%s12025_s3 + $0x1e4] sm:$0xf0]  ;;  %v3851_v11 = vpop.f32.mrf.mxu1 }
 0x24f   :  { %4469 = vmatmul.bf16.vlgmr.msrb.gmra.mxu2 %v11539_v46  ;;  %v7230_v46 = vor.u32 %v8008_v44, %v7229_v5  ;;  %v3852_v57 = vadd.f32 %v3851_v11, %v3839_v36  ;;  %v7186_v44 = vor.u32 %v7995_v2, %v7183_v4  ;;  %v7295_v36 = vld [vmem:[%s12027_s5 + $0x68] sm:$0xf0]  ;;  %v7278_v2 = vor.u32 %v8020_v56, %v7277_v55  ;;  %v7335_v55 = vld [vmem:[%s12027_s5 + $0xb8] sm:$0xf0] }
 0x251   :  { %4423 = vmatpush.bf16.msra.mxu3 %v7230_v46 }
 0x253   :  { %v3840_v10 = vpop.f32.mrf.mxu0 }
 0x254   :  { %v3864_v6 = vpop.f32.mrf.mxu2  ;;  %v11678_v7 = vpop.f32.mrf.mxu3 }
 0x255   :  { %4424 = vmatpush.bf16.msra.mxu3 %v7222_v28  ;;  %v3865_v50 = vadd.f32 %v3864_v6, %v3852_v57  ;;  %v8042_v57 = vld [vmem:[%s12027_s5 + $0xf4] sm:$0xf0] }
 0x256   :  { %v3853_v12 = vpop.f32.mrf.mxu1  ;;  %v7366_v35 = vor.u32 %v8042_v57, %v7365_v52  ;;  %v8035_v52 = vld [vmem:[%s12027_s5 + $0xc4] sm:$0xf]  ;;  %v7343_v57 = vld [vmem:[%s12027_s5 + $0xc8] sm:$0xf0] }
 0x257   :  { %v3878_v63 = vadd.f32 %v11678_v7, %v3865_v50  ;;  %v7367_v50 = vld [vmem:[%s12027_s5 + $0xf8] sm:$0xf0] }
 0x258   :  { %4702 = vmatpush.bf16.msra.mxu1 %v7366_v35  ;;  %v7333_v35 = vld [vmem:[%s12027_s5 + $0xb0] sm:$0xf] }
 0x259   :  { %4425 = vmatpush.bf16.msra.mxu3 %v7214_v34 }
 0x25c   :  { %v3866_v16 = vpop.f32.mrf.mxu2  ;;  %v3879_v19 = vpop.f32.mrf.mxu3 }
 0x25d   :  { %4426 = vmatpush.bf16.msra.mxu3 %v7206_v15 }
 0x261   :  { %4427 = vmatpush.bf16.msra.mxu3 %v7198_v20 }
 0x265   :  { %4428 = vmatpush.bf16.msra.mxu3 %v7190_v59 }
 0x269   :  { %4429 = vmatpush.bf16.msra.mxu3 %v7182_v54 }
 0x26b   :  { %v3890_v30 = vpop.f32.mrf.mxu0  ;;  %v3903_v31 = vpop.f32.mrf.mxu1 }
 0x26c   :  { %v3891_v0 = vadd.f32 %v3890_v30, %v3878_v63  ;;  %v7302_v30 = vor.u32 %v8026_v25, %v7301_v47  ;;  %v8038_v47 = vld [vmem:[%s12027_s5 + $0xd4] sm:$0xf0]  ;;  %v8013_v25 = vld [vmem:[%s12027_s5 + $0x14] sm:$0xf] }
 0x26d   :  { %4474 = vmatpush.bf16.msrb.mxu3 %v7242_v26  ;;  %v8025_v26 = vld [vmem:[%s12027_s5 + $0x74] sm:$0xf] }
 0x26e   :  { %v3904_v5 = vadd.f32 %v3903_v31, %v3891_v0  ;;  %v7303_v31 = vld [vmem:[%s12027_s5 + $0x78] sm:$0xf0]  ;;  %4689 = vmatpush.bf16.msra.mxu0 %v7302_v30  ;;  %v8039_v0 = vld [vmem:[%s12027_s5 + $0xe4] sm:$0xf] }
 0x26f   :  { %v7306_v33 = vor.u32 %v8025_v26, %v7303_v31  ;;  %v7255_v26 = vld [vmem:[%s12027_s5 + $0x18] sm:$0xf0] }
 0x270   :  { %v7258_v31 = vor.u32 %v8013_v25, %v7255_v26  ;;  %v8044_v25 = vld [vmem:[%s12029_s7 + $0x8] sm:$0xff]  ;;  %v8053_v26 = vld [vmem:[%s12029_s7 + $0x50] sm:$0xff] }
 0x271   :  { %4475 = vmatpush.bf16.msrb.mxu3 %v7234_v8  ;;  %4715 = vmatpush.bf16.msra.mxu2 %v7306_v33  ;;  %v7245_v33 = vld [vmem:[%s12027_s5] sm:$0xf] }
 0x273   :  { %v3892_v40 = vpop.f32.mrf.mxu0  ;;  %v3905_v41 = vpop.f32.mrf.mxu1 }
 0x274   :  { %v3916_v38 = vpop.f32.mrf.mxu2  ;;  %v3929_v39 = vpop.f32.mrf.mxu3  ;;  %v8022_v40 = vld [vmem:[%s12027_s5 + $0x54] sm:$0xf0]  ;;  %v8021_v41 = vld [vmem:[%s12027_s5 + $0x54] sm:$0xf] }
 0x275   :  { %4476 = vmatpush.bf16.msrb.mxu3 %v7226_v37  ;;  %v3917_v11 = vadd.f32 %v3916_v38, %v3904_v5  ;;  %v7294_v37 = vor.u32 %v8024_v49, %v7293_v32  ;;  %v7298_v38 = vor.u32 %v8023_v3, %v7295_v36  ;;  %v8037_v32 = vld [vmem:[%s12027_s5 + $0xd4] sm:$0xf]  ;;  %v7351_v49 = vld [vmem:[%s12027_s5 + $0xd8] sm:$0xf0]  ;;  %v8012_v3 = vld [vmem:[%s12027_s5 + $0x4] sm:$0xf0] }
 0x276   :  { %v7341_v36 = vld [vmem:[%s12027_s5 + $0xc0] sm:$0xf] }
 0x277   :  { %v3930_v46 = vadd.f32 %v3929_v39, %v3917_v11  ;;  %v7285_v39 = vld [vmem:[%s12027_s5 + $0x50] sm:$0xf]  ;;  %4690 = vmatpush.bf16.msra.mxu0 %v7294_v37  ;;  %4716 = vmatpush.bf16.msra.mxu2 %v7298_v38  ;;  %v8018_v11 = vld [vmem:[%s12027_s5 + $0x34] sm:$0xf0]  ;;  %v7246_v37 = vor.u32 %v8012_v3, %v7245_v33  ;;  %v8036_v38 = vld [vmem:[%s12027_s5 + $0xc4] sm:$0xf0] }
 0x278   :  { %v4523_v33 = vld [vmem:[%s12028_s6] sm:$0x3] }
 0x279   :  { %4477 = vmatpush.bf16.msrb.mxu3 %v7218_v17  ;;  %v7286_v17 = vor.u32 %v8022_v40, %v7285_v39  ;;  %v8011_v39 = vld [vmem:[%s12027_s5 + $0x4] sm:$0xf]  ;;  %v7247_v40 = vld [vmem:[%s12027_s5 + $0x8] sm:$0xf0] }
 0x27b   :  { %4691 = vmatpush.bf16.msra.mxu0 %v7286_v17  ;;  %v7346_v17 = vor.u32 %v8035_v52, %v7343_v57 }
 0x27c   :  { %v3918_v58 = vpop.f32.mrf.mxu2  ;;  %v3931_v60 = vpop.f32.mrf.mxu3 }
 0x27d   :  { %4478 = vmatpush.bf16.msrb.mxu3 %v7210_v53  ;;  %v7290_v53 = vor.u32 %v8021_v41, %v7287_v42  ;;  %v7370_v58 = vor.u32 %v8041_v43, %v7367_v50  ;;  %v7357_v60 = vld [vmem:[%s12027_s5 + $0xe0] sm:$0xf]  ;;  %v7342_v41 = vor.u32 %v8036_v38, %v7341_v36  ;;  %v7250_v42 = vor.u32 %v8011_v39, %v7247_v40  ;;  %v8034_v43 = vld [vmem:[%s12027_s5 + $0xb4] sm:$0xf0]  ;;  %v8033_v50 = vld [vmem:[%s12027_s5 + $0xb4] sm:$0xf] }
 0x27e   :  { %v7358_v63 = vor.u32 %v8040_v62, %v7357_v60  ;;  %v7338_v56 = vor.u32 %v8033_v50, %v7335_v55  ;;  %v8032_v60 = vld [vmem:[%s12027_s5 + $0xa4] sm:$0xf0]  ;;  %v4525_v36 = vperm.slane %v4523_v33, 0  ;;  %v4526_v40 = vperm.slane %v4523_v33, 1 }
 0x27f   :  { %4717 = vmatpush.bf16.msra.mxu2 %v7290_v53  ;;  %4692 = vmatpush.bf16.msra.mxu0 %v7278_v2  ;;  %v7334_v53 = vor.u32 %v8034_v43, %v7333_v35  ;;  %v8029_v2 = vld [vmem:[%s12027_s5 + $0x94] sm:$0xf] }
 0x280   :  { %4703 = vmatpush.bf16.msra.mxu1 %v7358_v63 }
 0x281   :  { %4479 = vmatpush.bf16.msrb.mxu3 %v7202_v61  ;;  %v8019_v61 = vld [vmem:[%s12027_s5 + $0x44] sm:$0xf] }
 0x282   :  { %v7282_v5 = vor.u32 %v8019_v61, %v7279_v21  ;;  %v8031_v61 = vld [vmem:[%s12027_s5 + $0xa4] sm:$0xf]  ;;  %v7327_v21 = vld [vmem:[%s12027_s5 + $0xa8] sm:$0xf0] }
 0x283   :  { %v7330_v63 = vor.u32 %v8031_v61, %v7327_v21 }
 0x284   :  { %4718 = vmatpush.bf16.msra.mxu2 %v7282_v5  ;;  %v7319_v5 = vld [vmem:[%s12027_s5 + $0x98] sm:$0xf0] }
 0x285   :  { %4480 = vmatpush.bf16.msrb.mxu3 %v7194_v1  ;;  %v7359_v1 = vld [vmem:[%s12027_s5 + $0xe8] sm:$0xf0] }
 0x286   :  { %v7362_v4 = vor.u32 %v8039_v0, %v7359_v1  ;;  %v7317_v0 = vld [vmem:[%s12027_s5 + $0x90] sm:$0xf]  ;;  %v8030_v1 = vld [vmem:[%s12027_s5 + $0x94] sm:$0xf0] }
 0x289   :  { %4481 = vmatpush.bf16.msrb.mxu3 %v7186_v44  ;;  %v7269_v44 = vld [vmem:[%s12027_s5 + $0x30] sm:$0xf] }
 0x28b   :  { %v3942_v6 = vpop.f32.mrf.mxu0  ;;  %v3955_v27 = vpop.f32.mrf.mxu1 }
 0x28c   :  { %v3943_v45 = vadd.f32 %v3942_v6, %v3930_v46  ;;  %v8017_v46 = vld [vmem:[%s12027_s5 + $0x34] sm:$0xf]  ;;  %v7271_v6 = vld [vmem:[%s12027_s5 + $0x38] sm:$0xf0] }
 0x28e   :  { %v3956_v7 = vadd.f32 %v3955_v27, %v3943_v45  ;;  %v4060_v27 = vperm.slane %v11763_v24, 1  ;;  %v7270_v45 = vor.u32 %v8018_v11, %v7269_v44  ;;  %v7322_v44 = vor.u32 %v8029_v2, %v7319_v5  ;;  %v7309_v11 = vld [vmem:[%s12027_s5 + $0x80] sm:$0xf] }
 0x28f   :  { %v8120_v2 = vmov 6.0  }
 0x290   :  { %4693 = vmatpush.bf16.msra.mxu0 %v7270_v45  ;;  %v7311_v45 = vld [vmem:[%s12027_s5 + $0x88] sm:$0xf0]  ;;  %8064 = vrcp.f32 %v8120_v2 }
 0x293   :  { %v3981_v29 = vpop.f32.mrf.mxu3  ;;  %v3944_v10 = vpop.f32.mrf.mxu0 }
 0x294   :  { %v3968_v28 = vpop.f32.mrf.mxu2  ;;  %v3957_v34 = vpop.f32.mrf.mxu1 }
 0x295   :  { %v3969_v9 = vadd.f32 %v3968_v28, %v3956_v7  ;;  %v7274_v7 = vor.u32 %v8017_v46, %v7271_v6  ;;  %v7261_v28 = vld [vmem:[%s12027_s5 + $0x20] sm:$0xf]  ;;  %v8015_v34 = vld [vmem:[%s12027_s5 + $0x24] sm:$0xf]  ;;  %v8028_v46 = vld [vmem:[%s12027_s5 + $0x84] sm:$0xf0] }
 0x296   :  { %v8027_v6 = vld [vmem:[%s12027_s5 + $0x84] sm:$0xf] }
 0x297   :  { %v3982_v12 = vadd.f32 %v3981_v29, %v3969_v9  ;;  %v8016_v29 = vld [vmem:[%s12027_s5 + $0x24] sm:$0xf0]  ;;  %4719 = vmatpush.bf16.msra.mxu2 %v7274_v7  ;;  %v7314_v7 = vor.u32 %v8027_v6, %v7311_v45 }
 0x299   :  { %v3988_v13 = vmax.f32 %v3982_v12, 0.0  ;;  %v7263_v12 = vld [vmem:[%s12027_s5 + $0x28] sm:$0xf0] }
 0x29b   :  { %v3992_v14 = vpack.c.bf16 %v3988_v13, %v3988_v13  ;;  %v3983_v16 = vpop.f32.mrf.mxu3 }
 0x29c   :  { %v3970_v15 = vpop.f32.mrf.mxu2  ;;  %v7266_v16 = vor.u32 %v8015_v34, %v7263_v12 }
 0x29d   :  { %4430 = vmatmul.bf16.vlgmr.msra.gmra.mxu3 %v3992_v14 }
 0x29e   :  { %4728 = vmatpush.bf16.msra.mxu3 %v7370_v58  ;;  %4720 = vmatpush.bf16.msra.mxu2 %v7266_v16  ;;  %v7325_v58 = vld [vmem:[%s12027_s5 + $0xa0] sm:$0xf] }
 0x29f   :  { %v7326_v62 = vor.u32 %v8032_v60, %v7325_v58  ;;  %v8063_v60 = vld [vmem:[%s12030_s8] ss:$0 sm:$0xff]  ;;  %s8121_s8 = smov [#allocation2]  }
 0x2a0   :  { %s4928_s4 = sshll.u32 %s8121_s8, 4  ;;  %s4929_s4 = int_to_ptr.vmem [resolvable:$true] %s4928_s4 }
 0x2a2   :  { %4729 = vmatpush.bf16.msra.mxu3 %v7362_v4  ;;  %4721 = vmatpush.bf16.msra.mxu2 %v7258_v31  ;;  %v7318_v4 = vor.u32 %v8030_v1, %v7317_v0  ;;  %v8052_v31 = vld [vmem:[%s12029_s7 + $0x48] sm:$0xff] }
 0x2a6   :  { %4722 = vmatpush.bf16.msra.mxu2 %v7250_v42 }
 0x2ab   :  { %v4392_v19 = vpop.f32.mrf.mxu0  ;;  %v4405_v48 = vpop.f32.mrf.mxu1 }
 0x2ac   :  { %v4393_v20 = vadd.f32 %v4392_v19, %v4059_v18 }
 0x2ad   :  { %4482 = vmatmul.bf16.vlgmr.msrb.gmra.mxu3 %v3992_v14  ;;  %v7262_v14 = vor.u32 %v8016_v29, %v7261_v28  ;;  %v8050_v28 = vld [vmem:[%s12029_s7 + $0x38] sm:$0xff] }
 0x2ae   :  { %v4406_v51 = vadd.f32 %v4405_v48, %v4393_v20  ;;  %v8058_v29 = vld [vmem:[%s12029_s7 + $0x78] sm:$0xff] }
 0x2af   :  { %4694 = vmatpush.bf16.msra.mxu0 %v7262_v14 }
 0x2b3   :  { %v4394_v23 = vpop.f32.mrf.mxu0  ;;  %v4407_v54 = vpop.f32.mrf.mxu1 }
 0x2b4   :  { %v4418_v59 = vpop.f32.mrf.mxu2  ;;  %v7349_v23 = vld [vmem:[%s12027_s5 + $0xd0] sm:$0xf] }
 0x2b5   :  { %v11766_v22 = vadd.f32 %v4418_v59, %v4406_v51  ;;  %v7253_v51 = vld [vmem:[%s12027_s5 + $0x10] sm:$0xf]  ;;  %v8014_v59 = vld [vmem:[%s12027_s5 + $0x14] sm:$0xf0]  ;;  %v7350_v30 = vor.u32 %v8038_v47, %v7349_v23  ;;  %v8055_v23 = vld [vmem:[%s12029_s7 + $0x60] sm:$0xff] }
 0x2b6   :  { %v7254_v54 = vor.u32 %v8014_v59, %v7253_v51  ;;  %v8047_v51 = vld [vmem:[%s12029_s7 + $0x20] sm:$0xff]  ;;  %v8046_v59 = vld [vmem:[%s12029_s7 + $0x18] sm:$0xff] }
 0x2b7   :  { %4704 = vmatpush.bf16.msra.mxu1 %v7350_v30  ;;  %v8054_v47 = vld [vmem:[%s12029_s7 + $0x58] sm:$0xff]  ;;  %v8043_v30 = vld [vmem:[%s12029_s7] sm:$0xff] }
 0x2b8   :  { %4695 = vmatpush.bf16.msra.mxu0 %v7254_v54  ;;  %v8045_v54 = vld [vmem:[%s12029_s7 + $0x10] sm:$0xff] }
 0x2bb   :  { %4705 = vmatpush.bf16.msra.mxu1 %v7342_v41 }
 0x2bc   :  { %v4420_v8 = vpop.f32.mrf.mxu2  ;;  %4696 = vmatpush.bf16.msra.mxu0 %v7246_v37 }
 0x2bd   :  { %v7354_v8 = vor.u32 %v8037_v32, %v7351_v49  ;;  %v8051_v32 = vld [vmem:[%s12029_s7 + $0x40] sm:$0xff] }
 0x2bf   :  { %4730 = vmatpush.bf16.msra.mxu3 %v7354_v8  ;;  %4706 = vmatpush.bf16.msra.mxu1 %v7334_v53 }
 0x2c0   :  { %4877 = vmatpush.bf16.msrb.mxu0 %v8050_v28 }
 0x2c3   :  { %4731 = vmatpush.bf16.msra.mxu3 %v7346_v17  ;;  %4707 = vmatpush.bf16.msra.mxu1 %v7326_v62 }
 0x2c7   :  { %4732 = vmatpush.bf16.msra.mxu3 %v7338_v56  ;;  %4708 = vmatpush.bf16.msra.mxu1 %v7318_v4  ;;  %v8119_v56 = vmov 6   ;;  %v8065_v4 = vpop.eup %8064 }
 0x2c8   :  { %8062 = vset.pattern.permute.xlu0 %v8119_v56  ;;  %v4908_v5 = vmul.f32 6.0, %v8065_v4  ;;  %vm4912_vm1 = vweird.f32 %v8065_v4 }
 0x2cb   :  { %v4444_v9 = vpop.f32.mrf.mxu0  ;;  %v4457_v10 = vpop.f32.mrf.mxu1  ;;  %4733 = vmatpush.bf16.msra.mxu3 %v7330_v63 }
 0x2cc   :  { %v4445_v13 = vadd.f32 %v4444_v9, %v4060_v27  ;;  %v7310_v27 = vor.u32 %v8028_v46, %v7309_v11  ;;  %v8049_v9 = vld [vmem:[%s12029_s7 + $0x30] sm:$0xff] }
 0x2cd   :  { %4878 = vmatpush.bf16.msrb.mxu0 %v8049_v9 }
 0x2ce   :  { %v4458_v15 = vadd.f32 %v4457_v10, %v4445_v13  ;;  %4709 = vmatpush.bf16.msra.mxu1 %v7310_v27 }
 0x2cf   :  { %4734 = vmatpush.bf16.msra.mxu3 %v7322_v44  ;;  %v4909_v44 = vsub.f32 1.0, %v4908_v5 }
 0x2d1   :  { %v4910_v11 = vmul.f32 %v8065_v4, %v4909_v44 }
 0x2d2   :  { %v4470_v24 = vpop.f32.mrf.mxu2  ;;  %4890 = vmatpush.bf16.msrb.mxu1 %v8058_v29 }
 0x2d3   :  { %v11865_v18 = vadd.f32 %v4470_v24, %v4458_v15  ;;  %v4446_v19 = vpop.f32.mrf.mxu0  ;;  %v4459_v20 = vpop.f32.mrf.mxu1  ;;  %4735 = vmatpush.bf16.msra.mxu3 %v7314_v7  ;;  %v4911_v46 = vadd.f32 %v8065_v4, %v4910_v11 }
 0x2d5   :  { %v4913_v6 = vsel %vm4912_vm1, %v8065_v4, %v4911_v46 }
 0x2da   :  { %v4472_v48 = vpop.f32.mrf.mxu2 }
 0x2db   :  { %v8048_v48 = vld [vmem:[%s12029_s7 + $0x28] sm:$0xff] }
 0x2dc   :  { %4879 = vmatpush.bf16.msrb.mxu0 %v8048_v48 }
 0x2e0   :  { %4880 = vmatpush.bf16.msrb.mxu0 %v8047_v51 }
 0x2e4   :  { %4881 = vmatpush.bf16.msrb.mxu0 %v8046_v59 }
 0x2e8   :  { %4882 = vmatpush.bf16.msrb.mxu0 %v8045_v54 }
 0x2ec   :  { %4883 = vmatpush.bf16.msrb.mxu0 %v8044_v25 }
 0x2f0   :  { %4884 = vmatpush.bf16.msrb.mxu0 %v8043_v30 }
 0x320   :  { %v4431_v10 = vpop.f32.mrf.mxu3 }
 0x321   :  { %v4432_v34 = vadd.f32 %v4431_v10, %v11766_v22  ;;  %v8057_v22 = vld [vmem:[%s12029_s7 + $0x70] sm:$0xff] }
 0x322   :  { %4891 = vmatpush.bf16.msrb.mxu1 %v8057_v22 }
 0x323   :  { %v4487_v12 = vmax.f32 %v4432_v34, 0.0 }
 0x325   :  { %v4489_v13 = vpack.c.bf16 %v4487_v12, %v4487_v12 }
 0x327   :  { %4697 = vmatmul.bf16.vlgmr.msra.gmra.mxu0 %v4489_v13  ;;  %4723 = vmatmul.bf16.vlgmr.msra.gmra.mxu2 %v4489_v13 }
 0x328   :  { %v4433_v14 = vpop.f32.mrf.mxu3 }
 0x330   :  { %v4483_v15 = vpop.f32.mrf.mxu3 }
 0x331   :  { %v4484_v16 = vadd.f32 %v4483_v15, %v11865_v18  ;;  %v8056_v18 = vld [vmem:[%s12029_s7 + $0x68] sm:$0xff] }
 0x332   :  { %4892 = vmatpush.bf16.msrb.mxu1 %v8056_v18 }
 0x333   :  { %v4488_v24 = vmax.f32 %v4484_v16, 0.0 }
 0x335   :  { %v4490_v19 = vpack.c.bf16 %v4488_v24, %v4488_v24 }
 0x336   :  { %4893 = vmatpush.bf16.msrb.mxu1 %v8055_v23 }
 0x337   :  { %4710 = vmatmul.bf16.vlgmr.msra.gmra.mxu1 %v4490_v19  ;;  %4736 = vmatmul.bf16.vlgmr.msra.gmra.mxu3 %v4490_v19 }
 0x338   :  { %v4485_v20 = vpop.f32.mrf.mxu3 }
 0x33a   :  { %4894 = vmatpush.bf16.msrb.mxu1 %v8054_v47 }
 0x33e   :  { %4895 = vmatpush.bf16.msrb.mxu1 %v8053_v26 }
 0x342   :  { %4896 = vmatpush.bf16.msrb.mxu1 %v8052_v31 }
 0x346   :  { %4897 = vmatpush.bf16.msrb.mxu1 %v8051_v32 }
 0x3a4   :  { %v4698_v49 = vpop.f32.mrf.mxu0 }
 0x3a5   :  { %v4699_v38 = vadd.f32 %v4698_v49, %v4525_v36 }
 0x3aa   :  { %v4724_v8 = vpop.f32.mrf.mxu2 }
 0x3ab   :  { %v4725_v52 = vadd.f32 %v4724_v8, %v4526_v40 }
 0x3ac   :  { %v4700_v3 = vpop.f32.mrf.mxu0 }
 0x3b2   :  { %v4726_v37 = vpop.f32.mrf.mxu2 }
 0x3b4   :  { %v4711_v39 = vpop.f32.mrf.mxu1 }
 0x3b5   :  { %v4712_v41 = vadd.f32 %v4711_v39, %v4699_v38 }
 0x3b7   :  { %v4741_v42 = vmax.f32 %v4712_v41, 0.0 }
 0x3b9   :  { %v4743_v57 = vpack.c.bf16 %v4741_v42, %v4741_v42 }
 0x3ba   :  { %v4737_v17 = vpop.f32.mrf.mxu3 }
 0x3bb   :  { %v4738_v35 = vadd.f32 %v4737_v17, %v4725_v52  ;;  %4885 = vmatmul.bf16.vlgmr.msrb.gmra.mxu0 %v4743_v57 }
 0x3bc   :  { %v4713_v43 = vpop.f32.mrf.mxu1 }
 0x3bd   :  { %v4742_v50 = vmax.f32 %v4738_v35, 0.0 }
 0x3bf   :  { %v4744_v53 = vpack.c.bf16 %v4742_v50, %v4742_v50 }
 0x3c1   :  { %4898 = vmatmul.bf16.vlgmr.msrb.gmra.mxu1 %v4744_v53 }
 0x3c2   :  { %v4739_v55 = vpop.f32.mrf.mxu3 }
 0x438   :  { %v4886_v58 = vpop.f32.mrf.mxu0 }
 0x439   :  { %v4887_v61 = vadd.f32 %v8063_v60, %v4886_v58 }
 0x43e   :  { %v4899_v21 = vpop.f32.mrf.mxu1 }
 0x43f   :  { %v4900_v62 = vadd.f32 %v4899_v21, %v4887_v61 }
 0x440   :  { %v4888_v63 = vpop.f32.mrf.mxu0 }
 0x441   :  { %v4904_v0 = vsel %vm4903_vm0, %v4900_v62, 0.0 }
 0x442   :  { %4905 = vadd.xlane.f32.xlu0 %v4904_v0 }
 0x446   :  { %v4901_v1 = vpop.f32.mrf.mxu1 }
 0x456   :  { %4918 = vperm.xlu0 %8062, %v4900_v62  }
 0x4b5   :  { %v4906_v27 = vpop.xlane.xlu0 %4905 }
 0x4b6   :  { %v4914_v45 = vmul.f32 %v4913_v6, %v4906_v27 }
 0x4b8   :  { %v4915_v7 = vsub.f32 %v4900_v62, %v4914_v45 }
 0x4c8   :  { %v4919_v28 = vpop.permute.xlu0 %4918 }
 0x4c9   :  { %v4921_v29 = vadd.f32 %v4919_v28, %v4915_v7 }
 0x4cb   :  { %4922 = vst [vmem:[#allocation2] sm:$0x3] %v4921_v29 }
 0x4cc   :  { %4933 = dma.vmem_to_hbm [thread:$0]  %s4929_s4, 32, %s4931_s1, [#allocation3]  }
 0x4cd   :  { %8117 = dma.done.wait [#allocation3], 32  }
 0x4ce   :  { %8118 = vsyncadd [#allocation3], 4294967264 }
 0x4cf   :  { %4938 = vsyncpa [#allocation3], 1 }

</bundles_post_ra>
